<compile_context>
chip_gen: v7x
topology: tpu7x:2x2x1
jax: 0.10.0
libtpu: 0.0.40
codegen_flags: <defaults>
</compile_context>

<pallas_src>
import functools

import numpy as np

import jax
import jax.numpy as jnp
from jax.experimental import pallas as pl
from jax.experimental.pallas import tpu as pltpu

BN_EPS = 1e-5
IN_F = 10
SKIP_PAD = 128            # layer-6 / skip width padded 64 -> 128 (lane dense)
OUT_PAD = 128             # output head padded 12 -> 128 (unmasked vst)
CAT_W = 1024 + SKIP_PAD   # fused layer-2 + skip RHS width (1152 = 9 * 128)


# ---------------------------------------------------------------------------
# Pallas kernel: whole forward pass for one batch tile (TB rows).
# ---------------------------------------------------------------------------
def circlenet_kernel(
    x_ref,
    w1_ref, t1_ref,
    w2c_ref, t2_ref, bsk_ref,
    w3_ref, t3_ref,
    w4_ref, t4_ref,
    w5_ref, t5_ref,
    w6_ref, t6_ref,
    wo_ref, bo_ref,
    o_ref,
):
    f32 = jnp.float32
    bf16 = jnp.bfloat16

    def shift_silu(z_f32, t_ref):
        # BN scale is pre-folded into the weight columns, so the epilogue is
        # shift + SiLU.  It runs in t's dtype (bf16 on v6e/v7x, f32 on v5e).
        # exp lands on the EUP; the reciprocal uses the approx EUP vrcp in f32
        # (safe lowering on all chips); adds/muls stay in the epilogue dtype.
        t = t_ref[...]
        z = z_f32.astype(t.dtype) + t
        e = jnp.exp(-z)
        s = pl.reciprocal(1.0 + e.astype(f32), approx=True)
        return (z * s.astype(t.dtype)).astype(bf16)

    h0 = x_ref[...].astype(bf16)

    z1 = jnp.dot(h0, w1_ref[...], preferred_element_type=f32)
    h1 = shift_silu(z1, t1_ref)                               # (TB, 1024) bf16

    # hidden1 + skip_proj fused: one MXU pass over the shared LHS h1.
    z2c = jnp.dot(h1, w2c_ref[...], preferred_element_type=f32)   # (TB, 1152)
    h2 = shift_silu(z2c[:, :1024], t2_ref)                    # (TB, 1024) bf16
    res1 = (z2c[:, 1024:] + bsk_ref[...]).astype(bf16)        # (TB, 128)  bf16

    h3 = shift_silu(jnp.dot(h2, w3_ref[...], preferred_element_type=f32), t3_ref)
    h4 = shift_silu(jnp.dot(h3, w4_ref[...], preferred_element_type=f32), t4_ref)
    h5 = shift_silu(jnp.dot(h4, w5_ref[...], preferred_element_type=f32), t5_ref)
    h6 = shift_silu(jnp.dot(h5, w6_ref[...], preferred_element_type=f32), t6_ref)
    # h6: (TB, 128) bf16; cols 64: are exactly zero (zero-padded w6/t6).

    h = h6 + res1                                             # bf16 skip add
    out = jnp.dot(h, wo_ref[...], preferred_element_type=f32) + bo_ref[...]
    o_ref[...] = out.astype(o_ref.dtype)                      # (TB, 128) padded


# ---------------------------------------------------------------------------
# Device heuristics.
# ---------------------------------------------------------------------------
def _device_kind():
    return jax.devices()[0].device_kind.lower()


def _is_v7x(kind):
    return ("v7" in kind) or ("7x" in kind)


def _cores_per_chip(kind):
    # v7x: 2 TensorCores/chip; v4/v5p megacore also shard "parallel" grid axes.
    return 2 if (_is_v7x(kind) or "v4" in kind or "v5p" in kind) else 1


def _tile_cap(kind):
    # v6e: 128 MiB VMEM + single TC -> bigger tile amortizes ~0.35us/step.
    # v7x: 64 MiB VMEM and wants >=2 grid steps for megacore -> 256.
    # v5e: keep 256 (MXU slow enough to hide the f32 epilogue; VMEM not binding).
    if "v6" in kind:
        return 512
    return 256


def select_epilogue_dtype(kind=None):
    kind = kind if kind is not None else _device_kind()
    # v6e/v7x have native bf16 VPU/EUP paths; v5e (and older) do not.
    if "v6" in kind or _is_v7x(kind):
        return jnp.bfloat16
    return jnp.float32


@functools.lru_cache(maxsize=1)
def _single_buffer_weights_supported():
    """One-time feature probe: does this jax build accept pl.Buffered(1) as a
    pipeline_mode on an input BlockSpec?  Probed on a tiny dummy kernel so a
    failure here can never mask a genuine lowering error of the real kernel."""
    def _probe(a_ref, w_ref, o_ref):
        o_ref[...] = a_ref[...] + w_ref[...]

    try:
        w_spec = pl.BlockSpec((8, 128), lambda i: (0, 0),
                              pipeline_mode=pl.Buffered(1))
        fn = pl.pallas_call(
            _probe,
            out_shape=jax.ShapeDtypeStruct((8, 128), jnp.float32),
            grid_spec=pltpu.PrefetchScalarGridSpec(
                num_scalar_prefetch=0,
                grid=(1,),
                in_specs=[pl.BlockSpec((8, 128), lambda i: (0, 0)), w_spec],
                out_specs=pl.BlockSpec((8, 128), lambda i: (0, 0)),
            ),
        )
        z = jnp.zeros((8, 128), jnp.float32)
        jax.jit(fn).lower(z, z).compile()
        return True
    except Exception:
        return False


# ---------------------------------------------------------------------------
# Parameter construction (deterministic, PyTorch-style uniform init).
# ---------------------------------------------------------------------------
def _linear_params(key, fan_in, fan_out):
    kw, kb = jax.random.split(key)
    bound = 1.0 / np.sqrt(fan_in)
    w = jax.random.uniform(kw, (fan_in, fan_out), jnp.float32, -bound, bound)
    b = jax.random.uniform(kb, (1, fan_out), jnp.float32, -bound, bound)
    return w, b


def _bn_params(key, c):
    kg, kb, km, kv = jax.random.split(key, 4)
    gamma = 1.0 + 0.1 * jax.random.normal(kg, (1, c), jnp.float32)
    beta = 0.1 * jax.random.normal(kb, (1, c), jnp.float32)
    running_mean = 0.1 * jax.random.normal(km, (1, c), jnp.float32)
    running_var = 1.0 + 0.1 * jax.random.uniform(kv, (1, c), jnp.float32)
    return gamma, beta, running_mean, running_var


def make_params(key):
    dims = [(10, 1024), (1024, 1024), (1024, 512), (512, 256), (256, 128), (128, 64)]
    keys = jax.random.split(key, 14)
    params = {}
    for i, (fi, fo) in enumerate(dims, start=1):
        w, b = _linear_params(keys[2 * i - 2], fi, fo)
        g, bt, m, v = _bn_params(keys[2 * i - 1], fo)
        params[f"w{i}"], params[f"b{i}"] = w, b
        params[f"g{i}"], params[f"beta{i}"] = g, bt
        params[f"m{i}"], params[f"v{i}"] = m, v
    params["wsk"], params["bsk"] = _linear_params(keys[12], 1024, 64)
    params["wo"], params["bo"] = _linear_params(keys[13], 64, 12)
    return params


def prepare_kernel_params(params, epilogue_dtype=None):
    """Fold eval-mode BN into each Linear (W' = W*s, t = (b-mean)*s + beta),
    cast weights to bf16, fuse the skip projection into the layer-2 weight,
    and pad the 64-wide tail / output head to lane-dense 128 columns."""
    ep = epilogue_dtype if epilogue_dtype is not None else select_epilogue_dtype()
    f32, bf16 = jnp.float32, jnp.bfloat16

    folded = {}
    for i in range(1, 7):
        s = params[f"g{i}"] / jnp.sqrt(params[f"v{i}"] + BN_EPS)          # (1, fo)
        t = (params[f"b{i}"] - params[f"m{i}"]) * s + params[f"beta{i}"]  # (1, fo)
        folded[i] = (params[f"w{i}"] * s, t)

    kp = {}
    kp["w1"] = folded[1][0].astype(bf16)
    kp["t1"] = folded[1][1].astype(ep)

    # Layer 2 + skip projection fused: columns [0:1024]=w2*s2, [1024:1088]=wsk,
    # [1088:1152]=0 (padding to a 128-lane multiple).
    wsk_pad = jnp.zeros((1024, SKIP_PAD), f32).at[:, :64].set(params["wsk"])
    kp["w2cat"] = jnp.concatenate([folded[2][0], wsk_pad], axis=1).astype(bf16)
    kp["t2"] = folded[2][1].astype(ep)
    kp["bsk"] = jnp.zeros((1, SKIP_PAD), f32).at[:, :64].set(params["bsk"])

    for i in (3, 4, 5):
        kp[f"w{i}"] = folded[i][0].astype(bf16)
        kp[f"t{i}"] = folded[i][1].astype(ep)

    # Layer 6 padded 64 -> 128 output columns (zero weights/shift -> zero acts).
    w6 = jnp.zeros((128, SKIP_PAD), f32).at[:, :64].set(folded[6][0])
    t6 = jnp.zeros((1, SKIP_PAD), f32).at[:, :64].set(folded[6][1])
    kp["w6"] = w6.astype(bf16)
    kp["t6"] = t6.astype(ep)

    # Output head padded (64, 12) -> (128, 128); padded rows/cols are zero.
    wo = jnp.zeros((SKIP_PAD, OUT_PAD), f32).at[:64, :12].set(params["wo"])
    bo = jnp.zeros((1, OUT_PAD), f32).at[:, :12].set(params["bo"])
    kp["wo"] = wo.astype(bf16)
    kp["bo"] = bo
    return kp


# ---------------------------------------------------------------------------
# pallas_call wrapper: grid over batch tiles, weights fully resident per step.
# ---------------------------------------------------------------------------
def _round_up(n, m):
    return ((n + m - 1) // m) * m


def _cdiv(a, b):
    return -(-a // b)


def _pick_tile_b(B, kind, tile_cap=None):
    """Batch tile: multiple of 16 (bf16 sublane packing), capped per-chip, and
    megacore-aware (>= n_cores grid steps, even step count for small grids)."""
    n_cores = _cores_per_chip(kind)
    cap = _round_up(tile_cap if tile_cap is not None else _tile_cap(kind), 16)
    per_core = _cdiv(B, n_cores)
    tile = max(16, min(cap, _round_up(per_core, 16)))
    grid_n = _cdiv(B, tile)
    if n_cores == 2 and 1 < grid_n <= 8 and grid_n % 2 == 1:
        alt = max(16, _round_up(_cdiv(B, grid_n + 1), 16))
        if _cdiv(B, alt) % 2 == 0:
            tile = alt
    return tile


def circlenet_forward(x, kp, tile_b=None):
    B, F = x.shape
    assert F == IN_F

    kind = _device_kind()
    tile = _pick_tile_b(B, kind, tile_b)
    B_pad = _round_up(B, tile)
    if B_pad != B:
        x = jnp.pad(x, ((0, B_pad - B), (0, 0)))
    grid_n = B_pad // tile

    # v7x has only 64 MiB physical VMEM; raise the limit only for the v6e
    # 512-row tile where double-buffered x/out + intermediates brush 48 MiB.
    vmem_limit = (96 if (tile >= 512 and not _is_v7x(kind)) else 48) * 1024 * 1024

    # Argument order must match circlenet_kernel's signature.
    ordered = [
        kp["w1"], kp["t1"],
        kp["w2cat"], kp["t2"], kp["bsk"],
        kp["w3"], kp["t3"],
        kp["w4"], kp["t4"],
        kp["w5"], kp["t5"],
        kp["w6"], kp["t6"],
        kp["wo"], kp["bo"],
    ]

    rowblk = lambda i: (i, 0)   # x / out: tile along batch
    full = lambda i: (0, 0)     # weights / shifts: whole array, constant block

    single_buf = _single_buffer_weights_supported()

    def wspec(a):
        # Constant index_map -> weight stays resident; one buffer is enough
        # when the build supports it (saves ~3.8 MiB VMEM, relevant on v7x).
        if single_buf:
            return pl.BlockSpec(a.shape, full, pipeline_mode=pl.Buffered(1))
        return pl.BlockSpec(a.shape, full)

    in_specs = [pl.BlockSpec((tile, F), rowblk)] + [wspec(a) for a in ordered]
    out_spec = pl.BlockSpec((tile, OUT_PAD), rowblk)

    # Cost hint: matmul flops + transcendentals + weight/activation bytes.
    flops_per_row = 2 * (10 * 1024 + 1024 * CAT_W + 1024 * 512 + 512 * 256 +
                         256 * 128 + 128 * SKIP_PAD + SKIP_PAD * OUT_PAD)
    trans_per_row = 2 * (1024 + 1024 + 512 + 256 + 128 + SKIP_PAD)  # exp + rcp
    weight_bytes = sum(int(np.prod(a.shape)) * a.dtype.itemsize for a in ordered)
    cost = pl.CostEstimate(
        flops=flops_per_row * B_pad,
        transcendentals=trans_per_row * B_pad,
        bytes_accessed=weight_bytes + B_pad * (F * 4 + OUT_PAD * 4),
    )

    out = pl.pallas_call(
        circlenet_kernel,
        out_shape=jax.ShapeDtypeStruct((B_pad, OUT_PAD), jnp.float32),
        grid_spec=pltpu.PrefetchScalarGridSpec(
            num_scalar_prefetch=0,
            grid=(grid_n,),
            in_specs=in_specs,
            out_specs=out_spec,
        ),
        compiler_params=pltpu.CompilerParams(
            dimension_semantics=("parallel",),
            vmem_limit_bytes=vmem_limit,
        ),
        cost_estimate=cost,
    )(x, *ordered)

    return out[:B, :12]


# ---------------------------------------------------------------------------
# Pure-JAX reference mirroring the kernel's numerics (bf16 matmul inputs, f32
# accumulation, epilogue in the t dtype) for correctness checking.
# ---------------------------------------------------------------------------
def circlenet_ref(x, kp):
    f32, bf16 = jnp.float32, jnp.bfloat16

    def mm(a_bf16, w_bf16):
        return jnp.dot(a_bf16.astype(f32), w_bf16.astype(f32))

    def act(z_f32, t):
        z = z_f32.astype(t.dtype) + t
        e = jnp.exp(-z)
        s = 1.0 / (1.0 + e.astype(f32))   # exact reciprocal (kernel uses approx)
        return (z * s.astype(t.dtype)).astype(bf16)

    h1 = act(mm(x.astype(bf16), kp["w1"]), kp["t1"])
    z2c = mm(h1, kp["w2cat"])
    h = act(z2c[:, :1024], kp["t2"])
    res1 = (z2c[:, 1024:] + kp["bsk"]).astype(bf16)
    for i in (3, 4, 5, 6):
        h = act(mm(h, kp[f"w{i}"]), kp[f"t{i}"])
    h = h + res1
    out = mm(h, kp["wo"]) + kp["bo"]
    return out[:, :12]


if __name__ == "__main__":
    key = jax.random.PRNGKey(0)
    kparam_key, kx = jax.random.split(key)

    params = make_params(kparam_key)
    kparams = prepare_kernel_params(params)

    B = 40  # ragged: exercises padding, 16-row bf16 tiles, megacore split on v7x
    x = jax.random.normal(kx, (B, IN_F), jnp.float32)

    out = circlenet_forward(x, kparams)
    out = jax.block_until_ready(out)
    assert out.shape == (B, 12)

    ref = circlenet_ref(x, kparams)
    if kparams["t1"].dtype == jnp.bfloat16:
        rtol = atol = 3e-2   # bf16 epilogue + approx EUP reciprocal
    else:
        rtol = atol = 1e-2   # f32 epilogue, approx reciprocal only
    np.testing.assert_allclose(np.asarray(out), np.asarray(ref),
                               rtol=rtol, atol=atol)

    print("KERNEL_OK")
</pallas_src>

<mosaic_0001>
module attributes {stable_mosaic.version = 11 : i64} {
  func.func @circlenet_kernel(%arg0: i32, %arg1: memref<48x10xf32, #tpu.memory_space<vmem>>, %arg2: memref<10x1024xbf16, #tpu.memory_space<vmem>>, %arg3: memref<1x1024xf32, #tpu.memory_space<vmem>>, %arg4: memref<1024x1152xbf16, #tpu.memory_space<vmem>>, %arg5: memref<1x1024xf32, #tpu.memory_space<vmem>>, %arg6: memref<1x128xf32, #tpu.memory_space<vmem>>, %arg7: memref<1024x512xbf16, #tpu.memory_space<vmem>>, %arg8: memref<1x512xf32, #tpu.memory_space<vmem>>, %arg9: memref<512x256xbf16, #tpu.memory_space<vmem>>, %arg10: memref<1x256xf32, #tpu.memory_space<vmem>>, %arg11: memref<256x128xbf16, #tpu.memory_space<vmem>>, %arg12: memref<1x128xf32, #tpu.memory_space<vmem>>, %arg13: memref<128x128xbf16, #tpu.memory_space<vmem>>, %arg14: memref<1x128xf32, #tpu.memory_space<vmem>>, %arg15: memref<128x128xbf16, #tpu.memory_space<vmem>>, %arg16: memref<1x128xf32, #tpu.memory_space<vmem>>, %arg17: memref<48x128xf32, #tpu.memory_space<vmem>>) attributes {dimension_semantics = [#tpu.dimension_semantics<parallel>], iteration_bounds = array<i64: 1>, scalar_prefetch = 0 : i64, scratch_operands = 0 : i64, tpu.core_type = #tpu.core_type<tc>, window_params = [{transform_indices = @transform_0, window_bounds = array<i64: 48, 10>}, {pipeline_mode = #tpu.pipeline_mode<synchronous>, transform_indices = @transform_1, window_bounds = array<i64: 10, 1024>}, {pipeline_mode = #tpu.pipeline_mode<synchronous>, transform_indices = @transform_2, window_bounds = array<i64: 1, 1024>}, {pipeline_mode = #tpu.pipeline_mode<synchronous>, transform_indices = @transform_3, window_bounds = array<i64: 1024, 1152>}, {pipeline_mode = #tpu.pipeline_mode<synchronous>, transform_indices = @transform_4, window_bounds = array<i64: 1, 1024>}, {pipeline_mode = #tpu.pipeline_mode<synchronous>, transform_indices = @transform_5, window_bounds = array<i64: 1, 128>}, {pipeline_mode = #tpu.pipeline_mode<synchronous>, transform_indices = @transform_6, window_bounds = array<i64: 1024, 512>}, {pipeline_mode = #tpu.pipeline_mode<synchronous>, transform_indices = @transform_7, window_bounds = array<i64: 1, 512>}, {pipeline_mode = #tpu.pipeline_mode<synchronous>, transform_indices = @transform_8, window_bounds = array<i64: 512, 256>}, {pipeline_mode = #tpu.pipeline_mode<synchronous>, transform_indices = @transform_9, window_bounds = array<i64: 1, 256>}, {pipeline_mode = #tpu.pipeline_mode<synchronous>, transform_indices = @transform_10, window_bounds = array<i64: 256, 128>}, {pipeline_mode = #tpu.pipeline_mode<synchronous>, transform_indices = @transform_11, window_bounds = array<i64: 1, 128>}, {pipeline_mode = #tpu.pipeline_mode<synchronous>, transform_indices = @transform_12, window_bounds = array<i64: 128, 128>}, {pipeline_mode = #tpu.pipeline_mode<synchronous>, transform_indices = @transform_13, window_bounds = array<i64: 1, 128>}, {pipeline_mode = #tpu.pipeline_mode<synchronous>, transform_indices = @transform_14, window_bounds = array<i64: 128, 128>}, {pipeline_mode = #tpu.pipeline_mode<synchronous>, transform_indices = @transform_15, window_bounds = array<i64: 1, 128>}, {transform_indices = @transform_16, window_bounds = array<i64: 48, 128>}]} {
    %c0 = arith.constant 0 : index
    %c0_0 = arith.constant 0 : index
    %0 = vector.load %arg1[%c0, %c0_0] : memref<48x10xf32, #tpu.memory_space<vmem>>, vector<48x10xf32>
    %1 = arith.truncf %0 : vector<48x10xf32> to vector<48x10xbf16>
    %c0_1 = arith.constant 0 : index
    %c0_2 = arith.constant 0 : index
    %2 = vector.load %arg2[%c0_1, %c0_2] : memref<10x1024xbf16, #tpu.memory_space<vmem>>, vector<10x1024xbf16>
    %cst = arith.constant dense<0.000000e+00> : vector<48x1024xf32>
    %3 = tpu.matmul %1, %2, %cst {dimension_numbers = #tpu.dot_dimension_numbers<[1], [0], [0], [1], [0, 0, 1, 1], [], []>} : vector<48x10xbf16>, vector<10x1024xbf16>, vector<48x1024xf32> -> vector<48x1024xf32>
    %c0_3 = arith.constant 0 : index
    %c0_4 = arith.constant 0 : index
    %4 = vector.load %arg3[%c0_3, %c0_4] : memref<1x1024xf32, #tpu.memory_space<vmem>>, vector<1x1024xf32>
    %5 = vector.broadcast %4 : vector<1x1024xf32> to vector<48x1024xf32>
    %6 = arith.addf %3, %5 : vector<48x1024xf32>
    %cst_5 = arith.constant 0.000000e+00 : f32
    %7 = vector.broadcast %cst_5 : f32 to vector<48x1024xf32>
    %8 = arith.subf %7, %6 : vector<48x1024xf32>
    %9 = math.exp %8 : vector<48x1024xf32>
    %cst_6 = arith.constant 1.000000e+00 : f32
    %10 = vector.broadcast %cst_6 : f32 to vector<48x1024xf32>
    %11 = arith.addf %10, %9 : vector<48x1024xf32>
    %12 = tpu.reciprocal %11 {approx = true} : vector<48x1024xf32> -> vector<48x1024xf32>
    %13 = arith.mulf %6, %12 : vector<48x1024xf32>
    %14 = arith.truncf %13 : vector<48x1024xf32> to vector<48x1024xbf16>
    %c0_7 = arith.constant 0 : index
    %c0_8 = arith.constant 0 : index
    %15 = vector.load %arg4[%c0_7, %c0_8] : memref<1024x1152xbf16, #tpu.memory_space<vmem>>, vector<1024x1152xbf16>
    %cst_9 = arith.constant dense<0.000000e+00> : vector<48x1152xf32>
    %16 = tpu.matmul %14, %15, %cst_9 {dimension_numbers = #tpu.dot_dimension_numbers<[1], [0], [0], [1], [0, 0, 1, 1], [], []>} : vector<48x1024xbf16>, vector<1024x1152xbf16>, vector<48x1152xf32> -> vector<48x1152xf32>
    %17 = vector.extract_strided_slice %16 {offsets = [0, 0], sizes = [48, 1024], strides = [1, 1]} : vector<48x1152xf32> to vector<48x1024xf32>
    %c0_10 = arith.constant 0 : index
    %c0_11 = arith.constant 0 : index
    %18 = vector.load %arg5[%c0_10, %c0_11] : memref<1x1024xf32, #tpu.memory_space<vmem>>, vector<1x1024xf32>
    %19 = vector.broadcast %18 : vector<1x1024xf32> to vector<48x1024xf32>
    %20 = arith.addf %17, %19 : vector<48x1024xf32>
    %cst_12 = arith.constant 0.000000e+00 : f32
    %21 = vector.broadcast %cst_12 : f32 to vector<48x1024xf32>
    %22 = arith.subf %21, %20 : vector<48x1024xf32>
    %23 = math.exp %22 : vector<48x1024xf32>
    %cst_13 = arith.constant 1.000000e+00 : f32
    %24 = vector.broadcast %cst_13 : f32 to vector<48x1024xf32>
    %25 = arith.addf %24, %23 : vector<48x1024xf32>
    %26 = tpu.reciprocal %25 {approx = true} : vector<48x1024xf32> -> vector<48x1024xf32>
    %27 = arith.mulf %20, %26 : vector<48x1024xf32>
    %28 = arith.truncf %27 : vector<48x1024xf32> to vector<48x1024xbf16>
    %29 = vector.extract_strided_slice %16 {offsets = [0, 1024], sizes = [48, 128], strides = [1, 1]} : vector<48x1152xf32> to vector<48x128xf32>
    %c0_14 = arith.constant 0 : index
    %c0_15 = arith.constant 0 : index
    %30 = vector.load %arg6[%c0_14, %c0_15] : memref<1x128xf32, #tpu.memory_space<vmem>>, vector<1x128xf32>
    %31 = vector.broadcast %30 : vector<1x128xf32> to vector<48x128xf32>
    %32 = arith.addf %29, %31 : vector<48x128xf32>
    %33 = arith.truncf %32 : vector<48x128xf32> to vector<48x128xbf16>
    %c0_16 = arith.constant 0 : index
    %c0_17 = arith.constant 0 : index
    %34 = vector.load %arg7[%c0_16, %c0_17] : memref<1024x512xbf16, #tpu.memory_space<vmem>>, vector<1024x512xbf16>
    %cst_18 = arith.constant dense<0.000000e+00> : vector<48x512xf32>
    %35 = tpu.matmul %28, %34, %cst_18 {dimension_numbers = #tpu.dot_dimension_numbers<[1], [0], [0], [1], [0, 0, 1, 1], [], []>} : vector<48x1024xbf16>, vector<1024x512xbf16>, vector<48x512xf32> -> vector<48x512xf32>
    %c0_19 = arith.constant 0 : index
    %c0_20 = arith.constant 0 : index
    %36 = vector.load %arg8[%c0_19, %c0_20] : memref<1x512xf32, #tpu.memory_space<vmem>>, vector<1x512xf32>
    %37 = vector.broadcast %36 : vector<1x512xf32> to vector<48x512xf32>
    %38 = arith.addf %35, %37 : vector<48x512xf32>
    %cst_21 = arith.constant 0.000000e+00 : f32
    %39 = vector.broadcast %cst_21 : f32 to vector<48x512xf32>
    %40 = arith.subf %39, %38 : vector<48x512xf32>
    %41 = math.exp %40 : vector<48x512xf32>
    %cst_22 = arith.constant 1.000000e+00 : f32
    %42 = vector.broadcast %cst_22 : f32 to vector<48x512xf32>
    %43 = arith.addf %42, %41 : vector<48x512xf32>
    %44 = tpu.reciprocal %43 {approx = true} : vector<48x512xf32> -> vector<48x512xf32>
    %45 = arith.mulf %38, %44 : vector<48x512xf32>
    %46 = arith.truncf %45 : vector<48x512xf32> to vector<48x512xbf16>
    %c0_23 = arith.constant 0 : index
    %c0_24 = arith.constant 0 : index
    %47 = vector.load %arg9[%c0_23, %c0_24] : memref<512x256xbf16, #tpu.memory_space<vmem>>, vector<512x256xbf16>
    %cst_25 = arith.constant dense<0.000000e+00> : vector<48x256xf32>
    %48 = tpu.matmul %46, %47, %cst_25 {dimension_numbers = #tpu.dot_dimension_numbers<[1], [0], [0], [1], [0, 0, 1, 1], [], []>} : vector<48x512xbf16>, vector<512x256xbf16>, vector<48x256xf32> -> vector<48x256xf32>
    %c0_26 = arith.constant 0 : index
    %c0_27 = arith.constant 0 : index
    %49 = vector.load %arg10[%c0_26, %c0_27] : memref<1x256xf32, #tpu.memory_space<vmem>>, vector<1x256xf32>
    %50 = vector.broadcast %49 : vector<1x256xf32> to vector<48x256xf32>
    %51 = arith.addf %48, %50 : vector<48x256xf32>
    %cst_28 = arith.constant 0.000000e+00 : f32
    %52 = vector.broadcast %cst_28 : f32 to vector<48x256xf32>
    %53 = arith.subf %52, %51 : vector<48x256xf32>
    %54 = math.exp %53 : vector<48x256xf32>
    %cst_29 = arith.constant 1.000000e+00 : f32
    %55 = vector.broadcast %cst_29 : f32 to vector<48x256xf32>
    %56 = arith.addf %55, %54 : vector<48x256xf32>
    %57 = tpu.reciprocal %56 {approx = true} : vector<48x256xf32> -> vector<48x256xf32>
    %58 = arith.mulf %51, %57 : vector<48x256xf32>
    %59 = arith.truncf %58 : vector<48x256xf32> to vector<48x256xbf16>
    %c0_30 = arith.constant 0 : index
    %c0_31 = arith.constant 0 : index
    %60 = vector.load %arg11[%c0_30, %c0_31] : memref<256x128xbf16, #tpu.memory_space<vmem>>, vector<256x128xbf16>
    %cst_32 = arith.constant dense<0.000000e+00> : vector<48x128xf32>
    %61 = tpu.matmul %59, %60, %cst_32 {dimension_numbers = #tpu.dot_dimension_numbers<[1], [0], [0], [1], [0, 0, 1, 1], [], []>} : vector<48x256xbf16>, vector<256x128xbf16>, vector<48x128xf32> -> vector<48x128xf32>
    %c0_33 = arith.constant 0 : index
    %c0_34 = arith.constant 0 : index
    %62 = vector.load %arg12[%c0_33, %c0_34] : memref<1x128xf32, #tpu.memory_space<vmem>>, vector<1x128xf32>
    %63 = vector.broadcast %62 : vector<1x128xf32> to vector<48x128xf32>
    %64 = arith.addf %61, %63 : vector<48x128xf32>
    %cst_35 = arith.constant 0.000000e+00 : f32
    %65 = vector.broadcast %cst_35 : f32 to vector<48x128xf32>
    %66 = arith.subf %65, %64 : vector<48x128xf32>
    %67 = math.exp %66 : vector<48x128xf32>
    %cst_36 = arith.constant 1.000000e+00 : f32
    %68 = vector.broadcast %cst_36 : f32 to vector<48x128xf32>
    %69 = arith.addf %68, %67 : vector<48x128xf32>
    %70 = tpu.reciprocal %69 {approx = true} : vector<48x128xf32> -> vector<48x128xf32>
    %71 = arith.mulf %64, %70 : vector<48x128xf32>
    %72 = arith.truncf %71 : vector<48x128xf32> to vector<48x128xbf16>
    %c0_37 = arith.constant 0 : index
    %c0_38 = arith.constant 0 : index
    %73 = vector.load %arg13[%c0_37, %c0_38] : memref<128x128xbf16, #tpu.memory_space<vmem>>, vector<128x128xbf16>
    %cst_39 = arith.constant dense<0.000000e+00> : vector<48x128xf32>
    %74 = tpu.matmul %72, %73, %cst_39 {dimension_numbers = #tpu.dot_dimension_numbers<[1], [0], [0], [1], [0, 0, 1, 1], [], []>} : vector<48x128xbf16>, vector<128x128xbf16>, vector<48x128xf32> -> vector<48x128xf32>
    %c0_40 = arith.constant 0 : index
    %c0_41 = arith.constant 0 : index
    %75 = vector.load %arg14[%c0_40, %c0_41] : memref<1x128xf32, #tpu.memory_space<vmem>>, vector<1x128xf32>
    %76 = vector.broadcast %75 : vector<1x128xf32> to vector<48x128xf32>
    %77 = arith.addf %74, %76 : vector<48x128xf32>
    %cst_42 = arith.constant 0.000000e+00 : f32
    %78 = vector.broadcast %cst_42 : f32 to vector<48x128xf32>
    %79 = arith.subf %78, %77 : vector<48x128xf32>
    %80 = math.exp %79 : vector<48x128xf32>
    %cst_43 = arith.constant 1.000000e+00 : f32
    %81 = vector.broadcast %cst_43 : f32 to vector<48x128xf32>
    %82 = arith.addf %81, %80 : vector<48x128xf32>
    %83 = tpu.reciprocal %82 {approx = true} : vector<48x128xf32> -> vector<48x128xf32>
    %84 = arith.mulf %77, %83 : vector<48x128xf32>
    %85 = arith.truncf %84 : vector<48x128xf32> to vector<48x128xbf16>
    %86 = arith.addf %85, %33 : vector<48x128xbf16>
    %c0_44 = arith.constant 0 : index
    %c0_45 = arith.constant 0 : index
    %87 = vector.load %arg15[%c0_44, %c0_45] : memref<128x128xbf16, #tpu.memory_space<vmem>>, vector<128x128xbf16>
    %cst_46 = arith.constant dense<0.000000e+00> : vector<48x128xf32>
    %88 = tpu.matmul %86, %87, %cst_46 {dimension_numbers = #tpu.dot_dimension_numbers<[1], [0], [0], [1], [0, 0, 1, 1], [], []>} : vector<48x128xbf16>, vector<128x128xbf16>, vector<48x128xf32> -> vector<48x128xf32>
    %c0_47 = arith.constant 0 : index
    %c0_48 = arith.constant 0 : index
    %89 = vector.load %arg16[%c0_47, %c0_48] : memref<1x128xf32, #tpu.memory_space<vmem>>, vector<1x128xf32>
    %90 = vector.broadcast %89 : vector<1x128xf32> to vector<48x128xf32>
    %91 = arith.addf %88, %90 : vector<48x128xf32>
    %c0_49 = arith.constant 0 : index
    %c0_50 = arith.constant 0 : index
    %92 = vector.load %arg17[%c0_49, %c0_50] : memref<48x128xf32, #tpu.memory_space<vmem>>, vector<48x128xf32>
    tpu.vector_store %arg17[%c0_49, %c0_50], %91 {strides = array<i32>} : memref<48x128xf32, #tpu.memory_space<vmem>>, vector<48x128xf32>,
    return
  }
  func.func @transform_0(%arg0: i32) -> (i32, i32) {
    %c0_i32 = arith.constant 0 : i32
    %c0_i32_0 = arith.constant 0 : i32
    return %arg0, %c0_i32 : i32, i32
  }
  func.func @transform_1(%arg0: i32) -> (i32, i32) {
    %c0_i32 = arith.constant 0 : i32
    %c0_i32_0 = arith.constant 0 : i32
    %c0_i32_1 = arith.constant 0 : i32
    return %c0_i32, %c0_i32_0 : i32, i32
  }
  func.func @transform_2(%arg0: i32) -> (i32, i32) {
    %c0_i32 = arith.constant 0 : i32
    %c0_i32_0 = arith.constant 0 : i32
    %c0_i32_1 = arith.constant 0 : i32
    return %c0_i32, %c0_i32_0 : i32, i32
  }
  func.func @transform_3(%arg0: i32) -> (i32, i32) {
    %c0_i32 = arith.constant 0 : i32
    %c0_i32_0 = arith.constant 0 : i32
    %c0_i32_1 = arith.constant 0 : i32
    return %c0_i32, %c0_i32_0 : i32, i32
  }
  func.func @transform_4(%arg0: i32) -> (i32, i32) {
    %c0_i32 = arith.constant 0 : i32
    %c0_i32_0 = arith.constant 0 : i32
    %c0_i32_1 = arith.constant 0 : i32
    return %c0_i32, %c0_i32_0 : i32, i32
  }
  func.func @transform_5(%arg0: i32) -> (i32, i32) {
    %c0_i32 = arith.constant 0 : i32
    %c0_i32_0 = arith.constant 0 : i32
    %c0_i32_1 = arith.constant 0 : i32
    return %c0_i32, %c0_i32_0 : i32, i32
  }
  func.func @transform_6(%arg0: i32) -> (i32, i32) {
    %c0_i32 = arith.constant 0 : i32
    %c0_i32_0 = arith.constant 0 : i32
    %c0_i32_1 = arith.constant 0 : i32
    return %c0_i32, %c0_i32_0 : i32, i32
  }
  func.func @transform_7(%arg0: i32) -> (i32, i32) {
    %c0_i32 = arith.constant 0 : i32
    %c0_i32_0 = arith.constant 0 : i32
    %c0_i32_1 = arith.constant 0 : i32
    return %c0_i32, %c0_i32_0 : i32, i32
  }
  func.func @transform_8(%arg0: i32) -> (i32, i32) {
    %c0_i32 = arith.constant 0 : i32
    %c0_i32_0 = arith.constant 0 : i32
    %c0_i32_1 = arith.constant 0 : i32
    return %c0_i32, %c0_i32_0 : i32, i32
  }
  func.func @transform_9(%arg0: i32) -> (i32, i32) {
    %c0_i32 = arith.constant 0 : i32
    %c0_i32_0 = arith.constant 0 : i32
    %c0_i32_1 = arith.constant 0 : i32
    return %c0_i32, %c0_i32_0 : i32, i32
  }
  func.func @transform_10(%arg0: i32) -> (i32, i32) {
    %c0_i32 = arith.constant 0 : i32
    %c0_i32_0 = arith.constant 0 : i32
    %c0_i32_1 = arith.constant 0 : i32
    return %c0_i32, %c0_i32_0 : i32, i32
  }
  func.func @transform_11(%arg0: i32) -> (i32, i32) {
    %c0_i32 = arith.constant 0 : i32
    %c0_i32_0 = arith.constant 0 : i32
    %c0_i32_1 = arith.constant 0 : i32
    return %c0_i32, %c0_i32_0 : i32, i32
  }
  func.func @transform_12(%arg0: i32) -> (i32, i32) {
    %c0_i32 = arith.constant 0 : i32
    %c0_i32_0 = arith.constant 0 : i32
    %c0_i32_1 = arith.constant 0 : i32
    return %c0_i32, %c0_i32_0 : i32, i32
  }
  func.func @transform_13(%arg0: i32) -> (i32, i32) {
    %c0_i32 = arith.constant 0 : i32
    %c0_i32_0 = arith.constant 0 : i32
    %c0_i32_1 = arith.constant 0 : i32
    return %c0_i32, %c0_i32_0 : i32, i32
  }
  func.func @transform_14(%arg0: i32) -> (i32, i32) {
    %c0_i32 = arith.constant 0 : i32
    %c0_i32_0 = arith.constant 0 : i32
    %c0_i32_1 = arith.constant 0 : i32
    return %c0_i32, %c0_i32_0 : i32, i32
  }
  func.func @transform_15(%arg0: i32) -> (i32, i32) {
    %c0_i32 = arith.constant 0 : i32
    %c0_i32_0 = arith.constant 0 : i32
    %c0_i32_1 = arith.constant 0 : i32
    return %c0_i32, %c0_i32_0 : i32, i32
  }
  func.func @transform_16(%arg0: i32) -> (i32, i32) {
    %c0_i32 = arith.constant 0 : i32
    %c0_i32_0 = arith.constant 0 : i32
    return %arg0, %c0_i32 : i32, i32
  }
}

</mosaic_0001>

<bundles_post_ra>
// kernel: tpu_custom_call.1
= control target key start
LH: loop header
LB: loop body
LE: loop exit
PB: predicated region body
PF: predicated region fallthrough
CT: control target
= control target key end

     0   :  { %s14921_s0 = inlined_call_operand.vmem [shape: f32[48,10], index: 0, kind: input, shape index: {}]   ;;  %s14922_s1 = inlined_call_operand.hbm [shape: bf16[10,1024], index: 1, kind: input, shape index: {}]   ;;  %s14923_s2 = inlined_call_operand.hbm [shape: f32[1,1024], index: 2, kind: input, shape index: {}]   ;;  %s14924_s3 = inlined_call_operand.hbm [shape: bf16[1024,1152], index: 3, kind: input, shape index: {}]   ;;  %s14925_s4 = inlined_call_operand.hbm [shape: f32[1,1024], index: 4, kind: input, shape index: {}]   ;;  %s14926_s5 = inlined_call_operand.hbm [shape: f32[1,128], index: 5, kind: input, shape index: {}]   ;;  %s14927_s6 = inlined_call_operand.hbm [shape: bf16[1024,512], index: 6, kind: input, shape index: {}]   ;;  %s14928_s7 = inlined_call_operand.hbm [shape: f32[1,512], index: 7, kind: input, shape index: {}]   ;;  %s14929_s8 = inlined_call_operand.hbm [shape: bf16[512,256], index: 8, kind: input, shape index: {}]   ;;  %s14930_s9 = inlined_call_operand.hbm [shape: f32[1,256], index: 9, kind: input, shape index: {}]   ;;  %s14931_s10 = inlined_call_operand.hbm [shape: bf16[256,128], index: 10, kind: input, shape index: {}]   ;;  %s14932_s11 = inlined_call_operand.hbm [shape: f32[1,128], index: 11, kind: input, shape index: {}]   ;;  %s14933_s12 = inlined_call_operand.hbm [shape: bf16[128,128], index: 12, kind: input, shape index: {}]   ;;  %s14934_s13 = inlined_call_operand.hbm [shape: f32[1,128], index: 13, kind: input, shape index: {}]   ;;  %s14935_s14 = inlined_call_operand.hbm [shape: bf16[128,128], index: 14, kind: input, shape index: {}]   ;;  %s14936_s15 = inlined_call_operand.hbm [shape: f32[1,128], index: 15, kind: input, shape index: {}]   ;;  %s14937_s16 = inlined_call_operand.hbm [shape: f32[48,128], index: 16, kind: output, shape index: {}]  }
   0x1   :  { %14971 = sst [smem:[#allocation57_spill]] %s14921_s0 }
   0x2   :  { %21 = vsyncpa [#allocation3], 0 }
   0x3   :  { %22 = vsyncpa [#allocation6], 0 }
   0x4   :  { %23 = vsyncpa [#allocation9], 0 }
   0x5   :  { %24 = vsyncpa [#allocation12], 0 }
   0x6   :  { %25 = vsyncpa [#allocation15], 0 }
   0x7   :  { %26 = vsyncpa [#allocation18], 0 }
   0x8   :  { %27 = vsyncpa [#allocation21], 0 }
   0x9   :  { %28 = vsyncpa [#allocation24], 0 }
   0xa   :  { %29 = vsyncpa [#allocation4], 0  ;;  %s13337_s21 = smov [#allocation5]   ;;  %s13338_s23 = smov [#allocation8]  }
   0xb   :  { %s50_s22 = sshll.u32 %s13337_s21, 4  ;;  %s72_s24 = sshll.u32 %s13338_s23, 4  ;;  %s51_s22 = int_to_ptr.vmem [resolvable:$true] %s50_s22  ;;  %s73_s24 = int_to_ptr.vmem [resolvable:$true] %s72_s24 }
   0xc   :  { %s12967_s27 = scalar_lea.hbm %s14923_s2, 128 }
   0xd   :  { %p12968_p0 = scmp.ne.s32.totalorder %s14923_s2, %s12967_s27  ;;  %p12971_p1 = scmp.lt.u32.totalorder %s12967_s27, %s14923_s2 }
   0xf   :  { %p12973_p2 = pnand %p12971_p1, %p12968_p0 }
  0x11   :  { %12976 = shalt.err (!%p12973_p2)
}
  0x12   :  { %s12977_s17 = scalar_lea.vmem %s51_s22, 128  ;;  %p12982_p4 = scmp.lt.s32.totalorder %s51_s22, %s51_s22 }
  0x13   :  { %p12978_p3 = scmp.ne.s32.totalorder %s51_s22, %s12977_s17  ;;  %p12983_p5 = scmp.lt.s32.totalorder %s12977_s17, %s12977_s17 }
  0x15   :  { %p12984_p6 = por %p12983_p5, %p12982_p4 }
  0x17   :  { %p12985_p7 = pnand %p12984_p6, %p12978_p3 }
  0x19   :  { %12988 = shalt.err (!%p12985_p7)
}
  0x1a   :  { %53 = dma.hbm_to_vmem [thread:$0]  %s14923_s2, 128, %s51_s22, [#allocation6]  }
  0x1b   :  { %s12989_s23 = scalar_lea.hbm %s14925_s4, 128 }
  0x1c   :  { %p12990_p8 = scmp.ne.s32.totalorder %s14925_s4, %s12989_s23  ;;  %p12993_p9 = scmp.lt.u32.totalorder %s12989_s23, %s14925_s4 }
  0x1e   :  { %p12995_p10 = pnand %p12993_p9, %p12990_p8 }
  0x20   :  { %12998 = shalt.err (!%p12995_p10)
}
  0x21   :  { %s12999_s29 = scalar_lea.vmem %s73_s24, 128  ;;  %p13004_p12 = scmp.lt.s32.totalorder %s73_s24, %s73_s24 }
  0x22   :  { %p13000_p11 = scmp.ne.s32.totalorder %s73_s24, %s12999_s29  ;;  %p13005_p13 = scmp.lt.s32.totalorder %s12999_s29, %s12999_s29 }
  0x24   :  { %p13006_p0 = por %p13005_p13, %p13004_p12 }
  0x26   :  { %p13007_p1 = pnand %p13006_p0, %p13000_p11 }
  0x28   :  { %13010 = shalt.err (!%p13007_p1)
}
  0x29   :  { %75 = dma.hbm_to_vmem [thread:$0]  %s14925_s4, 128, %s73_s24, [#allocation9]  }
  0x2a   :  { %s13339_s30 = smov [#allocation11]   ;;  %s13011_s19 = scalar_lea.hbm %s14927_s6, 32768 }
  0x2b   :  { %s91_s0 = sshll.u32 %s13339_s30, 4  ;;  %p13012_p2 = scmp.ne.s32.totalorder %s14927_s6, %s13011_s19  ;;  %s92_s0 = int_to_ptr.vmem [resolvable:$true] %s91_s0 }
  0x2c   :  { %p13015_p3 = scmp.lt.u32.totalorder %s13011_s19, %s14927_s6 }
  0x2e   :  { %p13017_p4 = pnand %p13015_p3, %p13012_p2 }
  0x30   :  { %13020 = shalt.err (!%p13017_p4)
}
  0x31   :  { %s13021_s26 = scalar_lea.vmem %s92_s0, 32768  ;;  %p13026_p6 = scmp.lt.s32.totalorder %s92_s0, %s92_s0 }
  0x32   :  { %p13022_p5 = scmp.ne.s32.totalorder %s92_s0, %s13021_s26  ;;  %p13027_p7 = scmp.lt.s32.totalorder %s13021_s26, %s13021_s26 }
  0x34   :  { %p13028_p8 = por %p13027_p7, %p13026_p6 }
  0x36   :  { %p13029_p9 = pnand %p13028_p8, %p13022_p5 }
  0x38   :  { %13032 = shalt.err (!%p13029_p9)
}
  0x39   :  { %s13340_s4 = smov 256   ;;  %s13341_s24 = smov 16  }
  0x3a   :  { %97 = dma.hbm_to_vmem [thread:$0]  %s14927_s6, 32768, %s92_s0, [#allocation12], %s13340_s4, %s13340_s4, %s13341_s24  }
  0x3b   :  { %s13342_s29 = smov [#allocation14]   ;;  %s13033_s17 = scalar_lea.hbm %s14929_s8, 8192 }
  0x3c   :  { %s113_s2 = sshll.u32 %s13342_s29, 4  ;;  %p13034_p10 = scmp.ne.s32.totalorder %s14929_s8, %s13033_s17  ;;  %s114_s2 = int_to_ptr.vmem [resolvable:$true] %s113_s2 }
  0x3d   :  { %p13037_p11 = scmp.lt.u32.totalorder %s13033_s17, %s14929_s8 }
  0x3f   :  { %p13039_p12 = pnand %p13037_p11, %p13034_p10 }
  0x41   :  { %13042 = shalt.err (!%p13039_p12)
}
  0x42   :  { %s13043_s23 = scalar_lea.vmem %s114_s2, 8192  ;;  %p13048_p0 = scmp.lt.s32.totalorder %s114_s2, %s114_s2 }
  0x43   :  { %p13044_p13 = scmp.ne.s32.totalorder %s114_s2, %s13043_s23  ;;  %p13049_p1 = scmp.lt.s32.totalorder %s13043_s23, %s13043_s23 }
  0x45   :  { %p13050_p2 = por %p13049_p1, %p13048_p0 }
  0x47   :  { %p13051_p3 = pnand %p13050_p2, %p13044_p13 }
  0x49   :  { %13054 = shalt.err (!%p13051_p3)
}
  0x4a   :  { %s13343_s6 = smov 128   ;;  %s13344_s0 = smov 8  }
  0x4b   :  { %119 = dma.hbm_to_vmem [thread:$0]  %s14929_s8, 8192, %s114_s2, [#allocation15], %s13343_s6, %s13343_s6, %s13344_s0  }
  0x4c   :  { %s13345_s4 = smov [#allocation17]   ;;  %s13055_s29 = scalar_lea.hbm %s14931_s10, 2048 }
  0x4d   :  { %s135_s24 = sshll.u32 %s13345_s4, 4  ;;  %p13056_p4 = scmp.ne.s32.totalorder %s14931_s10, %s13055_s29  ;;  %s136_s24 = int_to_ptr.vmem [resolvable:$true] %s135_s24 }
  0x4e   :  { %p13059_p5 = scmp.lt.u32.totalorder %s13055_s29, %s14931_s10 }
  0x50   :  { %p13061_p6 = pnand %p13059_p5, %p13056_p4 }
  0x52   :  { %13064 = shalt.err (!%p13061_p6)
}
  0x53   :  { %s13065_s19 = scalar_lea.vmem %s136_s24, 2048  ;;  %p13070_p8 = scmp.lt.s32.totalorder %s136_s24, %s136_s24 }
  0x54   :  { %p13066_p7 = scmp.ne.s32.totalorder %s136_s24, %s13065_s19  ;;  %p13071_p9 = scmp.lt.s32.totalorder %s13065_s19, %s13065_s19 }
  0x56   :  { %p13072_p10 = por %p13071_p9, %p13070_p8 }
  0x58   :  { %p13073_p11 = pnand %p13072_p10, %p13066_p7 }
  0x5a   :  { %13076 = shalt.err (!%p13073_p11)
}
  0x5b   :  { %s13346_s8 = smov 64   ;;  %s13347_s2 = smov 4  }
  0x5c   :  { %141 = dma.hbm_to_vmem [thread:$0]  %s14931_s10, 2048, %s136_s24, [#allocation18], %s13346_s8, %s13346_s8, %s13347_s2  }
  0x5d   :  { %s13348_s23 = smov [#allocation20]   ;;  %s13349_s26 = smov [#allocation23]  }
  0x5e   :  { %s157_s25 = sshll.u32 %s13348_s23, 4  ;;  %s179_s4 = sshll.u32 %s13349_s26, 4  ;;  %s158_s25 = int_to_ptr.vmem [resolvable:$true] %s157_s25  ;;  %s180_s4 = int_to_ptr.vmem [resolvable:$true] %s179_s4 }
  0x5f   :  { %s13077_s29 = scalar_lea.hbm %s14933_s12, 1024 }
  0x60   :  { %p13078_p12 = scmp.ne.s32.totalorder %s14933_s12, %s13077_s29  ;;  %p13081_p13 = scmp.lt.u32.totalorder %s13077_s29, %s14933_s12 }
  0x62   :  { %p13083_p0 = pnand %p13081_p13, %p13078_p12 }
  0x64   :  { %13086 = shalt.err (!%p13083_p0)
}
  0x65   :  { %s13087_s10 = scalar_lea.vmem %s158_s25, 1024  ;;  %p13092_p2 = scmp.lt.s32.totalorder %s158_s25, %s158_s25 }
  0x66   :  { %p13088_p1 = scmp.ne.s32.totalorder %s158_s25, %s13087_s10  ;;  %p13093_p3 = scmp.lt.s32.totalorder %s13087_s10, %s13087_s10 }
  0x68   :  { %p13094_p4 = por %p13093_p3, %p13092_p2 }
  0x6a   :  { %p13095_p5 = pnand %p13094_p4, %p13088_p1 }
  0x6c   :  { %13098 = shalt.err (!%p13095_p5)
}
  0x6d   :  { %163 = dma.hbm_to_vmem [thread:$0]  %s14933_s12, 1024, %s158_s25, [#allocation21], %s13346_s8, %s13346_s8, %s13347_s2  }
  0x6e   :  { %s13099_s23 = scalar_lea.hbm %s14935_s14, 1024 }
  0x6f   :  { %p13100_p6 = scmp.ne.s32.totalorder %s14935_s14, %s13099_s23  ;;  %p13103_p7 = scmp.lt.u32.totalorder %s13099_s23, %s14935_s14 }
  0x71   :  { %p13105_p8 = pnand %p13103_p7, %p13100_p6 }
  0x73   :  { %13108 = shalt.err (!%p13105_p8)
}
  0x74   :  { %s13109_s22 = scalar_lea.vmem %s180_s4, 1024  ;;  %p13114_p10 = scmp.lt.s32.totalorder %s180_s4, %s180_s4 }
  0x75   :  { %p13110_p9 = scmp.ne.s32.totalorder %s180_s4, %s13109_s22  ;;  %p13115_p11 = scmp.lt.s32.totalorder %s13109_s22, %s13109_s22 }
  0x77   :  { %p13116_p12 = por %p13115_p11, %p13114_p10 }
  0x79   :  { %p13117_p13 = pnand %p13116_p12, %p13110_p9 }
  0x7b   :  { %13120 = shalt.err (!%p13117_p13)
}
  0x7c   :  { %185 = dma.hbm_to_vmem [thread:$0]  %s14935_s14, 1024, %s180_s4, [#allocation24], %s13346_s8, %s13346_s8, %s13347_s2  }
  0x7d   :  { %s13350_s30 = smov [#allocation2]   ;;  %s13121_s24 = scalar_lea.hbm %s14922_s1, 1024 }
  0x7e   :  { %s37_s17 = sshll.u32 %s13350_s30, 4  ;;  %p13122_p0 = scmp.ne.s32.totalorder %s14922_s1, %s13121_s24  ;;  %s38_s17 = int_to_ptr.vmem [resolvable:$true] %s37_s17 }
  0x7f   :  { %p13125_p1 = scmp.lt.u32.totalorder %s13121_s24, %s14922_s1 }
  0x81   :  { %p13127_p2 = pnand %p13125_p1, %p13122_p0 }
  0x83   :  { %13130 = shalt.err (!%p13127_p2)
}
  0x84   :  { %s13131_s26 = scalar_lea.vmem %s38_s17, 1024  ;;  %p13136_p4 = scmp.lt.s32.totalorder %s38_s17, %s38_s17 }
  0x85   :  { %p13132_p3 = scmp.ne.s32.totalorder %s38_s17, %s13131_s26  ;;  %p13137_p5 = scmp.lt.s32.totalorder %s13131_s26, %s13131_s26 }
  0x87   :  { %p13138_p6 = por %p13137_p5, %p13136_p4 }
  0x89   :  { %p13139_p7 = pnand %p13138_p6, %p13132_p3 }
  0x8b   :  { %13142 = shalt.err (!%p13139_p7)
}
  0x8c   :  { %s13351_s14 = smov 512   ;;  %s13352_s8 = smov 32  }
  0x8d   :  { %43 = dma.hbm_to_vmem [thread:$0]  %s14922_s1, 1024, %s38_s17, [#allocation3], %s13351_s14, %s13351_s14, %s13352_s8  }
  0x8e   :  { %s13353_s27 = smov [#allocation7]   ;;  %s13143_s12 = scalar_lea.hbm %s14924_s3, 73728 }
  0x8f   :  { %s59_s28 = sshll.u32 %s13353_s27, 4  ;;  %p13144_p8 = scmp.ne.s32.totalorder %s14924_s3, %s13143_s12  ;;  %s60_s28 = int_to_ptr.vmem [resolvable:$true] %s59_s28 }
  0x90   :  { %p13147_p9 = scmp.lt.u32.totalorder %s13143_s12, %s14924_s3 }
  0x92   :  { %p13149_p10 = pnand %p13147_p9, %p13144_p8 }
  0x94   :  { %13152 = shalt.err (!%p13149_p10)
}
  0x95   :  { %s13153_s24 = scalar_lea.vmem %s60_s28, 73728  ;;  %p13158_p12 = scmp.lt.s32.totalorder %s60_s28, %s60_s28 }
  0x96   :  { %p13154_p11 = scmp.ne.s32.totalorder %s60_s28, %s13153_s24  ;;  %p13159_p13 = scmp.lt.s32.totalorder %s13153_s24, %s13153_s24 }
  0x98   :  { %p13160_p0 = por %p13159_p13, %p13158_p12 }
  0x9a   :  { %p13161_p1 = pnand %p13160_p0, %p13154_p11 }
  0x9c   :  { %13164 = shalt.err (!%p13161_p1)
}
  0x9d   :  { %s13354_s1 = smov 576   ;;  %s13355_s17 = smov 36  }
  0x9e   :  { %65 = dma.hbm_to_vmem [thread:$0]  %s14924_s3, 73728, %s60_s28, [#allocation6], %s13354_s1, %s13354_s1, %s13355_s17  }
  0x9f   :  { %s13356_s21 = smov [#allocation10]   ;;  %s13357_s26 = smov [#allocation13]  }
  0xa0   :  { %s82_s23 = sshll.u32 %s13356_s21, 4  ;;  %s104_s14 = sshll.u32 %s13357_s26, 4  ;;  %s83_s23 = int_to_ptr.vmem [resolvable:$true] %s82_s23  ;;  %s105_s14 = int_to_ptr.vmem [resolvable:$true] %s104_s14 }
  0xa1   :  { %s13165_s4 = scalar_lea.hbm %s14926_s5, 16 }
  0xa2   :  { %p13166_p2 = scmp.ne.s32.totalorder %s14926_s5, %s13165_s4  ;;  %p13169_p3 = scmp.lt.u32.totalorder %s13165_s4, %s14926_s5 }
  0xa4   :  { %p13171_p4 = pnand %p13169_p3, %p13166_p2 }
  0xa6   :  { %13174 = shalt.err (!%p13171_p4)
}
  0xa7   :  { %s13175_s3 = scalar_lea.vmem %s83_s23, 16  ;;  %s13179_s28 = scalar_lea.vmem %s83_s23, 32 }
  0xa8   :  { %p13176_p5 = scmp.ne.s32.totalorder %s83_s23, %s13175_s3  ;;  %p13180_p6 = scmp.lt.s32.totalorder %s83_s23, %s83_s23 }
  0xa9   :  { %p13181_p7 = scmp.lt.s32.totalorder %s13179_s28, %s13175_s3 }
  0xab   :  { %p13182_p8 = por %p13181_p7, %p13180_p6 }
  0xad   :  { %p13183_p9 = pnand %p13182_p8, %p13176_p5 }
  0xaf   :  { %13186 = shalt.err (!%p13183_p9)
}
  0xb0   :  { %85 = dma.hbm_to_vmem [thread:$0]  %s14926_s5, 16, %s83_s23, [#allocation9]  }
  0xb1   :  { %s13187_s24 = scalar_lea.hbm %s14928_s7, 64 }
  0xb2   :  { %p13188_p10 = scmp.ne.s32.totalorder %s14928_s7, %s13187_s24  ;;  %p13191_p11 = scmp.lt.u32.totalorder %s13187_s24, %s14928_s7 }
  0xb4   :  { %p13193_p12 = pnand %p13191_p11, %p13188_p10 }
  0xb6   :  { %13196 = shalt.err (!%p13193_p12)
}
  0xb7   :  { %s13197_s21 = scalar_lea.vmem %s105_s14, 64  ;;  %p13202_p0 = scmp.lt.s32.totalorder %s105_s14, %s105_s14 }
  0xb8   :  { %p13198_p13 = scmp.ne.s32.totalorder %s105_s14, %s13197_s21  ;;  %p13203_p1 = scmp.lt.s32.totalorder %s13197_s21, %s13197_s21 }
  0xba   :  { %p13204_p2 = por %p13203_p1, %p13202_p0 }
  0xbc   :  { %p13205_p3 = pnand %p13204_p2, %p13198_p13 }
  0xbe   :  { %13208 = shalt.err (!%p13205_p3)
}
  0xbf   :  { %107 = dma.hbm_to_vmem [thread:$0]  %s14928_s7, 64, %s105_s14, [#allocation12]  }
  0xc0   :  { %s13358_s26 = smov [#allocation16]   ;;  %s13359_s2 = smov [#allocation19]  }
  0xc1   :  { %s126_s8 = sshll.u32 %s13358_s26, 4  ;;  %s148_s4 = sshll.u32 %s13359_s2, 4  ;;  %s127_s8 = int_to_ptr.vmem [resolvable:$true] %s126_s8  ;;  %s149_s4 = int_to_ptr.vmem [resolvable:$true] %s148_s4 }
  0xc2   :  { %s13209_s22 = scalar_lea.hbm %s14930_s9, 32 }
  0xc3   :  { %p13210_p4 = scmp.ne.s32.totalorder %s14930_s9, %s13209_s22  ;;  %p13213_p5 = scmp.lt.u32.totalorder %s13209_s22, %s14930_s9 }
  0xc5   :  { %p13215_p6 = pnand %p13213_p5, %p13210_p4 }
  0xc7   :  { %13218 = shalt.err (!%p13215_p6)
}
  0xc8   :  { %s13219_s7 = scalar_lea.vmem %s127_s8, 32  ;;  %p13224_p8 = scmp.lt.s32.totalorder %s127_s8, %s127_s8 }
  0xc9   :  { %p13220_p7 = scmp.ne.s32.totalorder %s127_s8, %s13219_s7  ;;  %p13225_p9 = scmp.lt.s32.totalorder %s13219_s7, %s13219_s7 }
  0xcb   :  { %p13226_p10 = por %p13225_p9, %p13224_p8 }
  0xcd   :  { %p13227_p11 = pnand %p13226_p10, %p13220_p7 }
  0xcf   :  { %13230 = shalt.err (!%p13227_p11)
}
  0xd0   :  { %129 = dma.hbm_to_vmem [thread:$0]  %s14930_s9, 32, %s127_s8, [#allocation15]  }
  0xd1   :  { %s13231_s24 = scalar_lea.hbm %s14932_s11, 16 }
  0xd2   :  { %p13232_p12 = scmp.ne.s32.totalorder %s14932_s11, %s13231_s24  ;;  %p13235_p13 = scmp.lt.u32.totalorder %s13231_s24, %s14932_s11 }
  0xd4   :  { %p13237_p0 = pnand %p13235_p13, %p13232_p12 }
  0xd6   :  { %13240 = shalt.err (!%p13237_p0)
}
  0xd7   :  { %s13241_s21 = scalar_lea.vmem %s149_s4, 16  ;;  %s13245_s5 = scalar_lea.vmem %s149_s4, 32 }
  0xd8   :  { %p13242_p1 = scmp.ne.s32.totalorder %s149_s4, %s13241_s21  ;;  %p13246_p2 = scmp.lt.s32.totalorder %s149_s4, %s149_s4 }
  0xd9   :  { %p13247_p3 = scmp.lt.s32.totalorder %s13245_s5, %s13241_s21 }
  0xdb   :  { %p13248_p4 = por %p13247_p3, %p13246_p2 }
  0xdd   :  { %p13249_p5 = pnand %p13248_p4, %p13242_p1 }
  0xdf   :  { %13252 = shalt.err (!%p13249_p5)
}
  0xe0   :  { %151 = dma.hbm_to_vmem [thread:$0]  %s14932_s11, 16, %s149_s4, [#allocation18]  }
  0xe1   :  { %s13360_s26 = smov [#allocation22]   ;;  %s13361_s2 = smov [#allocation25]  }
  0xe2   :  { %s170_s8 = sshll.u32 %s13360_s26, 4  ;;  %s192_s27 = sshll.u32 %s13361_s2, 4  ;;  %s171_s8 = int_to_ptr.vmem [resolvable:$true] %s170_s8  ;;  %s193_s27 = int_to_ptr.vmem [resolvable:$true] %s192_s27 }
  0xe3   :  { %s13253_s12 = scalar_lea.hbm %s14934_s13, 16 }
  0xe4   :  { %p13254_p6 = scmp.ne.s32.totalorder %s14934_s13, %s13253_s12  ;;  %p13257_p7 = scmp.lt.u32.totalorder %s13253_s12, %s14934_s13 }
  0xe6   :  { %p13259_p8 = pnand %p13257_p7, %p13254_p6 }
  0xe8   :  { %13262 = shalt.err (!%p13259_p8)
}
  0xe9   :  { %s13263_s11 = scalar_lea.vmem %s171_s8, 16  ;;  %s13267_s4 = scalar_lea.vmem %s171_s8, 32 }
  0xea   :  { %p13264_p9 = scmp.ne.s32.totalorder %s171_s8, %s13263_s11  ;;  %p13268_p10 = scmp.lt.s32.totalorder %s171_s8, %s171_s8 }
  0xeb   :  { %p13269_p11 = scmp.lt.s32.totalorder %s13267_s4, %s13263_s11 }
  0xed   :  { %p13270_p12 = por %p13269_p11, %p13268_p10 }
  0xef   :  { %p13271_p13 = pnand %p13270_p12, %p13264_p9 }
  0xf1   :  { %13274 = shalt.err (!%p13271_p13)
}
  0xf2   :  { %173 = dma.hbm_to_vmem [thread:$0]  %s14934_s13, 16, %s171_s8, [#allocation21]  }
  0xf3   :  { %s13275_s24 = scalar_lea.hbm %s14936_s15, 16 }
  0xf4   :  { %p13276_p0 = scmp.ne.s32.totalorder %s14936_s15, %s13275_s24  ;;  %p13279_p1 = scmp.lt.u32.totalorder %s13275_s24, %s14936_s15 }
  0xf6   :  { %p13281_p2 = pnand %p13279_p1, %p13276_p0 }
  0xf8   :  { %13284 = shalt.err (!%p13281_p2)
}
  0xf9   :  { %s13285_s21 = scalar_lea.vmem %s193_s27, 16  ;;  %s13289_s5 = scalar_lea.vmem %s193_s27, 32 }
  0xfa   :  { %p13286_p3 = scmp.ne.s32.totalorder %s193_s27, %s13285_s21  ;;  %p13290_p4 = scmp.lt.s32.totalorder %s193_s27, %s193_s27 }
  0xfb   :  { %p13291_p5 = scmp.lt.s32.totalorder %s13289_s5, %s13285_s21 }
  0xfd   :  { %p13292_p6 = por %p13291_p5, %p13290_p4 }
  0xff   :  { %p13293_p7 = pnand %p13292_p6, %p13286_p3 }
 0x101   :  { %13296 = shalt.err (!%p13293_p7)
}
 0x102   :  { %195 = dma.hbm_to_vmem [thread:$0]  %s14936_s15, 16, %s193_s27, [#allocation24]  }
 0x103   :  { %13319 = dma.done.wait [#allocation3], 1024  }
 0x104   :  { %13320 = vsyncadd [#allocation3], 4294966272 }
 0x105   :  { %13321 = dma.done.wait [#allocation6], 73856  }
 0x106   :  { %13322 = vsyncadd [#allocation6], 4294893440 }
 0x107   :  { %13323 = dma.done.wait [#allocation9], 144  }
 0x108   :  { %13324 = vsyncadd [#allocation9], 4294967152 }
 0x109   :  { %13325 = dma.done.wait [#allocation12], 32832  }
 0x10a   :  { %13326 = vsyncadd [#allocation12], 4294934464 }
 0x10b   :  { %13327 = dma.done.wait [#allocation15], 8224  }
 0x10c   :  { %13328 = vsyncadd [#allocation15], 4294959072 }
 0x10d   :  { %13329 = dma.done.wait [#allocation18], 2064  }
 0x10e   :  { %13330 = vsyncadd [#allocation18], 4294965232 }
 0x10f   :  { %13331 = dma.done.wait [#allocation21], 1040  }
 0x110   :  { %13332 = vsyncadd [#allocation21], 4294966256 }
 0x111   :  { %13333 = dma.done.wait [#allocation24], 1040  }
 0x112   :  { %13334 = vsyncadd [#allocation24], 4294966256  ;;  %v13362_v0 = vmov 0   ;;  %v251_v1 = vld [vmem:[#allocation2] sm:$0xff]  ;;  %vm343_vm0 = vcmask 1044480   ;;  %s14972_s26 = sld [smem:[#allocation57_spill]] }
 0x113   :  { %400 = vmatprep.mubr.bf16.mxu0 %v13362_v0  ;;  %410 = vmatprep.mubr.bf16.mxu1 %v13362_v0  ;;  %v255_v2 = vld [vmem:[#allocation2 + $0x20] sm:$0x11]  ;;  %v252_v9 = vld [vmem:[#allocation2 + $0x8] sm:$0xff]  ;;  %v253_v14 = vld [vmem:[#allocation2 + $0x10] sm:$0xff]  ;;  %vm333_vm1 = vcmask 80896   ;;  %vm13364_vm2 = vmmov 0  }
 0x114   :  { %v9548_v4 = vcombine.high %v251_v1, %v255_v2  ;;  %v9547_v5 = vcombine.low %v251_v1, %v255_v2  ;;  %v256_v13 = vld [vmem:[#allocation2 + $0x28] sm:$0x11]  ;;  %v257_v15 = vld [vmem:[#allocation2 + $0x30] sm:$0x11]  ;;  %v254_v19 = vld [vmem:[#allocation2 + $0x18] sm:$0xff]  ;;  %s13365_s11 = smov [#allocation26]  }
 0x115   :  { %v9550_v16 = vcombine.high %v252_v9, %v256_v13  ;;  %v9549_v17 = vcombine.low %v252_v9, %v256_v13  ;;  %v9552_v18 = vcombine.high %v253_v14, %v257_v15  ;;  %v258_v20 = vld [vmem:[#allocation2 + $0x38] sm:$0x11]  ;;  %v9551_v21 = vcombine.low %v253_v14, %v257_v15  ;;  %v11048_v24 = vld [vmem:[#allocation7 + $0x4] ss:$36 sps:$4 sm:$0xff]   ;;  %v11066_v37 = vld [vmem:[#allocation7 + $0xdc] ss:$36 sps:$4 sm:$0xff]  }
 0x116   :  { %9555 = vmatprep.subr.msk.bf16.mxu0 %vm343_vm0, %v9548_v4  ;;  %v345_v10 = vsel %vm343_vm0, %v9547_v5, 0  ;;  %10751 = vmatprep.subr.msk.bf16.mxu1 %vm343_vm0, %v9548_v4  ;;  %v9554_v23 = vcombine.high %v254_v19, %v258_v20  ;;  %v11046_v29 = vld [vmem:[#allocation7] ss:$36 sps:$4 sm:$0xff]   ;;  %v11054_v30 = vld [vmem:[#allocation7 + $0x4c] ss:$36 sps:$4 sm:$0xff]   ;;  %v9553_v32 = vcombine.low %v254_v19, %v258_v20  ;;  %s9528_s4 = sshll.u32 %s13365_s11, 4  ;;  %s9529_s4 = int_to_ptr.vmem [resolvable:$true] %s9528_s4 }
 0x117   :  { %369 = vmatpush1.bf16.msra.mxu0 %v345_v10  ;;  %10752 = vmatpush1.bf16.msra.mxu1 %v345_v10  ;;  %v351_v22 = vsel %vm343_vm0, %v9549_v17, 0  ;;  %v357_v25 = vsel %vm343_vm0, %v9551_v21, 0  ;;  %v11052_v31 = vld [vmem:[#allocation7 + $0x48] ss:$36 sps:$4 sm:$0xff]   ;;  %v11060_v33 = vld [vmem:[#allocation7 + $0x94] ss:$36 sps:$4 sm:$0xff]   ;;  %p13302_p9 = scmp.lt.s32.totalorder %s9529_s4, %s9529_s4 }
 0x118   :  { %v242_v3 = vld [vmem:[%s14972_s26] sm:$0xff]  ;;  %v243_v6 = vld [vmem:[%s14972_s26 + $0x8] sm:$0xff]  ;;  %v244_v7 = vld [vmem:[%s14972_s26 + $0x10] sm:$0xff]  ;;  %9559 = vmatprep.subr.msk.bf16.mxu1 %vm343_vm0, %v9550_v16  ;;  %9563 = vmatprep.subr.msk.bf16.mxu0 %vm343_vm0, %v9552_v18  ;;  %v363_v36 = vsel %vm343_vm0, %v9553_v32, 0  ;;  %v261_v32 = vlaneseq  ;;  %s13297_s14 = scalar_lea.vmem %s9529_s4, 768 }
 0x119   :  { %v245_v8 = vld [vmem:[%s14972_s26 + $0x18] sm:$0xff]  ;;  %v13659_v11 = vpack.c.bf16 %v243_v6, %v242_v3  ;;  %v246_v26 = vld [vmem:[%s14972_s26 + $0x20] sm:$0xff]  ;;  %v247_v27 = vld [vmem:[%s14972_s26 + $0x28] sm:$0xff]  ;;  %p13298_p8 = scmp.ne.s32.totalorder %s9529_s4, %s13297_s14  ;;  %p13303_p10 = scmp.lt.s32.totalorder %s13297_s14, %s13297_s14 }
 0x11a   :  { %v13662_v12 = vpack.c.bf16 %v245_v8, %v244_v7  ;;  %v13681_v28 = vpack.c.bf16 %v247_v27, %v246_v26  ;;  %v11051_v34 = vld [vmem:[#allocation7 + $0xc] ss:$36 sps:$4 sm:$0xff]   ;;  %v11064_v38 = vld [vmem:[#allocation7 + $0xd8] ss:$36 sps:$4 sm:$0xff]   ;;  %v11072_v39 = vld [vmem:[#allocation7 + $0x124] ss:$36 sps:$4 sm:$0xff]  }
 0x11b   :  { %9556 = vmatmul.mubr.msk.bf16.vlgmr.msra.gmra.mrb[0].mxu0 %vm333_vm1, %v13659_v11  ;;  %v11058_v35 = vld [vmem:[#allocation7 + $0x90] ss:$36 sps:$4 sm:$0xff]   ;;  %v11070_v40 = vld [vmem:[#allocation7 + $0x120] ss:$36 sps:$4 sm:$0xff]   ;;  %v11076_v42 = vld [vmem:[#allocation7 + $0x168] ss:$36 sps:$4 sm:$0xff]   ;;  %p13304_p11 = por %p13303_p10, %p13302_p9 }
 0x11c   :  { %9557 = vmatmul.mubr.msk.bf16.vlgmr.msra.gmra.mrb[0].mxu1 %vm333_vm1, %v13662_v12  ;;  %495 = vmatpush1.bf16.msra.mxu0 %v357_v25  ;;  %v11078_v41 = vld [vmem:[#allocation7 + $0x16c] ss:$36 sps:$4 sm:$0xff]   ;;  %v11084_v43 = vld [vmem:[#allocation7 + $0x1b4] ss:$36 sps:$4 sm:$0xff]   ;;  %v11063_v48 = vld [vmem:[#allocation7 + $0x9c] ss:$36 sps:$4 sm:$0xff]  }
 0x11d   :  { %420 = vmatprep.mubr.bf16.mxu1 %v13362_v0  ;;  %432 = vmatpush1.bf16.msra.mxu1 %v351_v22  ;;  %v11082_v44 = vld [vmem:[#allocation7 + $0x1b0] ss:$36 sps:$4 sm:$0xff]   ;;  %v11049_v45 = vld [vmem:[#allocation7 + $0x8] ss:$36 sps:$4 sm:$0xff]   ;;  %v11061_v49 = vld [vmem:[#allocation7 + $0x98] ss:$36 sps:$4 sm:$0xff]   ;;  %p13305_p12 = pnand %p13304_p11, %p13298_p8 }
 0x11e   :  { %526 = vmatprep.mubr.bf16.mxu0 %v13362_v0  ;;  %9567 = vmatprep.subr.msk.bf16.mxu1 %vm343_vm0, %v9554_v23  ;;  %v11057_v46 = vld [vmem:[#allocation7 + $0x54] ss:$36 sps:$4 sm:$0xff]   ;;  %v11069_v50 = vld [vmem:[#allocation7 + $0xe4] ss:$36 sps:$4 sm:$0xff]   ;;  %v11075_v52 = vld [vmem:[#allocation7 + $0x12c] ss:$36 sps:$4 sm:$0xff]  }
 0x11f   :  { %4516 = vmatprep.subr.bf16.mxu0 %v11048_v24  ;;  %v11055_v47 = vld [vmem:[#allocation7 + $0x50] ss:$36 sps:$4 sm:$0xff]   ;;  %v11067_v51 = vld [vmem:[#allocation7 + $0xe0] ss:$36 sps:$4 sm:$0xff]   ;;  %v11073_v53 = vld [vmem:[#allocation7 + $0x128] ss:$36 sps:$4 sm:$0xff]  }
 0x120   :  { %v11081_v54 = vld [vmem:[#allocation7 + $0x174] ss:$36 sps:$4 sm:$0xff]   ;;  %v11087_v56 = vld [vmem:[#allocation7 + $0x1bc] ss:$36 sps:$4 sm:$0xff]   ;;  %v11093_v59 = vld [vmem:[#allocation7 + $0x204] ss:$36 sps:$4 sm:$0xff]  }
 0x121   :  { %v11079_v55 = vld [vmem:[#allocation7 + $0x170] ss:$36 sps:$4 sm:$0xff]   ;;  %v11085_v57 = vld [vmem:[#allocation7 + $0x1b8] ss:$36 sps:$4 sm:$0xff]   ;;  %v11091_v61 = vld [vmem:[#allocation7 + $0x200] ss:$36 sps:$4 sm:$0xff]  }
 0x122   :  { %v11090_v58 = vld [vmem:[#allocation7 + $0x1fc] ss:$36 sps:$4 sm:$0xff]   ;;  %v11096_v62 = vld [vmem:[#allocation7 + $0x244] ss:$36 sps:$4 sm:$0xff]   ;;  %v11099_v63 = vld [vmem:[#allocation7 + $0x24c] ss:$36 sps:$4 sm:$0xff]  }
 0x123   :  { %9564 = vmatmul.mubr.msk.bf16.vlgmr.msra.gmra.mrb[4].mxu0 %vm333_vm1, %v13659_v11  ;;  %v11088_v60 = vld [vmem:[#allocation7 + $0x1f8] ss:$36 sps:$4 sm:$0xff]   ;;  %v11097_v1 = vld [vmem:[#allocation7 + $0x248] ss:$36 sps:$4 sm:$0xff]   ;;  %v11103_v5 = vld [vmem:[#allocation7 + $0x290] ss:$36 sps:$4 sm:$0xff]  }
 0x124   :  { %9558 = vmatmul.mubr.msk.bf16.gmra.mrb[4].mxu1 %vm333_vm1, %v13681_v28  ;;  %536 = vmatprep.mubr.bf16.mxu0 %v13362_v0  ;;  %v11102_v2 = vld [vmem:[#allocation7 + $0x28c] ss:$36 sps:$4 sm:$0xff]   ;;  %v11105_v3 = vld [vmem:[#allocation7 + $0x294] ss:$36 sps:$4 sm:$0xff]   ;;  %v11111_v7 = vld [vmem:[#allocation7 + $0x2dc] ss:$36 sps:$4 sm:$0xff]  }
 0x125   :  { %463 = vmatprep.mubr.bf16.mxu1 %v13362_v0  ;;  %4517 = vmatpush1.bf16.msra.mxu0 %v11046_v29  ;;  %v11100_v4 = vld [vmem:[#allocation7 + $0x288] ss:$36 sps:$4 sm:$0xff]   ;;  %v11108_v6 = vld [vmem:[#allocation7 + $0x2d4] ss:$36 sps:$4 sm:$0xff]   ;;  %v11114_v10 = vld [vmem:[#allocation7 + $0x31c] ss:$36 sps:$4 sm:$0xff]  }
 0x126   :  { %4518 = vmatprep.subr.bf16.mxu0 %v11054_v30  ;;  %v11106_v8 = vld [vmem:[#allocation7 + $0x2d0] ss:$36 sps:$4 sm:$0xff]   ;;  %v11109_v9 = vld [vmem:[#allocation7 + $0x2d8] ss:$36 sps:$4 sm:$0xff]   ;;  %v11115_v13 = vld [vmem:[#allocation7 + $0x320] ss:$36 sps:$4 sm:$0xff]  }
 0x127   :  { %v11120_v14 = vld [vmem:[#allocation7 + $0x364] ss:$36 sps:$4 sm:$0xff]   ;;  %v11123_v15 = vld [vmem:[#allocation7 + $0x36c] ss:$36 sps:$4 sm:$0xff]   ;;  %v11129_v19 = vld [vmem:[#allocation7 + $0x3b4] ss:$36 sps:$4 sm:$0xff]  }
 0x128   :  { %v11118_v16 = vld [vmem:[#allocation7 + $0x360] ss:$36 sps:$4 sm:$0xff]   ;;  %v11121_v17 = vld [vmem:[#allocation7 + $0x368] ss:$36 sps:$4 sm:$0xff]   ;;  %v11127_v21 = vld [vmem:[#allocation7 + $0x3b0] ss:$36 sps:$4 sm:$0xff]  }
 0x129   :  { %4519 = vmatpush1.bf16.msra.mxu0 %v11052_v31  ;;  %v11126_v18 = vld [vmem:[#allocation7 + $0x3ac] ss:$36 sps:$4 sm:$0xff]   ;;  %v11132_v22 = vld [vmem:[#allocation7 + $0x3f4] ss:$36 sps:$4 sm:$0xff]   ;;  %v11135_v23 = vld [vmem:[#allocation7 + $0x3fc] ss:$36 sps:$4 sm:$0xff]  }
 0x12a   :  { %4520 = vmatprep.subr.bf16.mxu0 %v11060_v33  ;;  %v11124_v20 = vld [vmem:[#allocation7 + $0x3a8] ss:$36 sps:$4 sm:$0xff]   ;;  %v11130_v24 = vld [vmem:[#allocation7 + $0x3f0] ss:$36 sps:$4 sm:$0xff]   ;;  %v11133_v25 = vld [vmem:[#allocation7 + $0x3f8] ss:$36 sps:$4 sm:$0xff]  }
 0x12b   :  { %9565 = vmatmul.mubr.msk.bf16.gmra.mrb[8].mxu0 %vm333_vm1, %v13662_v12  ;;  %v11138_v26 = vld [vmem:[#allocation7 + $0x43c] ss:$36 sps:$4 sm:$0xff]   ;;  %v11141_v27 = vld [vmem:[#allocation7 + $0x444] ss:$36 sps:$4 sm:$0xff]   ;;  %v11147_v31 = vld [vmem:[#allocation7 + $0x48c] ss:$36 sps:$4 sm:$0xff]  }
 0x12c   :  { %9560 = vmatmul.mubr.msk.bf16.vlgmr.msra.gmra.mrb[8].mxu1 %vm333_vm1, %v13659_v11  ;;  %546 = vmatprep.mubr.bf16.mxu0 %v13362_v0  ;;  %v11139_v29 = vld [vmem:[#allocation7 + $0x440] ss:$36 sps:$4 sm:$0xff]   ;;  %v13712_v33 = vshrl.u32 %v261_v32, 7 }
 0x12d   :  { %473 = vmatprep.mubr.bf16.mxu1 %v13362_v0  ;;  %558 = vmatpush1.bf16.msra.mxu1 %v363_v36  ;;  %v11144_v30 = vld [vmem:[#allocation7 + $0x484] ss:$36 sps:$4 sm:$0xff]  }
 0x12e   :  { %4521 = vmatpush1.bf16.msra.mxu0 %v11058_v35  ;;  %4768 = vmatprep.subr.bf16.mxu1 %v11051_v34  ;;  %14973 = vst [vmem:[#allocation36_spill] sm:$0xff] %v13712_v33  ;;  %v13714_v34 = vld [vmem:[#allocation5] sm:$0xff]  ;;  %v13717_v35 = vsub.s32 0, %v13712_v33  ;;  %v13720_v36 = vsub.s32 1, %v13712_v33 }
 0x12f   :  { %4522 = vmatprep.subr.bf16.mxu0 %v11066_v37 }
 0x130   :  { %14974 = vst [vmem:[#allocation37_spill] sm:$0xff] %v13717_v35  ;;  %14975 = vst [vmem:[#allocation38_spill] sm:$0xff] %v13720_v36  ;;  %v264_v37 = vrot.slane %v13714_v34, %v13717_v35 }
 0x132   :  { %4523 = vmatpush1.bf16.msra.mxu0 %v11064_v38  ;;  %v268_v38 = vrot.slane %v13714_v34, %v13720_v36 }
 0x133   :  { %4524 = vmatprep.subr.bf16.mxu0 %v11072_v39  ;;  %9566 = vmatmul.mubr.msk.bf16.gmra.mrb[12].mxu0 %vm333_vm1, %v13681_v28 }
 0x134   :  { %9561 = vmatmul.mubr.msk.bf16.gmra.mrb[12].mxu1 %vm333_vm1, %v13662_v12 }
 0x135   :  { %483 = vmatprep.mubr.bf16.mxu1 %v13362_v0 }
 0x136   :  { %4525 = vmatpush1.bf16.msra.mxu0 %v11070_v40 }
 0x137   :  { %4526 = vmatprep.subr.bf16.mxu0 %v11078_v41 }
 0x13a   :  { %4527 = vmatpush1.bf16.msra.mxu0 %v11076_v42 }
 0x13b   :  { %4528 = vmatprep.subr.bf16.mxu0 %v11084_v43 }
 0x13c   :  { %9562 = vmatmul.mubr.msk.bf16.gmra.mrb[16].mxu1 %vm333_vm1, %v13681_v28 }
 0x13d   :  { %589 = vmatprep.mubr.bf16.mxu1 %v13362_v0 }
 0x13e   :  { %4529 = vmatpush1.bf16.msra.mxu0 %v11082_v44 }
 0x13f   :  { %4530 = vmatprep.subr.bf16.mxu0 %v11090_v58 }
 0x142   :  { %4531 = vmatpush1.bf16.msra.mxu0 %v11088_v60 }
 0x143   :  { %4532 = vmatprep.subr.bf16.mxu0 %v11096_v62 }
 0x144   :  { %9568 = vmatmul.mubr.msk.bf16.vlgmr.msra.gmra.mrb[20].mxu1 %vm333_vm1, %v13659_v11  ;;  %v11117_v11 = vld [vmem:[#allocation7 + $0x324] ss:$36 sps:$4 sm:$0xff]  }
 0x145   :  { %4769 = vmatpush1.bf16.msra.mxu1 %v11049_v45  ;;  %599 = vmatprep.mubr.bf16.mxu1 %v13362_v0  ;;  %v14940_v45 = vsub.s32 4, %v13712_v33 }
 0x146   :  { %4770 = vmatprep.subr.bf16.mxu1 %v11057_v46 }
 0x149   :  { %4771 = vmatpush1.bf16.msra.mxu1 %v11055_v47 }
 0x14a   :  { %4772 = vmatprep.subr.bf16.mxu1 %v11063_v48 }
 0x14c   :  { %9569 = vmatmul.mubr.msk.bf16.gmra.mrb[24].mxu1 %vm333_vm1, %v13662_v12  ;;  %v11112_v12 = vld [vmem:[#allocation7 + $0x318] ss:$36 sps:$4 sm:$0xff]  }
 0x14d   :  { %4773 = vmatpush1.bf16.msra.mxu1 %v11061_v49  ;;  %609 = vmatprep.mubr.bf16.mxu1 %v13362_v0  ;;  %v11094_v0 = vld [vmem:[#allocation7 + $0x240] ss:$36 sps:$4 sm:$0xff]  }
 0x14e   :  { %4774 = vmatprep.subr.bf16.mxu1 %v11069_v50  ;;  %4533 = vmatpush1.bf16.msra.mxu0 %v11094_v0  ;;  %v14939_v50 = vsub.s32 5, %v13712_v33  ;;  %v13753_v0 = vrot.slane %v13714_v34, %v14940_v45 }
 0x14f   :  { %4534 = vmatprep.subr.bf16.mxu0 %v11102_v2 }
 0x151   :  { %4775 = vmatpush1.bf16.msra.mxu1 %v11067_v51 }
 0x152   :  { %4776 = vmatprep.subr.bf16.mxu1 %v11075_v52  ;;  %4535 = vmatpush1.bf16.msra.mxu0 %v11100_v4 }
 0x153   :  { %4536 = vmatprep.subr.bf16.mxu0 %v11108_v6  ;;  %v13758_v6 = vsub.s32 2, %v13712_v33 }
 0x154   :  { %9570 = vmatmul.mubr.msk.bf16.gmra.mrb[28].mxu1 %vm333_vm1, %v13681_v28  ;;  %v11136_v28 = vld [vmem:[#allocation7 + $0x438] ss:$36 sps:$4 sm:$0xff]  }
 0x155   :  { %4777 = vmatpush1.bf16.msra.mxu1 %v11073_v53  ;;  %14976 = vst [vmem:[#allocation39_spill] sm:$0xff] %v13758_v6 }
 0x156   :  { %4778 = vmatprep.subr.bf16.mxu1 %v11081_v54  ;;  %4537 = vmatpush1.bf16.msra.mxu0 %v11106_v8 }
 0x157   :  { %4538 = vmatprep.subr.bf16.mxu0 %v11114_v10 }
 0x159   :  { %4779 = vmatpush1.bf16.msra.mxu1 %v11079_v55 }
 0x15a   :  { %4780 = vmatprep.subr.bf16.mxu1 %v11087_v56  ;;  %4539 = vmatpush1.bf16.msra.mxu0 %v11112_v12 }
 0x15b   :  { %4540 = vmatprep.subr.bf16.mxu0 %v11120_v14 }
 0x15d   :  { %4781 = vmatpush1.bf16.msra.mxu1 %v11085_v57 }
 0x15e   :  { %4782 = vmatprep.subr.bf16.mxu1 %v11093_v59  ;;  %4541 = vmatpush1.bf16.msra.mxu0 %v11118_v16 }
 0x15f   :  { %4542 = vmatprep.subr.bf16.mxu0 %v11126_v18 }
 0x161   :  { %4783 = vmatpush1.bf16.msra.mxu1 %v11091_v61 }
 0x162   :  { %4784 = vmatprep.subr.bf16.mxu1 %v11099_v63  ;;  %4543 = vmatpush1.bf16.msra.mxu0 %v11124_v20  ;;  %v13773_v20 = vsub.s32 3, %v13712_v33 }
 0x163   :  { %4544 = vmatprep.subr.bf16.mxu0 %v11132_v22 }
 0x164   :  { %14977 = vst [vmem:[#allocation40_spill] sm:$0xff] %v13773_v20 }
 0x165   :  { %4785 = vmatpush1.bf16.msra.mxu1 %v11097_v1 }
 0x166   :  { %4786 = vmatprep.subr.bf16.mxu1 %v11105_v3  ;;  %4545 = vmatpush1.bf16.msra.mxu0 %v11130_v24 }
 0x167   :  { %4546 = vmatprep.subr.bf16.mxu0 %v11138_v26 }
 0x169   :  { %4787 = vmatpush1.bf16.msra.mxu1 %v11103_v5 }
 0x16a   :  { %4788 = vmatprep.subr.bf16.mxu1 %v11111_v7  ;;  %4547 = vmatpush1.bf16.msra.mxu0 %v11136_v28 }
 0x16b   :  { %4579 = vmatprep.subr.bf16.mxu0 %v11144_v30 }
 0x16d   :  { %4789 = vmatpush1.bf16.msra.mxu1 %v11109_v9 }
 0x16e   :  { %4790 = vmatprep.subr.bf16.mxu1 %v11117_v11  ;;  %v13763_v11 = vrot.slane %v13714_v34, %v14939_v50 }
 0x171   :  { %4791 = vmatpush1.bf16.msra.mxu1 %v11115_v13 }
 0x172   :  { %4792 = vmatprep.subr.bf16.mxu1 %v11123_v15 }
 0x175   :  { %4793 = vmatpush1.bf16.msra.mxu1 %v11121_v17 }
 0x176   :  { %4794 = vmatprep.subr.bf16.mxu1 %v11129_v19 }
 0x179   :  { %4795 = vmatpush1.bf16.msra.mxu1 %v11127_v21 }
 0x17a   :  { %4796 = vmatprep.subr.bf16.mxu1 %v11135_v23 }
 0x17d   :  { %4797 = vmatpush1.bf16.msra.mxu1 %v11133_v25 }
 0x17e   :  { %4798 = vmatprep.subr.bf16.mxu1 %v11141_v27 }
 0x181   :  { %4799 = vmatpush1.bf16.msra.mxu1 %v11139_v29  ;;  %v13784_v29 = vrot.slane %v13714_v34, %v13758_v6 }
 0x182   :  { %4831 = vmatprep.subr.bf16.mxu1 %v11147_v31 }
 0x1ee   :  { %v402_v39 = vpop.f32.mrb[0].mxu0 }
 0x1ef   :  { %v412_v40 = vpop.f32.mrb[0].mxu1  ;;  %v13726_v41 = vadd.f32 %v402_v39, %v264_v37  ;;  %v404_v42 = vpop.f32.mrb[1].mxu0 }
 0x1f0   :  { %v13728_v43 = vadd.f32 %v412_v40, %v264_v37  ;;  %v414_v44 = vpop.f32.mrb[1].mxu1  ;;  %v13731_v46 = vadd.f32 %v404_v42, %v268_v38  ;;  %v406_v47 = vpop.f32.mrb[2].mxu0  ;;  %v13793_v40 = vrot.slane %v13714_v34, %v13773_v20 }
 0x1f1   :  { %v13733_v48 = vadd.f32 %v414_v44, %v268_v38  ;;  %v416_v49 = vpop.f32.mrb[2].mxu1  ;;  %v620_v51 = vsub.f32 0.0, %v13726_v41  ;;  %v13737_v52 = vadd.f32 %v406_v47, %v264_v37  ;;  %v408_v53 = vpop.f32.mrb[3].mxu0 }
 0x1f2   :  { %v636_v54 = vsub.f32 0.0, %v13728_v43  ;;  %v13740_v55 = vadd.f32 %v416_v49, %v264_v37  ;;  %v418_v56 = vpop.f32.mrb[3].mxu1  ;;  %v621_v57 = vsub.f32 0.0, %v13731_v46  ;;  %v13743_v58 = vadd.f32 %v408_v53, %v268_v38 }
 0x1f3   :  { %v637_v59 = vsub.f32 0.0, %v13733_v48  ;;  %v13746_v60 = vadd.f32 %v418_v56, %v268_v38  ;;  %v668_v61 = vmul.f32 1.442695, %v620_v51  ;;  %v628_v62 = vsub.f32 0.0, %v13737_v52 }
 0x1f4   :  { %v644_v63 = vsub.f32 0.0, %v13740_v55  ;;  %v670_v1 = vmul.f32 1.442695, %v621_v57  ;;  %v629_v2 = vsub.f32 0.0, %v13743_v58  ;;  %v700_v5 = vmul.f32 1.442695, %v636_v54 }
 0x1f5   :  { %v645_v3 = vsub.f32 0.0, %v13746_v60  ;;  %12390 = vpow2.f32 %v668_v61  ;;  %v684_v4 = vmul.f32 1.442695, %v628_v62  ;;  %v702_v8 = vmul.f32 1.442695, %v637_v59 }
 0x1f6   :  { %12392 = vpow2.f32 %v670_v1  ;;  %v686_v7 = vmul.f32 1.442695, %v629_v2  ;;  %v528_v10 = vpop.f32.mrb[4].mxu0  ;;  %v716_v12 = vmul.f32 1.442695, %v644_v63 }
 0x1f7   :  { %v422_v9 = vpop.f32.mrb[4].mxu1  ;;  %12394 = vpow2.f32 %v684_v4  ;;  %v13768_v15 = vadd.f32 %v528_v10, %v13753_v0  ;;  %v530_v16 = vpop.f32.mrb[5].mxu0  ;;  %v718_v17 = vmul.f32 1.442695, %v645_v3 }
 0x1f8   :  { %v13765_v13 = vadd.f32 %v422_v9, %v264_v37  ;;  %v424_v14 = vpop.f32.mrb[5].mxu1  ;;  %12396 = vpow2.f32 %v686_v7  ;;  %v532_v21 = vpop.f32.mrb[6].mxu0  ;;  %v13788_v32 = vadd.f32 %v530_v16, %v13763_v11 }
 0x1f9   :  { %v13770_v18 = vadd.f32 %v424_v14, %v268_v38  ;;  %v426_v19 = vpop.f32.mrb[6].mxu1  ;;  %12398 = vpow2.f32 %v700_v5  ;;  %v624_v25 = vsub.f32 0.0, %v13768_v15  ;;  %v534_v26 = vpop.f32.mrb[7].mxu0  ;;  %v13805_v1 = vadd.f32 %v532_v21, %v13753_v0 }
 0x1fa   :  { %v652_v22 = vsub.f32 0.0, %v13765_v13  ;;  %v13776_v23 = vadd.f32 %v426_v19, %v264_v37  ;;  %v428_v24 = vpop.f32.mrb[7].mxu1  ;;  %12400 = vpow2.f32 %v702_v8  ;;  %v625_v56 = vsub.f32 0.0, %v13788_v32 }
 0x1fb   :  { %v653_v27 = vsub.f32 0.0, %v13770_v18  ;;  %v13780_v28 = vadd.f32 %v428_v24, %v268_v38  ;;  %12402 = vpow2.f32 %v716_v12  ;;  %v676_v42 = vmul.f32 1.442695, %v624_v25 }
 0x1fc   :  { %v732_v30 = vmul.f32 1.442695, %v652_v22  ;;  %v660_v31 = vsub.f32 0.0, %v13776_v23  ;;  %12404 = vpow2.f32 %v718_v17  ;;  %v13810_v7 = vadd.f32 %v534_v26, %v13763_v11 }
 0x1fd   :  { %v734_v37 = vmul.f32 1.442695, %v653_v27  ;;  %v661_v39 = vsub.f32 0.0, %v13780_v28  ;;  %v13819_v21 = vmul.f32 1.442695, %v625_v56 }
 0x1fe   :  { %12406 = vpow2.f32 %v732_v30  ;;  %v748_v38 = vmul.f32 1.442695, %v660_v31  ;;  %v538_v49 = vpop.f32.mrb[8].mxu0 }
 0x1ff   :  { %12408 = vpow2.f32 %v734_v37  ;;  %v750_v44 = vmul.f32 1.442695, %v661_v39  ;;  %v465_v47 = vpop.f32.mrb[8].mxu1  ;;  %v12391_v51 = vpop.eup %12390  ;;  %v13827_v37 = vadd.f32 %v538_v49, %v13753_v0 }
 0x200   :  { %12410 = vpow2.f32 %v748_v38  ;;  %v13796_v53 = vadd.f32 %v465_v47, %v13784_v29  ;;  %v467_v54 = vpop.f32.mrb[9].mxu1  ;;  %v13799_v57 = vpop.f32.mrb[9].mxu0  ;;  %v764_v61 = vadd.f32 1.0, %v12391_v51 }
 0x201   :  { %v12393_v59 = vpop.eup %12392  ;;  %12412 = vpow2.f32 %v750_v44  ;;  %v13802_v62 = vadd.f32 %v467_v54, %v13793_v40  ;;  %v469_v63 = vpop.f32.mrb[10].mxu1  ;;  %v13858_v26 = vadd.f32 %v13799_v57, %v13763_v11 }
 0x202   :  { %v13807_v2 = vpop.f32.mrb[10].mxu0  ;;  %v12395_v3 = vpop.eup %12394  ;;  %v765_v4 = vadd.f32 1.0, %v12393_v59  ;;  %12414 = vpow2.f32 %v676_v42  ;;  %v622_v12 = vsub.f32 0.0, %v13796_v53  ;;  %v13816_v14 = vadd.f32 %v469_v63, %v13784_v29 }
 0x203   :  { %v471_v5 = vpop.f32.mrb[11].mxu1  ;;  %v13812_v8 = vpop.f32.mrb[11].mxu0  ;;  %12416 = vrcp.f32 %v764_v61  ;;  %v772_v10 = vadd.f32 1.0, %v12395_v3  ;;  %v623_v19 = vsub.f32 0.0, %v13802_v62 }
 0x204   :  { %v12397_v9 = vpop.eup %12396  ;;  %12418 = vrcp.f32 %v765_v4  ;;  %v13822_v25 = vadd.f32 %v471_v5, %v13793_v40  ;;  %v672_v42 = vmul.f32 1.442695, %v622_v12  ;;  %v630_v44 = vsub.f32 0.0, %v13816_v14 }
 0x205   :  { %v12399_v16 = vpop.eup %12398  ;;  %v773_v17 = vadd.f32 1.0, %v12397_v9  ;;  %12420 = vrcp.f32 %v772_v10  ;;  %v674_v56 = vmul.f32 1.442695, %v623_v19 }
 0x206   :  { %v12401_v22 = vpop.eup %12400  ;;  %v780_v24 = vadd.f32 1.0, %v12399_v16  ;;  %v13833_v63 = vpop.f32.mrb[12].mxu0  ;;  %v631_v4 = vsub.f32 0.0, %v13822_v25 }
 0x207   :  { %v12403_v27 = vpop.eup %12402  ;;  %12422 = vrcp.f32 %v773_v17  ;;  %v781_v30 = vadd.f32 1.0, %v12401_v22  ;;  %v475_v47 = vpop.f32.mrb[12].mxu1 }
 0x208   :  { %v12405_v39 = vpop.eup %12404  ;;  %12424 = vrcp.f32 %v780_v24  ;;  %v788_v38 = vadd.f32 1.0, %v12403_v27  ;;  %v13831_v59 = vadd.f32 %v475_v47, %v13784_v29  ;;  %v477_v61 = vpop.f32.mrb[13].mxu1  ;;  %v690_v50 = vmul.f32 1.442695, %v631_v4 }
 0x209   :  { %v12407_v51 = vpop.eup %12406  ;;  %12426 = vrcp.f32 %v781_v30  ;;  %v789_v54 = vadd.f32 1.0, %v12405_v39  ;;  %v13837_v5 = vadd.f32 %v477_v61, %v13793_v40  ;;  %v479_v9 = vpop.f32.mrb[14].mxu1  ;;  %v688_v61 = vmul.f32 1.442695, %v630_v44 }
 0x20a   :  { %v12409_v3 = vpop.eup %12408  ;;  %12428 = vrcp.f32 %v788_v38  ;;  %v796_v49 = vadd.f32 1.0, %v12407_v51  ;;  %v13839_v10 = vpop.f32.mrb[13].mxu0  ;;  %v638_v17 = vsub.f32 0.0, %v13831_v59  ;;  %v13843_v19 = vadd.f32 %v479_v9, %v13784_v29 }
 0x20b   :  { %v12411_v12 = vpop.eup %12410  ;;  %12430 = vrcp.f32 %v789_v54  ;;  %v797_v16 = vadd.f32 1.0, %v12409_v3  ;;  %v481_v22 = vpop.f32.mrb[15].mxu1  ;;  %v639_v39 = vsub.f32 0.0, %v13837_v5 }
 0x20c   :  { %v13845_v24 = vpop.f32.mrb[14].mxu0  ;;  %v12413_v27 = vpop.eup %12412  ;;  %12432 = vrcp.f32 %v796_v49  ;;  %v804_v30 = vadd.f32 1.0, %v12411_v12  ;;  %v13849_v38 = vadd.f32 %v481_v22, %v13793_v40  ;;  %v646_v3 = vsub.f32 0.0, %v13843_v19 }
 0x20d   :  { %v13851_v47 = vpop.f32.mrb[15].mxu0  ;;  %v12415_v51 = vpop.eup %12414  ;;  %12434 = vrcp.f32 %v797_v16  ;;  %v805_v54 = vadd.f32 1.0, %v12413_v27  ;;  %v704_v31 = vmul.f32 1.442695, %v638_v17  ;;  %v706_v22 = vmul.f32 1.442695, %v639_v39 }
 0x20e   :  { %v12417_v9 = vpop.eup %12416  ;;  %12436 = vrcp.f32 %v804_v30  ;;  %v647_v45 = vsub.f32 0.0, %v13849_v38  ;;  %v720_v27 = vmul.f32 1.442695, %v646_v3  ;;  %v13861_v30 = vadd.f32 1.0, %v12415_v51 }
 0x20f   :  { %v12419_v12 = vpop.eup %12418  ;;  %12438 = vrcp.f32 %v805_v54  ;;  %v860_v44 = vmul.f32 %v12417_v9, %v13726_v41  ;;  %v485_v20 = vpop.f32.mrb[16].mxu1  ;;  %v11142_v41 = vld [vmem:[#allocation7 + $0x480] ss:$36 sps:$4 sm:$0xff]  }
 0x210   :  { %v12421_v16 = vpop.eup %12420  ;;  %12440 = vpow2.f32 %v672_v42  ;;  %v861_v36 = vmul.f32 %v12419_v12, %v13731_v46  ;;  %v13866_v17 = vadd.f32 %v485_v20, %v13784_v29  ;;  %v487_v39 = vpop.f32.mrb[17].mxu1  ;;  %v722_v42 = vmul.f32 1.442695, %v647_v45 }
 0x211   :  { %v12423_v4 = vpop.eup %12422  ;;  %v868_v49 = vmul.f32 %v12421_v16, %v13737_v52  ;;  %12442 = vpow2.f32 %v674_v56  ;;  %v13870_v3 = vadd.f32 %v487_v39, %v13793_v40  ;;  %v489_v51 = vpop.f32.mrb[18].mxu1  ;;  %v11145_v52 = vld [vmem:[#allocation7 + $0x488] ss:$36 sps:$4 sm:$0xff]  }
 0x212   :  { %v12425_v57 = vpop.eup %12424  ;;  %v869_v54 = vmul.f32 %v12423_v4, %v13743_v58  ;;  %12444 = vpow2.f32 %v688_v61  ;;  %v654_v20 = vsub.f32 0.0, %v13866_v17  ;;  %v491_v56 = vpop.f32.mrb[19].mxu1 }
 0x213   :  { %v12427_v9 = vpop.eup %12426  ;;  %v13872_v6 = vpack.c.bf16 %v868_v49, %v860_v44  ;;  %v876_v46 = vmul.f32 %v12425_v57, %v13728_v43  ;;  %12446 = vpow2.f32 %v690_v50  ;;  %v655_v45 = vsub.f32 0.0, %v13870_v3  ;;  %v11150_v49 = vld [vmem:[#allocation7 + $0x4cc] ss:$36 sps:$4 sm:$0xff]   ;;  %v11153_v44 = vld [vmem:[#allocation7 + $0x4d4] ss:$36 sps:$4 sm:$0xff]  }
 0x214   :  { %v12429_v12 = vpop.eup %12428  ;;  %v13876_v16 = vpack.c.bf16 %v869_v54, %v861_v36  ;;  %v877_v58 = vmul.f32 %v12427_v9, %v13733_v48  ;;  %12448 = vpow2.f32 %v704_v31  ;;  %v736_v43 = vmul.f32 1.442695, %v654_v20  ;;  %v11148_v36 = vld [vmem:[#allocation7 + $0x4c8] ss:$36 sps:$4 sm:$0xff]   ;;  %v11156_v9 = vld [vmem:[#allocation7 + $0x514] ss:$36 sps:$4 sm:$0xff]  }
 0x215   :  { %v12431_v61 = vpop.eup %12430  ;;  %v884_v4 = vmul.f32 %v12429_v12, %v13740_v55  ;;  %12450 = vpow2.f32 %v706_v22  ;;  %v13882_v50 = vadd.f32 %v489_v51, %v13784_v29  ;;  %v738_v48 = vmul.f32 1.442695, %v655_v45  ;;  %v11154_v45 = vld [vmem:[#allocation7 + $0x510] ss:$36 sps:$4 sm:$0xff]  }
 0x216   :  { %v12433_v39 = vpop.eup %12432  ;;  %v885_v57 = vmul.f32 %v12431_v61, %v13746_v60  ;;  %4548 = vmatprep.mubr.bf16.mxu0 %v13876_v16  ;;  %4800 = vmatprep.mubr.bf16.mxu1 %v13876_v16  ;;  %12452 = vpow2.f32 %v720_v27  ;;  %v13888_v31 = vadd.f32 %v491_v56, %v13793_v40  ;;  %v11151_v40 = vld [vmem:[#allocation7 + $0x4d0] ss:$36 sps:$4 sm:$0xff]   ;;  %v11157_v61 = vld [vmem:[#allocation7 + $0x518] ss:$36 sps:$4 sm:$0xff]  }
 0x217   :  { %v12435_v55 = vpop.eup %12434  ;;  %v13890_v54 = vpack.c.bf16 %v884_v4, %v876_v46  ;;  %v892_v22 = vmul.f32 %v12433_v39, %v13765_v13  ;;  %4549 = vmatmul.mubr.bf16.vlgmr.msra.gmra.mrb[16].mxu0 %v13872_v6  ;;  %4801 = vmatmul.mubr.bf16.vlgmr.msra.gmra.mrb[32].mxu1 %v13872_v6  ;;  %12454 = vpow2.f32 %v722_v42  ;;  %v662_v60 = vsub.f32 0.0, %v13882_v50  ;;  %v13900_v13 = vpop.f32.mrb[20].mxu1  ;;  %v11159_v42 = vld [vmem:[#allocation7 + $0x51c] ss:$36 sps:$4 sm:$0xff]  }
 0x218   :  { %v12437_v29 = vpop.eup %12436  ;;  %v13896_v51 = vpack.c.bf16 %v885_v57, %v877_v58  ;;  %v893_v27 = vmul.f32 %v12435_v55, %v13770_v18  ;;  %4580 = vmatpush1.bf16.msra.mxu0 %v11142_v41  ;;  %4832 = vmatpush1.bf16.msra.mxu1 %v11145_v52  ;;  %12456 = vpow2.f32 %v736_v43  ;;  %v663_v46 = vsub.f32 0.0, %v13888_v31  ;;  %v13907_v41 = vpop.f32.mrb[21].mxu1 }
 0x219   :  { %14978 = vst [vmem:[#allocation41_spill] sm:$0xff] %v13890_v54  ;;  %v12439_v20 = vpop.eup %12438  ;;  %v900_v56 = vmul.f32 %v12437_v29, %v13776_v23  ;;  %4581 = vmatprep.subr.bf16.mxu0 %v11150_v49  ;;  %4833 = vmatprep.subr.bf16.mxu1 %v11153_v44  ;;  %12458 = vpow2.f32 %v738_v48  ;;  %v752_v12 = vmul.f32 1.442695, %v662_v60  ;;  %v13905_v18 = vadd.f32 %v13807_v2, %v13753_v0  ;;  %v13917_v2 = vpop.f32.mrb[22].mxu1  ;;  %v11165_v29 = vld [vmem:[#allocation7 + $0x564] ss:$36 sps:$4 sm:$0xff]  }
 0x21a   :  { %14979 = vst [vmem:[#allocation42_spill] sm:$0xff] %v13896_v51  ;;  %v12441_v52 = vpop.eup %12440  ;;  %v901_v58 = vmul.f32 %v12439_v20, %v13780_v28  ;;  %4558 = vmatprep.mubr.bf16.mxu0 %v13896_v51  ;;  %4810 = vmatprep.mubr.bf16.mxu1 %v13896_v51  ;;  %v754_v23 = vmul.f32 1.442695, %v663_v46  ;;  %12460 = vrcp.f32 %v13861_v30  ;;  %v14980_v4 = vsub.f32 0.0, %v13805_v1  ;;  %v11162_v28 = vld [vmem:[#allocation7 + $0x55c] ss:$36 sps:$4 sm:$0xff]  }
 0x21b   :  { %v12443_v44 = vpop.eup %12442  ;;  %v13919_v43 = vpack.c.bf16 %v900_v56, %v892_v22  ;;  %v766_v39 = vadd.f32 1.0, %v12441_v52  ;;  %12462 = vpow2.f32 %v752_v12  ;;  %v641_v57 = vsub.f32 0.0, %v13858_v26  ;;  %v13922_v48 = vpop.f32.mrb[23].mxu1 }
 0x21c   :  { %v13915_v49 = vmul.f32 1.442695, %v14980_v4  ;;  %v12445_v55 = vpop.eup %12444  ;;  %v13924_v60 = vpack.c.bf16 %v901_v58, %v893_v27  ;;  %v767_v30 = vadd.f32 1.0, %v12443_v44  ;;  %4582 = vmatpush1.bf16.msra.mxu0 %v11148_v36  ;;  %4834 = vmatpush1.bf16.msra.mxu1 %v11151_v40  ;;  %12464 = vpow2.f32 %v754_v23  ;;  %v11160_v40 = vld [vmem:[#allocation7 + $0x558] ss:$36 sps:$4 sm:$0xff]  }
 0x21d   :  { %14981 = vst [vmem:[#allocation43_spill] sm:$0xff] %v13919_v43  ;;  %v14983_v46 = vsub.f32 0.0, %v13810_v7  ;;  %v12447_v22 = vpop.eup %12446  ;;  %12466 = vrcp.f32 %v766_v39  ;;  %v774_v56 = vadd.f32 1.0, %v12445_v55  ;;  %4583 = vmatprep.subr.bf16.mxu0 %v11156_v9  ;;  %4835 = vmatprep.subr.bf16.mxu1 %v11159_v42  ;;  %v14984_v12 = vsub.f32 0.0, %v13827_v37  ;;  %v11163_v55 = vld [vmem:[#allocation7 + $0x560] ss:$36 sps:$4 sm:$0xff]  }
 0x21e   :  { %14982 = vst [vmem:[#allocation44_spill] sm:$0xff] %v13924_v60  ;;  %v648_v27 = vsub.f32 0.0, %v13905_v18  ;;  %v12449_v58 = vpop.eup %12448  ;;  %12468 = vrcp.f32 %v767_v30  ;;  %v775_v36 = vadd.f32 1.0, %v12447_v22  ;;  %v13937_v23 = vadd.f32 %v13812_v8, %v13763_v11  ;;  %v11168_v8 = vld [vmem:[#allocation7 + $0x5a4] ss:$36 sps:$4 sm:$0xff]  }
 0x21f   :  { %v13928_v20 = vmul.f32 1.442695, %v14983_v46  ;;  %v13932_v52 = vmul.f32 1.442695, %v14984_v12  ;;  %v13941_v4 = vadd.f32 %v13833_v63, %v13753_v0  ;;  %v12451_v9 = vpop.eup %12450  ;;  %12470 = vrcp.f32 %v774_v56  ;;  %4559 = vmatmul.mubr.bf16.gmra.mrb[20].mxu0 %v13890_v54  ;;  %4811 = vmatmul.mubr.bf16.gmra.mrb[36].mxu1 %v13890_v54 }
 0x220   :  { %v782_v42 = vadd.f32 1.0, %v12449_v58  ;;  %v13945_v44 = vmul.f32 1.442695, %v641_v57  ;;  %v12453_v39 = vpop.eup %12452  ;;  %12472 = vrcp.f32 %v775_v36  ;;  %4584 = vmatpush1.bf16.msra.mxu0 %v11154_v45  ;;  %4836 = vmatpush1.bf16.msra.mxu1 %v11157_v61  ;;  %v783_v30 = vadd.f32 1.0, %v12451_v9  ;;  %v11171_v57 = vld [vmem:[#allocation7 + $0x5ac] ss:$36 sps:$4 sm:$0xff]  }
 0x221   :  { %v13949_v63 = vadd.f32 %v13839_v10, %v13763_v11  ;;  %v13953_v46 = vadd.f32 %v13845_v24, %v13753_v0  ;;  %v12455_v22 = vpop.eup %12454  ;;  %4585 = vmatprep.subr.bf16.mxu0 %v11162_v28  ;;  %4837 = vmatprep.subr.bf16.mxu1 %v11165_v29  ;;  %v790_v56 = vadd.f32 1.0, %v12453_v39  ;;  %v13955_v12 = vmul.f32 1.442695, %v648_v27  ;;  %v11166_v29 = vld [vmem:[#allocation7 + $0x5a0] ss:$36 sps:$4 sm:$0xff]  }
 0x222   :  { %12474 = vrcp.f32 %v782_v42  ;;  %v13959_v45 = vadd.f32 %v13851_v47, %v13763_v11  ;;  %v12457_v61 = vpop.eup %12456  ;;  %4568 = vmatprep.mubr.bf16.mxu0 %v13924_v60  ;;  %4820 = vmatprep.mubr.bf16.mxu1 %v13924_v60  ;;  %v791_v0 = vadd.f32 1.0, %v12455_v22  ;;  %v649_v10 = vsub.f32 0.0, %v13937_v23  ;;  %v11169_v36 = vld [vmem:[#allocation7 + $0x5a8] ss:$36 sps:$4 sm:$0xff]  }
 0x223   :  { %12476 = vrcp.f32 %v783_v30  ;;  %v656_v24 = vsub.f32 0.0, %v13941_v4  ;;  %v12459_v28 = vpop.eup %12458  ;;  %v798_v27 = vadd.f32 1.0, %v12457_v61  ;;  %v14949_v58 = vsub.s32 6, %v13712_v33  ;;  %v11174_v22 = vld [vmem:[#allocation7 + $0x5ec] ss:$36 sps:$4 sm:$0xff]  }
 0x224   :  { %12478 = vrcp.f32 %v790_v56  ;;  %v14952_v11 = vsub.s32 7, %v13712_v33  ;;  %v13967_v47 = vpop.eup %12460  ;;  %4586 = vmatpush1.bf16.msra.mxu0 %v11160_v40  ;;  %4838 = vmatpush1.bf16.msra.mxu1 %v11163_v55  ;;  %v799_v9 = vadd.f32 1.0, %v12459_v28  ;;  %v657_v42 = vsub.f32 0.0, %v13949_v63  ;;  %v11177_v56 = vld [vmem:[#allocation7 + $0x5f4] ss:$36 sps:$4 sm:$0xff]  }
 0x225   :  { %12480 = vrcp.f32 %v791_v0  ;;  %v664_v39 = vsub.f32 0.0, %v13953_v46  ;;  %v12463_v30 = vpop.eup %12462  ;;  %4587 = vmatprep.subr.bf16.mxu0 %v11168_v8  ;;  %4839 = vmatprep.subr.bf16.mxu1 %v11171_v57  ;;  %v665_v61 = vsub.f32 0.0, %v13959_v45  ;;  %v13975_v40 = vrot.slane %v13714_v34, %v14949_v58  ;;  %v11172_v28 = vld [vmem:[#allocation7 + $0x5e8] ss:$36 sps:$4 sm:$0xff]   ;;  %v11175_v33 = vld [vmem:[#allocation7 + $0x5f0] ss:$36 sps:$4 sm:$0xff]  }
 0x226   :  { %12482 = vrcp.f32 %v798_v27  ;;  %v13980_v55 = vrot.slane %v13714_v34, %v14952_v11  ;;  %v12465_v0 = vpop.eup %12464  ;;  %v806_v8 = vadd.f32 1.0, %v12463_v30  ;;  %v726_v34 = vmul.f32 1.442695, %v649_v10 }
 0x227   :  { %12484 = vrcp.f32 %v799_v9  ;;  %v12467_v57 = vpop.eup %12466  ;;  %4569 = vmatmul.mubr.bf16.gmra.mrb[24].mxu0 %v13919_v43  ;;  %4821 = vmatmul.mubr.bf16.gmra.mrb[40].mxu1 %v13919_v43  ;;  %v807_v27 = vadd.f32 1.0, %v12465_v0  ;;  %v13988_v9 = vadd.f32 %v13900_v13, %v13975_v40  ;;  %v11180_v0 = vld [vmem:[#allocation7 + $0x634] ss:$36 sps:$4 sm:$0xff]   ;;  %v11183_v43 = vld [vmem:[#allocation7 + $0x63c] ss:$36 sps:$4 sm:$0xff]  }
 0x228   :  { %12486 = vpow2.f32 %v13819_v21  ;;  %v12469_v35 = vpop.eup %12468  ;;  %v862_v58 = vmul.f32 %v12467_v57, %v13796_v53  ;;  %4588 = vmatpush1.bf16.msra.mxu0 %v11166_v29  ;;  %4840 = vmatpush1.bf16.msra.mxu1 %v11169_v36  ;;  %v740_v21 = vmul.f32 1.442695, %v656_v24  ;;  %v13993_v53 = vadd.f32 %v13907_v41, %v13980_v55  ;;  %v11178_v41 = vld [vmem:[#allocation7 + $0x630] ss:$36 sps:$4 sm:$0xff]   ;;  %v11181_v24 = vld [vmem:[#allocation7 + $0x638] ss:$36 sps:$4 sm:$0xff]  }
 0x229   :  { %12488 = vrcp.f32 %v806_v8  ;;  %v12471_v30 = vpop.eup %12470  ;;  %v863_v11 = vmul.f32 %v12469_v35, %v13802_v62  ;;  %4589 = vmatprep.subr.bf16.mxu0 %v11174_v22  ;;  %4841 = vmatprep.subr.bf16.mxu1 %v11177_v56  ;;  %v742_v13 = vmul.f32 1.442695, %v657_v42  ;;  %v756_v35 = vmul.f32 1.442695, %v664_v39 }
 0x22a   :  { %12490 = vrcp.f32 %v807_v27  ;;  %v12473_v29 = vpop.eup %12472  ;;  %v870_v10 = vmul.f32 %v12471_v30, %v13816_v14  ;;  %v758_v62 = vmul.f32 1.442695, %v665_v61  ;;  %v626_v14 = vsub.f32 0.0, %v13988_v9  ;;  %v11184_v61 = vld [vmem:[#allocation7 + $0x678] ss:$36 sps:$4 sm:$0xff]  }
 0x22b   :  { %12492 = vpow2.f32 %v13915_v49  ;;  %v871_v8 = vmul.f32 %v12473_v29, %v13822_v25  ;;  %v11186_v25 = vld [vmem:[#allocation7 + $0x67c] ss:$36 sps:$4 sm:$0xff]  }
 0x22c   :  { %v12475_v36 = vpop.eup %12474  ;;  %12494 = vpow2.f32 %v13928_v20  ;;  %v13999_v56 = vpack.c.bf16 %v870_v10, %v862_v58  ;;  %4590 = vmatpush1.bf16.msra.mxu0 %v11172_v28  ;;  %4842 = vmatpush1.bf16.msra.mxu1 %v11175_v33  ;;  %v11189_v20 = vld [vmem:[#allocation7 + $0x684] ss:$36 sps:$4 sm:$0xff]   ;;  %v627_v33 = vsub.f32 0.0, %v13993_v53  ;;  %v680_v27 = vmul.f32 1.442695, %v626_v14 }
 0x22d   :  { %v12477_v22 = vpop.eup %12476  ;;  %v878_v57 = vmul.f32 %v12475_v36, %v13831_v59  ;;  %12496 = vpow2.f32 %v13932_v52  ;;  %v14004_v42 = vpack.c.bf16 %v871_v8, %v863_v11  ;;  %4591 = vmatprep.subr.bf16.mxu0 %v11180_v0  ;;  %4843 = vmatprep.subr.bf16.mxu1 %v11183_v43  ;;  %v11187_v59 = vld [vmem:[#allocation7 + $0x680] ss:$36 sps:$4 sm:$0xff]  }
 0x22e   :  { %14985 = vst [vmem:[#allocation45_spill] sm:$0xff] %v13999_v56  ;;  %v12479_v49 = vpop.eup %12478  ;;  %v879_v58 = vmul.f32 %v12477_v22, %v13837_v5  ;;  %12498 = vpow2.f32 %v13945_v44  ;;  %v11192_v44 = vld [vmem:[#allocation7 + $0x6c4] ss:$36 sps:$4 sm:$0xff]   ;;  %v682_v29 = vmul.f32 1.442695, %v627_v33 }
 0x22f   :  { %v12481_v39 = vpop.eup %12480  ;;  %v886_v52 = vmul.f32 %v12479_v49, %v13843_v19  ;;  %12500 = vpow2.f32 %v13955_v12  ;;  %4611 = vmatprep.mubr.bf16.mxu0 %v14004_v42  ;;  %4863 = vmatprep.mubr.bf16.mxu1 %v14004_v42  ;;  %v11195_v19 = vld [vmem:[#allocation7 + $0x6cc] ss:$36 sps:$4 sm:$0xff]   ;;  %v11190_v22 = vld [vmem:[#allocation7 + $0x6c0] ss:$36 sps:$4 sm:$0xff]  }
 0x230   :  { %v12483_v28 = vpop.eup %12482  ;;  %v887_v43 = vmul.f32 %v12481_v39, %v13849_v38  ;;  %12502 = vpow2.f32 %v726_v34  ;;  %4592 = vmatpush1.bf16.msra.mxu0 %v11178_v41  ;;  %4844 = vmatpush1.bf16.msra.mxu1 %v11181_v24  ;;  %v11193_v41 = vld [vmem:[#allocation7 + $0x6c8] ss:$36 sps:$4 sm:$0xff]  }
 0x231   :  { %v12485_v5 = vpop.eup %12484  ;;  %v14014_v11 = vpack.c.bf16 %v886_v52, %v878_v57  ;;  %12504 = vpow2.f32 %v740_v21  ;;  %4593 = vmatprep.subr.bf16.mxu0 %v11186_v25  ;;  %4845 = vmatprep.subr.bf16.mxu1 %v11189_v20  ;;  %v894_v0 = vmul.f32 %v12483_v28, %v13866_v17  ;;  %v11201_v57 = vld [vmem:[#allocation7 + $0x714] ss:$36 sps:$4 sm:$0xff]   ;;  %v11196_v49 = vld [vmem:[#allocation7 + $0x708] ss:$36 sps:$4 sm:$0xff]  }
 0x232   :  { %v12487_v30 = vpop.eup %12486  ;;  %v14016_v12 = vpack.c.bf16 %v887_v43, %v879_v58  ;;  %12506 = vpow2.f32 %v742_v13  ;;  %v895_v34 = vmul.f32 %v12485_v5, %v13870_v3  ;;  %v11198_v13 = vld [vmem:[#allocation7 + $0x70c] ss:$36 sps:$4 sm:$0xff]   ;;  %v14032_v58 = vadd.f32 %v13922_v48, %v13980_v55  ;;  %v11207_v5 = vld [vmem:[#allocation7 + $0x75c] ss:$36 sps:$4 sm:$0xff]  }
 0x233   :  { %14986 = vst [vmem:[#allocation46_spill] sm:$0xff] %v14014_v11  ;;  %v12489_v38 = vpop.eup %12488  ;;  %v769_v10 = vadd.f32 1.0, %v12487_v30  ;;  %12508 = vpow2.f32 %v756_v35  ;;  %v11199_v25 = vld [vmem:[#allocation7 + $0x710] ss:$36 sps:$4 sm:$0xff]  }
 0x234   :  { %14987 = vst [vmem:[#allocation47_spill] sm:$0xff] %v14016_v12  ;;  %v12491_v36 = vpop.eup %12490  ;;  %v902_v8 = vmul.f32 %v12489_v38, %v13882_v50  ;;  %12510 = vpow2.f32 %v758_v62  ;;  %4594 = vmatpush1.bf16.msra.mxu0 %v11184_v61  ;;  %4846 = vmatpush1.bf16.msra.mxu1 %v11187_v59  ;;  %v14026_v50 = vadd.f32 %v13917_v2, %v13975_v40  ;;  %v601_v62 = vpop.f32.mrb[24].mxu1  ;;  %v11204_v59 = vld [vmem:[#allocation7 + $0x754] ss:$36 sps:$4 sm:$0xff]  }
 0x235   :  { %v12493_v21 = vpop.eup %12492  ;;  %v903_v24 = vmul.f32 %v12491_v36, %v13888_v31  ;;  %12512 = vrcp.f32 %v769_v10  ;;  %4595 = vmatprep.subr.bf16.mxu0 %v11192_v44  ;;  %4847 = vmatprep.subr.bf16.mxu1 %v11195_v19  ;;  %v14035_v61 = vadd.f32 %v601_v62, %v13975_v40  ;;  %v603_v28 = vpop.f32.mrb[25].mxu1 }
 0x236   :  { %v12495_v17 = vpop.eup %12494  ;;  %v14022_v3 = vpack.c.bf16 %v902_v8, %v894_v0  ;;  %v776_v35 = vadd.f32 1.0, %v12493_v21  ;;  %12514 = vpow2.f32 %v680_v27  ;;  %v634_v44 = vsub.f32 0.0, %v14026_v50  ;;  %v605_v30 = vpop.f32.mrb[26].mxu1  ;;  %v11202_v0 = vld [vmem:[#allocation7 + $0x750] ss:$36 sps:$4 sm:$0xff]  }
 0x237   :  { %v12497_v14 = vpop.eup %12496  ;;  %v14028_v20 = vpack.c.bf16 %v903_v24, %v895_v34  ;;  %v777_v31 = vadd.f32 1.0, %v12495_v17  ;;  %12516 = vpow2.f32 %v682_v29  ;;  %v14039_v27 = vadd.f32 %v603_v28, %v13980_v55  ;;  %v11205_v29 = vld [vmem:[#allocation7 + $0x758] ss:$36 sps:$4 sm:$0xff]   ;;  %v607_v36 = vpop.f32.mrb[27].mxu1 }
 0x238   :  { %14988 = vst [vmem:[#allocation48_spill] sm:$0xff] %v14022_v3  ;;  %v12499_v33 = vpop.eup %12498  ;;  %12518 = vrcp.f32 %v776_v35  ;;  %v784_v39 = vadd.f32 1.0, %v12497_v14  ;;  %4596 = vmatpush1.bf16.msra.mxu0 %v11190_v22  ;;  %4848 = vmatpush1.bf16.msra.mxu1 %v11193_v41  ;;  %v635_v34 = vsub.f32 0.0, %v14032_v58  ;;  %v14043_v10 = vadd.f32 %v605_v30, %v13975_v40  ;;  %v11210_v17 = vld [vmem:[#allocation7 + $0x79c] ss:$36 sps:$4 sm:$0xff]  }
 0x239   :  { %14989 = vst [vmem:[#allocation49_spill] sm:$0xff] %v14028_v20  ;;  %v12501_v2 = vpop.eup %12500  ;;  %12520 = vrcp.f32 %v777_v31  ;;  %v785_v52 = vadd.f32 1.0, %v12499_v33  ;;  %4597 = vmatprep.subr.bf16.mxu0 %v11198_v13  ;;  %4849 = vmatprep.subr.bf16.mxu1 %v11201_v57  ;;  %v642_v22 = vsub.f32 0.0, %v14035_v61  ;;  %v14047_v41 = vadd.f32 %v607_v36, %v13980_v55  ;;  %v11213_v14 = vld [vmem:[#allocation7 + $0x7a4] ss:$36 sps:$4 sm:$0xff]  }
 0x23a   :  { %v12503_v43 = vpop.eup %12502  ;;  %12522 = vrcp.f32 %v784_v39  ;;  %v792_v48 = vadd.f32 1.0, %v12501_v2  ;;  %v643_v57 = vsub.f32 0.0, %v14039_v27  ;;  %v650_v35 = vsub.f32 0.0, %v14043_v10  ;;  %v11208_v2 = vld [vmem:[#allocation7 + $0x798] ss:$36 sps:$4 sm:$0xff]  }
 0x23b   :  { %v12505_v19 = vpop.eup %12504  ;;  %12524 = vrcp.f32 %v785_v52  ;;  %v793_v38 = vadd.f32 1.0, %v12503_v43  ;;  %v696_v33 = vmul.f32 1.442695, %v634_v44  ;;  %v11211_v52 = vld [vmem:[#allocation7 + $0x7a0] ss:$36 sps:$4 sm:$0xff]   ;;  %v651_v28 = vsub.f32 0.0, %v14047_v41 }
 0x23c   :  { %v12507_v8 = vpop.eup %12506  ;;  %12526 = vrcp.f32 %v792_v48  ;;  %v800_v21 = vadd.f32 1.0, %v12505_v19  ;;  %4598 = vmatpush1.bf16.msra.mxu0 %v11196_v49  ;;  %4850 = vmatpush1.bf16.msra.mxu1 %v11199_v25  ;;  %v698_v25 = vmul.f32 1.442695, %v635_v34  ;;  %v611_v43 = vpop.f32.mrb[28].mxu1  ;;  %v11216_v30 = vld [vmem:[#allocation7 + $0x7e4] ss:$36 sps:$4 sm:$0xff]   ;;  %v864_v19 = vmul.f32 %v13967_v47, %v13768_v15 }
 0x23d   :  { %v12509_v24 = vpop.eup %12508  ;;  %12528 = vrcp.f32 %v793_v38  ;;  %v801_v13 = vadd.f32 1.0, %v12507_v8  ;;  %4599 = vmatprep.subr.bf16.mxu0 %v11204_v59  ;;  %4851 = vmatprep.subr.bf16.mxu1 %v11207_v5  ;;  %v712_v59 = vmul.f32 1.442695, %v642_v22  ;;  %v14055_v5 = vadd.f32 %v611_v43, %v13975_v40  ;;  %v613_v8 = vpop.f32.mrb[29].mxu1 }
 0x23e   :  { %v12511_v62 = vpop.eup %12510  ;;  %12530 = vrcp.f32 %v800_v21  ;;  %v808_v31 = vadd.f32 1.0, %v12509_v24  ;;  %v714_v34 = vmul.f32 1.442695, %v643_v57  ;;  %v728_v36 = vmul.f32 1.442695, %v650_v35 }
 0x23f   :  { %v12513_v39 = vpop.eup %12512  ;;  %12532 = vrcp.f32 %v801_v13  ;;  %v809_v49 = vadd.f32 1.0, %v12511_v62  ;;  %v11219_v24 = vld [vmem:[#allocation7 + $0x7ec] ss:$36 sps:$4 sm:$0xff]   ;;  %v658_v47 = vsub.f32 0.0, %v14055_v5  ;;  %v14062_v22 = vadd.f32 %v613_v8, %v13980_v55  ;;  %v615_v13 = vpop.f32.mrb[30].mxu1 }
 0x240   :  { %v12515_v48 = vpop.eup %12514  ;;  %12534 = vrcp.f32 %v808_v31  ;;  %4600 = vmatpush1.bf16.msra.mxu0 %v11202_v0  ;;  %4852 = vmatpush1.bf16.msra.mxu1 %v11205_v29  ;;  %v865_v15 = vmul.f32 %v12513_v39, %v13788_v32  ;;  %v730_v62 = vmul.f32 1.442695, %v651_v28  ;;  %v14066_v57 = vadd.f32 %v615_v13, %v13975_v40  ;;  %v617_v35 = vpop.f32.mrb[31].mxu1  ;;  %v11214_v39 = vld [vmem:[#allocation7 + $0x7e0] ss:$36 sps:$4 sm:$0xff]  }
 0x241   :  { %v14057_v44 = vpop.eup %12516  ;;  %12536 = vrcp.f32 %v809_v49  ;;  %v770_v38 = vadd.f32 1.0, %v12515_v48  ;;  %4601 = vmatprep.subr.bf16.mxu0 %v11210_v17  ;;  %4853 = vmatprep.subr.bf16.mxu1 %v11213_v14  ;;  %v744_v32 = vmul.f32 1.442695, %v658_v47  ;;  %v659_v31 = vsub.f32 0.0, %v14062_v22  ;;  %v11217_v49 = vld [vmem:[#allocation7 + $0x7e8] ss:$36 sps:$4 sm:$0xff]  }
 0x242   :  { %v12519_v21 = vpop.eup %12518  ;;  %12538 = vpow2.f32 %v696_v33  ;;  %v666_v40 = vsub.f32 0.0, %v14066_v57  ;;  %v11225_v48 = vld [vmem:[#allocation7 + $0x834] ss:$36 sps:$4 sm:$0xff]  }
 0x243   :  { %v12521_v0 = vpop.eup %12520  ;;  %v872_v29 = vmul.f32 %v12519_v21, %v13805_v1  ;;  %12540 = vrcp.f32 %v770_v38  ;;  %v11220_v21 = vld [vmem:[#allocation7 + $0x828] ss:$36 sps:$4 sm:$0xff]  }
 0x244   :  { %v12523_v17 = vpop.eup %12522  ;;  %v873_v14 = vmul.f32 %v12521_v0, %v13810_v7  ;;  %4602 = vmatpush1.bf16.msra.mxu0 %v11208_v2  ;;  %4854 = vmatpush1.bf16.msra.mxu1 %v11211_v52  ;;  %12542 = vpow2.f32 %v698_v25  ;;  %v11222_v7 = vld [vmem:[#allocation7 + $0x82c] ss:$36 sps:$4 sm:$0xff]   ;;  %v746_v2 = vmul.f32 1.442695, %v659_v31  ;;  %v14079_v25 = vadd.f32 %v617_v35, %v13980_v55  ;;  %v11231_v55 = vld [vmem:[#allocation7 + $0x87c] ss:$36 sps:$4 sm:$0xff]  }
 0x245   :  { %v12525_v33 = vpop.eup %12524  ;;  %v14070_v43 = vpack.c.bf16 %v872_v29, %v864_v19  ;;  %v880_v1 = vmul.f32 %v12523_v17, %v13827_v37  ;;  %4603 = vmatprep.subr.bf16.mxu0 %v11216_v30  ;;  %4855 = vmatprep.subr.bf16.mxu1 %v11219_v24  ;;  %12544 = vpow2.f32 %v712_v59  ;;  %v760_v37 = vmul.f32 1.442695, %v666_v40  ;;  %v11229_v31 = vld [vmem:[#allocation7 + $0x878] ss:$36 sps:$4 sm:$0xff]  }
 0x246   :  { %v12527_v28 = vpop.eup %12526  ;;  %v14074_v38 = vpack.c.bf16 %v873_v14, %v865_v15  ;;  %v881_v8 = vmul.f32 %v12525_v33, %v13858_v26  ;;  %12546 = vpow2.f32 %v714_v34  ;;  %v11223_v15 = vld [vmem:[#allocation7 + $0x830] ss:$36 sps:$4 sm:$0xff]  }
 0x247   :  { %14990 = vst [vmem:[#allocation50_spill] sm:$0xff] %v14070_v43  ;;  %v12529_v52 = vpop.eup %12528  ;;  %v888_v19 = vmul.f32 %v12527_v28, %v13905_v18  ;;  %12548 = vpow2.f32 %v728_v36  ;;  %v11228_v26 = vld [vmem:[#allocation7 + $0x874] ss:$36 sps:$4 sm:$0xff]   ;;  %v667_v18 = vsub.f32 0.0, %v14079_v25  ;;  %v771_v36 = vadd.f32 1.0, %v14057_v44 }
 0x248   :  { %14991 = vst [vmem:[#allocation51_spill] sm:$0xff] %v14074_v38  ;;  %v12531_v47 = vpop.eup %12530  ;;  %v889_v30 = vmul.f32 %v12529_v52, %v13937_v23  ;;  %4604 = vmatpush1.bf16.msra.mxu0 %v11214_v39  ;;  %4856 = vmatpush1.bf16.msra.mxu1 %v11217_v49  ;;  %12550 = vpow2.f32 %v730_v62  ;;  %v11226_v14 = vld [vmem:[#allocation7 + $0x870] ss:$36 sps:$4 sm:$0xff]   ;;  %v11234_v44 = vld [vmem:[#allocation7 + $0x8bc] ss:$36 sps:$4 sm:$0xff]  }
 0x249   :  { %v12533_v24 = vpop.eup %12532  ;;  %v14082_v59 = vpack.c.bf16 %v888_v19, %v880_v1  ;;  %v896_v13 = vmul.f32 %v12531_v47, %v13941_v4  ;;  %4605 = vmatprep.subr.bf16.mxu0 %v11222_v7  ;;  %4857 = vmatprep.subr.bf16.mxu1 %v11225_v48  ;;  %12552 = vpow2.f32 %v744_v32  ;;  %v762_v17 = vmul.f32 1.442695, %v667_v18  ;;  %v11237_v32 = vld [vmem:[#allocation7 + $0x8c4] ss:$36 sps:$4 sm:$0xff]   ;;  %v11232_v28 = vld [vmem:[#allocation7 + $0x8b8] ss:$36 sps:$4 sm:$0xff]  }
 0x24a   :  { %v12535_v34 = vpop.eup %12534  ;;  %v14086_v0 = vpack.c.bf16 %v889_v30, %v881_v8  ;;  %v897_v23 = vmul.f32 %v12533_v24, %v13949_v63  ;;  %12554 = vpow2.f32 %v746_v2  ;;  %v11235_v7 = vld [vmem:[#allocation7 + $0x8c0] ss:$36 sps:$4 sm:$0xff]   ;;  %v11243_v52 = vld [vmem:[#allocation7 + $0x90c] ss:$36 sps:$4 sm:$0xff]  }
 0x24b   :  { %14992 = vst [vmem:[#allocation52_spill] sm:$0xff] %v14082_v59  ;;  %v12537_v29 = vpop.eup %12536  ;;  %v904_v35 = vmul.f32 %v12535_v34, %v13953_v46  ;;  %12556 = vpow2.f32 %v760_v37  ;;  %v11240_v2 = vld [vmem:[#allocation7 + $0x904] ss:$36 sps:$4 sm:$0xff]   ;;  %v11246_v34 = vld [vmem:[#allocation7 + $0x94c] ss:$36 sps:$4 sm:$0xff]  }
 0x24c   :  { %14993 = vst [vmem:[#allocation53_spill] sm:$0xff] %v14086_v0  ;;  %v12539_v4 = vpop.eup %12538  ;;  %v905_v62 = vmul.f32 %v12537_v29, %v13959_v45  ;;  %4606 = vmatpush1.bf16.msra.mxu0 %v11220_v21  ;;  %4858 = vmatpush1.bf16.msra.mxu1 %v11223_v15  ;;  %12558 = vpow2.f32 %v762_v17  ;;  %v11238_v37 = vld [vmem:[#allocation7 + $0x900] ss:$36 sps:$4 sm:$0xff]   ;;  %v11241_v47 = vld [vmem:[#allocation7 + $0x908] ss:$36 sps:$4 sm:$0xff]  }
 0x24d   :  { %v14092_v33 = vpack.c.bf16 %v904_v35, %v896_v13  ;;  %v778_v39 = vadd.f32 1.0, %v12539_v4  ;;  %v12541_v63 = vpop.eup %12540  ;;  %4607 = vmatprep.subr.bf16.mxu0 %v11228_v26  ;;  %4859 = vmatprep.subr.bf16.mxu1 %v11231_v55  ;;  %12560 = vrcp.f32 %v771_v36  ;;  %v11249_v55 = vld [vmem:[#allocation7 + $0x954] ss:$36 sps:$4 sm:$0xff]  }
 0x24e   :  { %v14094_v46 = vpack.c.bf16 %v905_v62, %v897_v23  ;;  %v12543_v49 = vpop.eup %12542  ;;  %v866_v17 = vmul.f32 %v12541_v63, %v13988_v9 }
 0x24f   :  { %14994 = vst [vmem:[#allocation54_spill] sm:$0xff] %v14092_v33  ;;  %12562 = vrcp.f32 %v778_v39  ;;  %v12545_v45 = vpop.eup %12544  ;;  %v779_v1 = vadd.f32 1.0, %v12543_v49  ;;  %v11252_v39 = vld [vmem:[#allocation7 + $0x994] ss:$36 sps:$4 sm:$0xff]  }
 0x250   :  { %14995 = vst [vmem:[#allocation55_spill] sm:$0xff] %v14094_v46  ;;  %v12547_v40 = vpop.eup %12546  ;;  %4608 = vmatpush1.bf16.msra.mxu0 %v11226_v14  ;;  %4860 = vmatpush1.bf16.msra.mxu1 %v11229_v31  ;;  %v786_v48 = vadd.f32 1.0, %v12545_v45  ;;  %v11244_v14 = vld [vmem:[#allocation7 + $0x948] ss:$36 sps:$4 sm:$0xff]   ;;  %v11247_v31 = vld [vmem:[#allocation7 + $0x950] ss:$36 sps:$4 sm:$0xff]  }
 0x251   :  { %v12549_v8 = vpop.eup %12548  ;;  %4609 = vmatprep.subr.bf16.mxu0 %v11234_v44  ;;  %4861 = vmatprep.subr.bf16.mxu1 %v11237_v32  ;;  %12564 = vrcp.f32 %v779_v1  ;;  %v787_v21 = vadd.f32 1.0, %v12547_v40  ;;  %v11255_v44 = vld [vmem:[#allocation7 + $0x99c] ss:$36 sps:$4 sm:$0xff]   ;;  %v11250_v49 = vld [vmem:[#allocation7 + $0x990] ss:$36 sps:$4 sm:$0xff]  }
 0x252   :  { %v12551_v19 = vpop.eup %12550  ;;  %12566 = vrcp.f32 %v786_v48  ;;  %v794_v30 = vadd.f32 1.0, %v12549_v8  ;;  %v11253_v45 = vld [vmem:[#allocation7 + $0x998] ss:$36 sps:$4 sm:$0xff]   ;;  %v11261_v48 = vld [vmem:[#allocation7 + $0x9e4] ss:$36 sps:$4 sm:$0xff]  }
 0x253   :  { %v12553_v24 = vpop.eup %12552  ;;  %12568 = vrcp.f32 %v787_v21  ;;  %v795_v15 = vadd.f32 1.0, %v12551_v19 }
 0x254   :  { %v12555_v26 = vpop.eup %12554  ;;  %4610 = vmatpush1.bf16.msra.mxu0 %v11232_v28  ;;  %4862 = vmatpush1.bf16.msra.mxu1 %v11235_v7  ;;  %12570 = vrcp.f32 %v794_v30  ;;  %v802_v13 = vadd.f32 1.0, %v12553_v24  ;;  %v11264_v24 = vld [vmem:[#allocation7 + $0xa24] ss:$36 sps:$4 sm:$0xff]  }
 0x255   :  { %v12557_v18 = vpop.eup %12556  ;;  %4642 = vmatprep.subr.bf16.mxu0 %v11240_v2  ;;  %4894 = vmatprep.subr.bf16.mxu1 %v11243_v52  ;;  %12572 = vrcp.f32 %v795_v15  ;;  %v803_v23 = vadd.f32 1.0, %v12555_v26  ;;  %v11267_v15 = vld [vmem:[#allocation7 + $0xa2c] ss:$36 sps:$4 sm:$0xff]  }
 0x256   :  { %v12559_v36 = vpop.eup %12558  ;;  %12574 = vrcp.f32 %v802_v13  ;;  %v810_v29 = vadd.f32 1.0, %v12557_v18  ;;  %v11262_v18 = vld [vmem:[#allocation7 + $0xa20] ss:$36 sps:$4 sm:$0xff]  }
 0x257   :  { %v12561_v35 = vpop.eup %12560  ;;  %4612 = vmatmul.mubr.bf16.vlgmr.msra.gmra.mrb[16].mxu0 %v13999_v56  ;;  %4864 = vmatmul.mubr.bf16.vlgmr.msra.gmra.mrb[32].mxu1 %v13999_v56  ;;  %12576 = vrcp.f32 %v803_v23  ;;  %v811_v4 = vadd.f32 1.0, %v12559_v36 }
 0x258   :  { %4643 = vmatpush1.bf16.msra.mxu0 %v11238_v37  ;;  %4895 = vmatpush1.bf16.msra.mxu1 %v11241_v47  ;;  %12578 = vrcp.f32 %v810_v29  ;;  %v867_v9 = vmul.f32 %v12561_v35, %v13993_v53  ;;  %v11256_v37 = vld [vmem:[#allocation7 + $0x9d8] ss:$36 sps:$4 sm:$0xff]   ;;  %v11259_v47 = vld [vmem:[#allocation7 + $0x9e0] ss:$36 sps:$4 sm:$0xff]  }
 0x259   :  { %v12563_v62 = vpop.eup %12562  ;;  %4644 = vmatprep.subr.bf16.mxu0 %v11246_v34  ;;  %4896 = vmatprep.subr.bf16.mxu1 %v11249_v55  ;;  %12580 = vrcp.f32 %v811_v4  ;;  %v11265_v34 = vld [vmem:[#allocation7 + $0xa28] ss:$36 sps:$4 sm:$0xff]   ;;  %v11273_v29 = vld [vmem:[#allocation7 + $0xa74] ss:$36 sps:$4 sm:$0xff]  }
 0x25a   :  { %v874_v32 = vmul.f32 %v12563_v62, %v14026_v50  ;;  %4621 = vmatprep.mubr.bf16.mxu0 %v14016_v12  ;;  %4873 = vmatprep.mubr.bf16.mxu1 %v14016_v12  ;;  %v11258_v50 = vld [vmem:[#allocation7 + $0x9dc] ss:$36 sps:$4 sm:$0xff]   ;;  %v11271_v4 = vld [vmem:[#allocation7 + $0xa70] ss:$36 sps:$4 sm:$0xff]  }
 0x25b   :  { %v12565_v63 = vpop.eup %12564 }
 0x25c   :  { %v14103_v1 = vpack.c.bf16 %v874_v32, %v866_v17  ;;  %v12567_v40 = vpop.eup %12566  ;;  %4645 = vmatpush1.bf16.msra.mxu0 %v11244_v14  ;;  %4897 = vmatpush1.bf16.msra.mxu1 %v11247_v31  ;;  %v875_v28 = vmul.f32 %v12565_v63, %v14032_v58  ;;  %v11268_v17 = vld [vmem:[#allocation7 + $0xa68] ss:$36 sps:$4 sm:$0xff]   ;;  %v11277_v14 = vld [vmem:[#allocation7 + $0xab8] ss:$36 sps:$4 sm:$0xff]   ;;  %v11283_v32 = vld [vmem:[#allocation7 + $0xb00] ss:$36 sps:$4 sm:$0xff]  }
 0x25d   :  { %v12569_v7 = vpop.eup %12568  ;;  %4646 = vmatprep.subr.bf16.mxu0 %v11252_v39  ;;  %4898 = vmatprep.subr.bf16.mxu1 %v11255_v44  ;;  %v882_v8 = vmul.f32 %v12567_v40, %v14035_v61  ;;  %v11282_v31 = vld [vmem:[#allocation7 + $0xafc] ss:$36 sps:$4 sm:$0xff]   ;;  %v11285_v39 = vld [vmem:[#allocation7 + $0xb04] ss:$36 sps:$4 sm:$0xff]   ;;  %v11294_v40 = vld [vmem:[#allocation7 + $0xb8c] ss:$36 sps:$4 sm:$0xff]  }
 0x25e   :  { %v12571_v2 = vpop.eup %12570  ;;  %v14107_v52 = vpack.c.bf16 %v875_v28, %v867_v9  ;;  %v883_v53 = vmul.f32 %v12569_v7, %v14039_v27  ;;  %v11280_v44 = vld [vmem:[#allocation7 + $0xaf8] ss:$36 sps:$4 sm:$0xff]   ;;  %v11286_v9 = vld [vmem:[#allocation7 + $0xb40] ss:$36 sps:$4 sm:$0xff]   ;;  %v11289_v63 = vld [vmem:[#allocation7 + $0xb48] ss:$36 sps:$4 sm:$0xff]  }
 0x25f   :  { %v12573_v21 = vpop.eup %12572  ;;  %4622 = vmatmul.mubr.bf16.gmra.mrb[20].mxu0 %v14014_v11  ;;  %4874 = vmatmul.mubr.bf16.gmra.mrb[36].mxu1 %v14014_v11  ;;  %v890_v19 = vmul.f32 %v12571_v2, %v14043_v10  ;;  %v11297_v28 = vld [vmem:[#allocation7 + $0xb94] ss:$36 sps:$4 sm:$0xff]   ;;  %v11292_v7 = vld [vmem:[#allocation7 + $0xb88] ss:$36 sps:$4 sm:$0xff]  }
 0x260   :  { %14996 = vst [vmem:[#allocation56_spill] sm:$0xff] %v14107_v52  ;;  %v12575_v58 = vpop.eup %12574  ;;  %4647 = vmatpush1.bf16.msra.mxu0 %v11250_v49  ;;  %4899 = vmatpush1.bf16.msra.mxu1 %v11253_v45  ;;  %v891_v30 = vmul.f32 %v12573_v21, %v14047_v41  ;;  %v11288_v49 = vld [vmem:[#allocation7 + $0xb44] ss:$36 sps:$4 sm:$0xff]   ;;  %v11291_v45 = vld [vmem:[#allocation7 + $0xb4c] ss:$36 sps:$4 sm:$0xff]  }
 0x261   :  { %v12577_v61 = vpop.eup %12576  ;;  %4648 = vmatprep.subr.bf16.mxu0 %v11258_v50  ;;  %4900 = vmatprep.subr.bf16.mxu1 %v11261_v48  ;;  %v14114_v27 = vpack.c.bf16 %v890_v19, %v882_v8  ;;  %v898_v26 = vmul.f32 %v12575_v58, %v14055_v5  ;;  %v11270_v5 = vld [vmem:[#allocation7 + $0xa6c] ss:$36 sps:$4 sm:$0xff]   ;;  %v11300_v48 = vld [vmem:[#allocation7 + $0xbd4] ss:$36 sps:$4 sm:$0xff]   ;;  %v11303_v8 = vld [vmem:[#allocation7 + $0xbdc] ss:$36 sps:$4 sm:$0xff]  }
 0x262   :  { %v12579_v13 = vpop.eup %12578  ;;  %4631 = vmatprep.mubr.bf16.mxu0 %v14028_v20  ;;  %4883 = vmatprep.mubr.bf16.mxu1 %v14028_v20  ;;  %v14119_v10 = vpack.c.bf16 %v891_v30, %v883_v53  ;;  %v899_v41 = vmul.f32 %v12577_v61, %v14062_v22  ;;  %v11276_v22 = vld [vmem:[#allocation7 + $0xab4] ss:$36 sps:$4 sm:$0xff]   ;;  %v11306_v21 = vld [vmem:[#allocation7 + $0xc1c] ss:$36 sps:$4 sm:$0xff]   ;;  %v11309_v19 = vld [vmem:[#allocation7 + $0xc24] ss:$36 sps:$4 sm:$0xff]  }
 0x263   :  { %v12581_v55 = vpop.eup %12580  ;;  %v906_v23 = vmul.f32 %v12579_v13, %v14066_v57  ;;  %v11279_v57 = vld [vmem:[#allocation7 + $0xabc] ss:$36 sps:$4 sm:$0xff]   ;;  %v11295_v50 = vld [vmem:[#allocation7 + $0xb90] ss:$36 sps:$4 sm:$0xff]   ;;  %v11316_v13 = vld [vmem:[#allocation7 + $0xca8] ss:$36 sps:$4 sm:$0xff]  }
 0x264   :  { %4649 = vmatpush1.bf16.msra.mxu0 %v11256_v37  ;;  %4901 = vmatpush1.bf16.msra.mxu1 %v11259_v47  ;;  %v907_v36 = vmul.f32 %v12581_v55, %v14079_v25  ;;  %v11274_v25 = vld [vmem:[#allocation7 + $0xab0] ss:$36 sps:$4 sm:$0xff]   ;;  %v11301_v53 = vld [vmem:[#allocation7 + $0xbd8] ss:$36 sps:$4 sm:$0xff]   ;;  %v11307_v37 = vld [vmem:[#allocation7 + $0xc20] ss:$36 sps:$4 sm:$0xff]  }
 0x265   :  { %4650 = vmatprep.subr.bf16.mxu0 %v11264_v24  ;;  %4902 = vmatprep.subr.bf16.mxu1 %v11267_v15  ;;  %v14124_v35 = vpack.c.bf16 %v906_v23, %v898_v26  ;;  %v11298_v2 = vld [vmem:[#allocation7 + $0xbd0] ss:$36 sps:$4 sm:$0xff]   ;;  %v11304_v58 = vld [vmem:[#allocation7 + $0xc18] ss:$36 sps:$4 sm:$0xff]   ;;  %v11312_v47 = vld [vmem:[#allocation7 + $0xc64] ss:$36 sps:$4 sm:$0xff]  }
 0x266   :  { %v14126_v62 = vpack.c.bf16 %v907_v36, %v899_v41  ;;  %v11315_v30 = vld [vmem:[#allocation7 + $0xc6c] ss:$36 sps:$4 sm:$0xff]   ;;  %v11310_v61 = vld [vmem:[#allocation7 + $0xc60] ss:$36 sps:$4 sm:$0xff]   ;;  %v11321_v26 = vld [vmem:[#allocation7 + $0xcb4] ss:$36 sps:$4 sm:$0xff]  }
 0x267   :  { %4632 = vmatmul.mubr.bf16.gmra.mrb[24].mxu0 %v14022_v3  ;;  %4884 = vmatmul.mubr.bf16.gmra.mrb[40].mxu1 %v14022_v3  ;;  %v11313_v24 = vld [vmem:[#allocation7 + $0xc68] ss:$36 sps:$4 sm:$0xff]   ;;  %v11327_v41 = vld [vmem:[#allocation7 + $0xcfc] ss:$36 sps:$4 sm:$0xff]   ;;  %v11322_v55 = vld [vmem:[#allocation7 + $0xcf0] ss:$36 sps:$4 sm:$0xff]  }
 0x268   :  { %4651 = vmatpush1.bf16.msra.mxu0 %v11262_v18  ;;  %4903 = vmatpush1.bf16.msra.mxu1 %v11265_v34  ;;  %v11318_v15 = vld [vmem:[#allocation7 + $0xcac] ss:$36 sps:$4 sm:$0xff]   ;;  %v11324_v34 = vld [vmem:[#allocation7 + $0xcf4] ss:$36 sps:$4 sm:$0xff]   ;;  %v11330_v36 = vld [vmem:[#allocation7 + $0xd3c] ss:$36 sps:$4 sm:$0xff]  }
 0x269   :  { %4652 = vmatprep.subr.bf16.mxu0 %v11270_v5  ;;  %4904 = vmatprep.subr.bf16.mxu1 %v11273_v29  ;;  %v11319_v18 = vld [vmem:[#allocation7 + $0xcb0] ss:$36 sps:$4 sm:$0xff]   ;;  %v11325_v23 = vld [vmem:[#allocation7 + $0xcf8] ss:$36 sps:$4 sm:$0xff]   ;;  %v11333_v5 = vld [vmem:[#allocation7 + $0xd44] ss:$36 sps:$4 sm:$0xff]  }
 0x26a   :  { %4674 = vmatprep.mubr.bf16.mxu0 %v14074_v38  ;;  %4926 = vmatprep.mubr.bf16.mxu1 %v14074_v38  ;;  %v11328_v29 = vld [vmem:[#allocation7 + $0xd38] ss:$36 sps:$4 sm:$0xff]  }
 0x26c   :  { %4653 = vmatpush1.bf16.msra.mxu0 %v11268_v17  ;;  %4905 = vmatpush1.bf16.msra.mxu1 %v11271_v4  ;;  %v11331_v17 = vld [vmem:[#allocation7 + $0xd40] ss:$36 sps:$4 sm:$0xff]  }
 0x26d   :  { %4654 = vmatprep.subr.bf16.mxu0 %v11276_v22  ;;  %4906 = vmatprep.subr.bf16.mxu1 %v11279_v57  ;;  %v11336_v4 = vld [vmem:[#allocation7 + $0xd84] ss:$36 sps:$4 sm:$0xff]   ;;  %v11339_v22 = vld [vmem:[#allocation7 + $0xd8c] ss:$36 sps:$4 sm:$0xff]  }
 0x26e   :  { %v11334_v57 = vld [vmem:[#allocation7 + $0xd80] ss:$36 sps:$4 sm:$0xff]  }
 0x270   :  { %4655 = vmatpush1.bf16.msra.mxu0 %v11274_v25  ;;  %4907 = vmatpush1.bf16.msra.mxu1 %v11277_v14  ;;  %v11337_v25 = vld [vmem:[#allocation7 + $0xd88] ss:$36 sps:$4 sm:$0xff]  }
 0x271   :  { %4656 = vmatprep.subr.bf16.mxu0 %v11282_v31  ;;  %4908 = vmatprep.subr.bf16.mxu1 %v11285_v39  ;;  %v11342_v14 = vld [vmem:[#allocation7 + $0xdcc] ss:$36 sps:$4 sm:$0xff]   ;;  %v11345_v31 = vld [vmem:[#allocation7 + $0xdd4] ss:$36 sps:$4 sm:$0xff]  }
 0x272   :  { %v11340_v39 = vld [vmem:[#allocation7 + $0xdc8] ss:$36 sps:$4 sm:$0xff]  }
 0x274   :  { %4657 = vmatpush1.bf16.msra.mxu0 %v11280_v44  ;;  %4909 = vmatpush1.bf16.msra.mxu1 %v11283_v32  ;;  %v11343_v44 = vld [vmem:[#allocation7 + $0xdd0] ss:$36 sps:$4 sm:$0xff]  }
 0x275   :  { %4658 = vmatprep.subr.bf16.mxu0 %v11288_v49  ;;  %4910 = vmatprep.subr.bf16.mxu1 %v11291_v45  ;;  %v11348_v32 = vld [vmem:[#allocation7 + $0xe14] ss:$36 sps:$4 sm:$0xff]   ;;  %v11351_v49 = vld [vmem:[#allocation7 + $0xe1c] ss:$36 sps:$4 sm:$0xff]  }
 0x276   :  { %v11346_v45 = vld [vmem:[#allocation7 + $0xe10] ss:$36 sps:$4 sm:$0xff]  }
 0x278   :  { %4659 = vmatpush1.bf16.msra.mxu0 %v11286_v9  ;;  %4911 = vmatpush1.bf16.msra.mxu1 %v11289_v63  ;;  %v11349_v9 = vld [vmem:[#allocation7 + $0xe18] ss:$36 sps:$4 sm:$0xff]  }
 0x279   :  { %4660 = vmatprep.subr.bf16.mxu0 %v11294_v40  ;;  %4912 = vmatprep.subr.bf16.mxu1 %v11297_v28  ;;  %v11354_v63 = vld [vmem:[#allocation7 + $0xe5c] ss:$36 sps:$4 sm:$0xff]   ;;  %v11357_v40 = vld [vmem:[#allocation7 + $0xe64] ss:$36 sps:$4 sm:$0xff]  }
 0x27a   :  { %v11352_v28 = vld [vmem:[#allocation7 + $0xe58] ss:$36 sps:$4 sm:$0xff]  }
 0x27c   :  { %4661 = vmatpush1.bf16.msra.mxu0 %v11292_v7  ;;  %4913 = vmatpush1.bf16.msra.mxu1 %v11295_v50  ;;  %v11355_v7 = vld [vmem:[#allocation7 + $0xe60] ss:$36 sps:$4 sm:$0xff]  }
 0x27d   :  { %4662 = vmatprep.subr.bf16.mxu0 %v11300_v48  ;;  %4914 = vmatprep.subr.bf16.mxu1 %v11303_v8  ;;  %v11360_v50 = vld [vmem:[#allocation7 + $0xea4] ss:$36 sps:$4 sm:$0xff]   ;;  %v11363_v48 = vld [vmem:[#allocation7 + $0xeac] ss:$36 sps:$4 sm:$0xff]  }
 0x27e   :  { %v11358_v8 = vld [vmem:[#allocation7 + $0xea0] ss:$36 sps:$4 sm:$0xff]  }
 0x280   :  { %4663 = vmatpush1.bf16.msra.mxu0 %v11298_v2  ;;  %4915 = vmatpush1.bf16.msra.mxu1 %v11301_v53  ;;  %v11361_v2 = vld [vmem:[#allocation7 + $0xea8] ss:$36 sps:$4 sm:$0xff]  }
 0x281   :  { %4664 = vmatprep.subr.bf16.mxu0 %v11306_v21  ;;  %4916 = vmatprep.subr.bf16.mxu1 %v11309_v19  ;;  %v11366_v53 = vld [vmem:[#allocation7 + $0xeec] ss:$36 sps:$4 sm:$0xff]   ;;  %v11369_v21 = vld [vmem:[#allocation7 + $0xef4] ss:$36 sps:$4 sm:$0xff]  }
 0x282   :  { %v11364_v19 = vld [vmem:[#allocation7 + $0xee8] ss:$36 sps:$4 sm:$0xff]  }
 0x284   :  { %4665 = vmatpush1.bf16.msra.mxu0 %v11304_v58  ;;  %4917 = vmatpush1.bf16.msra.mxu1 %v11307_v37  ;;  %v11367_v58 = vld [vmem:[#allocation7 + $0xef0] ss:$36 sps:$4 sm:$0xff]  }
 0x285   :  { %4666 = vmatprep.subr.bf16.mxu0 %v11312_v47  ;;  %4918 = vmatprep.subr.bf16.mxu1 %v11315_v30  ;;  %v11372_v37 = vld [vmem:[#allocation7 + $0xf34] ss:$36 sps:$4 sm:$0xff]   ;;  %v11375_v47 = vld [vmem:[#allocation7 + $0xf3c] ss:$36 sps:$4 sm:$0xff]  }
 0x286   :  { %v11370_v30 = vld [vmem:[#allocation7 + $0xf30] ss:$36 sps:$4 sm:$0xff]  }
 0x288   :  { %4667 = vmatpush1.bf16.msra.mxu0 %v11310_v61  ;;  %4919 = vmatpush1.bf16.msra.mxu1 %v11313_v24  ;;  %v11373_v61 = vld [vmem:[#allocation7 + $0xf38] ss:$36 sps:$4 sm:$0xff]  }
 0x289   :  { %4668 = vmatprep.subr.bf16.mxu0 %v11318_v15  ;;  %4920 = vmatprep.subr.bf16.mxu1 %v11321_v26  ;;  %v11378_v24 = vld [vmem:[#allocation7 + $0xf7c] ss:$36 sps:$4 sm:$0xff]   ;;  %v11381_v15 = vld [vmem:[#allocation7 + $0xf84] ss:$36 sps:$4 sm:$0xff]  }
 0x28a   :  { %v11376_v26 = vld [vmem:[#allocation7 + $0xf78] ss:$36 sps:$4 sm:$0xff]  }
 0x28c   :  { %4669 = vmatpush1.bf16.msra.mxu0 %v11316_v13  ;;  %4921 = vmatpush1.bf16.msra.mxu1 %v11319_v18  ;;  %v11379_v13 = vld [vmem:[#allocation7 + $0xf80] ss:$36 sps:$4 sm:$0xff]  }
 0x28d   :  { %4670 = vmatprep.subr.bf16.mxu0 %v11324_v34  ;;  %4922 = vmatprep.subr.bf16.mxu1 %v11327_v41  ;;  %v11384_v18 = vld [vmem:[#allocation7 + $0xfc4] ss:$36 sps:$4 sm:$0xff]   ;;  %v11387_v34 = vld [vmem:[#allocation7 + $0xfcc] ss:$36 sps:$4 sm:$0xff]  }
 0x28e   :  { %v11382_v41 = vld [vmem:[#allocation7 + $0xfc0] ss:$36 sps:$4 sm:$0xff]  }
 0x290   :  { %4671 = vmatpush1.bf16.msra.mxu0 %v11322_v55  ;;  %4923 = vmatpush1.bf16.msra.mxu1 %v11325_v23  ;;  %v11385_v55 = vld [vmem:[#allocation7 + $0xfc8] ss:$36 sps:$4 sm:$0xff]  }
 0x291   :  { %4672 = vmatprep.subr.bf16.mxu0 %v11330_v36  ;;  %4924 = vmatprep.subr.bf16.mxu1 %v11333_v5  ;;  %v11390_v23 = vld [vmem:[#allocation7 + $0x100c] ss:$36 sps:$4 sm:$0xff]   ;;  %v11393_v36 = vld [vmem:[#allocation7 + $0x1014] ss:$36 sps:$4 sm:$0xff]  }
 0x292   :  { %v11388_v5 = vld [vmem:[#allocation7 + $0x1008] ss:$36 sps:$4 sm:$0xff]  }
 0x294   :  { %4673 = vmatpush1.bf16.msra.mxu0 %v11328_v29  ;;  %4925 = vmatpush1.bf16.msra.mxu1 %v11331_v17  ;;  %v11391_v29 = vld [vmem:[#allocation7 + $0x1010] ss:$36 sps:$4 sm:$0xff]  }
 0x295   :  { %4705 = vmatprep.subr.bf16.mxu0 %v11336_v4  ;;  %4957 = vmatprep.subr.bf16.mxu1 %v11339_v22  ;;  %v11396_v17 = vld [vmem:[#allocation7 + $0x1054] ss:$36 sps:$4 sm:$0xff]   ;;  %v11399_v4 = vld [vmem:[#allocation7 + $0x105c] ss:$36 sps:$4 sm:$0xff]  }
 0x296   :  { %v11394_v22 = vld [vmem:[#allocation7 + $0x1050] ss:$36 sps:$4 sm:$0xff]  }
 0x297   :  { %4675 = vmatmul.mubr.bf16.vlgmr.msra.gmra.mrb[16].mxu0 %v14070_v43  ;;  %4927 = vmatmul.mubr.bf16.vlgmr.msra.gmra.mrb[32].mxu1 %v14070_v43 }
 0x298   :  { %4706 = vmatpush1.bf16.msra.mxu0 %v11334_v57  ;;  %4958 = vmatpush1.bf16.msra.mxu1 %v11337_v25  ;;  %v11397_v57 = vld [vmem:[#allocation7 + $0x1058] ss:$36 sps:$4 sm:$0xff]  }
 0x299   :  { %4707 = vmatprep.subr.bf16.mxu0 %v11342_v14  ;;  %4959 = vmatprep.subr.bf16.mxu1 %v11345_v31  ;;  %v11402_v25 = vld [vmem:[#allocation7 + $0x109c] ss:$36 sps:$4 sm:$0xff]   ;;  %v11405_v14 = vld [vmem:[#allocation7 + $0x10a4] ss:$36 sps:$4 sm:$0xff]  }
 0x29a   :  { %4684 = vmatprep.mubr.bf16.mxu0 %v14086_v0  ;;  %4936 = vmatprep.mubr.bf16.mxu1 %v14086_v0  ;;  %v11400_v31 = vld [vmem:[#allocation7 + $0x1098] ss:$36 sps:$4 sm:$0xff]  }
 0x29c   :  { %4708 = vmatpush1.bf16.msra.mxu0 %v11340_v39  ;;  %4960 = vmatpush1.bf16.msra.mxu1 %v11343_v44  ;;  %v11403_v39 = vld [vmem:[#allocation7 + $0x10a0] ss:$36 sps:$4 sm:$0xff]  }
 0x29d   :  { %4709 = vmatprep.subr.bf16.mxu0 %v11348_v32  ;;  %4961 = vmatprep.subr.bf16.mxu1 %v11351_v49  ;;  %v11408_v44 = vld [vmem:[#allocation7 + $0x10e4] ss:$36 sps:$4 sm:$0xff]   ;;  %v11411_v32 = vld [vmem:[#allocation7 + $0x10ec] ss:$36 sps:$4 sm:$0xff]  }
 0x29e   :  { %v11406_v49 = vld [vmem:[#allocation7 + $0x10e0] ss:$36 sps:$4 sm:$0xff]  }
 0x29f   :  { %4685 = vmatmul.mubr.bf16.gmra.mrb[20].mxu0 %v14082_v59  ;;  %4937 = vmatmul.mubr.bf16.gmra.mrb[36].mxu1 %v14082_v59 }
 0x2a0   :  { %4710 = vmatpush1.bf16.msra.mxu0 %v11346_v45  ;;  %4962 = vmatpush1.bf16.msra.mxu1 %v11349_v9  ;;  %v11409_v45 = vld [vmem:[#allocation7 + $0x10e8] ss:$36 sps:$4 sm:$0xff]  }
 0x2a1   :  { %4711 = vmatprep.subr.bf16.mxu0 %v11354_v63  ;;  %4963 = vmatprep.subr.bf16.mxu1 %v11357_v40  ;;  %v11414_v9 = vld [vmem:[#allocation7 + $0x112c] ss:$36 sps:$4 sm:$0xff]   ;;  %v11417_v63 = vld [vmem:[#allocation7 + $0x1134] ss:$36 sps:$4 sm:$0xff]  }
 0x2a2   :  { %4694 = vmatprep.mubr.bf16.mxu0 %v14094_v46  ;;  %4946 = vmatprep.mubr.bf16.mxu1 %v14094_v46  ;;  %v11412_v40 = vld [vmem:[#allocation7 + $0x1128] ss:$36 sps:$4 sm:$0xff]  }
 0x2a4   :  { %4712 = vmatpush1.bf16.msra.mxu0 %v11352_v28  ;;  %4964 = vmatpush1.bf16.msra.mxu1 %v11355_v7  ;;  %v11415_v28 = vld [vmem:[#allocation7 + $0x1130] ss:$36 sps:$4 sm:$0xff]  }
 0x2a5   :  { %4713 = vmatprep.subr.bf16.mxu0 %v11360_v50  ;;  %4965 = vmatprep.subr.bf16.mxu1 %v11363_v48  ;;  %v11420_v7 = vld [vmem:[#allocation7 + $0x1174] ss:$36 sps:$4 sm:$0xff]   ;;  %v11423_v50 = vld [vmem:[#allocation7 + $0x117c] ss:$36 sps:$4 sm:$0xff]  }
 0x2a6   :  { %v11418_v48 = vld [vmem:[#allocation7 + $0x1170] ss:$36 sps:$4 sm:$0xff]  }
 0x2a7   :  { %4695 = vmatmul.mubr.bf16.gmra.mrb[24].mxu0 %v14092_v33  ;;  %4947 = vmatmul.mubr.bf16.gmra.mrb[40].mxu1 %v14092_v33 }
 0x2a8   :  { %4714 = vmatpush1.bf16.msra.mxu0 %v11358_v8  ;;  %4966 = vmatpush1.bf16.msra.mxu1 %v11361_v2  ;;  %v11421_v8 = vld [vmem:[#allocation7 + $0x1178] ss:$36 sps:$4 sm:$0xff]  }
 0x2a9   :  { %4715 = vmatprep.subr.bf16.mxu0 %v11366_v53  ;;  %4967 = vmatprep.subr.bf16.mxu1 %v11369_v21  ;;  %v11426_v2 = vld [vmem:[#allocation7 + $0x11bc] ss:$36 sps:$4 sm:$0xff]   ;;  %v11429_v53 = vld [vmem:[#allocation7 + $0x11c4] ss:$36 sps:$4 sm:$0xff]  }
 0x2aa   :  { %4737 = vmatprep.mubr.bf16.mxu0 %v14107_v52  ;;  %4989 = vmatprep.mubr.bf16.mxu1 %v14107_v52  ;;  %v11424_v21 = vld [vmem:[#allocation7 + $0x11b8] ss:$36 sps:$4 sm:$0xff]  }
 0x2ac   :  { %4716 = vmatpush1.bf16.msra.mxu0 %v11364_v19  ;;  %4968 = vmatpush1.bf16.msra.mxu1 %v11367_v58  ;;  %v11427_v19 = vld [vmem:[#allocation7 + $0x11c0] ss:$36 sps:$4 sm:$0xff]   ;;  %v11432_v58 = vld [vmem:[#allocation7 + $0x14] ss:$36 sps:$4 sm:$0xff]  }
 0x2ad   :  { %4717 = vmatprep.subr.bf16.mxu0 %v11372_v37  ;;  %4969 = vmatprep.subr.bf16.mxu1 %v11375_v47  ;;  %v11435_v37 = vld [vmem:[#allocation7 + $0x1c] ss:$36 sps:$4 sm:$0xff]   ;;  %v11430_v47 = vld [vmem:[#allocation7 + $0x10] ss:$36 sps:$4 sm:$0xff]  }
 0x2b0   :  { %4718 = vmatpush1.bf16.msra.mxu0 %v11370_v30  ;;  %4970 = vmatpush1.bf16.msra.mxu1 %v11373_v61  ;;  %v11433_v30 = vld [vmem:[#allocation7 + $0x18] ss:$36 sps:$4 sm:$0xff]  }
 0x2b1   :  { %4719 = vmatprep.subr.bf16.mxu0 %v11378_v24  ;;  %4971 = vmatprep.subr.bf16.mxu1 %v11381_v15  ;;  %v11438_v61 = vld [vmem:[#allocation7 + $0x5c] ss:$36 sps:$4 sm:$0xff]   ;;  %v11441_v24 = vld [vmem:[#allocation7 + $0x64] ss:$36 sps:$4 sm:$0xff]  }
 0x2b2   :  { %v11436_v15 = vld [vmem:[#allocation7 + $0x58] ss:$36 sps:$4 sm:$0xff]  }
 0x2b4   :  { %4720 = vmatpush1.bf16.msra.mxu0 %v11376_v26  ;;  %4972 = vmatpush1.bf16.msra.mxu1 %v11379_v13  ;;  %v11439_v26 = vld [vmem:[#allocation7 + $0x60] ss:$36 sps:$4 sm:$0xff]  }
 0x2b5   :  { %4721 = vmatprep.subr.bf16.mxu0 %v11384_v18  ;;  %4973 = vmatprep.subr.bf16.mxu1 %v11387_v34  ;;  %v11444_v13 = vld [vmem:[#allocation7 + $0xa4] ss:$36 sps:$4 sm:$0xff]   ;;  %v11447_v18 = vld [vmem:[#allocation7 + $0xac] ss:$36 sps:$4 sm:$0xff]  }
 0x2b6   :  { %v11442_v34 = vld [vmem:[#allocation7 + $0xa0] ss:$36 sps:$4 sm:$0xff]  }
 0x2b8   :  { %4722 = vmatpush1.bf16.msra.mxu0 %v11382_v41  ;;  %4974 = vmatpush1.bf16.msra.mxu1 %v11385_v55  ;;  %v11445_v41 = vld [vmem:[#allocation7 + $0xa8] ss:$36 sps:$4 sm:$0xff]  }
 0x2b9   :  { %4723 = vmatprep.subr.bf16.mxu0 %v11390_v23  ;;  %4975 = vmatprep.subr.bf16.mxu1 %v11393_v36  ;;  %v11450_v55 = vld [vmem:[#allocation7 + $0xec] ss:$36 sps:$4 sm:$0xff]   ;;  %v11453_v23 = vld [vmem:[#allocation7 + $0xf4] ss:$36 sps:$4 sm:$0xff]  }
 0x2ba   :  { %v11448_v36 = vld [vmem:[#allocation7 + $0xe8] ss:$36 sps:$4 sm:$0xff]  }
 0x2bc   :  { %4724 = vmatpush1.bf16.msra.mxu0 %v11388_v5  ;;  %4976 = vmatpush1.bf16.msra.mxu1 %v11391_v29  ;;  %v11451_v5 = vld [vmem:[#allocation7 + $0xf0] ss:$36 sps:$4 sm:$0xff]  }
 0x2bd   :  { %4725 = vmatprep.subr.bf16.mxu0 %v11396_v17  ;;  %4977 = vmatprep.subr.bf16.mxu1 %v11399_v4  ;;  %v11456_v29 = vld [vmem:[#allocation7 + $0x134] ss:$36 sps:$4 sm:$0xff]   ;;  %v11459_v17 = vld [vmem:[#allocation7 + $0x13c] ss:$36 sps:$4 sm:$0xff]  }
 0x2be   :  { %v11454_v4 = vld [vmem:[#allocation7 + $0x130] ss:$36 sps:$4 sm:$0xff]  }
 0x2c0   :  { %4726 = vmatpush1.bf16.msra.mxu0 %v11394_v22  ;;  %4978 = vmatpush1.bf16.msra.mxu1 %v11397_v57  ;;  %v11457_v22 = vld [vmem:[#allocation7 + $0x138] ss:$36 sps:$4 sm:$0xff]  }
 0x2c1   :  { %4727 = vmatprep.subr.bf16.mxu0 %v11402_v25  ;;  %4979 = vmatprep.subr.bf16.mxu1 %v11405_v14  ;;  %v11462_v57 = vld [vmem:[#allocation7 + $0x17c] ss:$36 sps:$4 sm:$0xff]   ;;  %v11465_v25 = vld [vmem:[#allocation7 + $0x184] ss:$36 sps:$4 sm:$0xff]  }
 0x2c2   :  { %v11460_v14 = vld [vmem:[#allocation7 + $0x178] ss:$36 sps:$4 sm:$0xff]  }
 0x2c4   :  { %4728 = vmatpush1.bf16.msra.mxu0 %v11400_v31  ;;  %4980 = vmatpush1.bf16.msra.mxu1 %v11403_v39  ;;  %v11463_v31 = vld [vmem:[#allocation7 + $0x180] ss:$36 sps:$4 sm:$0xff]  }
 0x2c5   :  { %4729 = vmatprep.subr.bf16.mxu0 %v11408_v44  ;;  %4981 = vmatprep.subr.bf16.mxu1 %v11411_v32  ;;  %v11468_v39 = vld [vmem:[#allocation7 + $0x1c4] ss:$36 sps:$4 sm:$0xff]   ;;  %v11471_v44 = vld [vmem:[#allocation7 + $0x1cc] ss:$36 sps:$4 sm:$0xff]  }
 0x2c6   :  { %v11466_v32 = vld [vmem:[#allocation7 + $0x1c0] ss:$36 sps:$4 sm:$0xff]  }
 0x2c8   :  { %4730 = vmatpush1.bf16.msra.mxu0 %v11406_v49  ;;  %4982 = vmatpush1.bf16.msra.mxu1 %v11409_v45  ;;  %v11469_v49 = vld [vmem:[#allocation7 + $0x1c8] ss:$36 sps:$4 sm:$0xff]  }
 0x2c9   :  { %4731 = vmatprep.subr.bf16.mxu0 %v11414_v9  ;;  %4983 = vmatprep.subr.bf16.mxu1 %v11417_v63  ;;  %v11474_v45 = vld [vmem:[#allocation7 + $0x20c] ss:$36 sps:$4 sm:$0xff]   ;;  %v11477_v9 = vld [vmem:[#allocation7 + $0x214] ss:$36 sps:$4 sm:$0xff]  }
 0x2ca   :  { %v11472_v63 = vld [vmem:[#allocation7 + $0x208] ss:$36 sps:$4 sm:$0xff]  }
 0x2cc   :  { %4732 = vmatpush1.bf16.msra.mxu0 %v11412_v40  ;;  %4984 = vmatpush1.bf16.msra.mxu1 %v11415_v28  ;;  %v11475_v40 = vld [vmem:[#allocation7 + $0x210] ss:$36 sps:$4 sm:$0xff]  }
 0x2cd   :  { %4733 = vmatprep.subr.bf16.mxu0 %v11420_v7  ;;  %4985 = vmatprep.subr.bf16.mxu1 %v11423_v50  ;;  %v11480_v28 = vld [vmem:[#allocation7 + $0x254] ss:$36 sps:$4 sm:$0xff]   ;;  %v11483_v7 = vld [vmem:[#allocation7 + $0x25c] ss:$36 sps:$4 sm:$0xff]  }
 0x2ce   :  { %v11478_v50 = vld [vmem:[#allocation7 + $0x250] ss:$36 sps:$4 sm:$0xff]  }
 0x2d0   :  { %4734 = vmatpush1.bf16.msra.mxu0 %v11418_v48  ;;  %4986 = vmatpush1.bf16.msra.mxu1 %v11421_v8  ;;  %v11481_v48 = vld [vmem:[#allocation7 + $0x258] ss:$36 sps:$4 sm:$0xff]  }
 0x2d1   :  { %4735 = vmatprep.subr.bf16.mxu0 %v11426_v2  ;;  %4987 = vmatprep.subr.bf16.mxu1 %v11429_v53  ;;  %v11486_v8 = vld [vmem:[#allocation7 + $0x29c] ss:$36 sps:$4 sm:$0xff]   ;;  %v11489_v2 = vld [vmem:[#allocation7 + $0x2a4] ss:$36 sps:$4 sm:$0xff]  }
 0x2d2   :  { %v11484_v53 = vld [vmem:[#allocation7 + $0x298] ss:$36 sps:$4 sm:$0xff]  }
 0x2d4   :  { %4736 = vmatpush1.bf16.msra.mxu0 %v11424_v21  ;;  %4988 = vmatpush1.bf16.msra.mxu1 %v11427_v19  ;;  %v11487_v21 = vld [vmem:[#allocation7 + $0x2a0] ss:$36 sps:$4 sm:$0xff]  }
 0x2d5   :  { %5020 = vmatprep.subr.bf16.mxu0 %v11432_v58  ;;  %5272 = vmatprep.subr.bf16.mxu1 %v11435_v37  ;;  %v11492_v19 = vld [vmem:[#allocation7 + $0x2e4] ss:$36 sps:$4 sm:$0xff]   ;;  %v11495_v58 = vld [vmem:[#allocation7 + $0x2ec] ss:$36 sps:$4 sm:$0xff]  }
 0x2d6   :  { %v11490_v37 = vld [vmem:[#allocation7 + $0x2e0] ss:$36 sps:$4 sm:$0xff]  }
 0x2d7   :  { %4738 = vmatmul.mubr.bf16.vlgmr.msra.gmra.mrb[16].mxu0 %v14103_v1  ;;  %4990 = vmatmul.mubr.bf16.vlgmr.msra.gmra.mrb[32].mxu1 %v14103_v1 }
 0x2d8   :  { %5021 = vmatpush1.bf16.msra.mxu0 %v11430_v47  ;;  %5273 = vmatpush1.bf16.msra.mxu1 %v11433_v30  ;;  %v11493_v47 = vld [vmem:[#allocation7 + $0x2e8] ss:$36 sps:$4 sm:$0xff]  }
 0x2d9   :  { %5022 = vmatprep.subr.bf16.mxu0 %v11438_v61  ;;  %5274 = vmatprep.subr.bf16.mxu1 %v11441_v24  ;;  %v11498_v30 = vld [vmem:[#allocation7 + $0x32c] ss:$36 sps:$4 sm:$0xff]   ;;  %v11501_v61 = vld [vmem:[#allocation7 + $0x334] ss:$36 sps:$4 sm:$0xff]  }
 0x2da   :  { %4747 = vmatprep.mubr.bf16.mxu0 %v14119_v10  ;;  %4999 = vmatprep.mubr.bf16.mxu1 %v14119_v10  ;;  %v11496_v24 = vld [vmem:[#allocation7 + $0x328] ss:$36 sps:$4 sm:$0xff]  }
 0x2dc   :  { %5023 = vmatpush1.bf16.msra.mxu0 %v11436_v15  ;;  %5275 = vmatpush1.bf16.msra.mxu1 %v11439_v26  ;;  %v11499_v15 = vld [vmem:[#allocation7 + $0x330] ss:$36 sps:$4 sm:$0xff]  }
 0x2dd   :  { %5024 = vmatprep.subr.bf16.mxu0 %v11444_v13  ;;  %5276 = vmatprep.subr.bf16.mxu1 %v11447_v18  ;;  %v11504_v26 = vld [vmem:[#allocation7 + $0x374] ss:$36 sps:$4 sm:$0xff]   ;;  %v11507_v13 = vld [vmem:[#allocation7 + $0x37c] ss:$36 sps:$4 sm:$0xff]  }
 0x2de   :  { %v11502_v18 = vld [vmem:[#allocation7 + $0x370] ss:$36 sps:$4 sm:$0xff]  }
 0x2df   :  { %4748 = vmatmul.mubr.bf16.gmra.mrb[20].mxu0 %v14114_v27  ;;  %5000 = vmatmul.mubr.bf16.gmra.mrb[36].mxu1 %v14114_v27 }
 0x2e0   :  { %5025 = vmatpush1.bf16.msra.mxu0 %v11442_v34  ;;  %5277 = vmatpush1.bf16.msra.mxu1 %v11445_v41  ;;  %v11505_v34 = vld [vmem:[#allocation7 + $0x378] ss:$36 sps:$4 sm:$0xff]  }
 0x2e1   :  { %5026 = vmatprep.subr.bf16.mxu0 %v11450_v55  ;;  %5278 = vmatprep.subr.bf16.mxu1 %v11453_v23  ;;  %v11510_v41 = vld [vmem:[#allocation7 + $0x3bc] ss:$36 sps:$4 sm:$0xff]   ;;  %v11513_v55 = vld [vmem:[#allocation7 + $0x3c4] ss:$36 sps:$4 sm:$0xff]  }
 0x2e2   :  { %4757 = vmatprep.mubr.bf16.mxu0 %v14126_v62  ;;  %5009 = vmatprep.mubr.bf16.mxu1 %v14126_v62  ;;  %v11508_v23 = vld [vmem:[#allocation7 + $0x3b8] ss:$36 sps:$4 sm:$0xff]  }
 0x2e4   :  { %5027 = vmatpush1.bf16.msra.mxu0 %v11448_v36  ;;  %5279 = vmatpush1.bf16.msra.mxu1 %v11451_v5  ;;  %v11511_v36 = vld [vmem:[#allocation7 + $0x3c0] ss:$36 sps:$4 sm:$0xff]  }
 0x2e5   :  { %5028 = vmatprep.subr.bf16.mxu0 %v11456_v29  ;;  %5280 = vmatprep.subr.bf16.mxu1 %v11459_v17  ;;  %v11516_v5 = vld [vmem:[#allocation7 + $0x404] ss:$36 sps:$4 sm:$0xff]   ;;  %v11519_v29 = vld [vmem:[#allocation7 + $0x40c] ss:$36 sps:$4 sm:$0xff]  }
 0x2e6   :  { %v11514_v17 = vld [vmem:[#allocation7 + $0x400] ss:$36 sps:$4 sm:$0xff]  }
 0x2e7   :  { %4758 = vmatmul.mubr.bf16.gmra.mrb[24].mxu0 %v14124_v35  ;;  %5010 = vmatmul.mubr.bf16.gmra.mrb[40].mxu1 %v14124_v35 }
 0x2e8   :  { %5029 = vmatpush1.bf16.msra.mxu0 %v11454_v4  ;;  %5052 = vmatprep.mubr.bf16.mxu0 %v13876_v16  ;;  %v11517_v4 = vld [vmem:[#allocation7 + $0x408] ss:$36 sps:$4 sm:$0xff]  }
 0x2e9   :  { %5281 = vmatpush1.bf16.msra.mxu1 %v11457_v22  ;;  %5304 = vmatprep.mubr.bf16.mxu1 %v13876_v16  ;;  %v11522_v22 = vld [vmem:[#allocation7 + $0x44c] ss:$36 sps:$4 sm:$0xff]  }
 0x2ea   :  { %5030 = vmatprep.subr.bf16.mxu0 %v11462_v57  ;;  %5282 = vmatprep.subr.bf16.mxu1 %v11465_v25  ;;  %v11525_v57 = vld [vmem:[#allocation7 + $0x454] ss:$36 sps:$4 sm:$0xff]   ;;  %v11520_v25 = vld [vmem:[#allocation7 + $0x448] ss:$36 sps:$4 sm:$0xff]  }
 0x2ec   :  { %5031 = vmatpush1.bf16.msra.mxu0 %v11460_v14  ;;  %v11523_v14 = vld [vmem:[#allocation7 + $0x450] ss:$36 sps:$4 sm:$0xff]  }
 0x2ed   :  { %5283 = vmatpush1.bf16.msra.mxu1 %v11463_v31  ;;  %5032 = vmatprep.subr.bf16.mxu0 %v11468_v39  ;;  %v11528_v31 = vld [vmem:[#allocation7 + $0x494] ss:$36 sps:$4 sm:$0xff]   ;;  %v11531_v39 = vld [vmem:[#allocation7 + $0x49c] ss:$36 sps:$4 sm:$0xff]  }
 0x2ee   :  { %5284 = vmatprep.subr.bf16.mxu1 %v11471_v44  ;;  %v11526_v44 = vld [vmem:[#allocation7 + $0x490] ss:$36 sps:$4 sm:$0xff]  }
 0x2f0   :  { %5033 = vmatpush1.bf16.msra.mxu0 %v11466_v32  ;;  %v11529_v32 = vld [vmem:[#allocation7 + $0x498] ss:$36 sps:$4 sm:$0xff]  }
 0x2f1   :  { %5285 = vmatpush1.bf16.msra.mxu1 %v11469_v49  ;;  %5034 = vmatprep.subr.bf16.mxu0 %v11474_v45  ;;  %v11534_v49 = vld [vmem:[#allocation7 + $0x4dc] ss:$36 sps:$4 sm:$0xff]   ;;  %v11537_v45 = vld [vmem:[#allocation7 + $0x4e4] ss:$36 sps:$4 sm:$0xff]  }
 0x2f2   :  { %5286 = vmatprep.subr.bf16.mxu1 %v11477_v9  ;;  %v11532_v9 = vld [vmem:[#allocation7 + $0x4d8] ss:$36 sps:$4 sm:$0xff]  }
 0x2f4   :  { %5035 = vmatpush1.bf16.msra.mxu0 %v11472_v63  ;;  %v11535_v63 = vld [vmem:[#allocation7 + $0x4e0] ss:$36 sps:$4 sm:$0xff]  }
 0x2f5   :  { %5287 = vmatpush1.bf16.msra.mxu1 %v11475_v40  ;;  %5036 = vmatprep.subr.bf16.mxu0 %v11480_v28  ;;  %v11540_v40 = vld [vmem:[#allocation7 + $0x524] ss:$36 sps:$4 sm:$0xff]   ;;  %v11543_v28 = vld [vmem:[#allocation7 + $0x52c] ss:$36 sps:$4 sm:$0xff]  }
 0x2f6   :  { %5288 = vmatprep.subr.bf16.mxu1 %v11483_v7  ;;  %v11538_v7 = vld [vmem:[#allocation7 + $0x520] ss:$36 sps:$4 sm:$0xff]  }
 0x2f8   :  { %5037 = vmatpush1.bf16.msra.mxu0 %v11478_v50  ;;  %v11541_v50 = vld [vmem:[#allocation7 + $0x528] ss:$36 sps:$4 sm:$0xff]  }
 0x2f9   :  { %5289 = vmatpush1.bf16.msra.mxu1 %v11481_v48  ;;  %5038 = vmatprep.subr.bf16.mxu0 %v11486_v8  ;;  %v11546_v48 = vld [vmem:[#allocation7 + $0x56c] ss:$36 sps:$4 sm:$0xff]   ;;  %v11549_v8 = vld [vmem:[#allocation7 + $0x574] ss:$36 sps:$4 sm:$0xff]  }
 0x2fa   :  { %5290 = vmatprep.subr.bf16.mxu1 %v11489_v2  ;;  %v11544_v2 = vld [vmem:[#allocation7 + $0x568] ss:$36 sps:$4 sm:$0xff]  }
 0x2fc   :  { %5039 = vmatpush1.bf16.msra.mxu0 %v11484_v53  ;;  %v11547_v53 = vld [vmem:[#allocation7 + $0x570] ss:$36 sps:$4 sm:$0xff]  }
 0x2fd   :  { %5291 = vmatpush1.bf16.msra.mxu1 %v11487_v21  ;;  %5040 = vmatprep.subr.bf16.mxu0 %v11492_v19  ;;  %v11552_v21 = vld [vmem:[#allocation7 + $0x5b4] ss:$36 sps:$4 sm:$0xff]   ;;  %v11555_v19 = vld [vmem:[#allocation7 + $0x5bc] ss:$36 sps:$4 sm:$0xff]  }
 0x2fe   :  { %5292 = vmatprep.subr.bf16.mxu1 %v11495_v58  ;;  %v11550_v58 = vld [vmem:[#allocation7 + $0x5b0] ss:$36 sps:$4 sm:$0xff]  }
 0x300   :  { %5041 = vmatpush1.bf16.msra.mxu0 %v11490_v37  ;;  %v11553_v37 = vld [vmem:[#allocation7 + $0x5b8] ss:$36 sps:$4 sm:$0xff]  }
 0x301   :  { %5293 = vmatpush1.bf16.msra.mxu1 %v11493_v47  ;;  %5042 = vmatprep.subr.bf16.mxu0 %v11498_v30  ;;  %v11558_v47 = vld [vmem:[#allocation7 + $0x5fc] ss:$36 sps:$4 sm:$0xff]   ;;  %v11561_v30 = vld [vmem:[#allocation7 + $0x604] ss:$36 sps:$4 sm:$0xff]  }
 0x302   :  { %5294 = vmatprep.subr.bf16.mxu1 %v11501_v61  ;;  %v14997_v61 = vld [vmem:[#allocation43_spill] sm:$0xff] }
 0x304   :  { %5043 = vmatpush1.bf16.msra.mxu0 %v11496_v24  ;;  %v11556_v24 = vld [vmem:[#allocation7 + $0x5f8] ss:$36 sps:$4 sm:$0xff]  }
 0x305   :  { %5295 = vmatpush1.bf16.msra.mxu1 %v11499_v15  ;;  %5044 = vmatprep.subr.bf16.mxu0 %v11504_v26  ;;  %v11559_v15 = vld [vmem:[#allocation7 + $0x600] ss:$36 sps:$4 sm:$0xff]  }
 0x306   :  { %5296 = vmatprep.subr.bf16.mxu1 %v11507_v13  ;;  %v11564_v26 = vld [vmem:[#allocation7 + $0x644] ss:$36 sps:$4 sm:$0xff]   ;;  %v11567_v13 = vld [vmem:[#allocation7 + $0x64c] ss:$36 sps:$4 sm:$0xff]  }
 0x308   :  { %5045 = vmatpush1.bf16.msra.mxu0 %v11502_v18  ;;  %v11562_v18 = vld [vmem:[#allocation7 + $0x640] ss:$36 sps:$4 sm:$0xff]  }
 0x309   :  { %5297 = vmatpush1.bf16.msra.mxu1 %v11505_v34  ;;  %5046 = vmatprep.subr.bf16.mxu0 %v11510_v41  ;;  %v11565_v34 = vld [vmem:[#allocation7 + $0x648] ss:$36 sps:$4 sm:$0xff]  }
 0x30a   :  { %5298 = vmatprep.subr.bf16.mxu1 %v11513_v55  ;;  %v11570_v41 = vld [vmem:[#allocation7 + $0x68c] ss:$36 sps:$4 sm:$0xff]   ;;  %v11573_v55 = vld [vmem:[#allocation7 + $0x694] ss:$36 sps:$4 sm:$0xff]  }
 0x30c   :  { %5047 = vmatpush1.bf16.msra.mxu0 %v11508_v23  ;;  %v11568_v23 = vld [vmem:[#allocation7 + $0x688] ss:$36 sps:$4 sm:$0xff]  }
 0x30d   :  { %5299 = vmatpush1.bf16.msra.mxu1 %v11511_v36  ;;  %5048 = vmatprep.subr.bf16.mxu0 %v11516_v5  ;;  %v11571_v36 = vld [vmem:[#allocation7 + $0x690] ss:$36 sps:$4 sm:$0xff]  }
 0x30e   :  { %5300 = vmatprep.subr.bf16.mxu1 %v11519_v29  ;;  %v11576_v5 = vld [vmem:[#allocation7 + $0x6d4] ss:$36 sps:$4 sm:$0xff]   ;;  %v11579_v29 = vld [vmem:[#allocation7 + $0x6dc] ss:$36 sps:$4 sm:$0xff]  }
 0x310   :  { %5049 = vmatpush1.bf16.msra.mxu0 %v11514_v17  ;;  %v11574_v17 = vld [vmem:[#allocation7 + $0x6d0] ss:$36 sps:$4 sm:$0xff]  }
 0x311   :  { %5301 = vmatpush1.bf16.msra.mxu1 %v11517_v4  ;;  %5050 = vmatprep.subr.bf16.mxu0 %v11522_v22  ;;  %v11577_v4 = vld [vmem:[#allocation7 + $0x6d8] ss:$36 sps:$4 sm:$0xff]  }
 0x312   :  { %5302 = vmatprep.subr.bf16.mxu1 %v11525_v57  ;;  %v11582_v22 = vld [vmem:[#allocation7 + $0x71c] ss:$36 sps:$4 sm:$0xff]   ;;  %v11585_v57 = vld [vmem:[#allocation7 + $0x724] ss:$36 sps:$4 sm:$0xff]  }
 0x314   :  { %5051 = vmatpush1.bf16.msra.mxu0 %v11520_v25  ;;  %v11580_v25 = vld [vmem:[#allocation7 + $0x718] ss:$36 sps:$4 sm:$0xff]  }
 0x315   :  { %5303 = vmatpush1.bf16.msra.mxu1 %v11523_v14  ;;  %5083 = vmatprep.subr.bf16.mxu0 %v11528_v31  ;;  %v11583_v14 = vld [vmem:[#allocation7 + $0x720] ss:$36 sps:$4 sm:$0xff]  }
 0x316   :  { %5335 = vmatprep.subr.bf16.mxu1 %v11531_v39  ;;  %v11588_v31 = vld [vmem:[#allocation7 + $0x764] ss:$36 sps:$4 sm:$0xff]   ;;  %v11591_v39 = vld [vmem:[#allocation7 + $0x76c] ss:$36 sps:$4 sm:$0xff]  }
 0x317   :  { %5053 = vmatmul.mubr.bf16.vlgmr.msra.gmra.mrb[28].mxu0 %v13872_v6 }
 0x318   :  { %5305 = vmatmul.mubr.bf16.vlgmr.msra.gmra.mrb[44].mxu1 %v13872_v6  ;;  %5062 = vmatprep.mubr.bf16.mxu0 %v13896_v51 }
 0x319   :  { %5084 = vmatpush1.bf16.msra.mxu0 %v11526_v44  ;;  %5314 = vmatprep.mubr.bf16.mxu1 %v13896_v51  ;;  %v11586_v44 = vld [vmem:[#allocation7 + $0x760] ss:$36 sps:$4 sm:$0xff]  }
 0x31a   :  { %5336 = vmatpush1.bf16.msra.mxu1 %v11529_v32  ;;  %5085 = vmatprep.subr.bf16.mxu0 %v11534_v49  ;;  %v11589_v32 = vld [vmem:[#allocation7 + $0x768] ss:$36 sps:$4 sm:$0xff]  }
 0x31b   :  { %5337 = vmatprep.subr.bf16.mxu1 %v11537_v45  ;;  %v11594_v49 = vld [vmem:[#allocation7 + $0x7ac] ss:$36 sps:$4 sm:$0xff]   ;;  %v11597_v45 = vld [vmem:[#allocation7 + $0x7b4] ss:$36 sps:$4 sm:$0xff]  }
 0x31d   :  { %5086 = vmatpush1.bf16.msra.mxu0 %v11532_v9  ;;  %v11592_v9 = vld [vmem:[#allocation7 + $0x7a8] ss:$36 sps:$4 sm:$0xff]  }
 0x31e   :  { %5338 = vmatpush1.bf16.msra.mxu1 %v11535_v63  ;;  %5087 = vmatprep.subr.bf16.mxu0 %v11540_v40  ;;  %v11595_v63 = vld [vmem:[#allocation7 + $0x7b0] ss:$36 sps:$4 sm:$0xff]  }
 0x31f   :  { %5063 = vmatmul.mubr.bf16.gmra.mrb[32].mxu0 %v13890_v54  ;;  %5339 = vmatprep.subr.bf16.mxu1 %v11543_v28  ;;  %v11600_v40 = vld [vmem:[#allocation7 + $0x7f4] ss:$36 sps:$4 sm:$0xff]   ;;  %v11603_v28 = vld [vmem:[#allocation7 + $0x7fc] ss:$36 sps:$4 sm:$0xff]  }
 0x320   :  { %5315 = vmatmul.mubr.bf16.gmra.mrb[48].mxu1 %v13890_v54  ;;  %5072 = vmatprep.mubr.bf16.mxu0 %v13924_v60  ;;  %v11799_v54 = vld [vmem:[#allocation7 + $0x1140] ss:$36 sps:$4 sm:$0xff]  }
 0x321   :  { %5088 = vmatpush1.bf16.msra.mxu0 %v11538_v7  ;;  %5324 = vmatprep.mubr.bf16.mxu1 %v13924_v60  ;;  %v11598_v7 = vld [vmem:[#allocation7 + $0x7f0] ss:$36 sps:$4 sm:$0xff]   ;;  %v11796_v60 = vld [vmem:[#allocation7 + $0x1138] ss:$36 sps:$4 sm:$0xff]  }
 0x322   :  { %5340 = vmatpush1.bf16.msra.mxu1 %v11541_v50  ;;  %5089 = vmatprep.subr.bf16.mxu0 %v11546_v48  ;;  %v11601_v50 = vld [vmem:[#allocation7 + $0x7f8] ss:$36 sps:$4 sm:$0xff]  }
 0x323   :  { %5341 = vmatprep.subr.bf16.mxu1 %v11549_v8  ;;  %v11606_v48 = vld [vmem:[#allocation7 + $0x83c] ss:$36 sps:$4 sm:$0xff]   ;;  %v11609_v8 = vld [vmem:[#allocation7 + $0x844] ss:$36 sps:$4 sm:$0xff]  }
 0x325   :  { %5090 = vmatpush1.bf16.msra.mxu0 %v11544_v2  ;;  %v11604_v2 = vld [vmem:[#allocation7 + $0x838] ss:$36 sps:$4 sm:$0xff]  }
 0x326   :  { %5342 = vmatpush1.bf16.msra.mxu1 %v11547_v53  ;;  %5091 = vmatprep.subr.bf16.mxu0 %v11552_v21  ;;  %v11607_v53 = vld [vmem:[#allocation7 + $0x840] ss:$36 sps:$4 sm:$0xff]  }
 0x327   :  { %5073 = vmatmul.mubr.bf16.gmra.mrb[36].mxu0 %v14997_v61  ;;  %5343 = vmatprep.subr.bf16.mxu1 %v11555_v19  ;;  %v11612_v21 = vld [vmem:[#allocation7 + $0x884] ss:$36 sps:$4 sm:$0xff]   ;;  %v11615_v19 = vld [vmem:[#allocation7 + $0x88c] ss:$36 sps:$4 sm:$0xff]  }
 0x328   :  { %5325 = vmatmul.mubr.bf16.gmra.mrb[52].mxu1 %v14997_v61  ;;  %5115 = vmatprep.mubr.bf16.mxu0 %v14004_v42 }
 0x329   :  { %5092 = vmatpush1.bf16.msra.mxu0 %v11550_v58  ;;  %5367 = vmatprep.mubr.bf16.mxu1 %v14004_v42  ;;  %v11610_v58 = vld [vmem:[#allocation7 + $0x880] ss:$36 sps:$4 sm:$0xff]  }
 0x32a   :  { %5344 = vmatpush1.bf16.msra.mxu1 %v11553_v37  ;;  %5093 = vmatprep.subr.bf16.mxu0 %v11558_v47  ;;  %v11613_v37 = vld [vmem:[#allocation7 + $0x888] ss:$36 sps:$4 sm:$0xff]  }
 0x32b   :  { %5345 = vmatprep.subr.bf16.mxu1 %v11561_v30  ;;  %v11618_v47 = vld [vmem:[#allocation7 + $0x8cc] ss:$36 sps:$4 sm:$0xff]   ;;  %v11621_v30 = vld [vmem:[#allocation7 + $0x8d4] ss:$36 sps:$4 sm:$0xff]  }
 0x32d   :  { %5094 = vmatpush1.bf16.msra.mxu0 %v11556_v24  ;;  %v11616_v24 = vld [vmem:[#allocation7 + $0x8c8] ss:$36 sps:$4 sm:$0xff]  }
 0x32e   :  { %5346 = vmatpush1.bf16.msra.mxu1 %v11559_v15  ;;  %5095 = vmatprep.subr.bf16.mxu0 %v11564_v26  ;;  %v11619_v15 = vld [vmem:[#allocation7 + $0x8d0] ss:$36 sps:$4 sm:$0xff]  }
 0x32f   :  { %5347 = vmatprep.subr.bf16.mxu1 %v11567_v13  ;;  %v11624_v26 = vld [vmem:[#allocation7 + $0x914] ss:$36 sps:$4 sm:$0xff]   ;;  %v11627_v13 = vld [vmem:[#allocation7 + $0x91c] ss:$36 sps:$4 sm:$0xff]  }
 0x331   :  { %5096 = vmatpush1.bf16.msra.mxu0 %v11562_v18  ;;  %v11622_v18 = vld [vmem:[#allocation7 + $0x910] ss:$36 sps:$4 sm:$0xff]  }
 0x332   :  { %5348 = vmatpush1.bf16.msra.mxu1 %v11565_v34  ;;  %5097 = vmatprep.subr.bf16.mxu0 %v11570_v41  ;;  %v11625_v34 = vld [vmem:[#allocation7 + $0x918] ss:$36 sps:$4 sm:$0xff]  }
 0x333   :  { %5349 = vmatprep.subr.bf16.mxu1 %v11573_v55  ;;  %v11630_v41 = vld [vmem:[#allocation7 + $0x95c] ss:$36 sps:$4 sm:$0xff]   ;;  %v11633_v55 = vld [vmem:[#allocation7 + $0x964] ss:$36 sps:$4 sm:$0xff]  }
 0x335   :  { %5098 = vmatpush1.bf16.msra.mxu0 %v11568_v23  ;;  %v11628_v23 = vld [vmem:[#allocation7 + $0x958] ss:$36 sps:$4 sm:$0xff]  }
 0x336   :  { %5350 = vmatpush1.bf16.msra.mxu1 %v11571_v36  ;;  %5099 = vmatprep.subr.bf16.mxu0 %v11576_v5  ;;  %v11631_v36 = vld [vmem:[#allocation7 + $0x960] ss:$36 sps:$4 sm:$0xff]  }
 0x337   :  { %5351 = vmatprep.subr.bf16.mxu1 %v11579_v29  ;;  %v11636_v5 = vld [vmem:[#allocation7 + $0x9a4] ss:$36 sps:$4 sm:$0xff]   ;;  %v11639_v29 = vld [vmem:[#allocation7 + $0x9ac] ss:$36 sps:$4 sm:$0xff]  }
 0x339   :  { %5100 = vmatpush1.bf16.msra.mxu0 %v11574_v17  ;;  %v11634_v17 = vld [vmem:[#allocation7 + $0x9a0] ss:$36 sps:$4 sm:$0xff]  }
 0x33a   :  { %5352 = vmatpush1.bf16.msra.mxu1 %v11577_v4  ;;  %5101 = vmatprep.subr.bf16.mxu0 %v11582_v22  ;;  %v11637_v4 = vld [vmem:[#allocation7 + $0x9a8] ss:$36 sps:$4 sm:$0xff]  }
 0x33b   :  { %5353 = vmatprep.subr.bf16.mxu1 %v11585_v57  ;;  %v11642_v22 = vld [vmem:[#allocation7 + $0x9ec] ss:$36 sps:$4 sm:$0xff]   ;;  %v11645_v57 = vld [vmem:[#allocation7 + $0x9f4] ss:$36 sps:$4 sm:$0xff]  }
 0x33d   :  { %5102 = vmatpush1.bf16.msra.mxu0 %v11580_v25  ;;  %v11640_v25 = vld [vmem:[#allocation7 + $0x9e8] ss:$36 sps:$4 sm:$0xff]  }
 0x33e   :  { %5354 = vmatpush1.bf16.msra.mxu1 %v11583_v14  ;;  %5103 = vmatprep.subr.bf16.mxu0 %v11588_v31  ;;  %v11643_v14 = vld [vmem:[#allocation7 + $0x9f0] ss:$36 sps:$4 sm:$0xff]  }
 0x33f   :  { %5355 = vmatprep.subr.bf16.mxu1 %v11591_v39  ;;  %v11648_v31 = vld [vmem:[#allocation7 + $0xa34] ss:$36 sps:$4 sm:$0xff]   ;;  %v11651_v39 = vld [vmem:[#allocation7 + $0xa3c] ss:$36 sps:$4 sm:$0xff]  }
 0x341   :  { %5104 = vmatpush1.bf16.msra.mxu0 %v11586_v44  ;;  %v11646_v44 = vld [vmem:[#allocation7 + $0xa30] ss:$36 sps:$4 sm:$0xff]  }
 0x342   :  { %5356 = vmatpush1.bf16.msra.mxu1 %v11589_v32  ;;  %5105 = vmatprep.subr.bf16.mxu0 %v11594_v49  ;;  %v11649_v32 = vld [vmem:[#allocation7 + $0xa38] ss:$36 sps:$4 sm:$0xff]  }
 0x343   :  { %5357 = vmatprep.subr.bf16.mxu1 %v11597_v45  ;;  %v11654_v49 = vld [vmem:[#allocation7 + $0xa7c] ss:$36 sps:$4 sm:$0xff]   ;;  %v11657_v45 = vld [vmem:[#allocation7 + $0xa84] ss:$36 sps:$4 sm:$0xff]  }
 0x345   :  { %5106 = vmatpush1.bf16.msra.mxu0 %v11592_v9  ;;  %v11652_v9 = vld [vmem:[#allocation7 + $0xa78] ss:$36 sps:$4 sm:$0xff]  }
 0x346   :  { %5358 = vmatpush1.bf16.msra.mxu1 %v11595_v63  ;;  %5107 = vmatprep.subr.bf16.mxu0 %v11600_v40  ;;  %v11655_v63 = vld [vmem:[#allocation7 + $0xa80] ss:$36 sps:$4 sm:$0xff]  }
 0x347   :  { %5359 = vmatprep.subr.bf16.mxu1 %v11603_v28  ;;  %v11660_v40 = vld [vmem:[#allocation7 + $0xac4] ss:$36 sps:$4 sm:$0xff]   ;;  %v11663_v28 = vld [vmem:[#allocation7 + $0xacc] ss:$36 sps:$4 sm:$0xff]  }
 0x349   :  { %5108 = vmatpush1.bf16.msra.mxu0 %v11598_v7  ;;  %v11658_v7 = vld [vmem:[#allocation7 + $0xac0] ss:$36 sps:$4 sm:$0xff]  }
 0x34a   :  { %5360 = vmatpush1.bf16.msra.mxu1 %v11601_v50  ;;  %5109 = vmatprep.subr.bf16.mxu0 %v11606_v48  ;;  %v11661_v50 = vld [vmem:[#allocation7 + $0xac8] ss:$36 sps:$4 sm:$0xff]  }
 0x34b   :  { %5361 = vmatprep.subr.bf16.mxu1 %v11609_v8  ;;  %v11666_v48 = vld [vmem:[#allocation7 + $0xb0c] ss:$36 sps:$4 sm:$0xff]   ;;  %v11669_v8 = vld [vmem:[#allocation7 + $0xb14] ss:$36 sps:$4 sm:$0xff]  }
 0x34d   :  { %5110 = vmatpush1.bf16.msra.mxu0 %v11604_v2  ;;  %v11664_v2 = vld [vmem:[#allocation7 + $0xb08] ss:$36 sps:$4 sm:$0xff]  }
 0x34e   :  { %5362 = vmatpush1.bf16.msra.mxu1 %v11607_v53  ;;  %5111 = vmatprep.subr.bf16.mxu0 %v11612_v21  ;;  %v11667_v53 = vld [vmem:[#allocation7 + $0xb10] ss:$36 sps:$4 sm:$0xff]  }
 0x34f   :  { %5363 = vmatprep.subr.bf16.mxu1 %v11615_v19  ;;  %v11672_v21 = vld [vmem:[#allocation7 + $0xb54] ss:$36 sps:$4 sm:$0xff]   ;;  %v11675_v19 = vld [vmem:[#allocation7 + $0xb5c] ss:$36 sps:$4 sm:$0xff]  }
 0x351   :  { %5112 = vmatpush1.bf16.msra.mxu0 %v11610_v58  ;;  %v11670_v58 = vld [vmem:[#allocation7 + $0xb50] ss:$36 sps:$4 sm:$0xff]  }
 0x352   :  { %5364 = vmatpush1.bf16.msra.mxu1 %v11613_v37  ;;  %5113 = vmatprep.subr.bf16.mxu0 %v11618_v47  ;;  %v11673_v37 = vld [vmem:[#allocation7 + $0xb58] ss:$36 sps:$4 sm:$0xff]  }
 0x353   :  { %5365 = vmatprep.subr.bf16.mxu1 %v11621_v30  ;;  %v11678_v47 = vld [vmem:[#allocation7 + $0xb9c] ss:$36 sps:$4 sm:$0xff]   ;;  %v11681_v30 = vld [vmem:[#allocation7 + $0xba4] ss:$36 sps:$4 sm:$0xff]  }
 0x355   :  { %5114 = vmatpush1.bf16.msra.mxu0 %v11616_v24  ;;  %v11676_v24 = vld [vmem:[#allocation7 + $0xb98] ss:$36 sps:$4 sm:$0xff]  }
 0x356   :  { %5366 = vmatpush1.bf16.msra.mxu1 %v11619_v15  ;;  %5146 = vmatprep.subr.bf16.mxu0 %v11624_v26  ;;  %v11679_v15 = vld [vmem:[#allocation7 + $0xba0] ss:$36 sps:$4 sm:$0xff]  }
 0x357   :  { %5398 = vmatprep.subr.bf16.mxu1 %v11627_v13  ;;  %v11684_v26 = vld [vmem:[#allocation7 + $0xbe4] ss:$36 sps:$4 sm:$0xff]   ;;  %v11687_v13 = vld [vmem:[#allocation7 + $0xbec] ss:$36 sps:$4 sm:$0xff]  }
 0x358   :  { %5116 = vmatmul.mubr.bf16.vlgmr.msra.gmra.mrb[28].mxu0 %v13999_v56 }
 0x359   :  { %5368 = vmatmul.mubr.bf16.vlgmr.msra.gmra.mrb[44].mxu1 %v13999_v56  ;;  %5125 = vmatprep.mubr.bf16.mxu0 %v14016_v12 }
 0x35a   :  { %5147 = vmatpush1.bf16.msra.mxu0 %v11622_v18  ;;  %5377 = vmatprep.mubr.bf16.mxu1 %v14016_v12  ;;  %v11682_v18 = vld [vmem:[#allocation7 + $0xbe0] ss:$36 sps:$4 sm:$0xff]  }
 0x35b   :  { %5399 = vmatpush1.bf16.msra.mxu1 %v11625_v34  ;;  %5148 = vmatprep.subr.bf16.mxu0 %v11630_v41  ;;  %v11685_v34 = vld [vmem:[#allocation7 + $0xbe8] ss:$36 sps:$4 sm:$0xff]  }
 0x35c   :  { %5400 = vmatprep.subr.bf16.mxu1 %v11633_v55  ;;  %v11690_v41 = vld [vmem:[#allocation7 + $0xc2c] ss:$36 sps:$4 sm:$0xff]   ;;  %v11693_v55 = vld [vmem:[#allocation7 + $0xc34] ss:$36 sps:$4 sm:$0xff]  }
 0x35e   :  { %5149 = vmatpush1.bf16.msra.mxu0 %v11628_v23  ;;  %v11688_v23 = vld [vmem:[#allocation7 + $0xc28] ss:$36 sps:$4 sm:$0xff]  }
 0x35f   :  { %5401 = vmatpush1.bf16.msra.mxu1 %v11631_v36  ;;  %5150 = vmatprep.subr.bf16.mxu0 %v11636_v5  ;;  %v11691_v36 = vld [vmem:[#allocation7 + $0xc30] ss:$36 sps:$4 sm:$0xff]  }
 0x360   :  { %5126 = vmatmul.mubr.bf16.gmra.mrb[32].mxu0 %v14014_v11  ;;  %5402 = vmatprep.subr.bf16.mxu1 %v11639_v29  ;;  %v11696_v5 = vld [vmem:[#allocation7 + $0xc74] ss:$36 sps:$4 sm:$0xff]   ;;  %v11699_v29 = vld [vmem:[#allocation7 + $0xc7c] ss:$36 sps:$4 sm:$0xff]  }
 0x361   :  { %5378 = vmatmul.mubr.bf16.gmra.mrb[48].mxu1 %v14014_v11  ;;  %5135 = vmatprep.mubr.bf16.mxu0 %v14028_v20 }
 0x362   :  { %5151 = vmatpush1.bf16.msra.mxu0 %v11634_v17  ;;  %5387 = vmatprep.mubr.bf16.mxu1 %v14028_v20  ;;  %v11694_v17 = vld [vmem:[#allocation7 + $0xc70] ss:$36 sps:$4 sm:$0xff]  }
 0x363   :  { %5403 = vmatpush1.bf16.msra.mxu1 %v11637_v4  ;;  %5152 = vmatprep.subr.bf16.mxu0 %v11642_v22  ;;  %v11697_v4 = vld [vmem:[#allocation7 + $0xc78] ss:$36 sps:$4 sm:$0xff]  }
 0x364   :  { %5404 = vmatprep.subr.bf16.mxu1 %v11645_v57  ;;  %v11702_v22 = vld [vmem:[#allocation7 + $0xcbc] ss:$36 sps:$4 sm:$0xff]   ;;  %v11705_v57 = vld [vmem:[#allocation7 + $0xcc4] ss:$36 sps:$4 sm:$0xff]  }
 0x366   :  { %5153 = vmatpush1.bf16.msra.mxu0 %v11640_v25  ;;  %v11700_v25 = vld [vmem:[#allocation7 + $0xcb8] ss:$36 sps:$4 sm:$0xff]  }
 0x367   :  { %5405 = vmatpush1.bf16.msra.mxu1 %v11643_v14  ;;  %5154 = vmatprep.subr.bf16.mxu0 %v11648_v31  ;;  %v11703_v14 = vld [vmem:[#allocation7 + $0xcc0] ss:$36 sps:$4 sm:$0xff]  }
 0x368   :  { %5136 = vmatmul.mubr.bf16.gmra.mrb[36].mxu0 %v14022_v3  ;;  %5406 = vmatprep.subr.bf16.mxu1 %v11651_v39  ;;  %v11708_v31 = vld [vmem:[#allocation7 + $0xd04] ss:$36 sps:$4 sm:$0xff]   ;;  %v11711_v39 = vld [vmem:[#allocation7 + $0xd0c] ss:$36 sps:$4 sm:$0xff]  }
 0x369   :  { %5388 = vmatmul.mubr.bf16.gmra.mrb[52].mxu1 %v14022_v3  ;;  %5178 = vmatprep.mubr.bf16.mxu0 %v14074_v38 }
 0x36a   :  { %5155 = vmatpush1.bf16.msra.mxu0 %v11646_v44  ;;  %5430 = vmatprep.mubr.bf16.mxu1 %v14074_v38  ;;  %v11706_v44 = vld [vmem:[#allocation7 + $0xd00] ss:$36 sps:$4 sm:$0xff]  }
 0x36b   :  { %5407 = vmatpush1.bf16.msra.mxu1 %v11649_v32  ;;  %5156 = vmatprep.subr.bf16.mxu0 %v11654_v49  ;;  %v11709_v32 = vld [vmem:[#allocation7 + $0xd08] ss:$36 sps:$4 sm:$0xff]  }
 0x36c   :  { %5408 = vmatprep.subr.bf16.mxu1 %v11657_v45  ;;  %v11714_v49 = vld [vmem:[#allocation7 + $0xd4c] ss:$36 sps:$4 sm:$0xff]   ;;  %v11717_v45 = vld [vmem:[#allocation7 + $0xd54] ss:$36 sps:$4 sm:$0xff]  }
 0x36e   :  { %5157 = vmatpush1.bf16.msra.mxu0 %v11652_v9  ;;  %v11712_v9 = vld [vmem:[#allocation7 + $0xd48] ss:$36 sps:$4 sm:$0xff]  }
 0x36f   :  { %5409 = vmatpush1.bf16.msra.mxu1 %v11655_v63  ;;  %5158 = vmatprep.subr.bf16.mxu0 %v11660_v40  ;;  %v11715_v63 = vld [vmem:[#allocation7 + $0xd50] ss:$36 sps:$4 sm:$0xff]  }
 0x370   :  { %5410 = vmatprep.subr.bf16.mxu1 %v11663_v28  ;;  %v11720_v40 = vld [vmem:[#allocation7 + $0xd94] ss:$36 sps:$4 sm:$0xff]   ;;  %v11723_v28 = vld [vmem:[#allocation7 + $0xd9c] ss:$36 sps:$4 sm:$0xff]  }
 0x372   :  { %5159 = vmatpush1.bf16.msra.mxu0 %v11658_v7  ;;  %v11718_v7 = vld [vmem:[#allocation7 + $0xd90] ss:$36 sps:$4 sm:$0xff]  }
 0x373   :  { %5411 = vmatpush1.bf16.msra.mxu1 %v11661_v50  ;;  %5160 = vmatprep.subr.bf16.mxu0 %v11666_v48  ;;  %v11721_v50 = vld [vmem:[#allocation7 + $0xd98] ss:$36 sps:$4 sm:$0xff]  }
 0x374   :  { %5412 = vmatprep.subr.bf16.mxu1 %v11669_v8  ;;  %v11726_v48 = vld [vmem:[#allocation7 + $0xddc] ss:$36 sps:$4 sm:$0xff]   ;;  %v11729_v8 = vld [vmem:[#allocation7 + $0xde4] ss:$36 sps:$4 sm:$0xff]  }
 0x376   :  { %5161 = vmatpush1.bf16.msra.mxu0 %v11664_v2  ;;  %v11724_v2 = vld [vmem:[#allocation7 + $0xdd8] ss:$36 sps:$4 sm:$0xff]  }
 0x377   :  { %5413 = vmatpush1.bf16.msra.mxu1 %v11667_v53  ;;  %5162 = vmatprep.subr.bf16.mxu0 %v11672_v21  ;;  %v11727_v53 = vld [vmem:[#allocation7 + $0xde0] ss:$36 sps:$4 sm:$0xff]  }
 0x378   :  { %5414 = vmatprep.subr.bf16.mxu1 %v11675_v19  ;;  %v11732_v21 = vld [vmem:[#allocation7 + $0xe24] ss:$36 sps:$4 sm:$0xff]   ;;  %v11735_v19 = vld [vmem:[#allocation7 + $0xe2c] ss:$36 sps:$4 sm:$0xff]  }
 0x37a   :  { %5163 = vmatpush1.bf16.msra.mxu0 %v11670_v58  ;;  %v11730_v58 = vld [vmem:[#allocation7 + $0xe20] ss:$36 sps:$4 sm:$0xff]  }
 0x37b   :  { %5415 = vmatpush1.bf16.msra.mxu1 %v11673_v37  ;;  %5164 = vmatprep.subr.bf16.mxu0 %v11678_v47  ;;  %v11733_v37 = vld [vmem:[#allocation7 + $0xe28] ss:$36 sps:$4 sm:$0xff]  }
 0x37c   :  { %5416 = vmatprep.subr.bf16.mxu1 %v11681_v30  ;;  %v11738_v47 = vld [vmem:[#allocation7 + $0xe6c] ss:$36 sps:$4 sm:$0xff]   ;;  %v11741_v30 = vld [vmem:[#allocation7 + $0xe74] ss:$36 sps:$4 sm:$0xff]  }
 0x37e   :  { %5165 = vmatpush1.bf16.msra.mxu0 %v11676_v24  ;;  %v11736_v24 = vld [vmem:[#allocation7 + $0xe68] ss:$36 sps:$4 sm:$0xff]  }
 0x37f   :  { %5417 = vmatpush1.bf16.msra.mxu1 %v11679_v15  ;;  %5166 = vmatprep.subr.bf16.mxu0 %v11684_v26  ;;  %v11739_v15 = vld [vmem:[#allocation7 + $0xe70] ss:$36 sps:$4 sm:$0xff]  }
 0x380   :  { %5418 = vmatprep.subr.bf16.mxu1 %v11687_v13  ;;  %v11744_v26 = vld [vmem:[#allocation7 + $0xeb4] ss:$36 sps:$4 sm:$0xff]   ;;  %v5752_v13 = vld [vmem:[#allocation8] sm:$0xff] }
 0x382   :  { %5167 = vmatpush1.bf16.msra.mxu0 %v11682_v18  ;;  %v11747_v18 = vld [vmem:[#allocation7 + $0xebc] ss:$36 sps:$4 sm:$0xff]  }
 0x383   :  { %5419 = vmatpush1.bf16.msra.mxu1 %v11685_v34  ;;  %5168 = vmatprep.subr.bf16.mxu0 %v11690_v41  ;;  %v11742_v34 = vld [vmem:[#allocation7 + $0xeb0] ss:$36 sps:$4 sm:$0xff]  }
 0x384   :  { %5420 = vmatprep.subr.bf16.mxu1 %v11693_v55  ;;  %v14998_v41 = vld [vmem:[#allocation37_spill] sm:$0xff] }
 0x385   :  { %v14189_v55 = vrot.slane %v5752_v13, %v14998_v41 }
 0x386   :  { %5169 = vmatpush1.bf16.msra.mxu0 %v11688_v23  ;;  %v14999_v23 = vld [vmem:[#allocation39_spill] sm:$0xff] }
 0x387   :  { %5421 = vmatpush1.bf16.msra.mxu1 %v11691_v36  ;;  %5170 = vmatprep.subr.bf16.mxu0 %v11696_v5  ;;  %v14192_v36 = vrot.slane %v5752_v13, %v14999_v23  ;;  %v11745_v5 = vld [vmem:[#allocation7 + $0xeb8] ss:$36 sps:$4 sm:$0xff]   ;;  %v11777_v23 = vld [vmem:[#allocation7 + $0x1024] ss:$36 sps:$4 sm:$0xff]  }
 0x388   :  { %5422 = vmatprep.subr.bf16.mxu1 %v11699_v29  ;;  %v15000_v29 = vld [vmem:[#allocation38_spill] sm:$0xff] }
 0x38a   :  { %5171 = vmatpush1.bf16.msra.mxu0 %v11694_v17  ;;  %v14195_v17 = vrot.slane %v5752_v13, %v15000_v29  ;;  %v11774_v29 = vld [vmem:[#allocation7 + $0x101c] ss:$36 sps:$4 sm:$0xff]  }
 0x38b   :  { %5423 = vmatpush1.bf16.msra.mxu1 %v11697_v4  ;;  %5172 = vmatprep.subr.bf16.mxu0 %v11702_v22  ;;  %v15001_v4 = vld [vmem:[#allocation40_spill] sm:$0xff] }
 0x38c   :  { %5424 = vmatprep.subr.bf16.mxu1 %v11705_v57  ;;  %v14198_v22 = vrot.slane %v5752_v13, %v15001_v4  ;;  %v11750_v57 = vld [vmem:[#allocation7 + $0xefc] ss:$36 sps:$4 sm:$0xff]   ;;  %v11762_v13 = vld [vmem:[#allocation7 + $0xf8c] ss:$36 sps:$4 sm:$0xff]  }
 0x38e   :  { %5173 = vmatpush1.bf16.msra.mxu0 %v11700_v25  ;;  %v11753_v25 = vld [vmem:[#allocation7 + $0xf04] ss:$36 sps:$4 sm:$0xff]  }
 0x38f   :  { %5425 = vmatpush1.bf16.msra.mxu1 %v11703_v14  ;;  %5174 = vmatprep.subr.bf16.mxu0 %v11708_v31 }
 0x390   :  { %5426 = vmatprep.subr.bf16.mxu1 %v11711_v39 }
 0x392   :  { %5175 = vmatpush1.bf16.msra.mxu0 %v11706_v44 }
 0x393   :  { %5427 = vmatpush1.bf16.msra.mxu1 %v11709_v32  ;;  %5176 = vmatprep.subr.bf16.mxu0 %v11714_v49 }
 0x394   :  { %5428 = vmatprep.subr.bf16.mxu1 %v11717_v45  ;;  %v11748_v45 = vld [vmem:[#allocation7 + $0xef8] ss:$36 sps:$4 sm:$0xff]  }
 0x396   :  { %5177 = vmatpush1.bf16.msra.mxu0 %v11712_v9  ;;  %v11751_v9 = vld [vmem:[#allocation7 + $0xf00] ss:$36 sps:$4 sm:$0xff]  }
 0x397   :  { %5429 = vmatpush1.bf16.msra.mxu1 %v11715_v63  ;;  %5209 = vmatprep.subr.bf16.mxu0 %v11720_v40 }
 0x398   :  { %5461 = vmatprep.subr.bf16.mxu1 %v11723_v28 }
 0x399   :  { %5179 = vmatmul.mubr.bf16.vlgmr.msra.gmra.mrb[28].mxu0 %v14070_v43 }
 0x39a   :  { %5431 = vmatmul.mubr.bf16.vlgmr.msra.gmra.mrb[44].mxu1 %v14070_v43  ;;  %5188 = vmatprep.mubr.bf16.mxu0 %v14086_v0 }
 0x39b   :  { %5210 = vmatpush1.bf16.msra.mxu0 %v11718_v7  ;;  %5440 = vmatprep.mubr.bf16.mxu1 %v14086_v0 }
 0x39c   :  { %5462 = vmatpush1.bf16.msra.mxu1 %v11721_v50  ;;  %5211 = vmatprep.subr.bf16.mxu0 %v11726_v48  ;;  %v11756_v50 = vld [vmem:[#allocation7 + $0xf44] ss:$36 sps:$4 sm:$0xff]   ;;  %v11759_v48 = vld [vmem:[#allocation7 + $0xf4c] ss:$36 sps:$4 sm:$0xff]  }
 0x39d   :  { %5463 = vmatprep.subr.bf16.mxu1 %v11729_v8 }
 0x39f   :  { %5212 = vmatpush1.bf16.msra.mxu0 %v11724_v2 }
 0x3a0   :  { %5464 = vmatpush1.bf16.msra.mxu1 %v11727_v53  ;;  %5213 = vmatprep.subr.bf16.mxu0 %v11732_v21 }
 0x3a1   :  { %5189 = vmatmul.mubr.bf16.gmra.mrb[32].mxu0 %v14082_v59  ;;  %5465 = vmatprep.subr.bf16.mxu1 %v11735_v19 }
 0x3a2   :  { %5441 = vmatmul.mubr.bf16.gmra.mrb[48].mxu1 %v14082_v59  ;;  %5198 = vmatprep.mubr.bf16.mxu0 %v14094_v46 }
 0x3a3   :  { %5214 = vmatpush1.bf16.msra.mxu0 %v11730_v58  ;;  %5450 = vmatprep.mubr.bf16.mxu1 %v14094_v46 }
 0x3a4   :  { %5466 = vmatpush1.bf16.msra.mxu1 %v11733_v37  ;;  %5215 = vmatprep.subr.bf16.mxu0 %v11738_v47  ;;  %v11754_v37 = vld [vmem:[#allocation7 + $0xf40] ss:$36 sps:$4 sm:$0xff]  }
 0x3a5   :  { %5467 = vmatprep.subr.bf16.mxu1 %v11741_v30 }
 0x3a7   :  { %5216 = vmatpush1.bf16.msra.mxu0 %v11736_v24 }
 0x3a8   :  { %5468 = vmatpush1.bf16.msra.mxu1 %v11739_v15  ;;  %5217 = vmatprep.subr.bf16.mxu0 %v11744_v26  ;;  %v11757_v26 = vld [vmem:[#allocation7 + $0xf48] ss:$36 sps:$4 sm:$0xff]  }
 0x3a9   :  { %5199 = vmatmul.mubr.bf16.gmra.mrb[36].mxu0 %v14092_v33  ;;  %5469 = vmatprep.subr.bf16.mxu1 %v11747_v18 }
 0x3aa   :  { %5451 = vmatmul.mubr.bf16.gmra.mrb[52].mxu1 %v14092_v33  ;;  %5241 = vmatprep.mubr.bf16.mxu0 %v14107_v52  ;;  %v4739_v14 = vpop.f32.mrb[16].mxu0  ;;  %v4991_v31 = vpop.f32.mrb[32].mxu1 }
 0x3ab   :  { %5218 = vmatpush1.bf16.msra.mxu0 %v11742_v34  ;;  %5493 = vmatprep.mubr.bf16.mxu1 %v14107_v52  ;;  %v14205_v39 = vadd.f32 %v14189_v55, %v4739_v14  ;;  %v14208_v44 = vadd.f32 %v14192_v36, %v4991_v31  ;;  %v4741_v32 = vpop.f32.mrb[17].mxu0  ;;  %v4993_v49 = vpop.f32.mrb[33].mxu1  ;;  %v11781_v52 = vld [vmem:[#allocation7 + $0x1068] ss:$36 sps:$4 sm:$0xff]  }
 0x3ac   :  { %5470 = vmatpush1.bf16.msra.mxu1 %v11745_v5  ;;  %v14211_v63 = vadd.f32 %v14195_v17, %v4741_v32  ;;  %v14214_v40 = vadd.f32 %v14198_v22, %v4993_v49  ;;  %5219 = vmatprep.subr.bf16.mxu0 %v11750_v57  ;;  %v4743_v28 = vpop.f32.mrb[18].mxu0  ;;  %v4995_v7 = vpop.f32.mrb[34].mxu1 }
 0x3ad   :  { %v5842_v8 = vsub.f32 0.0, %v14205_v39  ;;  %v5844_v2 = vsub.f32 0.0, %v14208_v44  ;;  %5471 = vmatprep.subr.bf16.mxu1 %v11753_v25  ;;  %v14219_v53 = vadd.f32 %v14189_v55, %v4743_v28  ;;  %v14222_v21 = vadd.f32 %v14192_v36, %v4995_v7  ;;  %v4745_v19 = vpop.f32.mrb[19].mxu0  ;;  %v4997_v58 = vpop.f32.mrb[35].mxu1  ;;  %v11765_v28 = vld [vmem:[#allocation7 + $0xf94] ss:$36 sps:$4 sm:$0xff]  }
 0x3ae   :  { %v5843_v47 = vsub.f32 0.0, %v14211_v63  ;;  %v5845_v30 = vsub.f32 0.0, %v14214_v40  ;;  %v14227_v24 = vadd.f32 %v14195_v17, %v4745_v19  ;;  %v14230_v15 = vadd.f32 %v14198_v22, %v4997_v58  ;;  %v11760_v19 = vld [vmem:[#allocation7 + $0xf88] ss:$36 sps:$4 sm:$0xff]  }
 0x3af   :  { %v5890_v18 = vmul.f32 1.442695, %v5842_v8  ;;  %v5894_v34 = vmul.f32 1.442695, %v5844_v2  ;;  %v5850_v5 = vsub.f32 0.0, %v14219_v53  ;;  %v5852_v57 = vsub.f32 0.0, %v14222_v21  ;;  %5220 = vmatpush1.bf16.msra.mxu0 %v11748_v45 }
 0x3b0   :  { %v5892_v25 = vmul.f32 1.442695, %v5843_v47  ;;  %v5896_v14 = vmul.f32 1.442695, %v5845_v30  ;;  %5472 = vmatpush1.bf16.msra.mxu1 %v11751_v9  ;;  %v5851_v31 = vsub.f32 0.0, %v14227_v24  ;;  %v5853_v32 = vsub.f32 0.0, %v14230_v15  ;;  %5221 = vmatprep.subr.bf16.mxu0 %v11756_v50 }
 0x3b1   :  { %12582 = vpow2.f32 %v5890_v18  ;;  %v5906_v49 = vmul.f32 1.442695, %v5850_v5  ;;  %5473 = vmatprep.subr.bf16.mxu1 %v11759_v48  ;;  %v5910_v7 = vmul.f32 1.442695, %v5852_v57  ;;  %v11763_v30 = vld [vmem:[#allocation7 + $0xf90] ss:$36 sps:$4 sm:$0xff]  }
 0x3b2   :  { %12584 = vpow2.f32 %v5894_v34  ;;  %v4749_v8 = vpop.f32.mrb[20].mxu0  ;;  %v5001_v2 = vpop.f32.mrb[36].mxu1  ;;  %v5908_v58 = vmul.f32 1.442695, %v5851_v31  ;;  %v5912_v48 = vmul.f32 1.442695, %v5853_v32 }
 0x3b3   :  { %12586 = vpow2.f32 %v5892_v25  ;;  %5222 = vmatpush1.bf16.msra.mxu0 %v11754_v37  ;;  %v14237_v45 = vadd.f32 %v14189_v55, %v4749_v8  ;;  %v14240_v9 = vadd.f32 %v14192_v36, %v5001_v2  ;;  %v4751_v47 = vpop.f32.mrb[21].mxu0  ;;  %v5003_v50 = vpop.f32.mrb[37].mxu1  ;;  %v11768_v57 = vld [vmem:[#allocation7 + $0xfd4] ss:$36 sps:$4 sm:$0xff]  }
 0x3b4   :  { %12588 = vpow2.f32 %v5896_v14  ;;  %5474 = vmatpush1.bf16.msra.mxu1 %v11757_v26  ;;  %v14243_v18 = vadd.f32 %v14195_v17, %v4751_v47  ;;  %5223 = vmatprep.subr.bf16.mxu0 %v11762_v13  ;;  %v4753_v34 = vpop.f32.mrb[22].mxu0  ;;  %v5005_v5 = vpop.f32.mrb[38].mxu1  ;;  %v11771_v26 = vld [vmem:[#allocation7 + $0xfdc] ss:$36 sps:$4 sm:$0xff]   ;;  %v11766_v13 = vld [vmem:[#allocation7 + $0xfd0] ss:$36 sps:$4 sm:$0xff]  }
 0x3b5   :  { %12590 = vpow2.f32 %v5906_v49  ;;  %v5858_v37 = vsub.f32 0.0, %v14237_v45  ;;  %v5860_v25 = vsub.f32 0.0, %v14240_v9  ;;  %5475 = vmatprep.subr.bf16.mxu1 %v11765_v28  ;;  %v14248_v31 = vadd.f32 %v14189_v55, %v4753_v34  ;;  %v4755_v8 = vpop.f32.mrb[23].mxu0  ;;  %v14250_v14 = vpop.f32.mrb[39].mxu1  ;;  %v11769_v34 = vld [vmem:[#allocation7 + $0xfd8] ss:$36 sps:$4 sm:$0xff]  }
 0x3b6   :  { %12592 = vpow2.f32 %v5910_v7  ;;  %v5859_v32 = vsub.f32 0.0, %v14243_v18  ;;  %v14255_v28 = vadd.f32 %v14198_v22, %v5003_v50 }
 0x3b7   :  { %12594 = vpow2.f32 %v5908_v58  ;;  %v5922_v2 = vmul.f32 1.442695, %v5858_v37  ;;  %v5926_v47 = vmul.f32 1.442695, %v5860_v25  ;;  %v5866_v49 = vsub.f32 0.0, %v14248_v31  ;;  %5224 = vmatpush1.bf16.msra.mxu0 %v11760_v19 }
 0x3b8   :  { %12596 = vpow2.f32 %v5912_v48  ;;  %v5924_v4 = vmul.f32 1.442695, %v5859_v32  ;;  %5476 = vmatpush1.bf16.msra.mxu1 %v11763_v30  ;;  %5225 = vmatprep.subr.bf16.mxu0 %v11768_v57  ;;  %v11772_v48 = vld [vmem:[#allocation7 + $0x1018] ss:$36 sps:$4 sm:$0xff]   ;;  %v11775_v32 = vld [vmem:[#allocation7 + $0x1020] ss:$36 sps:$4 sm:$0xff]   ;;  %v14259_v57 = vadd.f32 %v14192_v36, %v5005_v5 }
 0x3b9   :  { %12598 = vpow2.f32 %v5922_v2  ;;  %v5938_v7 = vmul.f32 1.442695, %v5866_v49  ;;  %5477 = vmatprep.subr.bf16.mxu1 %v11771_v26  ;;  %v5861_v30 = vsub.f32 0.0, %v14255_v28 }
 0x3ba   :  { %12600 = vpow2.f32 %v5926_v47  ;;  %v4759_v58 = vpop.f32.mrb[24].mxu0  ;;  %v5011_v37 = vpop.f32.mrb[40].mxu1  ;;  %v11780_v47 = vld [vmem:[#allocation7 + $0x1064] ss:$36 sps:$4 sm:$0xff]  }
 0x3bb   :  { %v12583_v25 = vpop.eup %12582  ;;  %5226 = vmatpush1.bf16.msra.mxu0 %v11766_v13  ;;  %v4761_v41 = vpop.f32.mrb[25].mxu0  ;;  %12602 = vpow2.f32 %v5924_v4  ;;  %v14262_v13 = vadd.f32 %v14195_v17, %v4755_v8  ;;  %v5868_v8 = vsub.f32 0.0, %v14259_v57 }
 0x3bc   :  { %v5013_v19 = vpop.f32.mrb[41].mxu1  ;;  %v12585_v33 = vpop.eup %12584  ;;  %v5986_v50 = vadd.f32 1.0, %v12583_v25  ;;  %5478 = vmatpush1.bf16.msra.mxu1 %v11769_v34  ;;  %5227 = vmatprep.subr.bf16.mxu0 %v11774_v29  ;;  %12604 = vpow2.f32 %v5938_v7  ;;  %v11783_v25 = vld [vmem:[#allocation7 + $0x106c] ss:$36 sps:$4 sm:$0xff]   ;;  %v11778_v34 = vld [vmem:[#allocation7 + $0x1060] ss:$36 sps:$4 sm:$0xff]  }
 0x3bd   :  { %v4763_v26 = vpop.f32.mrb[26].mxu0  ;;  %v5015_v2 = vpop.f32.mrb[42].mxu1  ;;  %v5988_v46 = vadd.f32 1.0, %v12585_v33  ;;  %5479 = vmatprep.subr.bf16.mxu1 %v11777_v23  ;;  %v5928_v7 = vmul.f32 1.442695, %v5861_v30  ;;  %v14273_v30 = vadd.f32 %v14189_v55, %v4759_v58 }
 0x3be   :  { %v12587_v49 = vpop.eup %12586  ;;  %v4765_v59 = vpop.f32.mrb[27].mxu0  ;;  %12606 = vrcp.f32 %v5986_v50  ;;  %v11786_v23 = vld [vmem:[#allocation7 + $0x10ac] ss:$36 sps:$4 sm:$0xff]   ;;  %v14285_v58 = vadd.f32 %v14189_v55, %v4763_v26 }
 0x3bf   :  { %v12589_v4 = vpop.eup %12588  ;;  %v5987_v0 = vadd.f32 1.0, %v12587_v49  ;;  %v14264_v43 = vpop.f32.mrb[43].mxu1  ;;  %12608 = vrcp.f32 %v5988_v46  ;;  %5228 = vmatpush1.bf16.msra.mxu0 %v11772_v48  ;;  %v5867_v49 = vsub.f32 0.0, %v14262_v13  ;;  %v14270_v46 = vadd.f32 %v14198_v22, %v14250_v14  ;;  %v11789_v48 = vld [vmem:[#allocation7 + $0x10b4] ss:$36 sps:$4 sm:$0xff]  }
 0x3c0   :  { %v12591_v5 = vpop.eup %12590  ;;  %v5989_v29 = vadd.f32 1.0, %v12589_v4  ;;  %5480 = vmatpush1.bf16.msra.mxu1 %v11775_v32  ;;  %5229 = vmatprep.subr.bf16.mxu0 %v11780_v47  ;;  %v14276_v32 = vadd.f32 %v14192_v36, %v5011_v37  ;;  %v14282_v14 = vadd.f32 %v14198_v22, %v5013_v19  ;;  %v14288_v37 = vadd.f32 %v14192_v36, %v5015_v2 }
 0x3c1   :  { %v12593_v38 = vpop.eup %12592  ;;  %12610 = vrcp.f32 %v5987_v0  ;;  %v5994_v33 = vadd.f32 1.0, %v12591_v5  ;;  %5481 = vmatprep.subr.bf16.mxu1 %v11783_v25  ;;  %v14279_v5 = vadd.f32 %v14195_v17, %v4761_v41  ;;  %v11784_v25 = vld [vmem:[#allocation7 + $0x10a8] ss:$36 sps:$4 sm:$0xff]   ;;  %v5869_v19 = vsub.f32 0.0, %v14270_v46 }
 0x3c2   :  { %v12595_v3 = vpop.eup %12594  ;;  %12612 = vrcp.f32 %v5989_v29  ;;  %v5996_v50 = vadd.f32 1.0, %v12593_v38  ;;  %v5874_v55 = vsub.f32 0.0, %v14273_v30  ;;  %v14295_v36 = vadd.f32 %v14195_v17, %v4765_v59  ;;  %v11798_v59 = vld [vmem:[#allocation7 + $0x113c] ss:$36 sps:$4 sm:$0xff]  }
 0x3c3   :  { %v12597_v4 = vpop.eup %12596  ;;  %12614 = vrcp.f32 %v5994_v33  ;;  %v5995_v0 = vadd.f32 1.0, %v12595_v3  ;;  %5230 = vmatpush1.bf16.msra.mxu0 %v11778_v34  ;;  %v11787_v33 = vld [vmem:[#allocation7 + $0x10b0] ss:$36 sps:$4 sm:$0xff]   ;;  %v5940_v2 = vmul.f32 1.442695, %v5867_v49  ;;  %v14304_v20 = vadd.f32 %v14198_v22, %v14264_v43 }
 0x3c4   :  { %v12599_v47 = vpop.eup %12598  ;;  %12616 = vrcp.f32 %v5996_v50  ;;  %v5997_v38 = vadd.f32 1.0, %v12597_v4  ;;  %5482 = vmatpush1.bf16.msra.mxu1 %v11781_v52  ;;  %5231 = vmatprep.subr.bf16.mxu0 %v11786_v23  ;;  %v11792_v50 = vld [vmem:[#allocation7 + $0x10f4] ss:$36 sps:$4 sm:$0xff]   ;;  %v11795_v4 = vld [vmem:[#allocation7 + $0x10fc] ss:$36 sps:$4 sm:$0xff]   ;;  %v5876_v23 = vsub.f32 0.0, %v14276_v32 }
 0x3c5   :  { %v12601_v29 = vpop.eup %12600  ;;  %12618 = vrcp.f32 %v5995_v0  ;;  %v6002_v3 = vadd.f32 1.0, %v12599_v47  ;;  %5483 = vmatprep.subr.bf16.mxu1 %v11789_v48  ;;  %v11790_v34 = vld [vmem:[#allocation7 + $0x10f0] ss:$36 sps:$4 sm:$0xff]   ;;  %v5942_v0 = vmul.f32 1.442695, %v5868_v8  ;;  %v5875_v47 = vsub.f32 0.0, %v14279_v5 }
 0x3c6   :  { %12620 = vrcp.f32 %v5997_v38  ;;  %v6004_v41 = vadd.f32 1.0, %v12601_v29  ;;  %v14291_v61 = vpop.eup %12602  ;;  %v11793_v52 = vld [vmem:[#allocation7 + $0x10f8] ss:$36 sps:$4 sm:$0xff]   ;;  %v5877_v48 = vsub.f32 0.0, %v14282_v14  ;;  %v5884_v8 = vsub.f32 0.0, %v14288_v37 }
 0x3c7   :  { %12622 = vpow2.f32 %v5928_v7  ;;  %v12605_v26 = vpop.eup %12604  ;;  %5232 = vmatpush1.bf16.msra.mxu0 %v11784_v25  ;;  %v5882_v7 = vsub.f32 0.0, %v14285_v58  ;;  %v5944_v49 = vmul.f32 1.442695, %v5869_v19  ;;  %v11801_v25 = vld [vmem:[#allocation7 + $0x1144] ss:$36 sps:$4 sm:$0xff]   ;;  %v5885_v56 = vsub.f32 0.0, %v14304_v20 }
 0x3c8   :  { %v12607_v38 = vpop.eup %12606  ;;  %12624 = vrcp.f32 %v6002_v3  ;;  %v6010_v29 = vadd.f32 1.0, %v12605_v26  ;;  %5484 = vmatpush1.bf16.msra.mxu1 %v11787_v33  ;;  %5233 = vmatprep.subr.bf16.mxu0 %v11792_v50  ;;  %v5954_v3 = vmul.f32 1.442695, %v5874_v55  ;;  %v5883_v26 = vsub.f32 0.0, %v14295_v36 }
 0x3c9   :  { %v12609_v17 = vpop.eup %12608  ;;  %12626 = vrcp.f32 %v6004_v41  ;;  %5485 = vmatprep.subr.bf16.mxu1 %v11795_v4  ;;  %v5958_v33 = vmul.f32 1.442695, %v5876_v23  ;;  %v5956_v50 = vmul.f32 1.442695, %v5875_v47  ;;  %v11804_v41 = vld [vmem:[#allocation7 + $0x1184] ss:$36 sps:$4 sm:$0xff]  }
 0x3ca   :  { %12628 = vrcp.f32 %v6010_v29  ;;  %v5960_v51 = vmul.f32 1.442695, %v5877_v48  ;;  %v5970_v43 = vmul.f32 1.442695, %v5882_v7  ;;  %v5974_v22 = vmul.f32 1.442695, %v5884_v8 }
 0x3cb   :  { %v12611_v11 = vpop.eup %12610  ;;  %12630 = vpow2.f32 %v5942_v0  ;;  %5234 = vmatpush1.bf16.msra.mxu0 %v11790_v34  ;;  %v6082_v29 = vmul.f32 %v12607_v38, %v14205_v39  ;;  %v11807_v0 = vld [vmem:[#allocation7 + $0x118c] ss:$36 sps:$4 sm:$0xff]   ;;  %v6084_v34 = vmul.f32 %v12609_v17, %v14208_v44  ;;  %v5972_v47 = vmul.f32 1.442695, %v5883_v26 }
 0x3cc   :  { %v12613_v12 = vpop.eup %12612  ;;  %12632 = vpow2.f32 %v5940_v2  ;;  %5486 = vmatpush1.bf16.msra.mxu1 %v11793_v52  ;;  %5235 = vmatprep.subr.bf16.mxu0 %v11798_v59  ;;  %v6083_v52 = vmul.f32 %v12611_v11, %v14211_v63  ;;  %v11810_v17 = vld [vmem:[#allocation7 + $0x11cc] ss:$36 sps:$4 sm:$0xff]   ;;  %v5976_v11 = vmul.f32 1.442695, %v5885_v56  ;;  %v11813_v63 = vld [vmem:[#allocation7 + $0x11d4] ss:$36 sps:$4 sm:$0xff]  }
 0x3cd   :  { %v12615_v19 = vpop.eup %12614  ;;  %12634 = vpow2.f32 %v5944_v49  ;;  %5487 = vmatprep.subr.bf16.mxu1 %v11801_v25  ;;  %v6085_v8 = vmul.f32 %v12613_v12, %v14214_v40  ;;  %v6003_v49 = vadd.f32 1.0, %v14291_v61  ;;  %v11814_v56 = vld [vmem:[#allocation7 + $0x260] ss:$36 sps:$4 sm:$0xff]  }
 0x3ce   :  { %v12617_v4 = vpop.eup %12616  ;;  %v6090_v55 = vmul.f32 %v12615_v19, %v14219_v53  ;;  %12636 = vpow2.f32 %v5954_v3  ;;  %v11802_v53 = vld [vmem:[#allocation7 + $0x1180] ss:$36 sps:$4 sm:$0xff]  }
 0x3cf   :  { %v12619_v23 = vpop.eup %12618  ;;  %v6092_v2 = vmul.f32 %v12617_v4, %v14222_v21  ;;  %12638 = vpow2.f32 %v5958_v33  ;;  %5236 = vmatpush1.bf16.msra.mxu0 %v11796_v60  ;;  %v11805_v21 = vld [vmem:[#allocation7 + $0x1188] ss:$36 sps:$4 sm:$0xff]   ;;  %v11815_v33 = vld [vmem:[#allocation7 + $0x6e0] ss:$36 sps:$4 sm:$0xff]  }
 0x3d0   :  { %v12621_v48 = vpop.eup %12620  ;;  %v14313_v7 = vpack.c.bf16 %v6090_v55, %v6082_v29  ;;  %v6091_v39 = vmul.f32 %v12619_v23, %v14227_v24  ;;  %12640 = vpow2.f32 %v5956_v50  ;;  %5488 = vmatpush1.bf16.msra.mxu1 %v11799_v54  ;;  %5237 = vmatprep.subr.bf16.mxu0 %v11804_v41  ;;  %v11808_v54 = vld [vmem:[#allocation7 + $0x11c8] ss:$36 sps:$4 sm:$0xff]  }
 0x3d1   :  { %v12623_v38 = vpop.eup %12622  ;;  %v14317_v59 = vpack.c.bf16 %v6092_v2, %v6084_v34  ;;  %v6093_v44 = vmul.f32 %v12621_v48, %v14230_v15  ;;  %12642 = vpow2.f32 %v5960_v51  ;;  %5489 = vmatprep.subr.bf16.mxu1 %v11807_v0  ;;  %v11811_v51 = vld [vmem:[#allocation7 + $0x11d0] ss:$36 sps:$4 sm:$0xff]   ;;  %v11817_v0 = vld [vmem:[#allocation7 + $0x4a0] ss:$36 sps:$4 sm:$0xff]   ;;  %v11818_v23 = vld [vmem:[#allocation7 + $0x2a8] ss:$36 sps:$4 sm:$0xff]  }
 0x3d2   :  { %v14320_v24 = vpack.c.bf16 %v6091_v39, %v6083_v52  ;;  %v12625_v60 = vpop.eup %12624  ;;  %12644 = vpow2.f32 %v5970_v43  ;;  %v6005_v15 = vadd.f32 1.0, %v12623_v38  ;;  %v11820_v38 = vld [vmem:[#allocation7 + $0x68] ss:$36 sps:$4 sm:$0xff]  }
 0x3d3   :  { %v14323_v12 = vpack.c.bf16 %v6093_v44, %v6085_v8  ;;  %v14325_v40 = vpop.eup %12626  ;;  %12646 = vpow2.f32 %v5974_v22  ;;  %5238 = vmatpush1.bf16.msra.mxu0 %v11802_v53  ;;  %v6098_v26 = vmul.f32 %v12625_v60, %v14237_v45  ;;  %v11816_v45 = vld [vmem:[#allocation7 + $0x20] ss:$36 sps:$4 sm:$0xff]   ;;  %v11823_v60 = vld [vmem:[#allocation7 + $0x770] ss:$36 sps:$4 sm:$0xff]  }
 0x3d4   :  { %v12629_v25 = vpop.eup %12628  ;;  %12648 = vpow2.f32 %v5972_v47  ;;  %5490 = vmatpush1.bf16.msra.mxu1 %v11805_v21  ;;  %5239 = vmatprep.subr.bf16.mxu0 %v11810_v17  ;;  %v11819_v47 = vld [vmem:[#allocation7 + $0x728] ss:$36 sps:$4 sm:$0xff]   ;;  %v11822_v17 = vld [vmem:[#allocation7 + $0x2f0] ss:$36 sps:$4 sm:$0xff]  }
 0x3d5   :  { %v12631_v3 = vpop.eup %12630  ;;  %v6106_v61 = vmul.f32 %v12629_v25, %v14248_v31  ;;  %12650 = vpow2.f32 %v5976_v11  ;;  %5491 = vmatprep.subr.bf16.mxu1 %v11813_v63  ;;  %v11821_v21 = vld [vmem:[#allocation7 + $0x4e8] ss:$36 sps:$4 sm:$0xff]  }
 0x3d6   :  { %v12633_v50 = vpop.eup %12632  ;;  %12652 = vrcp.f32 %v6003_v49  ;;  %v6012_v41 = vadd.f32 1.0, %v12631_v3  ;;  %v11825_v3 = vld [vmem:[#allocation7 + $0x530] ss:$36 sps:$4 sm:$0xff]  }
 0x3d7   :  { %v12635_v19 = vpop.eup %12634  ;;  %12654 = vrcp.f32 %v6005_v15  ;;  %v6011_v43 = vadd.f32 1.0, %v12633_v50  ;;  %5240 = vmatpush1.bf16.msra.mxu0 %v11808_v54  ;;  %v14329_v22 = vpack.c.bf16 %v6106_v61, %v6098_v26  ;;  %v11826_v26 = vld [vmem:[#allocation7 + $0x338] ss:$36 sps:$4 sm:$0xff]  }
 0x3d8   :  { %v12637_v4 = vpop.eup %12636  ;;  %12656 = vrcp.f32 %v6012_v41  ;;  %v6013_v29 = vadd.f32 1.0, %v12635_v19  ;;  %5492 = vmatpush1.bf16.msra.mxu1 %v11811_v51  ;;  %10503 = vmatprep.subr.bf16.mxu0 %v11814_v56  ;;  %v11824_v51 = vld [vmem:[#allocation7 + $0xb0] ss:$36 sps:$4 sm:$0xff]   ;;  %v6100_v41 = vmul.f32 %v14325_v40, %v14240_v9  ;;  %v11830_v40 = vld [vmem:[#allocation7 + $0x380] ss:$36 sps:$4 sm:$0xff]  }
 0x3d9   :  { %v12639_v55 = vpop.eup %12638  ;;  %12658 = vrcp.f32 %v6011_v43  ;;  %v6018_v31 = vadd.f32 1.0, %v12637_v4  ;;  %10537 = vmatprep.subr.bf16.mxu1 %v11815_v33  ;;  %v11827_v33 = vld [vmem:[#allocation7 + $0x7b8] ss:$36 sps:$4 sm:$0xff]  }
 0x3da   :  { %v12641_v34 = vpop.eup %12640  ;;  %12660 = vrcp.f32 %v6013_v29  ;;  %v6020_v2 = vadd.f32 1.0, %v12639_v55  ;;  %5242 = vmatmul.mubr.bf16.vlgmr.msra.gmra.mrb[28].mxu0 %v14103_v1 }
 0x3db   :  { %v12643_v48 = vpop.eup %12642  ;;  %12662 = vrcp.f32 %v6018_v31  ;;  %v6019_v52 = vadd.f32 1.0, %v12641_v34  ;;  %5494 = vmatmul.mubr.bf16.vlgmr.msra.gmra.mrb[44].mxu1 %v14103_v1  ;;  %5251 = vmatprep.mubr.bf16.mxu0 %v14119_v10 }
 0x3dc   :  { %v12645_v39 = vpop.eup %12644  ;;  %12664 = vrcp.f32 %v6020_v2  ;;  %v6021_v53 = vadd.f32 1.0, %v12643_v48  ;;  %5503 = vmatprep.mubr.bf16.mxu1 %v14119_v10  ;;  %10504 = vmatpush3.bf16.msra.mxu0 %v11816_v45  ;;  %v11828_v45 = vld [vmem:[#allocation7 + $0xf8] ss:$36 sps:$4 sm:$0xff]   ;;  %v11832_v48 = vld [vmem:[#allocation7 + $0x140] ss:$36 sps:$4 sm:$0xff]  }
 0x3dd   :  { %v12647_v8 = vpop.eup %12646  ;;  %12666 = vrcp.f32 %v6019_v52  ;;  %v6026_v44 = vadd.f32 1.0, %v12645_v39  ;;  %10538 = vmatpush3.bf16.msra.mxu1 %v11817_v0  ;;  %10505 = vmatprep.subr.bf16.mxu0 %v11818_v23  ;;  %v11834_v52 = vld [vmem:[#allocation7 + $0x3c8] ss:$36 sps:$4 sm:$0xff]  }
 0x3de   :  { %v12649_v11 = vpop.eup %12648  ;;  %12668 = vrcp.f32 %v6021_v53  ;;  %v6028_v63 = vadd.f32 1.0, %v12647_v8  ;;  %10539 = vmatprep.subr.bf16.mxu1 %v11819_v47  ;;  %v11835_v8 = vld [vmem:[#allocation7 + $0x848] ss:$36 sps:$4 sm:$0xff]  }
 0x3df   :  { %v12651_v49 = vpop.eup %12650  ;;  %12670 = vrcp.f32 %v6026_v44  ;;  %v6027_v15 = vadd.f32 1.0, %v12649_v11 }
 0x3e0   :  { %v12653_v54 = vpop.eup %12652  ;;  %12672 = vrcp.f32 %v6028_v63  ;;  %v6029_v25 = vadd.f32 1.0, %v12651_v49  ;;  %10506 = vmatpush3.bf16.msra.mxu0 %v11820_v38 }
 0x3e1   :  { %v12655_v56 = vpop.eup %12654  ;;  %12674 = vrcp.f32 %v6027_v15  ;;  %10540 = vmatpush3.bf16.msra.mxu1 %v11821_v21  ;;  %10507 = vmatprep.subr.bf16.mxu0 %v11822_v17  ;;  %v6099_v4 = vmul.f32 %v12653_v54, %v14243_v18  ;;  %v11831_v18 = vld [vmem:[#allocation7 + $0x800] ss:$36 sps:$4 sm:$0xff]   ;;  %v11838_v15 = vld [vmem:[#allocation7 + $0x410] ss:$36 sps:$4 sm:$0xff]  }
 0x3e2   :  { %v12657_v61 = vpop.eup %12656  ;;  %12676 = vrcp.f32 %v6029_v25  ;;  %5252 = vmatmul.mubr.bf16.gmra.mrb[32].mxu0 %v14114_v27  ;;  %10541 = vmatprep.subr.bf16.mxu1 %v11823_v60  ;;  %v6101_v31 = vmul.f32 %v12655_v56, %v14255_v28  ;;  %v11841_v25 = vld [vmem:[#allocation7 + $0x650] ss:$36 sps:$4 sm:$0xff]   ;;  %v11845_v56 = vld [vmem:[#allocation7 + $0x698] ss:$36 sps:$4 sm:$0xff]  }
 0x3e3   :  { %v12659_v50 = vpop.eup %12658  ;;  %v6108_v19 = vmul.f32 %v12657_v61, %v14259_v57  ;;  %5504 = vmatmul.mubr.bf16.gmra.mrb[48].mxu1 %v14114_v27  ;;  %5261 = vmatprep.mubr.bf16.mxu0 %v14126_v62  ;;  %v11829_v57 = vld [vmem:[#allocation7 + $0x578] ss:$36 sps:$4 sm:$0xff]   ;;  %v11848_v61 = vld [vmem:[#allocation7 + $0x920] ss:$36 sps:$4 sm:$0xff]  }
 0x3e4   :  { %v12661_v43 = vpop.eup %12660  ;;  %v6107_v29 = vmul.f32 %v12659_v50, %v14262_v13  ;;  %5513 = vmatprep.mubr.bf16.mxu1 %v14126_v62  ;;  %10508 = vmatpush3.bf16.msra.mxu0 %v11824_v51  ;;  %v11844_v51 = vld [vmem:[#allocation7 + $0x218] ss:$36 sps:$4 sm:$0xff]   ;;  %v11850_v50 = vld [vmem:[#allocation7 + $0xba8] ss:$36 sps:$4 sm:$0xff]  }
 0x3e5   :  { %v12663_v55 = vpop.eup %12662  ;;  %v6109_v9 = vmul.f32 %v12661_v43, %v14270_v46  ;;  %10542 = vmatpush3.bf16.msra.mxu1 %v11825_v3  ;;  %10509 = vmatprep.subr.bf16.mxu0 %v11826_v26  ;;  %v14346_v0 = vpack.c.bf16 %v6108_v19, %v6100_v41  ;;  %v11833_v46 = vld [vmem:[#allocation7 + $0x5c0] ss:$36 sps:$4 sm:$0xff]   ;;  %v11851_v41 = vld [vmem:[#allocation7 + $0x1028] ss:$36 sps:$4 sm:$0xff]   ;;  %v15003_v43 = vld [vmem:[#allocation42_spill] sm:$0xff] }
 0x3e6   :  { %v12665_v23 = vpop.eup %12664  ;;  %10543 = vmatprep.subr.bf16.mxu1 %v11827_v33  ;;  %v14348_v34 = vpack.c.bf16 %v6107_v29, %v6099_v4  ;;  %v6114_v53 = vmul.f32 %v12663_v55, %v14273_v30  ;;  %v11846_v3 = vld [vmem:[#allocation7 + $0xb60] ss:$36 sps:$4 sm:$0xff]   ;;  %v15002_v19 = vld [vmem:[#allocation45_spill] sm:$0xff] }
 0x3e7   :  { %v12667_v13 = vpop.eup %12666  ;;  %v14350_v2 = vpack.c.bf16 %v6109_v9, %v6101_v31  ;;  %v6116_v21 = vmul.f32 %v12665_v23, %v14276_v32  ;;  %v11847_v26 = vld [vmem:[#allocation7 + $0xfe0] ss:$36 sps:$4 sm:$0xff]   ;;  %v11852_v29 = vld [vmem:[#allocation7 + $0x968] ss:$36 sps:$4 sm:$0xff]   ;;  %v11854_v55 = vld [vmem:[#allocation7 + $0xbf0] ss:$36 sps:$4 sm:$0xff]  }
 0x3e8   :  { %v12669_v47 = vpop.eup %12668  ;;  %10510 = vmatpush3.bf16.msra.mxu0 %v11828_v45  ;;  %v6115_v63 = vmul.f32 %v12667_v13, %v14279_v5  ;;  %v11839_v5 = vld [vmem:[#allocation7 + $0x890] ss:$36 sps:$4 sm:$0xff]   ;;  %v11849_v33 = vld [vmem:[#allocation7 + $0xda0] ss:$36 sps:$4 sm:$0xff]   ;;  %v11853_v45 = vld [vmem:[#allocation7 + $0xde8] ss:$36 sps:$4 sm:$0xff]  }
 0x3e9   :  { %v12671_v28 = vpop.eup %12670  ;;  %10544 = vmatpush3.bf16.msra.mxu1 %v11829_v57  ;;  %10511 = vmatprep.subr.bf16.mxu0 %v11830_v40  ;;  %v6117_v49 = vmul.f32 %v12669_v47, %v14282_v14  ;;  %v11842_v14 = vld [vmem:[#allocation7 + $0x458] ss:$36 sps:$4 sm:$0xff]   ;;  %v11855_v31 = vld [vmem:[#allocation7 + $0x1070] ss:$36 sps:$4 sm:$0xff]   ;;  %v15007_v13 = vld [vmem:[#allocation44_spill] sm:$0xff] }
 0x3ea   :  { %v12673_v39 = vpop.eup %12672  ;;  %v6122_v38 = vmul.f32 %v12671_v28, %v14285_v58  ;;  %5262 = vmatmul.mubr.bf16.gmra.mrb[36].mxu0 %v14124_v35  ;;  %10545 = vmatprep.subr.bf16.mxu1 %v11831_v18  ;;  %v11836_v58 = vld [vmem:[#allocation7 + $0x188] ss:$36 sps:$4 sm:$0xff]   ;;  %v15004_v4 = vld [vmem:[#allocation47_spill] sm:$0xff]  ;;  %v11856_v9 = vld [vmem:[#allocation7 + $0x9b0] ss:$36 sps:$4 sm:$0xff]  }
 0x3eb   :  { %v12675_v44 = vpop.eup %12674  ;;  %v6124_v17 = vmul.f32 %v12673_v39, %v14288_v37  ;;  %5514 = vmatmul.mubr.bf16.gmra.mrb[52].mxu1 %v14124_v35  ;;  %5556 = vmatprep.mubr.bf16.mxu0 %v13876_v16  ;;  %v11837_v37 = vld [vmem:[#allocation7 + $0x608] ss:$36 sps:$4 sm:$0xff]   ;;  %v11858_v57 = vld [vmem:[#allocation7 + $0xc38] ss:$36 sps:$4 sm:$0xff]   ;;  %v11864_v39 = vld [vmem:[#allocation7 + $0xa40] ss:$36 sps:$4 sm:$0xff]  }
 0x3ec   :  { %v12677_v11 = vpop.eup %12676  ;;  %v6123_v30 = vmul.f32 %v12675_v44, %v14295_v36  ;;  %10512 = vmatpush3.bf16.msra.mxu0 %v11832_v48  ;;  %5613 = vmatprep.mubr.bf16.mxu1 %v14004_v42  ;;  %v14362_v60 = vpack.c.bf16 %v6122_v38, %v6114_v53  ;;  %v11840_v42 = vld [vmem:[#allocation7 + $0x1d0] ss:$36 sps:$4 sm:$0xff]   ;;  %v11859_v23 = vld [vmem:[#allocation7 + $0x10b8] ss:$36 sps:$4 sm:$0xff]   ;;  %v11865_v53 = vld [vmem:[#allocation7 + $0xec0] ss:$36 sps:$4 sm:$0xff]  }
 0x3ed   :  { %v6125_v32 = vmul.f32 %v12677_v11, %v14304_v20  ;;  %10546 = vmatpush3.bf16.msra.mxu1 %v11833_v46  ;;  %10513 = vmatprep.subr.bf16.mxu0 %v11834_v52  ;;  %v14366_v16 = vpack.c.bf16 %v6124_v17, %v6116_v21  ;;  %v11843_v20 = vld [vmem:[#allocation7 + $0x8d8] ss:$36 sps:$4 sm:$0xff]   ;;  %v15005_v40 = vld [vmem:[#allocation41_spill] sm:$0xff]  ;;  %v11862_v46 = vld [vmem:[#allocation7 + $0xc80] ss:$36 sps:$4 sm:$0xff]  }
 0x3ee   :  { %10547 = vmatprep.subr.bf16.mxu1 %v11835_v8  ;;  %v14368_v54 = vpack.c.bf16 %v6123_v30, %v6115_v63  ;;  %v15006_v18 = vld [vmem:[#allocation46_spill] sm:$0xff]  ;;  %v15008_v47 = vld [vmem:[#allocation49_spill] sm:$0xff]  ;;  %v11863_v52 = vld [vmem:[#allocation7 + $0x1100] ss:$36 sps:$4 sm:$0xff]  }
 0x3ef   :  { %v14370_v36 = vpack.c.bf16 %v6125_v32, %v6117_v49  ;;  %v11860_v48 = vld [vmem:[#allocation7 + $0x9f8] ss:$36 sps:$4 sm:$0xff]   ;;  %v11866_v38 = vld [vmem:[#allocation7 + $0xcc8] ss:$36 sps:$4 sm:$0xff]   ;;  %v11871_v49 = vld [vmem:[#allocation7 + $0x1190] ss:$36 sps:$4 sm:$0xff]  }
 0x3f0   :  { %10514 = vmatpush3.bf16.msra.mxu0 %v11836_v58  ;;  %v11861_v28 = vld [vmem:[#allocation7 + $0xe78] ss:$36 sps:$4 sm:$0xff]   ;;  %v11867_v44 = vld [vmem:[#allocation7 + $0x1148] ss:$36 sps:$4 sm:$0xff]   ;;  %v11870_v58 = vld [vmem:[#allocation7 + $0xd10] ss:$36 sps:$4 sm:$0xff]  }
 0x3f1   :  { %10548 = vmatpush3.bf16.msra.mxu1 %v11837_v37  ;;  %10515 = vmatprep.subr.bf16.mxu0 %v11838_v15  ;;  %v15009_v8 = vld [vmem:[#allocation43_spill] sm:$0xff]  ;;  %v15010_v21 = vld [vmem:[#allocation48_spill] sm:$0xff]  ;;  %v11872_v32 = vld [vmem:[#allocation7 + $0xad0] ss:$36 sps:$4 sm:$0xff]  }
 0x3f2   :  { %10549 = vmatprep.subr.bf16.mxu1 %v11839_v5  ;;  %v15011_v17 = vld [vmem:[#allocation51_spill] sm:$0xff]  ;;  %v15012_v11 = vld [vmem:[#allocation56_spill] sm:$0xff]  ;;  %v11873_v37 = vld [vmem:[#allocation7 + $0xf50] ss:$36 sps:$4 sm:$0xff]  }
 0x3f3   :  { %v11868_v63 = vld [vmem:[#allocation7 + $0xa88] ss:$36 sps:$4 sm:$0xff]   ;;  %v11874_v15 = vld [vmem:[#allocation7 + $0xd58] ss:$36 sps:$4 sm:$0xff]  }
 0x3f4   :  { %10516 = vmatpush3.bf16.msra.mxu0 %v11840_v42  ;;  %v11869_v30 = vld [vmem:[#allocation7 + $0xf08] ss:$36 sps:$4 sm:$0xff]   ;;  %v11875_v5 = vld [vmem:[#allocation7 + $0x11d8] ss:$36 sps:$4 sm:$0xff]  }
 0x3f5   :  { %10550 = vmatpush3.bf16.msra.mxu1 %v11841_v25  ;;  %10517 = vmatprep.subr.bf16.mxu0 %v11842_v14  ;;  %v11876_v42 = vld [vmem:[#allocation7 + $0xb18] ss:$36 sps:$4 sm:$0xff]  }
 0x3f6   :  { %10551 = vmatprep.subr.bf16.mxu1 %v11843_v20  ;;  %v11877_v25 = vld [vmem:[#allocation7 + $0xf98] ss:$36 sps:$4 sm:$0xff]  }
 0x3f7   :  { %v11880_v14 = vld [vmem:[#allocation11 + $0x4] ss:$16 sps:$4 sm:$0xff]   ;;  %v11883_v20 = vld [vmem:[#allocation11 + $0xc] ss:$16 sps:$4 sm:$0xff]  }
 0x3f8   :  { %10518 = vmatpush3.bf16.msra.mxu0 %v11844_v51  ;;  %v11878_v51 = vld [vmem:[#allocation11] ss:$16 sps:$4 sm:$0xff]  }
 0x3f9   :  { %10552 = vmatpush3.bf16.msra.mxu1 %v11845_v56  ;;  %10571 = vmatprep.subr.bf16.mxu0 %v11846_v3  ;;  %v11881_v56 = vld [vmem:[#allocation11 + $0x8] ss:$16 sps:$4 sm:$0xff]   ;;  %v11886_v3 = vld [vmem:[#allocation11 + $0x24] ss:$16 sps:$4 sm:$0xff]  }
 0x3fa   :  { %10605 = vmatprep.subr.bf16.mxu1 %v11847_v26  ;;  %v15013_v26 = vld [vmem:[#allocation50_spill] sm:$0xff] }
 0x3fb   :  { %5557 = vmatmul.mubr.bf16.vlgmr.msra.gmra.mrb[40].mxu0 %v13872_v6  ;;  %v11857_v6 = vld [vmem:[#allocation7 + $0xe30] ss:$36 sps:$4 sm:$0xff]  }
 0x3fc   :  { %5614 = vmatmul.mubr.bf16.vlgmr.msra.gmra.mrb[56].mxu1 %v15002_v19  ;;  %5564 = vmatprep.mubr.bf16.mxu0 %v15003_v43  ;;  %v11892_v19 = vld [vmem:[#allocation11 + $0x44] ss:$16 sps:$4 sm:$0xff]   ;;  %v11895_v43 = vld [vmem:[#allocation11 + $0x4c] ss:$16 sps:$4 sm:$0xff]  }
 0x3fd   :  { %5621 = vmatprep.mubr.bf16.mxu1 %v15004_v4  ;;  %10572 = vmatpush3.bf16.msra.mxu0 %v11848_v61  ;;  %v11889_v61 = vld [vmem:[#allocation11 + $0x2c] ss:$16 sps:$4 sm:$0xff]   ;;  %v11890_v4 = vld [vmem:[#allocation11 + $0x40] ss:$16 sps:$4 sm:$0xff]  }
 0x3fe   :  { %10606 = vmatpush3.bf16.msra.mxu1 %v11849_v33  ;;  %10573 = vmatprep.subr.bf16.mxu0 %v11850_v50  ;;  %v15014_v33 = vld [vmem:[#allocation53_spill] sm:$0xff]  ;;  %v11884_v50 = vld [vmem:[#allocation11 + $0x20] ss:$16 sps:$4 sm:$0xff]  }
 0x3ff   :  { %10607 = vmatprep.subr.bf16.mxu1 %v11851_v41  ;;  %v11887_v41 = vld [vmem:[#allocation11 + $0x28] ss:$16 sps:$4 sm:$0xff]  }
 0x401   :  { %10574 = vmatpush3.bf16.msra.mxu0 %v11852_v29  ;;  %v11893_v29 = vld [vmem:[#allocation11 + $0x48] ss:$16 sps:$4 sm:$0xff]  }
 0x402   :  { %10608 = vmatpush3.bf16.msra.mxu1 %v11853_v45  ;;  %10575 = vmatprep.subr.bf16.mxu0 %v11854_v55  ;;  %v11898_v45 = vld [vmem:[#allocation11 + $0x64] ss:$16 sps:$4 sm:$0xff]   ;;  %v15015_v55 = vld [vmem:[#allocation52_spill] sm:$0xff] }
 0x403   :  { %5565 = vmatmul.mubr.bf16.gmra.mrb[44].mxu0 %v15005_v40  ;;  %10609 = vmatprep.subr.bf16.mxu1 %v11855_v31  ;;  %v11896_v31 = vld [vmem:[#allocation11 + $0x60] ss:$16 sps:$4 sm:$0xff]  }
 0x404   :  { %5622 = vmatmul.mubr.bf16.gmra.mrb[60].mxu1 %v15006_v18  ;;  %5572 = vmatprep.mubr.bf16.mxu0 %v15007_v13  ;;  %v11902_v40 = vld [vmem:[#allocation11 + $0x80] ss:$16 sps:$4 sm:$0xff]   ;;  %v11910_v18 = vld [vmem:[#allocation11 + $0xa4] ss:$16 sps:$4 sm:$0xff]  }
 0x405   :  { %5629 = vmatprep.mubr.bf16.mxu1 %v15008_v47  ;;  %10576 = vmatpush3.bf16.msra.mxu0 %v11856_v9  ;;  %v11899_v9 = vld [vmem:[#allocation11 + $0x68] ss:$16 sps:$4 sm:$0xff]   ;;  %v15017_v13 = vld [vmem:[#allocation54_spill] sm:$0xff] }
 0x406   :  { %10610 = vmatpush3.bf16.msra.mxu1 %v11857_v6  ;;  %10577 = vmatprep.subr.bf16.mxu0 %v11858_v57  ;;  %v11904_v6 = vld [vmem:[#allocation11 + $0x84] ss:$16 sps:$4 sm:$0xff]   ;;  %v11907_v57 = vld [vmem:[#allocation11 + $0x8c] ss:$16 sps:$4 sm:$0xff]   ;;  %v11911_v47 = vld [vmem:[#allocation11 + $0xa8] ss:$16 sps:$4 sm:$0xff]  }
 0x407   :  { %10611 = vmatprep.subr.bf16.mxu1 %v11859_v23  ;;  %v11905_v23 = vld [vmem:[#allocation11 + $0x88] ss:$16 sps:$4 sm:$0xff]  }
 0x409   :  { %10578 = vmatpush3.bf16.msra.mxu0 %v11860_v48  ;;  %v11916_v48 = vld [vmem:[#allocation11 + $0xc4] ss:$16 sps:$4 sm:$0xff]  }
 0x40a   :  { %10612 = vmatpush3.bf16.msra.mxu1 %v11861_v28  ;;  %10579 = vmatprep.subr.bf16.mxu0 %v11862_v46  ;;  %v11919_v28 = vld [vmem:[#allocation11 + $0xcc] ss:$16 sps:$4 sm:$0xff]   ;;  %v11914_v46 = vld [vmem:[#allocation11 + $0xc0] ss:$16 sps:$4 sm:$0xff]  }
 0x40b   :  { %5573 = vmatmul.mubr.bf16.gmra.mrb[48].mxu0 %v15009_v8  ;;  %10613 = vmatprep.subr.bf16.mxu1 %v11863_v52  ;;  %v11917_v52 = vld [vmem:[#allocation11 + $0xc8] ss:$16 sps:$4 sm:$0xff]   ;;  %v11931_v8 = vld [vmem:[#allocation11 + $0x10c] ss:$16 sps:$4 sm:$0xff]  }
 0x40c   :  { %5630 = vmatmul.mubr.bf16.gmra.mrb[64].mxu1 %v15010_v21  ;;  %5670 = vmatprep.mubr.bf16.mxu0 %v15011_v17  ;;  %v11929_v21 = vld [vmem:[#allocation11 + $0x108] ss:$16 sps:$4 sm:$0xff]   ;;  %v11934_v17 = vld [vmem:[#allocation11 + $0x124] ss:$16 sps:$4 sm:$0xff]  }
 0x40d   :  { %10580 = vmatpush3.bf16.msra.mxu0 %v11864_v39  ;;  %5727 = vmatprep.mubr.bf16.mxu1 %v15012_v11  ;;  %v11922_v39 = vld [vmem:[#allocation11 + $0xe4] ss:$16 sps:$4 sm:$0xff]   ;;  %v11937_v11 = vld [vmem:[#allocation11 + $0x12c] ss:$16 sps:$4 sm:$0xff]  }
 0x40e   :  { %10614 = vmatpush3.bf16.msra.mxu1 %v11865_v53  ;;  %10581 = vmatprep.subr.bf16.mxu0 %v11866_v38  ;;  %v11920_v53 = vld [vmem:[#allocation11 + $0xe0] ss:$16 sps:$4 sm:$0xff]   ;;  %v11928_v38 = vld [vmem:[#allocation11 + $0x104] ss:$16 sps:$4 sm:$0xff]  }
 0x40f   :  { %10615 = vmatprep.subr.bf16.mxu1 %v11867_v44  ;;  %v11926_v44 = vld [vmem:[#allocation11 + $0x100] ss:$16 sps:$4 sm:$0xff]  }
 0x411   :  { %10582 = vmatpush3.bf16.msra.mxu0 %v11868_v63  ;;  %v11932_v63 = vld [vmem:[#allocation11 + $0x120] ss:$16 sps:$4 sm:$0xff]  }
 0x412   :  { %10616 = vmatpush3.bf16.msra.mxu1 %v11869_v30  ;;  %10583 = vmatprep.subr.bf16.mxu0 %v11870_v58  ;;  %v11935_v30 = vld [vmem:[#allocation11 + $0x128] ss:$16 sps:$4 sm:$0xff]   ;;  %v11940_v58 = vld [vmem:[#allocation11 + $0x144] ss:$16 sps:$4 sm:$0xff]  }
 0x413   :  { %10617 = vmatprep.subr.bf16.mxu1 %v11871_v49  ;;  %v11943_v49 = vld [vmem:[#allocation11 + $0x14c] ss:$16 sps:$4 sm:$0xff]  }
 0x415   :  { %10584 = vmatpush3.bf16.msra.mxu0 %v11872_v32  ;;  %v11938_v32 = vld [vmem:[#allocation11 + $0x140] ss:$16 sps:$4 sm:$0xff]  }
 0x416   :  { %10618 = vmatpush3.bf16.msra.mxu1 %v11873_v37  ;;  %10585 = vmatprep.subr.bf16.mxu0 %v11874_v15  ;;  %v11941_v37 = vld [vmem:[#allocation11 + $0x148] ss:$16 sps:$4 sm:$0xff]   ;;  %v11946_v15 = vld [vmem:[#allocation11 + $0x164] ss:$16 sps:$4 sm:$0xff]  }
 0x417   :  { %10619 = vmatprep.subr.bf16.mxu1 %v11875_v5  ;;  %v11949_v5 = vld [vmem:[#allocation11 + $0x16c] ss:$16 sps:$4 sm:$0xff]  }
 0x419   :  { %10586 = vmatpush3.bf16.msra.mxu0 %v11876_v42  ;;  %v11944_v42 = vld [vmem:[#allocation11 + $0x160] ss:$16 sps:$4 sm:$0xff]  }
 0x41a   :  { %10620 = vmatpush3.bf16.msra.mxu1 %v11877_v25  ;;  %7728 = vmatprep.subr.bf16.mxu0 %v11880_v14  ;;  %v11947_v25 = vld [vmem:[#allocation11 + $0x168] ss:$16 sps:$4 sm:$0xff]   ;;  %v11952_v14 = vld [vmem:[#allocation11 + $0x184] ss:$16 sps:$4 sm:$0xff]  }
 0x41b   :  { %7980 = vmatprep.subr.bf16.mxu1 %v11883_v20  ;;  %v11955_v20 = vld [vmem:[#allocation11 + $0x18c] ss:$16 sps:$4 sm:$0xff]  }
 0x41c   :  { %5671 = vmatmul.mubr.bf16.vlgmr.msra.gmra.mrb[52].mxu0 %v15013_v26  ;;  %v11961_v26 = vld [vmem:[#allocation11 + $0x1ac] ss:$16 sps:$4 sm:$0xff]  }
 0x41d   :  { %5728 = vmatmul.mubr.bf16.vlgmr.msra.gmra.mrb[68].mxu1 %v14103_v1  ;;  %5678 = vmatprep.mubr.bf16.mxu0 %v15014_v33  ;;  %v11901_v1 = vld [vmem:[#allocation11 + $0x6c] ss:$16 sps:$4 sm:$0xff]   ;;  %v11959_v33 = vld [vmem:[#allocation11 + $0x1a8] ss:$16 sps:$4 sm:$0xff]  }
 0x41e   :  { %5735 = vmatprep.mubr.bf16.mxu1 %v14119_v10  ;;  %7729 = vmatpush1.bf16.msra.mxu0 %v11878_v51  ;;  %v15016_v10 = vld [vmem:[#allocation55_spill] sm:$0xff]  ;;  %v11950_v51 = vld [vmem:[#allocation11 + $0x180] ss:$16 sps:$4 sm:$0xff]  }
 0x41f   :  { %7981 = vmatpush1.bf16.msra.mxu1 %v11881_v56  ;;  %7730 = vmatprep.subr.bf16.mxu0 %v11886_v3  ;;  %v11953_v56 = vld [vmem:[#allocation11 + $0x188] ss:$16 sps:$4 sm:$0xff]   ;;  %v11958_v3 = vld [vmem:[#allocation11 + $0x1a4] ss:$16 sps:$4 sm:$0xff]  }
 0x420   :  { %7982 = vmatprep.subr.bf16.mxu1 %v11889_v61  ;;  %v11956_v61 = vld [vmem:[#allocation11 + $0x1a0] ss:$16 sps:$4 sm:$0xff]  }
 0x422   :  { %7731 = vmatpush1.bf16.msra.mxu0 %v11884_v50  ;;  %v11964_v50 = vld [vmem:[#allocation11 + $0x1c4] ss:$16 sps:$4 sm:$0xff]  }
 0x423   :  { %7983 = vmatpush1.bf16.msra.mxu1 %v11887_v41  ;;  %7732 = vmatprep.subr.bf16.mxu0 %v11892_v19  ;;  %v11967_v41 = vld [vmem:[#allocation11 + $0x1cc] ss:$16 sps:$4 sm:$0xff]   ;;  %v11962_v19 = vld [vmem:[#allocation11 + $0x1c0] ss:$16 sps:$4 sm:$0xff]  }
 0x424   :  { %5679 = vmatmul.mubr.bf16.gmra.mrb[56].mxu0 %v15015_v55  ;;  %7984 = vmatprep.subr.bf16.mxu1 %v11895_v43  ;;  %v11965_v43 = vld [vmem:[#allocation11 + $0x1c8] ss:$16 sps:$4 sm:$0xff]  }
 0x425   :  { %5736 = vmatmul.mubr.bf16.gmra.mrb[72].mxu1 %v14114_v27  ;;  %5686 = vmatprep.mubr.bf16.mxu0 %v15016_v10  ;;  %v11913_v27 = vld [vmem:[#allocation11 + $0xac] ss:$16 sps:$4 sm:$0xff]   ;;  %v11971_v55 = vld [vmem:[#allocation11 + $0x1e8] ss:$16 sps:$4 sm:$0xff]  }
 0x426   :  { %5743 = vmatprep.mubr.bf16.mxu1 %v14126_v62  ;;  %7733 = vmatpush1.bf16.msra.mxu0 %v11890_v4  ;;  %v11908_v62 = vld [vmem:[#allocation11 + $0xa0] ss:$16 sps:$4 sm:$0xff]   ;;  %v11970_v4 = vld [vmem:[#allocation11 + $0x1e4] ss:$16 sps:$4 sm:$0xff]   ;;  %v11979_v10 = vld [vmem:[#allocation11 + $0x20c] ss:$16 sps:$4 sm:$0xff]  }
 0x427   :  { %7985 = vmatpush1.bf16.msra.mxu1 %v11893_v29  ;;  %7734 = vmatprep.subr.bf16.mxu0 %v11898_v45  ;;  %v11973_v29 = vld [vmem:[#allocation11 + $0x1ec] ss:$16 sps:$4 sm:$0xff]   ;;  %v11968_v45 = vld [vmem:[#allocation11 + $0x1e0] ss:$16 sps:$4 sm:$0xff]  }
 0x428   :  { %7986 = vmatprep.subr.bf16.mxu1 %v11901_v1  ;;  %v11976_v1 = vld [vmem:[#allocation11 + $0x204] ss:$16 sps:$4 sm:$0xff]  }
 0x42a   :  { %7735 = vmatpush1.bf16.msra.mxu0 %v11896_v31  ;;  %v11974_v31 = vld [vmem:[#allocation11 + $0x200] ss:$16 sps:$4 sm:$0xff]  }
 0x42b   :  { %7987 = vmatpush1.bf16.msra.mxu1 %v11899_v9  ;;  %7736 = vmatprep.subr.bf16.mxu0 %v11904_v6  ;;  %v11977_v9 = vld [vmem:[#allocation11 + $0x208] ss:$16 sps:$4 sm:$0xff]   ;;  %v11982_v6 = vld [vmem:[#allocation11 + $0x224] ss:$16 sps:$4 sm:$0xff]  }
 0x42c   :  { %5687 = vmatmul.mubr.bf16.gmra.mrb[60].mxu0 %v15017_v13  ;;  %7988 = vmatprep.subr.bf16.mxu1 %v11907_v57  ;;  %v11985_v57 = vld [vmem:[#allocation11 + $0x22c] ss:$16 sps:$4 sm:$0xff]  }
 0x42d   :  { %5744 = vmatmul.mubr.bf16.gmra.mrb[76].mxu1 %v14124_v35  ;;  %7760 = vmatprep.mubr.bf16.mxu0 %v14320_v24  ;;  %v11925_v35 = vld [vmem:[#allocation11 + $0xec] ss:$16 sps:$4 sm:$0xff]  }
 0x42e   :  { %7737 = vmatpush1.bf16.msra.mxu0 %v11902_v40  ;;  %8012 = vmatprep.mubr.bf16.mxu1 %v14320_v24  ;;  %v11923_v24 = vld [vmem:[#allocation11 + $0xe8] ss:$16 sps:$4 sm:$0xff]   ;;  %v11980_v40 = vld [vmem:[#allocation11 + $0x220] ss:$16 sps:$4 sm:$0xff]   ;;  %v11991_v13 = vld [vmem:[#allocation11 + $0x24c] ss:$16 sps:$4 sm:$0xff]  }
 0x42f   :  { %7989 = vmatpush1.bf16.msra.mxu1 %v11905_v23  ;;  %7738 = vmatprep.subr.bf16.mxu0 %v11910_v18  ;;  %v11983_v23 = vld [vmem:[#allocation11 + $0x228] ss:$16 sps:$4 sm:$0xff]   ;;  %v11988_v18 = vld [vmem:[#allocation11 + $0x244] ss:$16 sps:$4 sm:$0xff]  }
 0x430   :  { %7990 = vmatprep.subr.bf16.mxu1 %v11913_v27  ;;  %v11986_v27 = vld [vmem:[#allocation11 + $0x240] ss:$16 sps:$4 sm:$0xff]  }
 0x432   :  { %7739 = vmatpush1.bf16.msra.mxu0 %v11908_v62  ;;  %v11989_v62 = vld [vmem:[#allocation11 + $0x248] ss:$16 sps:$4 sm:$0xff]  }
 0x433   :  { %7991 = vmatpush1.bf16.msra.mxu1 %v11911_v47  ;;  %7740 = vmatprep.subr.bf16.mxu0 %v11916_v48  ;;  %v11994_v47 = vld [vmem:[#allocation11 + $0x264] ss:$16 sps:$4 sm:$0xff]   ;;  %v11995_v48 = vld [vmem:[#allocation11 + $0x268] ss:$16 sps:$4 sm:$0xff]  }
 0x434   :  { %7992 = vmatprep.subr.bf16.mxu1 %v11919_v28  ;;  %v12000_v28 = vld [vmem:[#allocation11 + $0x284] ss:$16 sps:$4 sm:$0xff]  }
 0x436   :  { %7741 = vmatpush1.bf16.msra.mxu0 %v11914_v46  ;;  %v12003_v46 = vld [vmem:[#allocation11 + $0x28c] ss:$16 sps:$4 sm:$0xff]  }
 0x437   :  { %7993 = vmatpush1.bf16.msra.mxu1 %v11917_v52  ;;  %7742 = vmatprep.subr.bf16.mxu0 %v11922_v39  ;;  %v11998_v52 = vld [vmem:[#allocation11 + $0x280] ss:$16 sps:$4 sm:$0xff]   ;;  %v12001_v39 = vld [vmem:[#allocation11 + $0x288] ss:$16 sps:$4 sm:$0xff]  }
 0x438   :  { %7994 = vmatprep.subr.bf16.mxu1 %v11925_v35  ;;  %v12006_v35 = vld [vmem:[#allocation11 + $0x2a4] ss:$16 sps:$4 sm:$0xff]  }
 0x43a   :  { %7743 = vmatpush1.bf16.msra.mxu0 %v11920_v53  ;;  %v12007_v53 = vld [vmem:[#allocation11 + $0x2a8] ss:$16 sps:$4 sm:$0xff]  }
 0x43b   :  { %7995 = vmatpush1.bf16.msra.mxu1 %v11923_v24  ;;  %7744 = vmatprep.subr.bf16.mxu0 %v11928_v38  ;;  %v12012_v24 = vld [vmem:[#allocation11 + $0x2c4] ss:$16 sps:$4 sm:$0xff]   ;;  %v12015_v38 = vld [vmem:[#allocation11 + $0x2cc] ss:$16 sps:$4 sm:$0xff]  }
 0x43c   :  { %7996 = vmatprep.subr.bf16.mxu1 %v11931_v8  ;;  %v12010_v8 = vld [vmem:[#allocation11 + $0x2c0] ss:$16 sps:$4 sm:$0xff]  }
 0x43e   :  { %7745 = vmatpush1.bf16.msra.mxu0 %v11926_v44  ;;  %v12013_v44 = vld [vmem:[#allocation11 + $0x2c8] ss:$16 sps:$4 sm:$0xff]  }
 0x43f   :  { %7997 = vmatpush1.bf16.msra.mxu1 %v11929_v21  ;;  %7746 = vmatprep.subr.bf16.mxu0 %v11934_v17  ;;  %v12018_v21 = vld [vmem:[#allocation11 + $0x2e4] ss:$16 sps:$4 sm:$0xff]   ;;  %v12016_v17 = vld [vmem:[#allocation11 + $0x2e0] ss:$16 sps:$4 sm:$0xff]  }
 0x440   :  { %7998 = vmatprep.subr.bf16.mxu1 %v11937_v11  ;;  %v12024_v11 = vld [vmem:[#allocation11 + $0x304] ss:$16 sps:$4 sm:$0xff]  }
 0x442   :  { %7747 = vmatpush1.bf16.msra.mxu0 %v11932_v63  ;;  %v12027_v63 = vld [vmem:[#allocation11 + $0x30c] ss:$16 sps:$4 sm:$0xff]  }
 0x443   :  { %7999 = vmatpush1.bf16.msra.mxu1 %v11935_v30  ;;  %7748 = vmatprep.subr.bf16.mxu0 %v11940_v58  ;;  %v12022_v30 = vld [vmem:[#allocation11 + $0x300] ss:$16 sps:$4 sm:$0xff]   ;;  %v12025_v58 = vld [vmem:[#allocation11 + $0x308] ss:$16 sps:$4 sm:$0xff]  }
 0x444   :  { %8000 = vmatprep.subr.bf16.mxu1 %v11943_v49  ;;  %v12030_v49 = vld [vmem:[#allocation11 + $0x324] ss:$16 sps:$4 sm:$0xff]  }
 0x446   :  { %7749 = vmatpush1.bf16.msra.mxu0 %v11938_v32  ;;  %v12033_v32 = vld [vmem:[#allocation11 + $0x32c] ss:$16 sps:$4 sm:$0xff]  }
 0x447   :  { %8001 = vmatpush1.bf16.msra.mxu1 %v11941_v37  ;;  %7750 = vmatprep.subr.bf16.mxu0 %v11946_v15  ;;  %v12028_v37 = vld [vmem:[#allocation11 + $0x320] ss:$16 sps:$4 sm:$0xff]   ;;  %v12031_v15 = vld [vmem:[#allocation11 + $0x328] ss:$16 sps:$4 sm:$0xff]  }
 0x448   :  { %8002 = vmatprep.subr.bf16.mxu1 %v11949_v5  ;;  %v12036_v5 = vld [vmem:[#allocation11 + $0x344] ss:$16 sps:$4 sm:$0xff]  }
 0x44a   :  { %7751 = vmatpush1.bf16.msra.mxu0 %v11944_v42  ;;  %v12039_v42 = vld [vmem:[#allocation11 + $0x34c] ss:$16 sps:$4 sm:$0xff]  }
 0x44b   :  { %8003 = vmatpush1.bf16.msra.mxu1 %v11947_v25  ;;  %7752 = vmatprep.subr.bf16.mxu0 %v11952_v14  ;;  %v12034_v25 = vld [vmem:[#allocation11 + $0x340] ss:$16 sps:$4 sm:$0xff]   ;;  %v12037_v14 = vld [vmem:[#allocation11 + $0x348] ss:$16 sps:$4 sm:$0xff]  }
 0x44c   :  { %8004 = vmatprep.subr.bf16.mxu1 %v11955_v20  ;;  %v12042_v20 = vld [vmem:[#allocation11 + $0x364] ss:$16 sps:$4 sm:$0xff]  }
 0x44e   :  { %7753 = vmatpush1.bf16.msra.mxu0 %v11950_v51  ;;  %v12045_v51 = vld [vmem:[#allocation11 + $0x36c] ss:$16 sps:$4 sm:$0xff]  }
 0x44f   :  { %8005 = vmatpush1.bf16.msra.mxu1 %v11953_v56  ;;  %7754 = vmatprep.subr.bf16.mxu0 %v11958_v3  ;;  %v12040_v56 = vld [vmem:[#allocation11 + $0x360] ss:$16 sps:$4 sm:$0xff]   ;;  %v12043_v3 = vld [vmem:[#allocation11 + $0x368] ss:$16 sps:$4 sm:$0xff]  }
 0x450   :  { %8006 = vmatprep.subr.bf16.mxu1 %v11961_v26  ;;  %v12048_v26 = vld [vmem:[#allocation11 + $0x384] ss:$16 sps:$4 sm:$0xff]  }
 0x452   :  { %7755 = vmatpush1.bf16.msra.mxu0 %v11956_v61  ;;  %v12051_v61 = vld [vmem:[#allocation11 + $0x38c] ss:$16 sps:$4 sm:$0xff]  }
 0x453   :  { %8007 = vmatpush1.bf16.msra.mxu1 %v11959_v33  ;;  %7756 = vmatprep.subr.bf16.mxu0 %v11964_v50  ;;  %v12046_v33 = vld [vmem:[#allocation11 + $0x380] ss:$16 sps:$4 sm:$0xff]   ;;  %v12049_v50 = vld [vmem:[#allocation11 + $0x388] ss:$16 sps:$4 sm:$0xff]  }
 0x454   :  { %8008 = vmatprep.subr.bf16.mxu1 %v11967_v41  ;;  %v12054_v41 = vld [vmem:[#allocation11 + $0x3a4] ss:$16 sps:$4 sm:$0xff]  }
 0x456   :  { %7757 = vmatpush1.bf16.msra.mxu0 %v11962_v19  ;;  %v12057_v19 = vld [vmem:[#allocation11 + $0x3ac] ss:$16 sps:$4 sm:$0xff]  }
 0x457   :  { %8009 = vmatpush1.bf16.msra.mxu1 %v11965_v43  ;;  %7758 = vmatprep.subr.bf16.mxu0 %v11970_v4  ;;  %v12052_v43 = vld [vmem:[#allocation11 + $0x3a0] ss:$16 sps:$4 sm:$0xff]   ;;  %v12055_v4 = vld [vmem:[#allocation11 + $0x3a8] ss:$16 sps:$4 sm:$0xff]  }
 0x458   :  { %8010 = vmatprep.subr.bf16.mxu1 %v11973_v29  ;;  %v12060_v29 = vld [vmem:[#allocation11 + $0x3c4] ss:$16 sps:$4 sm:$0xff]  }
 0x45a   :  { %7759 = vmatpush1.bf16.msra.mxu0 %v11968_v45  ;;  %v12063_v45 = vld [vmem:[#allocation11 + $0x3cc] ss:$16 sps:$4 sm:$0xff]  }
 0x45b   :  { %8011 = vmatpush1.bf16.msra.mxu1 %v11971_v55  ;;  %7791 = vmatprep.subr.bf16.mxu0 %v11976_v1  ;;  %v12058_v55 = vld [vmem:[#allocation11 + $0x3c0] ss:$16 sps:$4 sm:$0xff]   ;;  %v12061_v1 = vld [vmem:[#allocation11 + $0x3c8] ss:$16 sps:$4 sm:$0xff]  }
 0x45c   :  { %8043 = vmatprep.subr.bf16.mxu1 %v11979_v10  ;;  %v12066_v10 = vld [vmem:[#allocation11 + $0x3e4] ss:$16 sps:$4 sm:$0xff]  }
 0x45d   :  { %7761 = vmatmul.mubr.bf16.vlgmr.msra.gmra.mrb[64].mxu0 %v14313_v7 }
 0x45e   :  { %8013 = vmatmul.mubr.bf16.vlgmr.msra.gmra.mrb[80].mxu1 %v14313_v7  ;;  %7770 = vmatprep.mubr.bf16.mxu0 %v14348_v34  ;;  %v11997_v7 = vld [vmem:[#allocation11 + $0x26c] ss:$16 sps:$4 sm:$0xff]  }
 0x45f   :  { %7792 = vmatpush1.bf16.msra.mxu0 %v11974_v31  ;;  %8022 = vmatprep.mubr.bf16.mxu1 %v14348_v34  ;;  %v11992_v34 = vld [vmem:[#allocation11 + $0x260] ss:$16 sps:$4 sm:$0xff]   ;;  %v12069_v31 = vld [vmem:[#allocation11 + $0x3ec] ss:$16 sps:$4 sm:$0xff]  }
 0x460   :  { %8044 = vmatpush1.bf16.msra.mxu1 %v11977_v9  ;;  %7793 = vmatprep.subr.bf16.mxu0 %v11982_v6  ;;  %v12064_v9 = vld [vmem:[#allocation11 + $0x3e0] ss:$16 sps:$4 sm:$0xff]   ;;  %v12067_v6 = vld [vmem:[#allocation11 + $0x3e8] ss:$16 sps:$4 sm:$0xff]  }
 0x461   :  { %8045 = vmatprep.subr.bf16.mxu1 %v11985_v57  ;;  %v12072_v57 = vld [vmem:[#allocation11 + $0x404] ss:$16 sps:$4 sm:$0xff]  }
 0x463   :  { %7794 = vmatpush1.bf16.msra.mxu0 %v11980_v40  ;;  %v12075_v40 = vld [vmem:[#allocation11 + $0x40c] ss:$16 sps:$4 sm:$0xff]  }
 0x464   :  { %8046 = vmatpush1.bf16.msra.mxu1 %v11983_v23  ;;  %7795 = vmatprep.subr.bf16.mxu0 %v11988_v18  ;;  %v12070_v23 = vld [vmem:[#allocation11 + $0x400] ss:$16 sps:$4 sm:$0xff]   ;;  %v12073_v18 = vld [vmem:[#allocation11 + $0x408] ss:$16 sps:$4 sm:$0xff]  }
 0x465   :  { %7771 = vmatmul.mubr.bf16.gmra.mrb[68].mxu0 %v14329_v22  ;;  %8047 = vmatprep.subr.bf16.mxu1 %v11991_v13  ;;  %v12078_v13 = vld [vmem:[#allocation11 + $0x424] ss:$16 sps:$4 sm:$0xff]  }
 0x466   :  { %8023 = vmatmul.mubr.bf16.gmra.mrb[84].mxu1 %v14329_v22  ;;  %7780 = vmatprep.mubr.bf16.mxu0 %v14368_v54  ;;  %v12009_v22 = vld [vmem:[#allocation11 + $0x2ac] ss:$16 sps:$4 sm:$0xff]  }
 0x467   :  { %7796 = vmatpush1.bf16.msra.mxu0 %v11986_v27  ;;  %8032 = vmatprep.mubr.bf16.mxu1 %v14368_v54  ;;  %v12004_v54 = vld [vmem:[#allocation11 + $0x2a0] ss:$16 sps:$4 sm:$0xff]   ;;  %v12081_v27 = vld [vmem:[#allocation11 + $0x42c] ss:$16 sps:$4 sm:$0xff]  }
 0x468   :  { %8048 = vmatpush1.bf16.msra.mxu1 %v11989_v62  ;;  %7797 = vmatprep.subr.bf16.mxu0 %v11994_v47  ;;  %v12076_v62 = vld [vmem:[#allocation11 + $0x420] ss:$16 sps:$4 sm:$0xff]   ;;  %v12079_v47 = vld [vmem:[#allocation11 + $0x428] ss:$16 sps:$4 sm:$0xff]  }
 0x469   :  { %8049 = vmatprep.subr.bf16.mxu1 %v11997_v7  ;;  %v12084_v7 = vld [vmem:[#allocation11 + $0x444] ss:$16 sps:$4 sm:$0xff]  }
 0x46b   :  { %7798 = vmatpush1.bf16.msra.mxu0 %v11992_v34  ;;  %v12087_v34 = vld [vmem:[#allocation11 + $0x44c] ss:$16 sps:$4 sm:$0xff]  }
 0x46c   :  { %8050 = vmatpush1.bf16.msra.mxu1 %v11995_v48  ;;  %7799 = vmatprep.subr.bf16.mxu0 %v12000_v28  ;;  %v12082_v48 = vld [vmem:[#allocation11 + $0x440] ss:$16 sps:$4 sm:$0xff]   ;;  %v12085_v28 = vld [vmem:[#allocation11 + $0x448] ss:$16 sps:$4 sm:$0xff]  }
 0x46d   :  { %7781 = vmatmul.mubr.bf16.gmra.mrb[72].mxu0 %v14362_v60  ;;  %8051 = vmatprep.subr.bf16.mxu1 %v12003_v46  ;;  %v12090_v46 = vld [vmem:[#allocation11 + $0x464] ss:$16 sps:$4 sm:$0xff]  }
 0x46e   :  { %8033 = vmatmul.mubr.bf16.gmra.mrb[88].mxu1 %v14362_v60  ;;  %7823 = vmatprep.mubr.bf16.mxu0 %v14323_v12  ;;  %v12021_v60 = vld [vmem:[#allocation11 + $0x2ec] ss:$16 sps:$4 sm:$0xff]  }
 0x46f   :  { %7800 = vmatpush1.bf16.msra.mxu0 %v11998_v52  ;;  %8075 = vmatprep.mubr.bf16.mxu1 %v14323_v12  ;;  %v12019_v12 = vld [vmem:[#allocation11 + $0x2e8] ss:$16 sps:$4 sm:$0xff]  }
 0x470   :  { %8052 = vmatpush1.bf16.msra.mxu1 %v12001_v39  ;;  %7801 = vmatprep.subr.bf16.mxu0 %v12006_v35  ;;  %v12091_v52 = vld [vmem:[#allocation11 + $0x468] ss:$16 sps:$4 sm:$0xff]   ;;  %v12096_v39 = vld [vmem:[#allocation11 + $0x484] ss:$16 sps:$4 sm:$0xff]   ;;  %v12099_v35 = vld [vmem:[#allocation11 + $0x48c] ss:$16 sps:$4 sm:$0xff]  }
 0x471   :  { %8053 = vmatprep.subr.bf16.mxu1 %v12009_v22  ;;  %v12966_v22 = vld [vmem:[#allocation8] sm:$0xff] }
 0x473   :  { %7802 = vmatpush1.bf16.msra.mxu0 %v12004_v54  ;;  %v15018_v54 = vld [vmem:[#allocation36_spill] sm:$0xff] }
 0x474   :  { %8054 = vmatpush1.bf16.msra.mxu1 %v12007_v53  ;;  %7803 = vmatprep.subr.bf16.mxu0 %v12012_v24  ;;  %v15019_v53 = vsub.s32 4, %v15018_v54 }
 0x475   :  { %8055 = vmatprep.subr.bf16.mxu1 %v12015_v38  ;;  %v15020_v38 = vsub.s32 6, %v15018_v54 }
 0x476   :  { %v14418_v24 = vrot.slane %v12966_v22, %v15019_v53 }
 0x477   :  { %7804 = vmatpush1.bf16.msra.mxu0 %v12010_v8  ;;  %v15021_v8 = vsub.s32 5, %v15018_v54 }
 0x478   :  { %8056 = vmatpush1.bf16.msra.mxu1 %v12013_v44  ;;  %7805 = vmatprep.subr.bf16.mxu0 %v12018_v21  ;;  %v15022_v21 = vsub.s32 7, %v15018_v54 }
 0x479   :  { %8057 = vmatprep.subr.bf16.mxu1 %v12021_v60  ;;  %v14426_v44 = vrot.slane %v12966_v22, %v15021_v8 }
 0x47a   :  { %v14430_v60 = vrot.slane %v12966_v22, %v15022_v21 }
 0x47b   :  { %7806 = vmatpush1.bf16.msra.mxu0 %v12016_v17  ;;  %v12097_v17 = vld [vmem:[#allocation11 + $0x488] ss:$16 sps:$4 sm:$0xff]  }
 0x47c   :  { %8058 = vmatpush1.bf16.msra.mxu1 %v12019_v12  ;;  %7807 = vmatprep.subr.bf16.mxu0 %v12024_v11  ;;  %v12102_v11 = vld [vmem:[#allocation11 + $0x4a4] ss:$16 sps:$4 sm:$0xff]  }
 0x47d   :  { %8059 = vmatprep.subr.bf16.mxu1 %v12027_v63 }
 0x47f   :  { %7808 = vmatpush1.bf16.msra.mxu0 %v12022_v30 }
 0x480   :  { %8060 = vmatpush1.bf16.msra.mxu1 %v12025_v58  ;;  %7809 = vmatprep.subr.bf16.mxu0 %v12030_v49  ;;  %v12105_v49 = vld [vmem:[#allocation11 + $0x4ac] ss:$16 sps:$4 sm:$0xff]  }
 0x481   :  { %8061 = vmatprep.subr.bf16.mxu1 %v12033_v32 }
 0x483   :  { %7810 = vmatpush1.bf16.msra.mxu0 %v12028_v37 }
 0x484   :  { %8062 = vmatpush1.bf16.msra.mxu1 %v12031_v15  ;;  %7811 = vmatprep.subr.bf16.mxu0 %v12036_v5  ;;  %v12100_v5 = vld [vmem:[#allocation11 + $0x4a0] ss:$16 sps:$4 sm:$0xff]  }
 0x485   :  { %8063 = vmatprep.subr.bf16.mxu1 %v12039_v42  ;;  %v12103_v42 = vld [vmem:[#allocation11 + $0x4a8] ss:$16 sps:$4 sm:$0xff]  }
 0x487   :  { %7812 = vmatpush1.bf16.msra.mxu0 %v12034_v25 }
 0x488   :  { %8064 = vmatpush1.bf16.msra.mxu1 %v12037_v14  ;;  %7813 = vmatprep.subr.bf16.mxu0 %v12042_v20 }
 0x489   :  { %8065 = vmatprep.subr.bf16.mxu1 %v12045_v51 }
 0x48b   :  { %7814 = vmatpush1.bf16.msra.mxu0 %v12040_v56 }
 0x48c   :  { %8066 = vmatpush1.bf16.msra.mxu1 %v12043_v3  ;;  %7815 = vmatprep.subr.bf16.mxu0 %v12048_v26  ;;  %v12108_v3 = vld [vmem:[#allocation11 + $0x4c4] ss:$16 sps:$4 sm:$0xff]  }
 0x48d   :  { %8067 = vmatprep.subr.bf16.mxu1 %v12051_v61 }
 0x48f   :  { %7816 = vmatpush1.bf16.msra.mxu0 %v12046_v33 }
 0x490   :  { %8068 = vmatpush1.bf16.msra.mxu1 %v12049_v50  ;;  %7817 = vmatprep.subr.bf16.mxu0 %v12054_v41 }
 0x491   :  { %8069 = vmatprep.subr.bf16.mxu1 %v12057_v19  ;;  %v12111_v19 = vld [vmem:[#allocation11 + $0x4cc] ss:$16 sps:$4 sm:$0xff]  }
 0x493   :  { %7818 = vmatpush1.bf16.msra.mxu0 %v12052_v43 }
 0x494   :  { %8070 = vmatpush1.bf16.msra.mxu1 %v12055_v4  ;;  %7819 = vmatprep.subr.bf16.mxu0 %v12060_v29 }
 0x495   :  { %8071 = vmatprep.subr.bf16.mxu1 %v12063_v45 }
 0x497   :  { %7820 = vmatpush1.bf16.msra.mxu0 %v12058_v55  ;;  %v12106_v55 = vld [vmem:[#allocation11 + $0x4c0] ss:$16 sps:$4 sm:$0xff]  }
 0x498   :  { %8072 = vmatpush1.bf16.msra.mxu1 %v12061_v1  ;;  %7821 = vmatprep.subr.bf16.mxu0 %v12066_v10 }
 0x499   :  { %8073 = vmatprep.subr.bf16.mxu1 %v12069_v31 }
 0x49b   :  { %7822 = vmatpush1.bf16.msra.mxu0 %v12064_v9 }
 0x49c   :  { %8074 = vmatpush1.bf16.msra.mxu1 %v12067_v6  ;;  %7854 = vmatprep.subr.bf16.mxu0 %v12072_v57  ;;  %v12109_v6 = vld [vmem:[#allocation11 + $0x4c8] ss:$16 sps:$4 sm:$0xff]  }
 0x49d   :  { %8106 = vmatprep.subr.bf16.mxu1 %v12075_v40 }
 0x49e   :  { %7824 = vmatmul.mubr.bf16.vlgmr.msra.gmra.mrb[64].mxu0 %v14317_v59 }
 0x49f   :  { %8076 = vmatmul.mubr.bf16.vlgmr.msra.gmra.mrb[80].mxu1 %v14317_v59  ;;  %7833 = vmatprep.mubr.bf16.mxu0 %v14350_v2  ;;  %v12093_v59 = vld [vmem:[#allocation11 + $0x46c] ss:$16 sps:$4 sm:$0xff]  }
 0x4a0   :  { %7855 = vmatpush1.bf16.msra.mxu0 %v12070_v23  ;;  %8085 = vmatprep.mubr.bf16.mxu1 %v14350_v2  ;;  %v12088_v2 = vld [vmem:[#allocation11 + $0x460] ss:$16 sps:$4 sm:$0xff]  }
 0x4a1   :  { %8107 = vmatpush1.bf16.msra.mxu1 %v12073_v18  ;;  %7856 = vmatprep.subr.bf16.mxu0 %v12078_v13 }
 0x4a2   :  { %8108 = vmatprep.subr.bf16.mxu1 %v12081_v27  ;;  %v12114_v27 = vld [vmem:[#allocation11 + $0x4e4] ss:$16 sps:$4 sm:$0xff]  }
 0x4a4   :  { %7857 = vmatpush1.bf16.msra.mxu0 %v12076_v62 }
 0x4a5   :  { %8109 = vmatpush1.bf16.msra.mxu1 %v12079_v47  ;;  %7858 = vmatprep.subr.bf16.mxu0 %v12084_v7 }
 0x4a6   :  { %7834 = vmatmul.mubr.bf16.gmra.mrb[68].mxu0 %v14346_v0  ;;  %8110 = vmatprep.subr.bf16.mxu1 %v12087_v34 }
 0x4a7   :  { %8086 = vmatmul.mubr.bf16.gmra.mrb[84].mxu1 %v14346_v0  ;;  %7843 = vmatprep.mubr.bf16.mxu0 %v14370_v36  ;;  %v14422_v0 = vrot.slane %v12966_v22, %v15020_v38  ;;  %v12115_v22 = vld [vmem:[#allocation11 + $0x4e8] ss:$16 sps:$4 sm:$0xff]  }
 0x4a8   :  { %7859 = vmatpush1.bf16.msra.mxu0 %v12082_v48  ;;  %8095 = vmatprep.mubr.bf16.mxu1 %v14370_v36  ;;  %v12094_v36 = vld [vmem:[#allocation11 + $0x480] ss:$16 sps:$4 sm:$0xff]   ;;  %v12117_v48 = vld [vmem:[#allocation11 + $0x4ec] ss:$16 sps:$4 sm:$0xff]  }
 0x4a9   :  { %8111 = vmatpush1.bf16.msra.mxu1 %v12085_v28  ;;  %7860 = vmatprep.subr.bf16.mxu0 %v12090_v46 }
 0x4aa   :  { %8112 = vmatprep.subr.bf16.mxu1 %v12093_v59 }
 0x4ac   :  { %7861 = vmatpush1.bf16.msra.mxu0 %v12088_v2 }
 0x4ad   :  { %8113 = vmatpush1.bf16.msra.mxu1 %v12091_v52  ;;  %7862 = vmatprep.subr.bf16.mxu0 %v12096_v39  ;;  %v5243_v12 = vpop.f32.mrb[28].mxu0  ;;  %v12112_v52 = vld [vmem:[#allocation11 + $0x4e0] ss:$16 sps:$4 sm:$0xff]  }
 0x4ae   :  { %7844 = vmatmul.mubr.bf16.gmra.mrb[72].mxu0 %v14366_v16  ;;  %8114 = vmatprep.subr.bf16.mxu1 %v12099_v35  ;;  %v14434_v63 = vadd.f32 %v14418_v24, %v5243_v12  ;;  %v5495_v30 = vpop.f32.mrb[44].mxu1  ;;  %v5245_v58 = vpop.f32.mrb[29].mxu0 }
 0x4af   :  { %8096 = vmatmul.mubr.bf16.gmra.mrb[88].mxu1 %v14366_v16  ;;  %v14438_v32 = vadd.f32 %v14422_v0, %v5495_v30  ;;  %v14441_v37 = vadd.f32 %v14426_v44, %v5245_v58  ;;  %v5497_v15 = vpop.f32.mrb[45].mxu1  ;;  %v5247_v25 = vpop.f32.mrb[30].mxu0  ;;  %v12123_v58 = vld [vmem:[#allocation11 + $0x50c] ss:$16 sps:$4 sm:$0xff]  }
 0x4b0   :  { %7863 = vmatpush1.bf16.msra.mxu0 %v12094_v36  ;;  %v5846_v14 = vsub.f32 0.0, %v14434_v63  ;;  %v14445_v20 = vadd.f32 %v14430_v60, %v5497_v15  ;;  %v14448_v51 = vadd.f32 %v14418_v24, %v5247_v25  ;;  %v5499_v16 = vpop.f32.mrb[46].mxu1  ;;  %v5249_v56 = vpop.f32.mrb[31].mxu0  ;;  %v12121_v25 = vld [vmem:[#allocation11 + $0x508] ss:$16 sps:$4 sm:$0xff]  }
 0x4b1   :  { %8115 = vmatpush1.bf16.msra.mxu1 %v12097_v17  ;;  %v5848_v26 = vsub.f32 0.0, %v14438_v32  ;;  %v5847_v61 = vsub.f32 0.0, %v14441_v37  ;;  %7864 = vmatprep.subr.bf16.mxu0 %v12102_v11  ;;  %v14453_v33 = vadd.f32 %v14422_v0, %v5499_v16  ;;  %v14456_v50 = vadd.f32 %v14426_v44, %v5249_v56  ;;  %v5501_v41 = vpop.f32.mrb[47].mxu1  ;;  %v12120_v17 = vld [vmem:[#allocation11 + $0x504] ss:$16 sps:$4 sm:$0xff]  }
 0x4b2   :  { %v5898_v43 = vmul.f32 1.442695, %v5846_v14  ;;  %v5849_v4 = vsub.f32 0.0, %v14445_v20  ;;  %8116 = vmatprep.subr.bf16.mxu1 %v12105_v49  ;;  %v5854_v29 = vsub.f32 0.0, %v14448_v51  ;;  %v14461_v45 = vadd.f32 %v14430_v60, %v5501_v41  ;;  %v12126_v16 = vld [vmem:[#allocation11 + $0x524] ss:$16 sps:$4 sm:$0xff]  }
 0x4b3   :  { %v5902_v1 = vmul.f32 1.442695, %v5848_v26  ;;  %v5900_v10 = vmul.f32 1.442695, %v5847_v61  ;;  %v5856_v31 = vsub.f32 0.0, %v14453_v33  ;;  %v5855_v9 = vsub.f32 0.0, %v14456_v50 }
 0x4b4   :  { %12678 = vpow2.f32 %v5898_v43  ;;  %v5904_v57 = vmul.f32 1.442695, %v5849_v4  ;;  %v5914_v40 = vmul.f32 1.442695, %v5854_v29  ;;  %7865 = vmatpush1.bf16.msra.mxu0 %v12100_v5  ;;  %v5857_v23 = vsub.f32 0.0, %v14461_v45 }
 0x4b5   :  { %12680 = vpow2.f32 %v5902_v1  ;;  %v5918_v18 = vmul.f32 1.442695, %v5856_v31  ;;  %8117 = vmatpush1.bf16.msra.mxu1 %v12103_v42  ;;  %7866 = vmatprep.subr.bf16.mxu0 %v12108_v3  ;;  %v5253_v13 = vpop.f32.mrb[32].mxu0  ;;  %v5916_v62 = vmul.f32 1.442695, %v5855_v9 }
 0x4b6   :  { %12682 = vpow2.f32 %v5900_v10  ;;  %8118 = vmatprep.subr.bf16.mxu1 %v12111_v19  ;;  %v14467_v47 = vadd.f32 %v14418_v24, %v5253_v13  ;;  %v5505_v7 = vpop.f32.mrb[48].mxu1  ;;  %v5255_v34 = vpop.f32.mrb[33].mxu0  ;;  %v5920_v28 = vmul.f32 1.442695, %v5857_v23  ;;  %v12118_v42 = vld [vmem:[#allocation11 + $0x500] ss:$16 sps:$4 sm:$0xff]  }
 0x4b7   :  { %12684 = vpow2.f32 %v5904_v57  ;;  %v14470_v46 = vadd.f32 %v14422_v0, %v5505_v7  ;;  %v14473_v59 = vadd.f32 %v14426_v44, %v5255_v34  ;;  %v5507_v2 = vpop.f32.mrb[49].mxu1  ;;  %v5257_v39 = vpop.f32.mrb[34].mxu0  ;;  %v12129_v19 = vld [vmem:[#allocation11 + $0x52c] ss:$16 sps:$4 sm:$0xff]   ;;  %v12124_v31 = vld [vmem:[#allocation11 + $0x520] ss:$16 sps:$4 sm:$0xff]  }
 0x4b8   :  { %12686 = vpow2.f32 %v5914_v40  ;;  %7867 = vmatpush1.bf16.msra.mxu0 %v12106_v55  ;;  %v5862_v35 = vsub.f32 0.0, %v14467_v47  ;;  %v14477_v54 = vadd.f32 %v14418_v24, %v5257_v39  ;;  %v5509_v53 = vpop.f32.mrb[50].mxu1  ;;  %v14479_v38 = vpop.f32.mrb[35].mxu0  ;;  %v14484_v11 = vadd.f32 %v14430_v60, %v5507_v2  ;;  %v12127_v23 = vld [vmem:[#allocation11 + $0x528] ss:$16 sps:$4 sm:$0xff]  }
 0x4b9   :  { %12688 = vpow2.f32 %v5918_v18  ;;  %8119 = vmatpush1.bf16.msra.mxu1 %v12109_v6  ;;  %v5864_v8 = vsub.f32 0.0, %v14470_v46  ;;  %v5863_v36 = vsub.f32 0.0, %v14473_v59  ;;  %7868 = vmatprep.subr.bf16.mxu0 %v12114_v27  ;;  %v5511_v21 = vpop.f32.mrb[51].mxu1  ;;  %v14489_v26 = vadd.f32 %v14422_v0, %v5509_v53  ;;  %v12132_v13 = vld [vmem:[#allocation11 + $0x544] ss:$16 sps:$4 sm:$0xff]  }
 0x4ba   :  { %12690 = vpow2.f32 %v5916_v62  ;;  %v5930_v12 = vmul.f32 1.442695, %v5862_v35  ;;  %8120 = vmatprep.subr.bf16.mxu1 %v12117_v48  ;;  %v5870_v30 = vsub.f32 0.0, %v14477_v54  ;;  %v5865_v3 = vsub.f32 0.0, %v14484_v11  ;;  %v12135_v48 = vld [vmem:[#allocation11 + $0x54c] ss:$16 sps:$4 sm:$0xff]  }
 0x4bb   :  { %12692 = vpow2.f32 %v5920_v28  ;;  %v5934_v49 = vmul.f32 1.442695, %v5864_v8  ;;  %v5932_v15 = vmul.f32 1.442695, %v5863_v36  ;;  %v5872_v34 = vsub.f32 0.0, %v14489_v26 }
 0x4bc   :  { %12694 = vpow2.f32 %v5930_v12  ;;  %v5946_v5 = vmul.f32 1.442695, %v5870_v30  ;;  %7869 = vmatpush1.bf16.msra.mxu0 %v12112_v52  ;;  %v5936_v7 = vmul.f32 1.442695, %v5865_v3  ;;  %v14494_v52 = vadd.f32 %v14426_v44, %v14479_v38  ;;  %v12130_v36 = vld [vmem:[#allocation11 + $0x540] ss:$16 sps:$4 sm:$0xff]  }
 0x4bd   :  { %12696 = vpow2.f32 %v5934_v49  ;;  %8121 = vmatpush1.bf16.msra.mxu1 %v12115_v22  ;;  %7870 = vmatprep.subr.bf16.mxu0 %v12120_v17  ;;  %v5263_v14 = vpop.f32.mrb[36].mxu0  ;;  %v14497_v39 = vadd.f32 %v14430_v60, %v5511_v21  ;;  %v12133_v30 = vld [vmem:[#allocation11 + $0x548] ss:$16 sps:$4 sm:$0xff]  }
 0x4be   :  { %v12679_v56 = vpop.eup %12678  ;;  %8122 = vmatprep.subr.bf16.mxu1 %v12123_v58  ;;  %v5515_v61 = vpop.f32.mrb[52].mxu1  ;;  %12698 = vpow2.f32 %v5932_v15  ;;  %v14500_v53 = vadd.f32 %v14418_v24, %v5263_v14  ;;  %v12138_v58 = vld [vmem:[#allocation11 + $0x564] ss:$16 sps:$4 sm:$0xff]  }
 0x4bf   :  { %v5265_v41 = vpop.f32.mrb[37].mxu0  ;;  %v12681_v43 = vpop.eup %12680  ;;  %v5990_v4 = vadd.f32 1.0, %v12679_v56  ;;  %12700 = vpow2.f32 %v5946_v5  ;;  %v14503_v8 = vadd.f32 %v14422_v0, %v5515_v61  ;;  %v5871_v56 = vsub.f32 0.0, %v14494_v52  ;;  %v12136_v61 = vld [vmem:[#allocation11 + $0x560] ss:$16 sps:$4 sm:$0xff]  }
 0x4c0   :  { %v5517_v29 = vpop.f32.mrb[53].mxu1  ;;  %v5267_v55 = vpop.f32.mrb[38].mxu0  ;;  %v5992_v10 = vadd.f32 1.0, %v12681_v43  ;;  %7871 = vmatpush1.bf16.msra.mxu0 %v12118_v42  ;;  %v14506_v38 = vadd.f32 %v14426_v44, %v5265_v41  ;;  %v5873_v3 = vsub.f32 0.0, %v14497_v39  ;;  %v12144_v43 = vld [vmem:[#allocation11 + $0x584] ss:$16 sps:$4 sm:$0xff]  }
 0x4c1   :  { %v12683_v1 = vpop.eup %12682  ;;  %v5519_v9 = vpop.f32.mrb[54].mxu1  ;;  %12702 = vrcp.f32 %v5990_v4  ;;  %8123 = vmatpush1.bf16.msra.mxu1 %v12121_v25  ;;  %7872 = vmatprep.subr.bf16.mxu0 %v12126_v16  ;;  %v14509_v21 = vadd.f32 %v14430_v60, %v5517_v29  ;;  %v14512_v5 = vadd.f32 %v14418_v24, %v5267_v55  ;;  %v12141_v25 = vld [vmem:[#allocation11 + $0x56c] ss:$16 sps:$4 sm:$0xff]   ;;  %v5880_v29 = vsub.f32 0.0, %v14503_v8 }
 0x4c2   :  { %v5269_v6 = vpop.f32.mrb[39].mxu0  ;;  %v12685_v57 = vpop.eup %12684  ;;  %v5991_v40 = vadd.f32 1.0, %v12683_v1  ;;  %12704 = vrcp.f32 %v5992_v10  ;;  %8124 = vmatprep.subr.bf16.mxu1 %v12129_v19  ;;  %v14515_v42 = vadd.f32 %v14422_v0, %v5519_v9  ;;  %v5878_v19 = vsub.f32 0.0, %v14500_v53  ;;  %v12139_v0 = vld [vmem:[#allocation11 + $0x568] ss:$16 sps:$4 sm:$0xff]  }
 0x4c3   :  { %v5521_v18 = vpop.f32.mrb[55].mxu1  ;;  %v12687_v27 = vpop.eup %12686  ;;  %v5993_v62 = vadd.f32 1.0, %v12685_v57  ;;  %v14521_v24 = vadd.f32 %v14426_v44, %v5269_v6  ;;  %v5879_v55 = vsub.f32 0.0, %v14506_v38  ;;  %v5881_v1 = vsub.f32 0.0, %v14509_v21  ;;  %v12147_v10 = vld [vmem:[#allocation11 + $0x58c] ss:$16 sps:$4 sm:$0xff]  }
 0x4c4   :  { %v12689_v28 = vpop.eup %12688  ;;  %12706 = vrcp.f32 %v5991_v40  ;;  %v5998_v2 = vadd.f32 1.0, %v12687_v27  ;;  %7873 = vmatpush1.bf16.msra.mxu0 %v12124_v31  ;;  %v5950_v9 = vmul.f32 1.442695, %v5872_v34  ;;  %v5886_v44 = vsub.f32 0.0, %v14512_v5  ;;  %v12142_v40 = vld [vmem:[#allocation11 + $0x580] ss:$16 sps:$4 sm:$0xff]  }
 0x4c5   :  { %v12691_v35 = vpop.eup %12690  ;;  %12708 = vrcp.f32 %v5993_v62  ;;  %v6000_v22 = vadd.f32 1.0, %v12689_v28  ;;  %8125 = vmatpush1.bf16.msra.mxu1 %v12127_v23  ;;  %7874 = vmatprep.subr.bf16.mxu0 %v12132_v13  ;;  %v5888_v6 = vsub.f32 0.0, %v14515_v42  ;;  %v14531_v57 = vadd.f32 %v14430_v60, %v5521_v18 }
 0x4c6   :  { %v12693_v17 = vpop.eup %12692  ;;  %12710 = vrcp.f32 %v5998_v2  ;;  %v5999_v12 = vadd.f32 1.0, %v12691_v35  ;;  %8126 = vmatprep.subr.bf16.mxu1 %v12135_v48  ;;  %v5948_v27 = vmul.f32 1.442695, %v5871_v56  ;;  %v5887_v62 = vsub.f32 0.0, %v14521_v24  ;;  %v12150_v48 = vld [vmem:[#allocation11 + $0x5a4] ss:$16 sps:$4 sm:$0xff]  }
 0x4c7   :  { %v12695_v49 = vpop.eup %12694  ;;  %12712 = vrcp.f32 %v6000_v22  ;;  %v6001_v15 = vadd.f32 1.0, %v12693_v17  ;;  %v5952_v34 = vmul.f32 1.442695, %v5873_v3  ;;  %v5962_v2 = vmul.f32 1.442695, %v5878_v19 }
 0x4c8   :  { %v12697_v14 = vpop.eup %12696  ;;  %12714 = vrcp.f32 %v5999_v12  ;;  %v6006_v16 = vadd.f32 1.0, %v12695_v49  ;;  %7875 = vmatpush1.bf16.msra.mxu0 %v12130_v36  ;;  %v12153_v35 = vld [vmem:[#allocation11 + $0x5ac] ss:$16 sps:$4 sm:$0xff]   ;;  %v5966_v60 = vmul.f32 1.442695, %v5880_v29 }
 0x4c9   :  { %12716 = vrcp.f32 %v6001_v15  ;;  %v6008_v41 = vadd.f32 1.0, %v12697_v14  ;;  %v14523_v4 = vpop.eup %12698  ;;  %8127 = vmatpush1.bf16.msra.mxu1 %v12133_v30  ;;  %7876 = vmatprep.subr.bf16.mxu0 %v12138_v58  ;;  %v5964_v18 = vmul.f32 1.442695, %v5879_v55  ;;  %v5968_v36 = vmul.f32 1.442695, %v5881_v1 }
 0x4ca   :  { %12718 = vpow2.f32 %v5936_v7  ;;  %v12701_v31 = vpop.eup %12700  ;;  %8128 = vmatprep.subr.bf16.mxu1 %v12141_v25  ;;  %v12145_v7 = vld [vmem:[#allocation11 + $0x588] ss:$16 sps:$4 sm:$0xff]   ;;  %v5978_v12 = vmul.f32 1.442695, %v5886_v44  ;;  %v5982_v30 = vmul.f32 1.442695, %v5888_v6 }
 0x4cb   :  { %v12703_v23 = vpop.eup %12702  ;;  %12720 = vrcp.f32 %v6006_v16  ;;  %v6014_v13 = vadd.f32 1.0, %v12701_v31  ;;  %v5889_v58 = vsub.f32 0.0, %v14531_v57  ;;  %v5980_v16 = vmul.f32 1.442695, %v5887_v62  ;;  %v12148_v29 = vld [vmem:[#allocation11 + $0x5a0] ss:$16 sps:$4 sm:$0xff]  }
 0x4cc   :  { %v12705_v28 = vpop.eup %12704  ;;  %12722 = vrcp.f32 %v6008_v41  ;;  %7877 = vmatpush1.bf16.msra.mxu0 %v12136_v61  ;;  %v6086_v25 = vmul.f32 %v12703_v23, %v14434_v63  ;;  %v12151_v31 = vld [vmem:[#allocation11 + $0x5a8] ss:$16 sps:$4 sm:$0xff]   ;;  %v12156_v44 = vld [vmem:[#allocation11 + $0x5c4] ss:$16 sps:$4 sm:$0xff]  }
 0x4cd   :  { %12724 = vrcp.f32 %v6014_v13  ;;  %8129 = vmatpush1.bf16.msra.mxu1 %v12139_v0  ;;  %7878 = vmatprep.subr.bf16.mxu0 %v12144_v43  ;;  %v6088_v14 = vmul.f32 %v12705_v28, %v14438_v32 }
 0x4ce   :  { %v12707_v22 = vpop.eup %12706  ;;  %12726 = vpow2.f32 %v5950_v9  ;;  %8130 = vmatprep.subr.bf16.mxu1 %v12147_v10  ;;  %v10519_v49 = vpop.f32.mrb[40].mxu0 }
 0x4cf   :  { %v12709_v17 = vpop.eup %12708  ;;  %12728 = vpow2.f32 %v5948_v27  ;;  %v10553_v56 = vpop.f32.mrb[56].mxu1  ;;  %v6087_v41 = vmul.f32 %v12707_v22, %v14441_v37  ;;  %v12157_v22 = vld [vmem:[#allocation11 + $0x5c8] ss:$16 sps:$4 sm:$0xff]  }
 0x4d0   :  { %v12711_v15 = vpop.eup %12710  ;;  %v10520_v3 = vpop.f32.mrb[41].mxu0  ;;  %12730 = vpow2.f32 %v5952_v34  ;;  %7879 = vmatpush1.bf16.msra.mxu0 %v12142_v40  ;;  %v6089_v63 = vmul.f32 %v12709_v17, %v14445_v20  ;;  %v12159_v20 = vld [vmem:[#allocation11 + $0x5cc] ss:$16 sps:$4 sm:$0xff]   ;;  %v12154_v34 = vld [vmem:[#allocation11 + $0x5c0] ss:$16 sps:$4 sm:$0xff]  }
 0x4d1   :  { %v12713_v61 = vpop.eup %12712  ;;  %v6094_v19 = vmul.f32 %v12711_v15, %v14448_v51  ;;  %v10521_v0 = vadd.f32 %v10520_v3, %v10519_v49  ;;  %v10554_v43 = vpop.f32.mrb[57].mxu1  ;;  %12732 = vpow2.f32 %v5962_v2  ;;  %8131 = vmatpush1.bf16.msra.mxu1 %v12145_v7  ;;  %7880 = vmatprep.subr.bf16.mxu0 %v12150_v48  ;;  %v5984_v48 = vmul.f32 1.442695, %v5889_v58  ;;  %v12165_v49 = vld [vmem:[#allocation11 + $0x5ec] ss:$16 sps:$4 sm:$0xff]  }
 0x4d2   :  { %v10522_v55 = vpop.f32.mrb[42].mxu0  ;;  %v12715_v1 = vpop.eup %12714  ;;  %v6096_v32 = vmul.f32 %v12713_v61, %v14453_v33  ;;  %v10555_v10 = vadd.f32 %v10554_v43, %v10553_v56  ;;  %12734 = vpow2.f32 %v5966_v60  ;;  %8132 = vmatprep.subr.bf16.mxu1 %v12153_v35  ;;  %v6007_v35 = vadd.f32 1.0, %v14523_v4  ;;  %v12162_v60 = vld [vmem:[#allocation11 + $0x5e4] ss:$16 sps:$4 sm:$0xff]   ;;  %v12160_v61 = vld [vmem:[#allocation11 + $0x5e0] ss:$16 sps:$4 sm:$0xff]  }
 0x4d3   :  { %v10556_v9 = vpop.f32.mrb[58].mxu1  ;;  %v10523_v37 = vpop.f32.mrb[43].mxu0  ;;  %v14541_v6 = vpack.c.bf16 %v6094_v19, %v6086_v25  ;;  %v6095_v40 = vmul.f32 %v12715_v1, %v14456_v50  ;;  %12736 = vpow2.f32 %v5964_v18  ;;  %v12168_v1 = vld [vmem:[#allocation11 + $0x604] ss:$16 sps:$4 sm:$0xff]  }
 0x4d4   :  { %v12717_v51 = vpop.eup %12716  ;;  %v10524_v23 = vadd.f32 %v10523_v37, %v10522_v55  ;;  %v10557_v13 = vpop.f32.mrb[59].mxu1  ;;  %v14544_v33 = vpack.c.bf16 %v6096_v32, %v6088_v14  ;;  %v14547_v7 = vadd.f32 %v10555_v10, %v10521_v0  ;;  %12738 = vpow2.f32 %v5968_v36  ;;  %7881 = vmatpush1.bf16.msra.mxu0 %v12148_v29  ;;  %v12171_v10 = vld [vmem:[#allocation11 + $0x60c] ss:$16 sps:$4 sm:$0xff]  }
 0x4d5   :  { %v12719_v27 = vpop.eup %12718  ;;  %v6097_v62 = vmul.f32 %v12717_v51, %v14461_v45  ;;  %v10558_v28 = vadd.f32 %v10557_v13, %v10556_v9  ;;  %v6135_v2 = vpack.c.bf16 %v6095_v40, %v6087_v41  ;;  %12740 = vpow2.f32 %v5978_v12  ;;  %8133 = vmatpush1.bf16.msra.mxu1 %v12151_v31  ;;  %7882 = vmatprep.subr.bf16.mxu0 %v12156_v44  ;;  %v12163_v41 = vld [vmem:[#allocation11 + $0x5e8] ss:$16 sps:$4 sm:$0xff]   ;;  %v12166_v13 = vld [vmem:[#allocation11 + $0x600] ss:$16 sps:$4 sm:$0xff]  }
 0x4d6   :  { %v12721_v50 = vpop.eup %12720  ;;  %v6009_v18 = vadd.f32 1.0, %v12719_v27  ;;  %12742 = vpow2.f32 %v5982_v30  ;;  %8134 = vmatprep.subr.bf16.mxu1 %v12159_v20  ;;  %v10525_v58 = vpop.f32.mrb[44].mxu0 }
 0x4d7   :  { %v14550_v17 = vpack.c.bf16 %v6097_v62, %v6089_v63  ;;  %v14552_v45 = vpop.eup %12722  ;;  %v14554_v36 = vadd.f32 %v10558_v28, %v10524_v23  ;;  %7886 = vmatprep.mubr.bf16.mxu0 %v6135_v2  ;;  %12744 = vpow2.f32 %v5980_v16  ;;  %8138 = vmatprep.mubr.bf16.mxu1 %v6135_v2  ;;  %v10559_v4 = vpop.f32.mrb[60].mxu1  ;;  %v6102_v14 = vmul.f32 %v12721_v50, %v14467_v47  ;;  %v12174_v28 = vld [vmem:[#allocation11 + $0x624] ss:$16 sps:$4 sm:$0xff]  }
 0x4d8   :  { %v12725_v15 = vpop.eup %12724  ;;  %v10526_v12 = vpop.f32.mrb[45].mxu0  ;;  %12746 = vpow2.f32 %v5984_v48  ;;  %7883 = vmatpush1.bf16.msra.mxu0 %v12154_v34  ;;  %v12169_v48 = vld [vmem:[#allocation11 + $0x608] ss:$16 sps:$4 sm:$0xff]  }
 0x4d9   :  { %v12727_v25 = vpop.eup %12726  ;;  %v6110_v56 = vmul.f32 %v12725_v15, %v14477_v54  ;;  %v10527_v3 = vadd.f32 %v10526_v12, %v10525_v58  ;;  %v10560_v30 = vpop.f32.mrb[61].mxu1  ;;  %12748 = vrcp.f32 %v6007_v35  ;;  %8135 = vmatpush1.bf16.msra.mxu1 %v12157_v22  ;;  %7884 = vmatprep.subr.bf16.mxu0 %v12162_v60  ;;  %v12177_v35 = vld [vmem:[#allocation11 + $0x62c] ss:$16 sps:$4 sm:$0xff]  }
 0x4da   :  { %v10528_v19 = vpop.f32.mrb[46].mxu0  ;;  %v12729_v0 = vpop.eup %12728  ;;  %v6016_v43 = vadd.f32 1.0, %v12727_v25  ;;  %v10561_v16 = vadd.f32 %v10560_v30, %v10559_v4  ;;  %12750 = vrcp.f32 %v6009_v18  ;;  %8136 = vmatprep.subr.bf16.mxu1 %v12165_v49  ;;  %v12172_v49 = vld [vmem:[#allocation11 + $0x620] ss:$16 sps:$4 sm:$0xff]  }
 0x4db   :  { %v10562_v29 = vpop.f32.mrb[62].mxu1  ;;  %v10529_v55 = vpop.f32.mrb[47].mxu0  ;;  %v6015_v47 = vadd.f32 1.0, %v12729_v0  ;;  %v14558_v31 = vpack.c.bf16 %v6110_v56, %v6102_v14  ;;  %v12175_v14 = vld [vmem:[#allocation11 + $0x628] ss:$16 sps:$4 sm:$0xff]  }
 0x4dc   :  { %v12731_v63 = vpop.eup %12730  ;;  %v10530_v54 = vadd.f32 %v10529_v55, %v10528_v19  ;;  %v10563_v32 = vpop.f32.mrb[63].mxu1  ;;  %12752 = vrcp.f32 %v6016_v43  ;;  %v14560_v44 = vadd.f32 %v10561_v16, %v10527_v3  ;;  %7885 = vmatpush1.bf16.msra.mxu0 %v12160_v61  ;;  %v12180_v0 = vld [vmem:[#allocation11 + $0x644] ss:$16 sps:$4 sm:$0xff]   ;;  %v12183_v55 = vld [vmem:[#allocation11 + $0x64c] ss:$16 sps:$4 sm:$0xff]  }
 0x4dd   :  { %v12733_v9 = vpop.eup %12732  ;;  %v6017_v37 = vadd.f32 1.0, %v12731_v63  ;;  %v10564_v51 = vadd.f32 %v10563_v32, %v10562_v29  ;;  %12754 = vrcp.f32 %v6015_v47  ;;  %8137 = vmatpush1.bf16.msra.mxu1 %v12163_v41  ;;  %7917 = vmatprep.subr.bf16.mxu0 %v12168_v1 }
 0x4de   :  { %v12735_v40 = vpop.eup %12734  ;;  %v6022_v23 = vadd.f32 1.0, %v12733_v9  ;;  %8169 = vmatprep.subr.bf16.mxu1 %v12171_v10  ;;  %v10531_v50 = vpop.f32.mrb[48].mxu0  ;;  %v12178_v10 = vld [vmem:[#allocation11 + $0x640] ss:$16 sps:$4 sm:$0xff]  }
 0x4df   :  { %v12737_v20 = vpop.eup %12736  ;;  %12756 = vrcp.f32 %v6017_v37  ;;  %v6024_v27 = vadd.f32 1.0, %v12735_v40  ;;  %v14562_v62 = vadd.f32 %v10564_v51, %v10530_v54  ;;  %7887 = vmatmul.mubr.bf16.vlgmr.msra.gmra.mrb[64].mxu0 %v14541_v6  ;;  %v10565_v18 = vpop.f32.mrb[64].mxu1  ;;  %v12181_v51 = vld [vmem:[#allocation11 + $0x648] ss:$16 sps:$4 sm:$0xff]   ;;  %v12186_v40 = vld [vmem:[#allocation11 + $0x664] ss:$16 sps:$4 sm:$0xff]  }
 0x4e0   :  { %v12739_v34 = vpop.eup %12738  ;;  %12758 = vrcp.f32 %v6022_v23  ;;  %v6023_v2 = vadd.f32 1.0, %v12737_v20  ;;  %v10532_v58 = vpop.f32.mrb[49].mxu0  ;;  %8139 = vmatmul.mubr.bf16.vlgmr.msra.gmra.mrb[80].mxu1 %v14541_v6  ;;  %7918 = vmatpush1.bf16.msra.mxu0 %v12166_v13  ;;  %v6104_v13 = vmul.f32 %v14552_v45, %v14470_v46  ;;  %v12184_v46 = vld [vmem:[#allocation11 + $0x660] ss:$16 sps:$4 sm:$0xff]  }
 0x4e1   :  { %v12741_v22 = vpop.eup %12740  ;;  %12760 = vrcp.f32 %v6024_v27  ;;  %v6025_v60 = vadd.f32 1.0, %v12739_v34  ;;  %v10533_v12 = vadd.f32 %v10532_v58, %v10531_v50  ;;  %v10566_v25 = vpop.f32.mrb[65].mxu1  ;;  %8170 = vmatpush1.bf16.msra.mxu1 %v12169_v48  ;;  %7919 = vmatprep.subr.bf16.mxu0 %v12174_v28  ;;  %v12189_v27 = vld [vmem:[#allocation11 + $0x66c] ss:$16 sps:$4 sm:$0xff]   ;;  %v12192_v58 = vld [vmem:[#allocation11 + $0x684] ss:$16 sps:$4 sm:$0xff]  }
 0x4e2   :  { %v12743_v15 = vpop.eup %12742  ;;  %12762 = vrcp.f32 %v6023_v2  ;;  %v6030_v4 = vadd.f32 1.0, %v12741_v22  ;;  %v10534_v56 = vpop.f32.mrb[50].mxu0  ;;  %v10567_v61 = vadd.f32 %v10566_v25, %v10565_v18  ;;  %8171 = vmatprep.subr.bf16.mxu1 %v12177_v35  ;;  %v12193_v25 = vld [vmem:[#allocation11 + $0x688] ss:$16 sps:$4 sm:$0xff]  }
 0x4e3   :  { %v12745_v3 = vpop.eup %12744  ;;  %12764 = vrcp.f32 %v6025_v60  ;;  %v6032_v30 = vadd.f32 1.0, %v12743_v15  ;;  %v10568_v41 = vpop.f32.mrb[66].mxu1 }
 0x4e4   :  { %v10535_v19 = vpop.f32.mrb[51].mxu0  ;;  %v12747_v43 = vpop.eup %12746  ;;  %12766 = vrcp.f32 %v6030_v4  ;;  %v6031_v16 = vadd.f32 1.0, %v12745_v3  ;;  %v14566_v47 = vadd.f32 %v10567_v61, %v10533_v12  ;;  %7920 = vmatpush1.bf16.msra.mxu0 %v12172_v49  ;;  %v12190_v12 = vld [vmem:[#allocation11 + $0x680] ss:$16 sps:$4 sm:$0xff]   ;;  %v12201_v61 = vld [vmem:[#allocation11 + $0x6ac] ss:$16 sps:$4 sm:$0xff]  }
 0x4e5   :  { %v10536_v29 = vadd.f32 %v10535_v19, %v10534_v56  ;;  %v10569_v6 = vpop.f32.mrb[67].mxu1  ;;  %v12749_v1 = vpop.eup %12748  ;;  %12768 = vrcp.f32 %v6032_v30  ;;  %v6033_v63 = vadd.f32 1.0, %v12747_v43  ;;  %8172 = vmatpush1.bf16.msra.mxu1 %v12175_v14  ;;  %7921 = vmatprep.subr.bf16.mxu0 %v12180_v0  ;;  %v12198_v30 = vld [vmem:[#allocation11 + $0x6a4] ss:$16 sps:$4 sm:$0xff]  }
 0x4e6   :  { %v10570_v54 = vadd.f32 %v10569_v6, %v10568_v41  ;;  %v12751_v32 = vpop.eup %12750  ;;  %12770 = vrcp.f32 %v6031_v16  ;;  %8173 = vmatprep.subr.bf16.mxu1 %v12183_v55  ;;  %v6103_v28 = vmul.f32 %v12749_v1, %v14473_v59  ;;  %v12195_v59 = vld [vmem:[#allocation11 + $0x68c] ss:$16 sps:$4 sm:$0xff]  }
 0x4e7   :  { %v12753_v9 = vpop.eup %12752  ;;  %12772 = vrcp.f32 %v6033_v63  ;;  %v6105_v50 = vmul.f32 %v12751_v32, %v14484_v11 }
 0x4e8   :  { %v14568_v37 = vadd.f32 %v10570_v54, %v10536_v29  ;;  %v12755_v23 = vpop.eup %12754  ;;  %v6112_v20 = vmul.f32 %v12753_v9, %v14489_v26  ;;  %7922 = vmatpush1.bf16.msra.mxu0 %v12178_v10  ;;  %v12187_v26 = vld [vmem:[#allocation11 + $0x668] ss:$16 sps:$4 sm:$0xff]  }
 0x4e9   :  { %v12757_v48 = vpop.eup %12756  ;;  %v6111_v34 = vmul.f32 %v12755_v23, %v14494_v52  ;;  %8174 = vmatpush1.bf16.msra.mxu1 %v12181_v51  ;;  %7923 = vmatprep.subr.bf16.mxu0 %v12186_v40  ;;  %v12204_v51 = vld [vmem:[#allocation11 + $0x6c4] ss:$16 sps:$4 sm:$0xff]   ;;  %v12207_v40 = vld [vmem:[#allocation11 + $0x6cc] ss:$16 sps:$4 sm:$0xff]  }
 0x4ea   :  { %v12759_v2 = vpop.eup %12758  ;;  %v6113_v35 = vmul.f32 %v12757_v48, %v14497_v39  ;;  %v14577_v22 = vpack.c.bf16 %v6112_v20, %v6104_v13  ;;  %8175 = vmatprep.subr.bf16.mxu1 %v12189_v27  ;;  %v14599_v27 = vld [vmem:[#allocation10] ss:$0 sm:$0xff]  ;;  %v12202_v48 = vld [vmem:[#allocation11 + $0x6c0] ss:$16 sps:$4 sm:$0xff]  }
 0x4eb   :  { %v12761_v60 = vpop.eup %12760  ;;  %v6143_v18 = vpack.c.bf16 %v6111_v34, %v6103_v28  ;;  %v6118_v15 = vmul.f32 %v12759_v2, %v14500_v53  ;;  %v12210_v2 = vld [vmem:[#allocation11 + $0x6e4] ss:$16 sps:$4 sm:$0xff]  }
 0x4ec   :  { %v12763_v45 = vpop.eup %12762  ;;  %v14579_v49 = vpack.c.bf16 %v6113_v35, %v6105_v50  ;;  %7924 = vmatpush1.bf16.msra.mxu0 %v12184_v46  ;;  %v6120_v56 = vmul.f32 %v12761_v60, %v14503_v8  ;;  %v12213_v50 = vld [vmem:[#allocation11 + $0x6ec] ss:$16 sps:$4 sm:$0xff]  }
 0x4ed   :  { %v12765_v52 = vpop.eup %12764  ;;  %7896 = vmatprep.mubr.bf16.mxu0 %v6143_v18  ;;  %8148 = vmatprep.mubr.bf16.mxu1 %v6143_v18 }
 0x4ee   :  { %v12767_v11 = vpop.eup %12766  ;;  %7897 = vmatmul.mubr.bf16.gmra.mrb[68].mxu0 %v14558_v31  ;;  %8149 = vmatmul.mubr.bf16.gmra.mrb[84].mxu1 %v14558_v31  ;;  %v6119_v31 = vmul.f32 %v12763_v45, %v14506_v38  ;;  %v6121_v0 = vmul.f32 %v12765_v52, %v14509_v21  ;;  %v12196_v38 = vld [vmem:[#allocation11 + $0x6a0] ss:$16 sps:$4 sm:$0xff]  }
 0x4ef   :  { %v12769_v39 = vpop.eup %12768  ;;  %v6126_v4 = vmul.f32 %v12767_v11, %v14512_v5  ;;  %8176 = vmatpush1.bf16.msra.mxu1 %v12187_v26  ;;  %7925 = vmatprep.subr.bf16.mxu0 %v12192_v58  ;;  %v10587_v5 = vpop.f32.mrb[52].mxu0  ;;  %v12208_v58 = vld [vmem:[#allocation11 + $0x6e0] ss:$16 sps:$4 sm:$0xff]  }
 0x4f0   :  { %v12771_v14 = vpop.eup %12770  ;;  %v6128_v3 = vmul.f32 %v12769_v39, %v14515_v42  ;;  %8177 = vmatprep.subr.bf16.mxu1 %v12195_v59  ;;  %v10621_v16 = vpop.f32.mrb[68].mxu1  ;;  %7926 = vmatpush1.bf16.msra.mxu0 %v12190_v12  ;;  %v12211_v59 = vld [vmem:[#allocation11 + $0x6e8] ss:$16 sps:$4 sm:$0xff]  }
 0x4f1   :  { %v12773_v41 = vpop.eup %12772  ;;  %v6127_v53 = vmul.f32 %v12771_v14, %v14521_v24  ;;  %v6150_v19 = vpack.c.bf16 %v6126_v4, %v6118_v15  ;;  %v10588_v29 = vpop.f32.mrb[53].mxu0  ;;  %7927 = vmatprep.subr.bf16.mxu0 %v12198_v30  ;;  %v12199_v24 = vld [vmem:[#allocation11 + $0x6a8] ss:$16 sps:$4 sm:$0xff]   ;;  %v12219_v14 = vld [vmem:[#allocation11 + $0x70c] ss:$16 sps:$4 sm:$0xff]  }
 0x4f2   :  { %v6129_v43 = vmul.f32 %v12773_v41, %v14531_v57  ;;  %v14591_v8 = vpack.c.bf16 %v6128_v3, %v6120_v56  ;;  %v10589_v6 = vadd.f32 %v10588_v29, %v10587_v5  ;;  %v10622_v55 = vpop.f32.mrb[69].mxu1  ;;  %v10590_v1 = vpop.f32.mrb[54].mxu0  ;;  %v12217_v41 = vld [vmem:[#allocation11 + $0x708] ss:$16 sps:$4 sm:$0xff]  }
 0x4f3   :  { %v6151_v42 = vpack.c.bf16 %v6127_v53, %v6119_v31  ;;  %8178 = vmatpush1.bf16.msra.mxu1 %v12193_v25  ;;  %v10623_v63 = vadd.f32 %v10622_v55, %v10621_v16  ;;  %v10624_v54 = vpop.f32.mrb[70].mxu1  ;;  %v10591_v32 = vpop.f32.mrb[55].mxu0  ;;  %v12216_v25 = vld [vmem:[#allocation11 + $0x704] ss:$16 sps:$4 sm:$0xff]   ;;  %v12220_v55 = vld [vmem:[#allocation11 + $0x720] ss:$16 sps:$4 sm:$0xff]  }
 0x4f4   :  { %8179 = vmatprep.subr.bf16.mxu1 %v12201_v61  ;;  %v14593_v21 = vpack.c.bf16 %v6129_v43, %v6121_v0  ;;  %v5673_v57 = vadd.f32 %v10589_v6, %v14547_v7  ;;  %v10592_v10 = vadd.f32 %v10591_v32, %v10590_v1  ;;  %v10625_v9 = vpop.f32.mrb[71].mxu1  ;;  %7928 = vmatpush1.bf16.msra.mxu0 %v12196_v38  ;;  %v12205_v7 = vld [vmem:[#allocation11 + $0x6c8] ss:$16 sps:$4 sm:$0xff]   ;;  %v12214_v61 = vld [vmem:[#allocation11 + $0x700] ss:$16 sps:$4 sm:$0xff]  }
 0x4f5   :  { %7906 = vmatprep.mubr.bf16.mxu0 %v6151_v42  ;;  %8158 = vmatprep.mubr.bf16.mxu1 %v6151_v42  ;;  %v10626_v23 = vadd.f32 %v10625_v9, %v10624_v54  ;;  %v12223_v1 = vld [vmem:[#allocation11 + $0x728] ss:$16 sps:$4 sm:$0xff]  }
 0x4f6   :  { %7907 = vmatmul.mubr.bf16.gmra.mrb[72].mxu0 %v6150_v19  ;;  %8159 = vmatmul.mubr.bf16.gmra.mrb[88].mxu1 %v6150_v19  ;;  %v5730_v13 = vadd.f32 %v10623_v63, %v5673_v57  ;;  %v5676_v20 = vadd.f32 %v10592_v10, %v14554_v36  ;;  %v12222_v19 = vld [vmem:[#allocation11 + $0x724] ss:$16 sps:$4 sm:$0xff]   ;;  %v12231_v10 = vld [vmem:[#allocation11 + $0x74c] ss:$16 sps:$4 sm:$0xff]  }
 0x4f7   :  { %7949 = vmatprep.mubr.bf16.mxu0 %v14550_v17  ;;  %8201 = vmatprep.mubr.bf16.mxu1 %v14550_v17  ;;  %v10593_v34 = vpop.f32.mrb[56].mxu0  ;;  %v12228_v57 = vld [vmem:[#allocation11 + $0x744] ss:$16 sps:$4 sm:$0xff]  }
 0x4f8   :  { %8180 = vmatpush1.bf16.msra.mxu1 %v12199_v24  ;;  %v5733_v28 = vadd.f32 %v10626_v23, %v5676_v20  ;;  %7929 = vmatprep.subr.bf16.mxu0 %v12204_v51  ;;  %v10627_v35 = vpop.f32.mrb[72].mxu1  ;;  %v10594_v60 = vpop.f32.mrb[57].mxu0  ;;  %v14602_v18 = vadd.f32 %v14599_v27, %v5730_v13  ;;  %v12226_v13 = vld [vmem:[#allocation11 + $0x740] ss:$16 sps:$4 sm:$0xff]   ;;  %v12229_v20 = vld [vmem:[#allocation11 + $0x748] ss:$16 sps:$4 sm:$0xff]  }
 0x4f9   :  { %8181 = vmatprep.subr.bf16.mxu1 %v12207_v40  ;;  %v10595_v36 = vadd.f32 %v10594_v60, %v10593_v34  ;;  %v10628_v46 = vpop.f32.mrb[73].mxu1  ;;  %v10596_v26 = vpop.f32.mrb[58].mxu0  ;;  %7930 = vmatpush1.bf16.msra.mxu0 %v12202_v48 }
 0x4fa   :  { %v14605_v17 = vadd.f32 %v14599_v27, %v5733_v28  ;;  %v10629_v45 = vadd.f32 %v10628_v46, %v10627_v35  ;;  %v10630_v52 = vpop.f32.mrb[74].mxu1  ;;  %v10597_v11 = vpop.f32.mrb[59].mxu0  ;;  %7931 = vmatprep.subr.bf16.mxu0 %v12210_v2  ;;  %v12232_v2 = vld [vmem:[#allocation11 + $0x760] ss:$16 sps:$4 sm:$0xff]   ;;  %v12243_v35 = vld [vmem:[#allocation11 + $0x78c] ss:$16 sps:$4 sm:$0xff]  }
 0x4fb   :  { %v5681_v15 = vadd.f32 %v10595_v36, %v14560_v44  ;;  %v10598_v4 = vadd.f32 %v10597_v11, %v10596_v26  ;;  %v10631_v12 = vpop.f32.mrb[75].mxu1  ;;  %v12225_v44 = vld [vmem:[#allocation11 + $0x72c] ss:$16 sps:$4 sm:$0xff]   ;;  %v12238_v36 = vld [vmem:[#allocation11 + $0x780] ss:$16 sps:$4 sm:$0xff]  }
 0x4fc   :  { %8182 = vmatpush1.bf16.msra.mxu1 %v12205_v7  ;;  %v6167_v39 = vpack.c.bf16 %v14605_v17, %v14602_v18  ;;  %v10632_v56 = vadd.f32 %v10631_v12, %v10630_v52  ;;  %v12237_v7 = vld [vmem:[#allocation11 + $0x76c] ss:$16 sps:$4 sm:$0xff]   ;;  %v12241_v46 = vld [vmem:[#allocation11 + $0x788] ss:$16 sps:$4 sm:$0xff]   ;;  %v12246_v26 = vld [vmem:[#allocation11 + $0x7a4] ss:$16 sps:$4 sm:$0xff]  }
 0x4fd   :  { %8183 = vmatprep.subr.bf16.mxu1 %v12213_v50  ;;  %v5738_v3 = vadd.f32 %v10629_v45, %v5681_v15  ;;  %v5684_v30 = vadd.f32 %v10598_v4, %v14562_v62  ;;  %7932 = vmatpush1.bf16.msra.mxu0 %v12208_v58  ;;  %v12235_v50 = vld [vmem:[#allocation11 + $0x768] ss:$16 sps:$4 sm:$0xff]   ;;  %v12244_v45 = vld [vmem:[#allocation11 + $0x7a0] ss:$16 sps:$4 sm:$0xff]   ;;  %v12255_v52 = vld [vmem:[#allocation11 + $0x7cc] ss:$16 sps:$4 sm:$0xff]  }
 0x4fe   :  { %7933 = vmatprep.subr.bf16.mxu0 %v12216_v25  ;;  %v12247_v58 = vld [vmem:[#allocation11 + $0x7a8] ss:$16 sps:$4 sm:$0xff]   ;;  %v12250_v11 = vld [vmem:[#allocation11 + $0x7c0] ss:$16 sps:$4 sm:$0xff]   ;;  %v12258_v4 = vld [vmem:[#allocation11 + $0x7e4] ss:$16 sps:$4 sm:$0xff]  }
 0x4ff   :  { %v5741_v31 = vadd.f32 %v10632_v56, %v5684_v30  ;;  %v10599_v53 = vpop.f32.mrb[60].mxu0  ;;  %v14612_v43 = vadd.f32 %v14599_v27, %v5738_v3  ;;  %v12253_v15 = vld [vmem:[#allocation11 + $0x7c8] ss:$16 sps:$4 sm:$0xff]   ;;  %v12261_v12 = vld [vmem:[#allocation11 + $0x7ec] ss:$16 sps:$4 sm:$0xff]  }
 0x500   :  { %8184 = vmatpush1.bf16.msra.mxu1 %v12211_v59  ;;  %v10633_v5 = vpop.f32.mrb[76].mxu1  ;;  %v10600_v0 = vpop.f32.mrb[61].mxu0  ;;  %v12252_v59 = vld [vmem:[#allocation11 + $0x7c4] ss:$16 sps:$4 sm:$0xff]   ;;  %v12256_v25 = vld [vmem:[#allocation11 + $0x7e0] ss:$16 sps:$4 sm:$0xff]  }
 0x501   :  { %8185 = vmatprep.subr.bf16.mxu1 %v12219_v14  ;;  %v14615_v16 = vadd.f32 %v14599_v27, %v5741_v31  ;;  %v10601_v29 = vadd.f32 %v10600_v0, %v10599_v53  ;;  %v10634_v62 = vpop.f32.mrb[77].mxu1  ;;  %v10602_v42 = vpop.f32.mrb[62].mxu0  ;;  %7934 = vmatpush1.bf16.msra.mxu0 %v12214_v61  ;;  %v12259_v14 = vld [vmem:[#allocation11 + $0x7e8] ss:$16 sps:$4 sm:$0xff]   ;;  %v12262_v3 = vld [vmem:[#allocation14] ss:$8 sps:$4 sm:$0xff]  }
 0x502   :  { %v10635_v6 = vadd.f32 %v10634_v62, %v10633_v5  ;;  %v10636_v63 = vpop.f32.mrb[78].mxu1  ;;  %v10603_v38 = vpop.f32.mrb[63].mxu0  ;;  %7935 = vmatprep.subr.bf16.mxu0 %v12222_v19  ;;  %v12264_v56 = vld [vmem:[#allocation14 + $0x4] ss:$8 sps:$4 sm:$0xff]   ;;  %v12267_v30 = vld [vmem:[#allocation14 + $0x14] ss:$8 sps:$4 sm:$0xff]  }
 0x503   :  { %v5689_v24 = vadd.f32 %v10601_v29, %v14566_v47  ;;  %v10604_v54 = vadd.f32 %v10603_v38, %v10602_v42  ;;  %v10637_v32 = vpop.f32.mrb[79].mxu1  ;;  %v6168_v9 = vpack.c.bf16 %v14615_v16, %v14612_v43  ;;  %v12234_v47 = vld [vmem:[#allocation11 + $0x764] ss:$16 sps:$4 sm:$0xff]   ;;  %v12273_v53 = vld [vmem:[#allocation14 + $0x34] ss:$8 sps:$4 sm:$0xff]  }
 0x504   :  { %8186 = vmatpush1.bf16.msra.mxu1 %v12217_v41  ;;  %v10638_v51 = vadd.f32 %v10637_v32, %v10636_v63  ;;  %v12265_v61 = vld [vmem:[#allocation14 + $0x10] ss:$8 sps:$4 sm:$0xff]   ;;  %v12270_v41 = vld [vmem:[#allocation14 + $0x24] ss:$8 sps:$4 sm:$0xff]   ;;  %v12268_v31 = vld [vmem:[#allocation14 + $0x20] ss:$8 sps:$4 sm:$0xff]  }
 0x505   :  { %8187 = vmatprep.subr.bf16.mxu1 %v12225_v44  ;;  %v5746_v40 = vadd.f32 %v10635_v6, %v5689_v24  ;;  %v5692_v23 = vadd.f32 %v10604_v54, %v14568_v37  ;;  %7936 = vmatpush1.bf16.msra.mxu0 %v12220_v55  ;;  %v12240_v37 = vld [vmem:[#allocation11 + $0x784] ss:$16 sps:$4 sm:$0xff]   ;;  %v12279_v44 = vld [vmem:[#allocation14 + $0x54] ss:$8 sps:$4 sm:$0xff]   ;;  %v12288_v62 = vld [vmem:[#allocation14 + $0x84] ss:$8 sps:$4 sm:$0xff]  }
 0x506   :  { %7937 = vmatprep.subr.bf16.mxu0 %v12228_v57  ;;  %v12274_v19 = vld [vmem:[#allocation14 + $0x40] ss:$8 sps:$4 sm:$0xff]   ;;  %v12277_v5 = vld [vmem:[#allocation14 + $0x50] ss:$8 sps:$4 sm:$0xff]   ;;  %v12291_v6 = vld [vmem:[#allocation14 + $0x94] ss:$8 sps:$4 sm:$0xff]  }
 0x507   :  { %v5749_v48 = vadd.f32 %v10638_v51, %v5692_v23  ;;  %v14622_v28 = vadd.f32 %v14599_v27, %v5746_v40  ;;  %v12280_v0 = vld [vmem:[#allocation14 + $0x60] ss:$8 sps:$4 sm:$0xff]   ;;  %v12283_v29 = vld [vmem:[#allocation14 + $0x70] ss:$8 sps:$4 sm:$0xff]   ;;  %v12297_v63 = vld [vmem:[#allocation14 + $0xb4] ss:$8 sps:$4 sm:$0xff]  }
 0x508   :  { %8188 = vmatpush1.bf16.msra.mxu1 %v12223_v1  ;;  %v12286_v42 = vld [vmem:[#allocation14 + $0x80] ss:$8 sps:$4 sm:$0xff]   ;;  %v12289_v55 = vld [vmem:[#allocation14 + $0x90] ss:$8 sps:$4 sm:$0xff]   ;;  %v12300_v24 = vld [vmem:[#allocation14 + $0xc4] ss:$8 sps:$4 sm:$0xff]  }
 0x509   :  { %8189 = vmatprep.subr.bf16.mxu1 %v12231_v10  ;;  %v14625_v34 = vadd.f32 %v14599_v27, %v5749_v48  ;;  %7938 = vmatpush1.bf16.msra.mxu0 %v12226_v13  ;;  %v12249_v27 = vld [vmem:[#allocation11 + $0x7ac] ss:$16 sps:$4 sm:$0xff]   ;;  %v12303_v32 = vld [vmem:[#allocation14 + $0xd4] ss:$8 sps:$4 sm:$0xff]   ;;  %v12306_v10 = vld [vmem:[#allocation14 + $0xe4] ss:$8 sps:$4 sm:$0xff]  }
 0x50a   :  { %7939 = vmatprep.subr.bf16.mxu0 %v12234_v47  ;;  %v12292_v1 = vld [vmem:[#allocation14 + $0xa0] ss:$8 sps:$4 sm:$0xff]   ;;  %v12295_v38 = vld [vmem:[#allocation14 + $0xb0] ss:$8 sps:$4 sm:$0xff]   ;;  %v12309_v40 = vld [vmem:[#allocation14 + $0xf4] ss:$8 sps:$4 sm:$0xff]  }
 0x50b   :  { %v6169_v60 = vpack.c.bf16 %v14625_v34, %v14622_v28  ;;  %v12298_v54 = vld [vmem:[#allocation14 + $0xc0] ss:$8 sps:$4 sm:$0xff]   ;;  %v12301_v57 = vld [vmem:[#allocation14 + $0xd0] ss:$8 sps:$4 sm:$0xff]   ;;  %v12312_v13 = vld [vmem:[#allocation14 + $0x104] ss:$8 sps:$4 sm:$0xff]  }
 0x50c   :  { %8190 = vmatpush1.bf16.msra.mxu1 %v12229_v20  ;;  %v12304_v51 = vld [vmem:[#allocation14 + $0xe0] ss:$8 sps:$4 sm:$0xff]   ;;  %v12307_v23 = vld [vmem:[#allocation14 + $0xf0] ss:$8 sps:$4 sm:$0xff]   ;;  %v6426_v20 = vld [vmem:[#allocation13] sm:$0xf] }
 0x50d   :  { %8191 = vmatprep.subr.bf16.mxu1 %v12237_v7  ;;  %7940 = vmatpush1.bf16.msra.mxu0 %v12232_v2  ;;  %v15023_v48 = vld [vmem:[#allocation37_spill] sm:$0xff]  ;;  %v15024_v7 = vld [vmem:[#allocation39_spill] sm:$0xff] }
 0x50e   :  { %7941 = vmatprep.subr.bf16.mxu0 %v12240_v37  ;;  %v14640_v47 = vrot.slane %v6426_v20, %v15023_v48  ;;  %v14643_v2 = vrot.slane %v6426_v20, %v15024_v7 }
 0x510   :  { %8192 = vmatpush1.bf16.msra.mxu1 %v12235_v50  ;;  %v15025_v50 = vld [vmem:[#allocation38_spill] sm:$0xff] }
 0x511   :  { %8193 = vmatprep.subr.bf16.mxu1 %v12243_v35  ;;  %7942 = vmatpush1.bf16.msra.mxu0 %v12238_v36  ;;  %v14646_v37 = vrot.slane %v6426_v20, %v15025_v50  ;;  %v15026_v35 = vld [vmem:[#allocation40_spill] sm:$0xff] }
 0x512   :  { %7943 = vmatprep.subr.bf16.mxu0 %v12246_v26  ;;  %v14649_v36 = vrot.slane %v6426_v20, %v15026_v35 }
 0x514   :  { %8194 = vmatpush1.bf16.msra.mxu1 %v12241_v46 }
 0x515   :  { %8195 = vmatprep.subr.bf16.mxu1 %v12249_v27  ;;  %7944 = vmatpush1.bf16.msra.mxu0 %v12244_v45 }
 0x516   :  { %7945 = vmatprep.subr.bf16.mxu0 %v12252_v59 }
 0x518   :  { %8196 = vmatpush1.bf16.msra.mxu1 %v12247_v58 }
 0x519   :  { %8197 = vmatprep.subr.bf16.mxu1 %v12255_v52  ;;  %7946 = vmatpush1.bf16.msra.mxu0 %v12250_v11 }
 0x51a   :  { %7947 = vmatprep.subr.bf16.mxu0 %v12258_v4 }
 0x51c   :  { %8198 = vmatpush1.bf16.msra.mxu1 %v12253_v15 }
 0x51d   :  { %8199 = vmatprep.subr.bf16.mxu1 %v12261_v12  ;;  %7948 = vmatpush1.bf16.msra.mxu0 %v12256_v25 }
 0x51e   :  { %8784 = vmatprep.subr.bf16.mxu0 %v12264_v56 }
 0x520   :  { %8200 = vmatpush1.bf16.msra.mxu1 %v12259_v14  ;;  %7950 = vmatmul.mubr.bf16.vlgmr.msra.gmra.mrb[64].mxu0 %v14544_v33 }
 0x521   :  { %7959 = vmatprep.mubr.bf16.mxu0 %v14579_v49  ;;  %8785 = vmatpush1.bf16.msra.mxu0 %v12262_v3 }
 0x522   :  { %8786 = vmatprep.subr.bf16.mxu0 %v12267_v30 }
 0x523   :  { %8202 = vmatmul.mubr.bf16.vlgmr.msra.gmra.mrb[80].mxu1 %v14544_v33  ;;  %v12271_v33 = vld [vmem:[#allocation14 + $0x30] ss:$8 sps:$4 sm:$0xff]  }
 0x524   :  { %8211 = vmatprep.mubr.bf16.mxu1 %v14579_v49  ;;  %v12276_v49 = vld [vmem:[#allocation14 + $0x44] ss:$8 sps:$4 sm:$0xff]  }
 0x525   :  { %8787 = vmatpush1.bf16.msra.mxu0 %v12265_v61 }
 0x526   :  { %8788 = vmatprep.subr.bf16.mxu0 %v12270_v41 }
 0x528   :  { %7960 = vmatmul.mubr.bf16.gmra.mrb[68].mxu0 %v14577_v22 }
 0x529   :  { %7969 = vmatprep.mubr.bf16.mxu0 %v14593_v21  ;;  %8789 = vmatpush1.bf16.msra.mxu0 %v12268_v31 }
 0x52a   :  { %8790 = vmatprep.subr.bf16.mxu0 %v12273_v53 }
 0x52b   :  { %8212 = vmatmul.mubr.bf16.gmra.mrb[84].mxu1 %v14577_v22  ;;  %v12282_v22 = vld [vmem:[#allocation14 + $0x64] ss:$8 sps:$4 sm:$0xff]  }
 0x52c   :  { %8221 = vmatprep.mubr.bf16.mxu1 %v14593_v21  ;;  %v12285_v21 = vld [vmem:[#allocation14 + $0x74] ss:$8 sps:$4 sm:$0xff]  }
 0x52d   :  { %8791 = vmatpush1.bf16.msra.mxu0 %v12271_v33 }
 0x52e   :  { %8792 = vmatprep.subr.bf16.mxu0 %v12276_v49 }
 0x530   :  { %7970 = vmatmul.mubr.bf16.gmra.mrb[72].mxu0 %v14591_v8 }
 0x531   :  { %8793 = vmatpush1.bf16.msra.mxu0 %v12274_v19 }
 0x532   :  { %8794 = vmatprep.subr.bf16.mxu0 %v12279_v44 }
 0x533   :  { %8222 = vmatmul.mubr.bf16.gmra.mrb[88].mxu1 %v14591_v8  ;;  %v12294_v8 = vld [vmem:[#allocation14 + $0xa4] ss:$8 sps:$4 sm:$0xff]  }
 0x535   :  { %8795 = vmatpush1.bf16.msra.mxu0 %v12277_v5 }
 0x536   :  { %8796 = vmatprep.subr.bf16.mxu0 %v12282_v22 }
 0x539   :  { %8797 = vmatpush1.bf16.msra.mxu0 %v12280_v0 }
 0x53a   :  { %8798 = vmatprep.subr.bf16.mxu0 %v12285_v21 }
 0x53d   :  { %8799 = vmatpush1.bf16.msra.mxu0 %v12283_v29 }
 0x53e   :  { %8800 = vmatprep.subr.bf16.mxu0 %v12288_v62 }
 0x541   :  { %8801 = vmatpush1.bf16.msra.mxu0 %v12286_v42 }
 0x542   :  { %8802 = vmatprep.subr.bf16.mxu0 %v12291_v6 }
 0x545   :  { %8803 = vmatpush1.bf16.msra.mxu0 %v12289_v55 }
 0x546   :  { %8804 = vmatprep.subr.bf16.mxu0 %v12294_v8 }
 0x549   :  { %8805 = vmatpush1.bf16.msra.mxu0 %v12292_v1 }
 0x54a   :  { %8806 = vmatprep.subr.bf16.mxu0 %v12297_v63 }
 0x54d   :  { %8807 = vmatpush1.bf16.msra.mxu0 %v12295_v38 }
 0x54e   :  { %8808 = vmatprep.subr.bf16.mxu0 %v12300_v24 }
 0x551   :  { %8809 = vmatpush1.bf16.msra.mxu0 %v12298_v54 }
 0x552   :  { %8810 = vmatprep.subr.bf16.mxu0 %v12303_v32 }
 0x555   :  { %8811 = vmatpush1.bf16.msra.mxu0 %v12301_v57 }
 0x556   :  { %8812 = vmatprep.subr.bf16.mxu0 %v12306_v10 }
 0x559   :  { %8813 = vmatpush1.bf16.msra.mxu0 %v12304_v51 }
 0x55a   :  { %8814 = vmatprep.subr.bf16.mxu0 %v12309_v40 }
 0x55d   :  { %8815 = vmatpush1.bf16.msra.mxu0 %v12307_v23 }
 0x55e   :  { %8847 = vmatprep.subr.bf16.mxu0 %v12312_v13 }
 0x5f3   :  { %v7951_v46 = vpop.f32.mrb[64].mxu0 }
 0x5f4   :  { %v14652_v27 = vadd.f32 %v7951_v46, %v14640_v47  ;;  %v7953_v58 = vpop.f32.mrb[65].mxu0 }
 0x5f5   :  { %v14658_v52 = vadd.f32 %v7953_v58, %v14646_v37  ;;  %v7955_v15 = vpop.f32.mrb[66].mxu0 }
 0x5f6   :  { %v8203_v26 = vpop.f32.mrb[80].mxu1  ;;  %v8232_v12 = vsub.f32 0.0, %v14652_v27  ;;  %v14666_v14 = vadd.f32 %v7955_v15, %v14640_v47  ;;  %v7957_v3 = vpop.f32.mrb[67].mxu0 }
 0x5f7   :  { %v14655_v45 = vadd.f32 %v8203_v26, %v14643_v2  ;;  %v8205_v59 = vpop.f32.mrb[81].mxu1  ;;  %v8233_v61 = vsub.f32 0.0, %v14658_v52  ;;  %v14674_v31 = vadd.f32 %v7957_v3, %v14646_v37 }
 0x5f8   :  { %v14661_v11 = vadd.f32 %v8205_v59, %v14649_v36  ;;  %v8207_v4 = vpop.f32.mrb[82].mxu1  ;;  %v8256_v33 = vmul.f32 1.442695, %v8232_v12  ;;  %v8236_v19 = vsub.f32 0.0, %v14666_v14 }
 0x5f9   :  { %v8234_v25 = vsub.f32 0.0, %v14655_v45  ;;  %v14669_v56 = vadd.f32 %v8207_v4, %v14643_v2  ;;  %v8209_v30 = vpop.f32.mrb[83].mxu1  ;;  %v8258_v5 = vmul.f32 1.442695, %v8233_v61  ;;  %v8237_v0 = vsub.f32 0.0, %v14674_v31 }
 0x5fa   :  { %v8235_v41 = vsub.f32 0.0, %v14661_v11  ;;  %v14677_v53 = vadd.f32 %v8209_v30, %v14649_v36  ;;  %12774 = vpow2.f32 %v8256_v33  ;;  %v8264_v29 = vmul.f32 1.442695, %v8236_v19 }
 0x5fb   :  { %v8260_v49 = vmul.f32 1.442695, %v8234_v25  ;;  %v8238_v44 = vsub.f32 0.0, %v14669_v56  ;;  %v7961_v42 = vpop.f32.mrb[68].mxu0  ;;  %v8266_v55 = vmul.f32 1.442695, %v8237_v0 }
 0x5fc   :  { %v8262_v22 = vmul.f32 1.442695, %v8235_v41  ;;  %v8239_v21 = vsub.f32 0.0, %v14677_v53  ;;  %v14684_v8 = vadd.f32 %v7961_v42, %v14640_v47  ;;  %v7963_v63 = vpop.f32.mrb[69].mxu0 }
 0x5fd   :  { %12776 = vpow2.f32 %v8260_v49  ;;  %v8268_v62 = vmul.f32 1.442695, %v8238_v44  ;;  %v14690_v54 = vadd.f32 %v7963_v63, %v14646_v37  ;;  %v7965_v32 = vpop.f32.mrb[70].mxu0 }
 0x5fe   :  { %v8213_v6 = vpop.f32.mrb[84].mxu1  ;;  %12778 = vpow2.f32 %v8258_v5  ;;  %v8270_v24 = vmul.f32 1.442695, %v8239_v21  ;;  %v8240_v10 = vsub.f32 0.0, %v14684_v8  ;;  %v14695_v40 = vadd.f32 %v7965_v32, %v14640_v47  ;;  %v7967_v23 = vpop.f32.mrb[71].mxu0 }
 0x5ff   :  { %v14687_v1 = vadd.f32 %v8213_v6, %v14643_v2  ;;  %v8215_v38 = vpop.f32.mrb[85].mxu1  ;;  %12780 = vpow2.f32 %v8262_v22  ;;  %v8241_v20 = vsub.f32 0.0, %v14690_v54  ;;  %v14707_v22 = vadd.f32 %v7967_v23, %v14646_v37 }
 0x600   :  { %v8217_v57 = vpop.f32.mrb[86].mxu1  ;;  %12782 = vpow2.f32 %v8264_v29  ;;  %v8272_v7 = vmul.f32 1.442695, %v8240_v10  ;;  %v8244_v46 = vsub.f32 0.0, %v14695_v40  ;;  %v14700_v58 = vadd.f32 %v8215_v38, %v14649_v36 }
 0x601   :  { %v8242_v51 = vsub.f32 0.0, %v14687_v1  ;;  %v8219_v13 = vpop.f32.mrb[87].mxu1  ;;  %12784 = vpow2.f32 %v8268_v62  ;;  %v8274_v26 = vmul.f32 1.442695, %v8241_v20  ;;  %v14704_v33 = vadd.f32 %v8217_v57, %v14643_v2 }
 0x602   :  { %12786 = vpow2.f32 %v8266_v55  ;;  %v8280_v59 = vmul.f32 1.442695, %v8244_v46  ;;  %v8243_v41 = vsub.f32 0.0, %v14700_v58  ;;  %v8245_v10 = vsub.f32 0.0, %v14707_v22 }
 0x603   :  { %v8276_v35 = vmul.f32 1.442695, %v8242_v51  ;;  %12788 = vpow2.f32 %v8270_v24  ;;  %v7971_v15 = vpop.f32.mrb[72].mxu0  ;;  %v8246_v24 = vsub.f32 0.0, %v14704_v33  ;;  %v14712_v51 = vadd.f32 %v8219_v13, %v14649_v36 }
 0x604   :  { %12790 = vpow2.f32 %v8272_v7  ;;  %v12775_v12 = vpop.eup %12774  ;;  %v7973_v25 = vpop.f32.mrb[73].mxu0  ;;  %v8278_v38 = vmul.f32 1.442695, %v8243_v41  ;;  %v14715_v7 = vadd.f32 %v7971_v15, %v14640_v47 }
 0x605   :  { %12792 = vpow2.f32 %v8276_v35  ;;  %v8304_v61 = vadd.f32 1.0, %v12775_v12  ;;  %v7975_v49 = vpop.f32.mrb[74].mxu0  ;;  %v8247_v41 = vsub.f32 0.0, %v14712_v51 }
 0x606   :  { %v8223_v4 = vpop.f32.mrb[88].mxu1  ;;  %12794 = vpow2.f32 %v8274_v26  ;;  %v7977_v0 = vpop.f32.mrb[75].mxu0 }
 0x607   :  { %v8225_v3 = vpop.f32.mrb[89].mxu1  ;;  %v12777_v30 = vpop.eup %12776  ;;  %12796 = vpow2.f32 %v8280_v59  ;;  %v14718_v35 = vadd.f32 %v8223_v4, %v14643_v2  ;;  %v14721_v59 = vadd.f32 %v7973_v25, %v14646_v37  ;;  %v8284_v25 = vmul.f32 1.442695, %v8246_v24 }
 0x608   :  { %v8227_v19 = vpop.f32.mrb[90].mxu1  ;;  %v12779_v44 = vpop.eup %12778  ;;  %v8306_v5 = vadd.f32 1.0, %v12777_v30  ;;  %12798 = vrcp.f32 %v8304_v61  ;;  %v14724_v12 = vadd.f32 %v8225_v3, %v14649_v36  ;;  %v14727_v61 = vadd.f32 %v7975_v49, %v14640_v47 }
 0x609   :  { %v12781_v21 = vpop.eup %12780  ;;  %v8305_v29 = vadd.f32 1.0, %v12779_v44  ;;  %v8229_v62 = vpop.f32.mrb[91].mxu1  ;;  %v14730_v15 = vadd.f32 %v8227_v19, %v14643_v2  ;;  %v14735_v3 = vadd.f32 %v7977_v0, %v14646_v37  ;;  %v8250_v47 = vsub.f32 0.0, %v14718_v35 }
 0x60a   :  { %v12783_v42 = vpop.eup %12782  ;;  %12800 = vrcp.f32 %v8306_v5  ;;  %v8307_v6 = vadd.f32 1.0, %v12781_v21  ;;  %v8248_v5 = vsub.f32 0.0, %v14715_v7  ;;  %v8249_v49 = vsub.f32 0.0, %v14721_v59 }
 0x60b   :  { %v12785_v55 = vpop.eup %12784  ;;  %12802 = vrcp.f32 %v8305_v29  ;;  %v8308_v63 = vadd.f32 1.0, %v12783_v42  ;;  %v8282_v29 = vmul.f32 1.442695, %v8245_v10  ;;  %v8251_v2 = vsub.f32 0.0, %v14724_v12 }
 0x60c   :  { %v12787_v32 = vpop.eup %12786  ;;  %12804 = vrcp.f32 %v8307_v6  ;;  %v8310_v57 = vadd.f32 1.0, %v12785_v55  ;;  %v8252_v6 = vsub.f32 0.0, %v14727_v61  ;;  %v8254_v55 = vsub.f32 0.0, %v14730_v15 }
 0x60d   :  { %v12789_v23 = vpop.eup %12788  ;;  %12806 = vrcp.f32 %v8308_v63  ;;  %v8309_v20 = vadd.f32 1.0, %v12787_v32  ;;  %v14743_v37 = vadd.f32 %v8229_v62, %v14649_v36  ;;  %v8288_v24 = vmul.f32 1.442695, %v8248_v5 }
 0x60e   :  { %v12791_v46 = vpop.eup %12790  ;;  %12808 = vrcp.f32 %v8310_v57  ;;  %v8311_v26 = vadd.f32 1.0, %v12789_v23  ;;  %v8253_v32 = vsub.f32 0.0, %v14735_v3  ;;  %v8292_v10 = vmul.f32 1.442695, %v8250_v47 }
 0x60f   :  { %v12793_v13 = vpop.eup %12792  ;;  %12810 = vrcp.f32 %v8309_v20  ;;  %v8312_v30 = vadd.f32 1.0, %v12791_v46  ;;  %v8290_v23 = vmul.f32 1.442695, %v8249_v49  ;;  %v8294_v46 = vmul.f32 1.442695, %v8251_v2 }
 0x610   :  { %12812 = vrcp.f32 %v8311_v26  ;;  %v8314_v4 = vadd.f32 1.0, %v12793_v13  ;;  %v12795_v44 = vpop.eup %12794  ;;  %v8296_v26 = vmul.f32 1.442695, %v8252_v6  ;;  %v8300_v13 = vmul.f32 1.442695, %v8254_v55 }
 0x611   :  { %12814 = vpow2.f32 %v8278_v38  ;;  %v12797_v21 = vpop.eup %12796  ;;  %v8286_v38 = vmul.f32 1.442695, %v8247_v41  ;;  %v8255_v62 = vsub.f32 0.0, %v14743_v37  ;;  %v12310_v6 = vld [vmem:[#allocation14 + $0x100] ss:$8 sps:$4 sm:$0xff]   ;;  %v8313_v55 = vadd.f32 1.0, %v12795_v44 }
 0x612   :  { %v12799_v19 = vpop.eup %12798  ;;  %12816 = vrcp.f32 %v8312_v30  ;;  %v8316_v42 = vadd.f32 1.0, %v12797_v21  ;;  %v8298_v21 = vmul.f32 1.442695, %v8253_v32  ;;  %v12313_v44 = vld [vmem:[#allocation14 + $0x110] ss:$8 sps:$4 sm:$0xff]  }
 0x613   :  { %12818 = vrcp.f32 %v8314_v4  ;;  %v8352_v4 = vmul.f32 %v12799_v19, %v14652_v27 }
 0x614   :  { %v12801_v63 = vpop.eup %12800  ;;  %12820 = vrcp.f32 %v8316_v42 }
 0x615   :  { %v12803_v0 = vpop.eup %12802  ;;  %12822 = vpow2.f32 %v8284_v25  ;;  %v14750_v5 = vmul.f32 %v12801_v63, %v14655_v45 }
 0x616   :  { %v12805_v57 = vpop.eup %12804  ;;  %12824 = vpow2.f32 %v8282_v29  ;;  %v8353_v47 = vmul.f32 %v12803_v0, %v14658_v52 }
 0x617   :  { %v12807_v20 = vpop.eup %12806  ;;  %12826 = vpow2.f32 %v8286_v38  ;;  %v14758_v2 = vmul.f32 %v12805_v57, %v14661_v11 }
 0x618   :  { %v12809_v30 = vpop.eup %12808  ;;  %v8356_v36 = vmul.f32 %v12807_v20, %v14666_v14  ;;  %12828 = vpow2.f32 %v8288_v24 }
 0x619   :  { %v12811_v41 = vpop.eup %12810  ;;  %v14753_v25 = vmul.f32 %v12809_v30, %v14669_v56  ;;  %12830 = vpow2.f32 %v8292_v10  ;;  %v8302_v56 = vmul.f32 1.442695, %v8255_v62 }
 0x61a   :  { %v12813_v29 = vpop.eup %12812  ;;  %v8376_v49 = vpack.c.bf16 %v8356_v36, %v8352_v4  ;;  %v8357_v27 = vmul.f32 %v12811_v41, %v14674_v31  ;;  %12832 = vpow2.f32 %v8290_v23  ;;  %v12315_v31 = vld [vmem:[#allocation14 + $0x114] ss:$8 sps:$4 sm:$0xff]   ;;  %v12318_v23 = vld [vmem:[#allocation14 + $0x124] ss:$8 sps:$4 sm:$0xff]   ;;  %v12316_v4 = vld [vmem:[#allocation14 + $0x120] ss:$8 sps:$4 sm:$0xff]  }
 0x61b   :  { %v12815_v14 = vpop.eup %12814  ;;  %v8378_v45 = vpack.c.bf16 %v14753_v25, %v14750_v5  ;;  %v14763_v19 = vmul.f32 %v12813_v29, %v14677_v53  ;;  %12834 = vpow2.f32 %v8294_v46  ;;  %v12321_v41 = vld [vmem:[#allocation14 + $0x134] ss:$8 sps:$4 sm:$0xff]  }
 0x61c   :  { %v8377_v42 = vpack.c.bf16 %v8357_v27, %v8353_v47  ;;  %v12817_v52 = vpop.eup %12816  ;;  %12836 = vpow2.f32 %v8296_v26  ;;  %v8315_v38 = vadd.f32 1.0, %v12815_v14  ;;  %v12362_v5 = vld [vmem:[#allocation17 + $0x50] sm:$0xff]  }
 0x61d   :  { %v8379_v63 = vpack.c.bf16 %v14763_v19, %v14758_v2  ;;  %v14767_v11 = vpop.eup %12818  ;;  %12838 = vpow2.f32 %v8300_v13  ;;  %v14770_v24 = vmul.f32 %v12817_v52, %v14684_v8  ;;  %v12324_v52 = vld [vmem:[#allocation14 + $0x144] ss:$8 sps:$4 sm:$0xff]   ;;  %v12351_v2 = vld [vmem:[#allocation14 + $0x1d4] ss:$8 sps:$4 sm:$0xff]   ;;  %v12349_v19 = vld [vmem:[#allocation14 + $0x1d0] ss:$8 sps:$4 sm:$0xff]  }
 0x61e   :  { %8816 = vmatprep.mubr.bf16.mxu0 %v8377_v42  ;;  %v12821_v0 = vpop.eup %12820  ;;  %12840 = vpow2.f32 %v8298_v21  ;;  %v12363_v25 = vld [vmem:[#allocation17 + $0x10] sm:$0xff]  }
 0x61f   :  { %8817 = vmatmul.mubr.bf16.vlgmr.msra.gmra.mrb[76].mxu0 %v8376_v49  ;;  %v12823_v53 = vpop.eup %12822  ;;  %v14773_v32 = vmul.f32 %v12821_v0, %v14695_v40  ;;  %12842 = vpow2.f32 %v8302_v56  ;;  %v12319_v56 = vld [vmem:[#allocation14 + $0x130] ss:$8 sps:$4 sm:$0xff]  }
 0x620   :  { %8848 = vmatpush1.bf16.msra.mxu0 %v12310_v6  ;;  %v12825_v57 = vpop.eup %12824  ;;  %12844 = vrcp.f32 %v8313_v55  ;;  %v8318_v10 = vadd.f32 1.0, %v12823_v53 }
 0x621   :  { %8849 = vmatprep.subr.bf16.mxu0 %v12315_v31  ;;  %v12827_v20 = vpop.eup %12826  ;;  %12846 = vrcp.f32 %v8315_v38  ;;  %v8317_v46 = vadd.f32 1.0, %v12825_v57  ;;  %v8380_v26 = vpack.c.bf16 %v14773_v32, %v14770_v24 }
 0x622   :  { %v12829_v13 = vpop.eup %12828  ;;  %12848 = vrcp.f32 %v8318_v10  ;;  %v8319_v8 = vadd.f32 1.0, %v12827_v20  ;;  %v12327_v10 = vld [vmem:[#allocation14 + $0x154] ss:$8 sps:$4 sm:$0xff]   ;;  %v14779_v20 = vmul.f32 %v14767_v11, %v14687_v1 }
 0x623   :  { %v12831_v30 = vpop.eup %12830  ;;  %12850 = vrcp.f32 %v8317_v46  ;;  %v8320_v40 = vadd.f32 1.0, %v12829_v13 }
 0x624   :  { %8850 = vmatpush1.bf16.msra.mxu0 %v12313_v44  ;;  %v12833_v36 = vpop.eup %12832  ;;  %12852 = vrcp.f32 %v8319_v8  ;;  %v8322_v62 = vadd.f32 1.0, %v12831_v30  ;;  %v12322_v44 = vld [vmem:[#allocation14 + $0x140] ss:$8 sps:$4 sm:$0xff]  }
 0x625   :  { %8851 = vmatprep.subr.bf16.mxu0 %v12318_v23  ;;  %v12835_v21 = vpop.eup %12834  ;;  %12854 = vrcp.f32 %v8320_v40  ;;  %v8321_v29 = vadd.f32 1.0, %v12833_v36 }
 0x626   :  { %v12837_v47 = vpop.eup %12836  ;;  %12856 = vrcp.f32 %v8322_v62  ;;  %v8323_v49 = vadd.f32 1.0, %v12835_v21  ;;  %v12330_v21 = vld [vmem:[#allocation14 + $0x164] ss:$8 sps:$4 sm:$0xff]  }
 0x627   :  { %v12839_v27 = vpop.eup %12838  ;;  %12858 = vrcp.f32 %v8321_v29  ;;  %v8324_v14 = vadd.f32 1.0, %v12837_v47 }
 0x628   :  { %8852 = vmatpush1.bf16.msra.mxu0 %v12316_v4  ;;  %v12841_v42 = vpop.eup %12840  ;;  %12860 = vrcp.f32 %v8323_v49  ;;  %v8326_v6 = vadd.f32 1.0, %v12839_v27  ;;  %v12328_v49 = vld [vmem:[#allocation14 + $0x160] ss:$8 sps:$4 sm:$0xff]  }
 0x629   :  { %8853 = vmatprep.subr.bf16.mxu0 %v12321_v41  ;;  %v12843_v55 = vpop.eup %12842  ;;  %12862 = vrcp.f32 %v8324_v14  ;;  %v8325_v31 = vadd.f32 1.0, %v12841_v42  ;;  %v12333_v42 = vld [vmem:[#allocation14 + $0x174] ss:$8 sps:$4 sm:$0xff]  }
 0x62a   :  { %v12845_v38 = vpop.eup %12844  ;;  %12864 = vrcp.f32 %v8326_v6  ;;  %v8327_v0 = vadd.f32 1.0, %v12843_v55 }
 0x62b   :  { %v12847_v53 = vpop.eup %12846  ;;  %12866 = vrcp.f32 %v8325_v31  ;;  %v8361_v8 = vmul.f32 %v12845_v38, %v14690_v54  ;;  %v12331_v31 = vld [vmem:[#allocation14 + $0x170] ss:$8 sps:$4 sm:$0xff]  }
 0x62c   :  { %8854 = vmatpush1.bf16.msra.mxu0 %v12319_v56  ;;  %v12849_v57 = vpop.eup %12848  ;;  %12868 = vrcp.f32 %v8327_v0  ;;  %v14787_v4 = vmul.f32 %v12847_v53, %v14700_v58  ;;  %v12345_v0 = vld [vmem:[#allocation14 + $0x1b4] ss:$8 sps:$4 sm:$0xff]   ;;  %v12343_v53 = vld [vmem:[#allocation14 + $0x1b0] ss:$8 sps:$4 sm:$0xff]  }
 0x62d   :  { %8855 = vmatprep.subr.bf16.mxu0 %v12324_v52  ;;  %v12851_v23 = vpop.eup %12850  ;;  %v14782_v46 = vmul.f32 %v12849_v57, %v14704_v33  ;;  %v12325_v33 = vld [vmem:[#allocation14 + $0x150] ss:$8 sps:$4 sm:$0xff]   ;;  %v12346_v57 = vld [vmem:[#allocation14 + $0x1c0] ss:$8 sps:$4 sm:$0xff]  }
 0x62e   :  { %v12853_v13 = vpop.eup %12852  ;;  %v8365_v30 = vmul.f32 %v12851_v23, %v14707_v22  ;;  %v12357_v23 = vld [vmem:[#allocation14 + $0x1f4] ss:$8 sps:$4 sm:$0xff]  }
 0x62f   :  { %v12855_v40 = vpop.eup %12854  ;;  %v14790_v36 = vmul.f32 %v12853_v13, %v14712_v51  ;;  %v8382_v1 = vpack.c.bf16 %v14782_v46, %v14779_v20  ;;  %v12355_v13 = vld [vmem:[#allocation14 + $0x1f0] ss:$8 sps:$4 sm:$0xff]   ;;  %v12366_v20 = vld [vmem:[#allocation17 + $0x60] sm:$0xff]  }
 0x630   :  { %8856 = vmatpush1.bf16.msra.mxu0 %v12322_v44  ;;  %v12857_v11 = vpop.eup %12856  ;;  %v8381_v62 = vpack.c.bf16 %v8365_v30, %v8361_v8  ;;  %v8368_v29 = vmul.f32 %v12855_v40, %v14715_v7  ;;  %v12348_v44 = vld [vmem:[#allocation14 + $0x1c4] ss:$8 sps:$4 sm:$0xff]  }
 0x631   :  { %8857 = vmatprep.subr.bf16.mxu0 %v12327_v10  ;;  %v12859_v41 = vpop.eup %12858  ;;  %v8383_v54 = vpack.c.bf16 %v14790_v36, %v14787_v4  ;;  %v8370_v14 = vmul.f32 %v12857_v11, %v14718_v35  ;;  %v12336_v35 = vld [vmem:[#allocation14 + $0x184] ss:$8 sps:$4 sm:$0xff]   ;;  %v12352_v10 = vld [vmem:[#allocation14 + $0x1e0] ss:$8 sps:$4 sm:$0xff]  }
 0x632   :  { %v12861_v22 = vpop.eup %12860  ;;  %8826 = vmatprep.mubr.bf16.mxu0 %v8381_v62  ;;  %v8369_v52 = vmul.f32 %v12859_v41, %v14721_v59  ;;  %v12334_v59 = vld [vmem:[#allocation14 + $0x180] ss:$8 sps:$4 sm:$0xff]   ;;  %v12370_v62 = vld [vmem:[#allocation17 + $0x70] sm:$0xff]  }
 0x633   :  { %v12863_v58 = vpop.eup %12862  ;;  %8827 = vmatmul.mubr.bf16.gmra.mrb[80].mxu0 %v8380_v26  ;;  %v8371_v26 = vmul.f32 %v12861_v22, %v14724_v12  ;;  %v12337_v12 = vld [vmem:[#allocation14 + $0x190] ss:$8 sps:$4 sm:$0xff]   ;;  %v12358_v8 = vld [vmem:[#allocation17 + $0x40] sm:$0xff]  }
 0x634   :  { %v12865_v51 = vpop.eup %12864  ;;  %v8372_v47 = vmul.f32 %v12863_v58, %v14727_v61  ;;  %8858 = vmatpush1.bf16.msra.mxu0 %v12325_v33  ;;  %v12359_v30 = vld [vmem:[#allocation17] sm:$0xff]   ;;  %10639 = vmatprep.subr.bf16.mxu1 %v12358_v8  ;;  %v12360_v40 = vld [vmem:[#allocation17 + $0x48] sm:$0xff]   ;;  %v12365_v4 = vld [vmem:[#allocation17 + $0x18] sm:$0xff]  }
 0x635   :  { %v12867_v27 = vpop.eup %12866  ;;  %v8374_v56 = vmul.f32 %v12865_v51, %v14730_v15  ;;  %8859 = vmatprep.subr.bf16.mxu0 %v12330_v21  ;;  %v12339_v15 = vld [vmem:[#allocation14 + $0x194] ss:$8 sps:$4 sm:$0xff]   ;;  %10640 = vmatpush3.bf16.msra.mxu1 %v12359_v30  ;;  %v12361_v11 = vld [vmem:[#allocation17 + $0x8] sm:$0xff]   ;;  %v12367_v46 = vld [vmem:[#allocation17 + $0x20] sm:$0xff]  }
 0x636   :  { %v12869_v6 = vpop.eup %12868  ;;  %v8373_v24 = vmul.f32 %v12867_v27, %v14735_v3  ;;  %v8384_v32 = vpack.c.bf16 %v8372_v47, %v8368_v29  ;;  %v12342_v3 = vld [vmem:[#allocation14 + $0x1a4] ss:$8 sps:$4 sm:$0xff]   ;;  %10641 = vmatprep.subr.bf16.mxu1 %v12360_v40  ;;  %v12371_v33 = vld [vmem:[#allocation17 + $0x30] sm:$0xff]   ;;  %v12372_v41 = vld [vmem:[#allocation17 + $0x78] sm:$0xff]  }
 0x637   :  { %v8375_v7 = vmul.f32 %v12869_v6, %v14743_v37  ;;  %v8386_v61 = vpack.c.bf16 %v8374_v56, %v8370_v14  ;;  %v12340_v37 = vld [vmem:[#allocation14 + $0x1a0] ss:$8 sps:$4 sm:$0xff]  }
 0x638   :  { %v8385_v55 = vpack.c.bf16 %v8373_v24, %v8369_v52  ;;  %8860 = vmatpush1.bf16.msra.mxu0 %v12328_v49  ;;  %v12368_v36 = vld [vmem:[#allocation17 + $0x68] sm:$0xff]   ;;  %v12373_v21 = vld [vmem:[#allocation17 + $0x38] sm:$0xff]  }
 0x639   :  { %8861 = vmatprep.subr.bf16.mxu0 %v12333_v42  ;;  %v8387_v38 = vpack.c.bf16 %v8375_v7, %v8371_v26  ;;  %10642 = vmatpush3.bf16.msra.mxu1 %v12361_v11 }
 0x63a   :  { %8836 = vmatprep.mubr.bf16.mxu0 %v8385_v55  ;;  %10643 = vmatprep.subr.bf16.mxu1 %v12362_v5 }
 0x63b   :  { %8837 = vmatmul.mubr.bf16.gmra.mrb[84].mxu0 %v8384_v32 }
 0x63c   :  { %8879 = vmatprep.mubr.bf16.mxu0 %v8379_v63  ;;  %8862 = vmatpush1.bf16.msra.mxu0 %v12331_v31  ;;  %v12354_v63 = vld [vmem:[#allocation14 + $0x1e4] ss:$8 sps:$4 sm:$0xff]  }
 0x63d   :  { %8863 = vmatprep.subr.bf16.mxu0 %v12336_v35  ;;  %10644 = vmatpush3.bf16.msra.mxu1 %v12363_v25 }
 0x640   :  { %8864 = vmatpush1.bf16.msra.mxu0 %v12334_v59 }
 0x641   :  { %8865 = vmatprep.subr.bf16.mxu0 %v12339_v15 }
 0x644   :  { %8866 = vmatpush1.bf16.msra.mxu0 %v12337_v12 }
 0x645   :  { %8867 = vmatprep.subr.bf16.mxu0 %v12342_v3 }
 0x648   :  { %8868 = vmatpush1.bf16.msra.mxu0 %v12340_v37 }
 0x649   :  { %8869 = vmatprep.subr.bf16.mxu0 %v12345_v0 }
 0x64c   :  { %8870 = vmatpush1.bf16.msra.mxu0 %v12343_v53 }
 0x64d   :  { %8871 = vmatprep.subr.bf16.mxu0 %v12348_v44 }
 0x650   :  { %8872 = vmatpush1.bf16.msra.mxu0 %v12346_v57 }
 0x651   :  { %8873 = vmatprep.subr.bf16.mxu0 %v12351_v2 }
 0x654   :  { %8874 = vmatpush1.bf16.msra.mxu0 %v12349_v19 }
 0x655   :  { %8875 = vmatprep.subr.bf16.mxu0 %v12354_v63 }
 0x658   :  { %8876 = vmatpush1.bf16.msra.mxu0 %v12352_v10 }
 0x659   :  { %8877 = vmatprep.subr.bf16.mxu0 %v12357_v23 }
 0x65c   :  { %8878 = vmatpush1.bf16.msra.mxu0 %v12355_v13 }
 0x65f   :  { %8880 = vmatmul.mubr.bf16.vlgmr.msra.gmra.mrb[76].mxu0 %v8378_v45  ;;  %v12364_v45 = vld [vmem:[#allocation17 + $0x58] sm:$0xff]  }
 0x660   :  { %8889 = vmatprep.mubr.bf16.mxu0 %v8383_v54  ;;  %10645 = vmatprep.subr.bf16.mxu1 %v12364_v45  ;;  %v8452_v54 = vld [vmem:[#allocation16] sm:$0x3] }
 0x661   :  { %10646 = vmatpush3.bf16.msra.mxu1 %v12365_v4  ;;  %v8457_v22 = vrot.slane %v8452_v54, %v15023_v48  ;;  %v8461_v58 = vrot.slane %v8452_v54, %v15025_v50 }
 0x662   :  { %10647 = vmatprep.subr.bf16.mxu1 %v12366_v20 }
 0x665   :  { %10648 = vmatpush3.bf16.msra.mxu1 %v12367_v46 }
 0x666   :  { %10649 = vmatprep.subr.bf16.mxu1 %v12368_v36 }
 0x667   :  { %8890 = vmatmul.mubr.bf16.gmra.mrb[80].mxu0 %v8382_v1  ;;  %v12369_v1 = vld [vmem:[#allocation17 + $0x28] sm:$0xff]  }
 0x668   :  { %8899 = vmatprep.mubr.bf16.mxu0 %v8387_v38 }
 0x669   :  { %10650 = vmatpush3.bf16.msra.mxu1 %v12369_v1 }
 0x66a   :  { %10651 = vmatprep.subr.bf16.mxu1 %v12370_v62 }
 0x66d   :  { %10652 = vmatpush3.bf16.msra.mxu1 %v12371_v33 }
 0x66e   :  { %10653 = vmatprep.subr.bf16.mxu1 %v12372_v41 }
 0x66f   :  { %8900 = vmatmul.mubr.bf16.gmra.mrb[84].mxu0 %v8386_v61 }
 0x671   :  { %10654 = vmatpush3.bf16.msra.mxu1 %v12373_v21 }
 0x732   :  { %v8881_v51 = vpop.f32.mrb[76].mxu0 }
 0x733   :  { %v14821_v29 = vadd.f32 %v8881_v51, %v8457_v22  ;;  %v8883_v47 = vpop.f32.mrb[77].mxu0 }
 0x734   :  { %v14823_v49 = vadd.f32 %v8883_v47, %v8461_v58  ;;  %v8885_v27 = vpop.f32.mrb[78].mxu0 }
 0x735   :  { %v8910_v14 = vsub.f32 0.0, %v14821_v29  ;;  %v14826_v56 = vadd.f32 %v8885_v27, %v8457_v22  ;;  %v8887_v42 = vpop.f32.mrb[79].mxu0 }
 0x736   :  { %v8911_v6 = vsub.f32 0.0, %v14823_v49  ;;  %v14829_v52 = vadd.f32 %v8887_v42, %v8461_v58 }
 0x737   :  { %v8922_v24 = vmul.f32 1.442695, %v8910_v14  ;;  %v8912_v48 = vsub.f32 0.0, %v14826_v56 }
 0x738   :  { %v8924_v50 = vmul.f32 1.442695, %v8911_v6  ;;  %v8913_v32 = vsub.f32 0.0, %v14829_v52 }
 0x739   :  { %12870 = vpow2.f32 %v8922_v24  ;;  %v8926_v26 = vmul.f32 1.442695, %v8912_v48 }
 0x73a   :  { %12872 = vpow2.f32 %v8924_v50  ;;  %v8928_v7 = vmul.f32 1.442695, %v8913_v32  ;;  %v8891_v61 = vpop.f32.mrb[80].mxu0 }
 0x73b   :  { %12874 = vpow2.f32 %v8926_v26  ;;  %v14833_v55 = vadd.f32 %v8891_v61, %v8457_v22  ;;  %v8893_v31 = vpop.f32.mrb[81].mxu0 }
 0x73c   :  { %12876 = vpow2.f32 %v8928_v7  ;;  %v14835_v35 = vadd.f32 %v8893_v31, %v8461_v58  ;;  %v8895_v38 = vpop.f32.mrb[82].mxu0 }
 0x73d   :  { %v8914_v59 = vsub.f32 0.0, %v14833_v55  ;;  %v14838_v15 = vadd.f32 %v8895_v38, %v8457_v22  ;;  %v8897_v12 = vpop.f32.mrb[83].mxu0 }
 0x73e   :  { %v8915_v3 = vsub.f32 0.0, %v14835_v35  ;;  %v14841_v37 = vadd.f32 %v8897_v12, %v8461_v58 }
 0x73f   :  { %v8930_v0 = vmul.f32 1.442695, %v8914_v59  ;;  %v8916_v53 = vsub.f32 0.0, %v14838_v15 }
 0x740   :  { %v8932_v44 = vmul.f32 1.442695, %v8915_v3  ;;  %v8917_v57 = vsub.f32 0.0, %v14841_v37 }
 0x741   :  { %12878 = vpow2.f32 %v8930_v0  ;;  %v8934_v2 = vmul.f32 1.442695, %v8916_v53 }
 0x742   :  { %12880 = vpow2.f32 %v8932_v44  ;;  %v8936_v19 = vmul.f32 1.442695, %v8917_v57  ;;  %v8901_v63 = vpop.f32.mrb[84].mxu0 }
 0x743   :  { %v12871_v10 = vpop.eup %12870  ;;  %12882 = vpow2.f32 %v8934_v2  ;;  %v14845_v23 = vadd.f32 %v8901_v63, %v8457_v22  ;;  %v8903_v13 = vpop.f32.mrb[85].mxu0 }
 0x744   :  { %v12873_v8 = vpop.eup %12872  ;;  %v8946_v30 = vadd.f32 1.0, %v12871_v10  ;;  %12884 = vpow2.f32 %v8936_v19  ;;  %v14847_v40 = vadd.f32 %v8903_v13, %v8461_v58  ;;  %v8905_v11 = vpop.f32.mrb[86].mxu0 }
 0x745   :  { %v12875_v5 = vpop.eup %12874  ;;  %v8947_v25 = vadd.f32 1.0, %v12873_v8  ;;  %v8918_v45 = vsub.f32 0.0, %v14845_v23  ;;  %v14850_v4 = vadd.f32 %v8905_v11, %v8457_v22  ;;  %v8907_v20 = vpop.f32.mrb[87].mxu0 }
 0x746   :  { %v12877_v46 = vpop.eup %12876  ;;  %12886 = vrcp.f32 %v8946_v30  ;;  %v8948_v36 = vadd.f32 1.0, %v12875_v5  ;;  %v8919_v1 = vsub.f32 0.0, %v14847_v40  ;;  %v14853_v62 = vadd.f32 %v8907_v20, %v8461_v58 }
 0x747   :  { %12888 = vrcp.f32 %v8947_v25  ;;  %v8949_v33 = vadd.f32 1.0, %v12877_v46  ;;  %v8938_v41 = vmul.f32 1.442695, %v8918_v45  ;;  %v8920_v21 = vsub.f32 0.0, %v14850_v4 }
 0x748   :  { %12890 = vrcp.f32 %v8948_v36  ;;  %v8940_v54 = vmul.f32 1.442695, %v8919_v1  ;;  %v8921_v51 = vsub.f32 0.0, %v14853_v62 }
 0x749   :  { %12892 = vrcp.f32 %v8949_v33  ;;  %v8942_v22 = vmul.f32 1.442695, %v8920_v21 }
 0x74a   :  { %12894 = vpow2.f32 %v8938_v41  ;;  %v8944_v47 = vmul.f32 1.442695, %v8921_v51  ;;  %v12375_v51 = vld [vmem:[#allocation20 + $0x8] sm:$0xff]  }
 0x74b   :  { %v12879_v27 = vpop.eup %12878  ;;  %12896 = vpow2.f32 %v8940_v54  ;;  %v13363_v54 = vmov 0.0  }
 0x74c   :  { %v12881_v14 = vpop.eup %12880  ;;  %v8950_v42 = vadd.f32 1.0, %v12879_v27  ;;  %12898 = vpow2.f32 %v8942_v22  ;;  %10695 = vmatprep.subr.bf16.mxu1 %v13363_v54  ;;  %v12380_v22 = vld [vmem:[#allocation20 + $0x30] sm:$0xff]  }
 0x74d   :  { %v12883_v58 = vpop.eup %12882  ;;  %v8951_v6 = vadd.f32 1.0, %v12881_v14  ;;  %12900 = vpow2.f32 %v8944_v47  ;;  %v12381_v47 = vld [vmem:[#allocation20 + $0x38] sm:$0xff]  }
 0x74e   :  { %v12885_v24 = vpop.eup %12884  ;;  %12902 = vrcp.f32 %v8950_v42  ;;  %v8952_v48 = vadd.f32 1.0, %v12883_v58  ;;  %v10468_v14 = vld [vmem:[#allocation19] ss:$0 sm:$0xff] }
 0x74f   :  { %12904 = vrcp.f32 %v8951_v6  ;;  %v8953_v50 = vadd.f32 1.0, %v12885_v24 }
 0x750   :  { %v12887_v32 = vpop.eup %12886  ;;  %12906 = vrcp.f32 %v8952_v48 }
 0x751   :  { %v12889_v26 = vpop.eup %12888  ;;  %12908 = vrcp.f32 %v8953_v50  ;;  %v8970_v31 = vmul.f32 %v12887_v32, %v14821_v29 }
 0x752   :  { %v12891_v7 = vpop.eup %12890  ;;  %v8971_v12 = vmul.f32 %v12889_v26, %v14823_v49 }
 0x753   :  { %v12893_v61 = vpop.eup %12892  ;;  %v8972_v38 = vmul.f32 %v12891_v7, %v14826_v56 }
 0x754   :  { %v12895_v59 = vpop.eup %12894  ;;  %v8973_v3 = vmul.f32 %v12893_v61, %v14829_v52 }
 0x755   :  { %v12897_v0 = vpop.eup %12896  ;;  %v8982_v53 = vpack.c.bf16 %v8972_v38, %v8970_v31  ;;  %v8954_v44 = vadd.f32 1.0, %v12895_v59 }
 0x756   :  { %v12899_v57 = vpop.eup %12898  ;;  %v8955_v2 = vadd.f32 1.0, %v12897_v0  ;;  %v8983_v19 = vpack.c.bf16 %v8973_v3, %v8971_v12 }
 0x757   :  { %v12901_v63 = vpop.eup %12900  ;;  %12910 = vrcp.f32 %v8954_v44  ;;  %v8956_v10 = vadd.f32 1.0, %v12899_v57 }
 0x758   :  { %v12903_v13 = vpop.eup %12902  ;;  %12912 = vrcp.f32 %v8955_v2  ;;  %v8957_v8 = vadd.f32 1.0, %v12901_v63  ;;  %9155 = vmatprep.mubr.bf16.mxu1 %v8983_v19 }
 0x759   :  { %v12905_v29 = vpop.eup %12904  ;;  %12914 = vrcp.f32 %v8956_v10  ;;  %9156 = vmatmul.mubr.bf16.vlgmr.msra.gmra.mrb[92].mxu1 %v8982_v53  ;;  %v8974_v52 = vmul.f32 %v12903_v13, %v14833_v55 }
 0x75a   :  { %v12907_v56 = vpop.eup %12906  ;;  %12916 = vrcp.f32 %v8957_v8  ;;  %v8975_v11 = vmul.f32 %v12905_v29, %v14835_v35 }
 0x75b   :  { %v12909_v49 = vpop.eup %12908  ;;  %v8976_v30 = vmul.f32 %v12907_v56, %v14838_v15 }
 0x75c   :  { %v8977_v5 = vmul.f32 %v12909_v49, %v14841_v37  ;;  %v12374_v37 = vld [vmem:[#allocation20] sm:$0xff]  }
 0x75d   :  { %v8984_v25 = vpack.c.bf16 %v8976_v30, %v8974_v52  ;;  %10696 = vmatpush3.bf16.msra.mxu1 %v12374_v37 }
 0x75e   :  { %v8985_v45 = vpack.c.bf16 %v8977_v5, %v8975_v11  ;;  %10697 = vmatprep.subr.bf16.mxu1 %v13363_v54 }
 0x760   :  { %9163 = vmatprep.mubr.bf16.mxu1 %v8985_v45 }
 0x761   :  { %v12911_v20 = vpop.eup %12910  ;;  %9164 = vmatmul.mubr.bf16.gmra.mrb[96].mxu1 %v8984_v25 }
 0x762   :  { %v12913_v46 = vpop.eup %12912  ;;  %v8978_v33 = vmul.f32 %v12911_v20, %v14845_v23  ;;  %10698 = vmatpush3.bf16.msra.mxu1 %v12375_v51  ;;  %v12376_v23 = vld [vmem:[#allocation20 + $0x10] sm:$0xff]  }
 0x763   :  { %v12915_v36 = vpop.eup %12914  ;;  %v8979_v55 = vmul.f32 %v12913_v46, %v14847_v40  ;;  %10699 = vmatprep.subr.bf16.mxu1 %v13363_v54  ;;  %v12377_v40 = vld [vmem:[#allocation20 + $0x18] sm:$0xff]  }
 0x764   :  { %v12917_v1 = vpop.eup %12916  ;;  %v8980_v41 = vmul.f32 %v12915_v36, %v14850_v4  ;;  %v12378_v4 = vld [vmem:[#allocation20 + $0x20] sm:$0xff]  }
 0x765   :  { %v8981_v15 = vmul.f32 %v12917_v1, %v14853_v62  ;;  %v12379_v62 = vld [vmem:[#allocation20 + $0x28] sm:$0xff]  }
 0x766   :  { %v8986_v21 = vpack.c.bf16 %v8980_v41, %v8978_v33  ;;  %10700 = vmatpush3.bf16.msra.mxu1 %v12376_v23 }
 0x767   :  { %v8987_v35 = vpack.c.bf16 %v8981_v15, %v8979_v55  ;;  %10701 = vmatprep.subr.bf16.mxu1 %v13363_v54 }
 0x769   :  { %9171 = vmatprep.mubr.bf16.mxu1 %v8987_v35 }
 0x76a   :  { %9172 = vmatmul.mubr.bf16.gmra.mrb[100].mxu1 %v8986_v21 }
 0x76b   :  { %10702 = vmatpush3.bf16.msra.mxu1 %v12377_v40  ;;  %10711 = vmatprep.mubr.msk.bf16.mxu1 %vm13364_vm2, %v13363_v54 }
 0x76c   :  { %10703 = vmatprep.subr.bf16.mxu1 %v13363_v54 }
 0x76f   :  { %10704 = vmatpush3.bf16.msra.mxu1 %v12378_v4 }
 0x770   :  { %10705 = vmatprep.subr.bf16.mxu1 %v13363_v54 }
 0x773   :  { %10706 = vmatpush3.bf16.msra.mxu1 %v12379_v62 }
 0x774   :  { %10707 = vmatprep.subr.bf16.mxu1 %v13363_v54 }
 0x777   :  { %10708 = vmatpush3.bf16.msra.mxu1 %v12380_v22 }
 0x778   :  { %10709 = vmatprep.subr.bf16.mxu1 %v13363_v54 }
 0x77b   :  { %10710 = vmatpush3.bf16.msra.mxu1 %v12381_v47 }
 0x77c   :  { %10723 = vmatprep.subr.bf16.mxu1 %v13363_v54 }
 0x82c   :  { %v10655_v27 = vpop.f32.mrb[92].mxu1 }
 0x82d   :  { %v10656_v42 = vpop.f32.mrb[93].mxu1 }
 0x82e   :  { %v10657_v58 = vadd.f32 %v10656_v42, %v10655_v27  ;;  %v10658_v6 = vpop.f32.mrb[94].mxu1 }
 0x82f   :  { %v10659_v24 = vpop.f32.mrb[95].mxu1 }
 0x830   :  { %v9158_v48 = vadd.f32 %v10657_v58, %v10468_v14  ;;  %v10660_v50 = vadd.f32 %v10659_v24, %v10658_v6 }
 0x832   :  { %v9180_v32 = vsub.f32 0.0, %v9158_v48  ;;  %v9161_v26 = vadd.f32 %v10660_v50, %v10468_v14 }
 0x834   :  { %v9186_v7 = vmul.f32 1.442695, %v9180_v32  ;;  %v9181_v61 = vsub.f32 0.0, %v9161_v26  ;;  %v10661_v31 = vpop.f32.mrb[96].mxu1 }
 0x835   :  { %v10662_v38 = vpop.f32.mrb[97].mxu1 }
 0x836   :  { %12918 = vpow2.f32 %v9186_v7  ;;  %v9188_v59 = vmul.f32 1.442695, %v9181_v61  ;;  %v10663_v12 = vadd.f32 %v10662_v38, %v10661_v31  ;;  %v10664_v3 = vpop.f32.mrb[98].mxu1  ;;  %v12382_v7 = vld [vmem:[#allocation23] sm:$0xff]   ;;  %v12383_v61 = vld [vmem:[#allocation23 + $0x8] sm:$0xff]   ;;  %v12384_v31 = vld [vmem:[#allocation23 + $0x10] sm:$0xff]  }
 0x837   :  { %v10665_v0 = vpop.f32.mrb[99].mxu1  ;;  %v12385_v38 = vld [vmem:[#allocation23 + $0x18] sm:$0xff]  }
 0x838   :  { %12920 = vpow2.f32 %v9188_v59  ;;  %v9166_v53 = vadd.f32 %v10663_v12, %v10468_v14  ;;  %v10666_v44 = vadd.f32 %v10665_v0, %v10664_v3  ;;  %v12386_v59 = vld [vmem:[#allocation23 + $0x20] sm:$0xff]   ;;  %v12387_v12 = vld [vmem:[#allocation23 + $0x28] sm:$0xff]   ;;  %v12388_v3 = vld [vmem:[#allocation23 + $0x30] sm:$0xff]  }
 0x839   :  { %v12389_v0 = vld [vmem:[#allocation23 + $0x38] sm:$0xff]  }
 0x83a   :  { %v9182_v57 = vsub.f32 0.0, %v9166_v53  ;;  %v9169_v2 = vadd.f32 %v10666_v44, %v10468_v14 }
 0x83c   :  { %v9190_v19 = vmul.f32 1.442695, %v9182_v57  ;;  %v9183_v63 = vsub.f32 0.0, %v9169_v2 }
 0x83d   :  { %v10667_v10 = vpop.f32.mrb[100].mxu1 }
 0x83e   :  { %12922 = vpow2.f32 %v9190_v19  ;;  %v9192_v13 = vmul.f32 1.442695, %v9183_v63  ;;  %v10668_v8 = vpop.f32.mrb[101].mxu1 }
 0x83f   :  { %v10669_v29 = vadd.f32 %v10668_v8, %v10667_v10  ;;  %v10670_v56 = vpop.f32.mrb[102].mxu1 }
 0x840   :  { %v12919_v49 = vpop.eup %12918  ;;  %12924 = vpow2.f32 %v9192_v13  ;;  %v10671_v52 = vpop.f32.mrb[103].mxu1 }
 0x841   :  { %v9198_v30 = vadd.f32 1.0, %v12919_v49  ;;  %v9174_v11 = vadd.f32 %v10669_v29, %v10468_v14  ;;  %v10672_v5 = vadd.f32 %v10671_v52, %v10670_v56 }
 0x842   :  { %v12921_v25 = vpop.eup %12920 }
 0x843   :  { %12926 = vrcp.f32 %v9198_v30  ;;  %v9199_v45 = vadd.f32 1.0, %v12921_v25  ;;  %v9184_v20 = vsub.f32 0.0, %v9174_v11  ;;  %v9177_v46 = vadd.f32 %v10672_v5, %v10468_v14 }
 0x845   :  { %12928 = vrcp.f32 %v9199_v45  ;;  %v9194_v36 = vmul.f32 1.442695, %v9184_v20  ;;  %v9185_v1 = vsub.f32 0.0, %v9177_v46 }
 0x847   :  { %12930 = vpow2.f32 %v9194_v36  ;;  %v9196_v33 = vmul.f32 1.442695, %v9185_v1 }
 0x848   :  { %v12923_v41 = vpop.eup %12922 }
 0x849   :  { %v9200_v55 = vadd.f32 1.0, %v12923_v41  ;;  %12932 = vpow2.f32 %v9196_v33 }
 0x84a   :  { %v12925_v15 = vpop.eup %12924 }
 0x84b   :  { %12934 = vrcp.f32 %v9200_v55  ;;  %v9201_v21 = vadd.f32 1.0, %v12925_v15 }
 0x84d   :  { %v12927_v35 = vpop.eup %12926  ;;  %12936 = vrcp.f32 %v9201_v21 }
 0x84e   :  { %v9210_v51 = vmul.f32 %v12927_v35, %v9158_v48 }
 0x84f   :  { %v12929_v37 = vpop.eup %12928 }
 0x850   :  { %v9211_v23 = vmul.f32 %v12929_v37, %v9161_v26 }
 0x851   :  { %v12931_v40 = vpop.eup %12930 }
 0x852   :  { %v9216_v4 = vpack.c.bf16 %v9211_v23, %v9210_v51  ;;  %v9202_v62 = vadd.f32 1.0, %v12931_v40 }
 0x853   :  { %v12933_v22 = vpop.eup %12932 }
 0x854   :  { %12938 = vrcp.f32 %v9202_v62  ;;  %v9203_v47 = vadd.f32 1.0, %v12933_v22  ;;  %10712 = vmatmul.mubr.bf16.vlgmr.msra.gmra.mrb[104].mxu1 %v9216_v4 }
 0x855   :  { %v12935_v27 = vpop.eup %12934  ;;  %10715 = vmatprep.mubr.msk.bf16.mxu1 %vm13364_vm2, %v13363_v54  ;;  %10724 = vmatpush3.bf16.msra.mxu1 %v12382_v7 }
 0x856   :  { %12940 = vrcp.f32 %v9203_v47  ;;  %v9212_v42 = vmul.f32 %v12935_v27, %v9166_v53  ;;  %10725 = vmatprep.subr.bf16.mxu1 %v13363_v54  ;;  %v10485_v53 = vld [vmem:[#allocation22] ss:$0 sm:$0xff] }
 0x857   :  { %v12937_v14 = vpop.eup %12936 }
 0x858   :  { %v9213_v58 = vmul.f32 %v12937_v14, %v9169_v2 }
 0x859   :  { %10726 = vmatpush3.bf16.msra.mxu1 %v12383_v61 }
 0x85a   :  { %v9217_v6 = vpack.c.bf16 %v9213_v58, %v9212_v42  ;;  %10727 = vmatprep.subr.bf16.mxu1 %v13363_v54 }
 0x85c   :  { %10716 = vmatmul.mubr.bf16.gmra.mrb[108].mxu1 %v9217_v6 }
 0x85d   :  { %10719 = vmatprep.mubr.msk.bf16.mxu1 %vm13364_vm2, %v13363_v54  ;;  %10728 = vmatpush3.bf16.msra.mxu1 %v12384_v31 }
 0x85e   :  { %v12939_v24 = vpop.eup %12938  ;;  %10729 = vmatprep.subr.bf16.mxu1 %v13363_v54 }
 0x85f   :  { %v9214_v50 = vmul.f32 %v12939_v24, %v9174_v11 }
 0x860   :  { %v12941_v48 = vpop.eup %12940 }
 0x861   :  { %v9215_v32 = vmul.f32 %v12941_v48, %v9177_v46  ;;  %10730 = vmatpush3.bf16.msra.mxu1 %v12385_v38 }
 0x862   :  { %10731 = vmatprep.subr.bf16.mxu1 %v13363_v54 }
 0x863   :  { %v9218_v26 = vpack.c.bf16 %v9215_v32, %v9214_v50 }
 0x865   :  { %10720 = vmatmul.mubr.bf16.gmra.mrb[112].mxu1 %v9218_v26 }
 0x866   :  { %10739 = vmatprep.mubr.msk.bf16.mxu1 %vm13364_vm2, %v13363_v54  ;;  %10732 = vmatpush3.bf16.msra.mxu1 %v12386_v59 }
 0x867   :  { %10733 = vmatprep.subr.bf16.mxu1 %v13363_v54 }
 0x86a   :  { %10734 = vmatpush3.bf16.msra.mxu1 %v12387_v12 }
 0x86b   :  { %10735 = vmatprep.subr.bf16.mxu1 %v13363_v54 }
 0x86e   :  { %10736 = vmatpush3.bf16.msra.mxu1 %v12388_v3 }
 0x86f   :  { %10737 = vmatprep.subr.bf16.mxu1 %v13363_v54 }
 0x872   :  { %10738 = vmatpush3.bf16.msra.mxu1 %v12389_v0 }
 0x927   :  { %v9324_v44 = vpop.f32.mrb[104].mxu1 }
 0x928   :  { %v9325_v57 = vadd.f32 %v10485_v53, %v9324_v44  ;;  %v10713_v2 = vpop.f32.mrb[105].mxu1 }
 0x929   :  { %v9327_v19 = vpop.f32.mrb[106].mxu1 }
 0x92a   :  { %v9347_v63 = vsub.f32 0.0, %v9325_v57  ;;  %v9328_v10 = vadd.f32 %v10485_v53, %v9327_v19  ;;  %v10714_v13 = vpop.f32.mrb[107].mxu1  ;;  %v10494_v19 = vld [vmem:[#allocation25] ss:$0 sm:$0xff] }
 0x92c   :  { %v9353_v8 = vmul.f32 1.442695, %v9347_v63  ;;  %v9348_v29 = vsub.f32 0.0, %v9328_v10 }
 0x92e   :  { %12942 = vpow2.f32 %v9353_v8  ;;  %v9355_v56 = vmul.f32 1.442695, %v9348_v29 }
 0x92f   :  { %v9332_v49 = vpop.f32.mrb[108].mxu1 }
 0x930   :  { %12944 = vpow2.f32 %v9355_v56  ;;  %v9333_v52 = vadd.f32 %v10485_v53, %v9332_v49  ;;  %v10717_v30 = vpop.f32.mrb[109].mxu1 }
 0x931   :  { %v9335_v11 = vpop.f32.mrb[110].mxu1 }
 0x932   :  { %v9349_v5 = vsub.f32 0.0, %v9333_v52  ;;  %v9336_v25 = vadd.f32 %v10485_v53, %v9335_v11  ;;  %v10718_v45 = vpop.f32.mrb[111].mxu1 }
 0x934   :  { %v9357_v20 = vmul.f32 1.442695, %v9349_v5  ;;  %v9350_v46 = vsub.f32 0.0, %v9336_v25 }
 0x936   :  { %12946 = vpow2.f32 %v9357_v20  ;;  %v9359_v36 = vmul.f32 1.442695, %v9350_v46 }
 0x938   :  { %v12943_v1 = vpop.eup %12942  ;;  %12948 = vpow2.f32 %v9359_v36  ;;  %v9340_v33 = vpop.f32.mrb[112].mxu1 }
 0x939   :  { %v9365_v41 = vadd.f32 1.0, %v12943_v1  ;;  %v9341_v55 = vadd.f32 %v10485_v53, %v9340_v33  ;;  %v10721_v15 = vpop.f32.mrb[113].mxu1 }
 0x93a   :  { %v12945_v21 = vpop.eup %12944  ;;  %v9343_v35 = vpop.f32.mrb[114].mxu1 }
 0x93b   :  { %12950 = vrcp.f32 %v9365_v41  ;;  %v9366_v37 = vadd.f32 1.0, %v12945_v21  ;;  %v9351_v51 = vsub.f32 0.0, %v9341_v55  ;;  %v9344_v23 = vadd.f32 %v10485_v53, %v9343_v35  ;;  %v10722_v40 = vpop.f32.mrb[115].mxu1 }
 0x93d   :  { %12952 = vrcp.f32 %v9366_v37  ;;  %v9361_v4 = vmul.f32 1.442695, %v9351_v51  ;;  %v9352_v62 = vsub.f32 0.0, %v9344_v23 }
 0x93f   :  { %12954 = vpow2.f32 %v9361_v4  ;;  %v9363_v22 = vmul.f32 1.442695, %v9352_v62 }
 0x940   :  { %v12947_v47 = vpop.eup %12946 }
 0x941   :  { %v9367_v27 = vadd.f32 1.0, %v12947_v47  ;;  %12956 = vpow2.f32 %v9363_v22 }
 0x942   :  { %v12949_v14 = vpop.eup %12948 }
 0x943   :  { %12958 = vrcp.f32 %v9367_v27  ;;  %v9368_v42 = vadd.f32 1.0, %v12949_v14 }
 0x945   :  { %v12951_v58 = vpop.eup %12950  ;;  %12960 = vrcp.f32 %v9368_v42 }
 0x946   :  { %v9377_v24 = vmul.f32 %v12951_v58, %v9325_v57 }
 0x947   :  { %v12953_v6 = vpop.eup %12952 }
 0x948   :  { %v9378_v48 = vmul.f32 %v12953_v6, %v9328_v10 }
 0x949   :  { %v12955_v50 = vpop.eup %12954 }
 0x94a   :  { %v9383_v32 = vpack.c.bf16 %v9378_v48, %v9377_v24  ;;  %v9369_v26 = vadd.f32 1.0, %v12955_v50 }
 0x94b   :  { %v12957_v7 = vpop.eup %12956 }
 0x94c   :  { %v9386_v61 = vadd.bf16 %v9383_v32, %v6167_v39  ;;  %12962 = vrcp.f32 %v9369_v26  ;;  %v9370_v31 = vadd.f32 1.0, %v12957_v7 }
 0x94d   :  { %v12959_v38 = vpop.eup %12958 }
 0x94e   :  { %12964 = vrcp.f32 %v9370_v31  ;;  %10740 = vmatmul.mubr.bf16.vlgmr.msra.gmra.mrb[116].mxu1 %v9386_v61  ;;  %v9379_v12 = vmul.f32 %v12959_v38, %v9333_v52 }
 0x94f   :  { %v12961_v59 = vpop.eup %12960  ;;  %10743 = vmatprep.mubr.msk.bf16.mxu1 %vm13364_vm2, %v13363_v54 }
 0x950   :  { %v9380_v3 = vmul.f32 %v12961_v59, %v9336_v25 }
 0x952   :  { %v9384_v0 = vpack.c.bf16 %v9380_v3, %v9379_v12 }
 0x954   :  { %v9387_v53 = vadd.bf16 %v9384_v0, %v6168_v9 }
 0x956   :  { %v12963_v44 = vpop.eup %12962  ;;  %10744 = vmatmul.mubr.bf16.gmra.mrb[120].mxu1 %v9387_v53 }
 0x957   :  { %10747 = vmatprep.mubr.msk.bf16.mxu1 %vm13364_vm2, %v13363_v54  ;;  %v9381_v17 = vmul.f32 %v12963_v44, %v9341_v55 }
 0x958   :  { %v12965_v18 = vpop.eup %12964 }
 0x959   :  { %v9382_v39 = vmul.f32 %v12965_v18, %v9344_v23 }
 0x95b   :  { %v9385_v57 = vpack.c.bf16 %v9382_v39, %v9381_v17 }
 0x95d   :  { %v9388_v2 = vadd.bf16 %v9385_v57, %v6169_v60 }
 0x95f   :  { %10748 = vmatmul.mubr.bf16.gmra.mrb[124].mxu1 %v9388_v2 }
 0xa21   :  { %v9494_v63 = vpop.f32.mrb[116].mxu1 }
 0xa22   :  { %v9495_v10 = vadd.f32 %v10494_v19, %v9494_v63  ;;  %v10741_v13 = vpop.f32.mrb[117].mxu1 }
 0xa23   :  { %v9497_v43 = vpop.f32.mrb[118].mxu1 }
 0xa24   :  { %9517 = vst [vmem:[#allocation26] sm:$0xff] %v9495_v10  ;;  %v9498_v16 = vadd.f32 %v10494_v19, %v9497_v43  ;;  %v10742_v9 = vpop.f32.mrb[119].mxu1 }
 0xa26   :  { %9518 = vst [vmem:[#allocation26 + $0x8] sm:$0xff] %v9498_v16 }
 0xa29   :  { %v9502_v8 = vpop.f32.mrb[120].mxu1 }
 0xa2a   :  { %v9503_v54 = vadd.f32 %v10494_v19, %v9502_v8  ;;  %v10745_v29 = vpop.f32.mrb[121].mxu1 }
 0xa2b   :  { %v9505_v56 = vpop.f32.mrb[122].mxu1 }
 0xa2c   :  { %9519 = vst [vmem:[#allocation26 + $0x10] sm:$0xff] %v9503_v54  ;;  %v9506_v49 = vadd.f32 %v10494_v19, %v9505_v56  ;;  %v10746_v52 = vpop.f32.mrb[123].mxu1 }
 0xa2e   :  { %9520 = vst [vmem:[#allocation26 + $0x18] sm:$0xff] %v9506_v49 }
 0xa32   :  { %v9510_v28 = vpop.f32.mrb[124].mxu1 }
 0xa33   :  { %v9511_v34 = vadd.f32 %v10494_v19, %v9510_v28  ;;  %v10749_v60 = vpop.f32.mrb[125].mxu1 }
 0xa34   :  { %v9513_v30 = vpop.f32.mrb[126].mxu1 }
 0xa35   :  { %9521 = vst [vmem:[#allocation26 + $0x20] sm:$0xff] %v9511_v34  ;;  %v9514_v11 = vadd.f32 %v10494_v19, %v9513_v30  ;;  %v10750_v5 = vpop.f32.mrb[127].mxu1 }
 0xa37   :  { %9522 = vst [vmem:[#allocation26 + $0x28] sm:$0xff] %v9514_v11 }
 0xa38   :  { %13308 = shalt.err (!%p13305_p12)
}
 0xa39   :  { %s13309_s10 = scalar_lea.hbm %s14937_s16, 768 }
 0xa3a   :  { %p13310_p13 = scmp.ne.s32.totalorder %s14937_s16, %s13309_s10  ;;  %p13313_p0 = scmp.lt.u32.totalorder %s13309_s10, %s14937_s16 }
 0xa3c   :  { %p13315_p1 = pnand %p13313_p0, %p13310_p13 }
 0xa3e   :  { %13318 = shalt.err (!%p13315_p1)
}
 0xa3f   :  { %9534 = dma.vmem_to_hbm [thread:$0]  %s9529_s4, 768, %s14937_s16, [#allocation4], %s13343_s6, %s13343_s6, %s13344_s0  }
 0xa40   :  { %13335 = dma.done.wait [#allocation4], 768  }
 0xa41   :  { %13336 = vsyncadd [#allocation4], 4294966528 }
 0xa42   :  { %9538 = vsyncpa [#allocation3], 1 }
 0xa43   :  { %9539 = vsyncpa [#allocation6], 1 }
 0xa44   :  { %9540 = vsyncpa [#allocation9], 1 }
 0xa45   :  { %9541 = vsyncpa [#allocation12], 1 }
 0xa46   :  { %9542 = vsyncpa [#allocation15], 1 }
 0xa47   :  { %9543 = vsyncpa [#allocation18], 1 }
 0xa48   :  { %9544 = vsyncpa [#allocation21], 1 }
 0xa49   :  { %9545 = vsyncpa [#allocation24], 1 }
 0xa4a   :  { %9546 = vsyncpa [#allocation4], 1 }

</bundles_post_ra>
